<compile_context>
chip_gen: v6e
topology: v6e:2x2x1
jax: 0.10.0
libtpu: 0.0.40
codegen_flags: <defaults>
</compile_context>

<pallas_src>
import jax
import jax.numpy as jnp
from jax.experimental import pallas as pl
from jax.experimental.pallas import tpu as pltpu

B = 32         # total graphs per call
GRID = 2       # grid steps: 2 parallel steps -> both TCs on v7x, ~free on v5e/v6e
G = B // GRID  # graphs per grid step
N = 8          # nodes per graph (single-graph batch inside the module)
IN = 4         # input feature size (module hardcodes GraphNorm(4))
H = 32         # hidden_channels
E = 16         # edges per graph
EPS = 1e-5     # GraphNorm eps
STEPS = 3      # Set2Set processing steps

# ---- packed per-channel vector params: one param per row of a [24,128] slab
R_GN0W, R_GN0B, R_GN0S = 0, 1, 2
R_GN1W, R_GN1B, R_GN1S = 3, 4, 5
R_GN2W, R_GN2B, R_GN2S = 6, 7, 8
R_GN3W, R_GN3B, R_GN3S = 9, 10, 11
R_B1, R_B2, R_B3 = 12, 13, 14
R_A1, R_A2 = 15, 16
R_BLSTM = 17
VEC_ROWS = 24            # padded to a sublane multiple
VEC_LANES = 4 * H        # 128 exactly (lstm bias needs 4H lanes)

# ---- packed GCN weights: rows 0:IN = W1 (rest zero pad), H:2H = W2, 2H:3H = W3
GCNW_ROWS = 3 * H
# ---- packed LSTM weights: rows 0:H = W_fused = wih_q^T + whh^T, H:2H = wih_r^T
LSTMW_ROWS = 2 * H


# ---------------------------------------------------------------- kernel ----
def _graph_norm(x, w, b, s):
    # PyG GraphNorm, per graph (axis 1 = node axis), two-pass variance:
    #   out = x - s * mean ;  var = mean(out^2) ;  y = w * out / sqrt(var+eps) + b
    m = jnp.mean(x, axis=1, keepdims=True)
    out = x - s * m
    var = jnp.mean(out * out, axis=1, keepdims=True)
    return out * jax.lax.rsqrt(var + EPS) * w + b


def _prelu(x, a):
    return jnp.where(x > 0, x, a * x)


def encoder_kernel(x_ref, a_ref, gcnw_ref, lstmw_ref, vec_ref, o_ref):
    g, n, _ = x_ref.shape
    x = x_ref[...]                     # [G, N, IN]
    A = a_ref[...]                     # [G, N, N]

    def vrow(r, c):                    # static ref slice -> [1, c]
        return vec_ref[r:r + 1, 0:c]

    # ---- GraphNorm0 --------------------------------------------------------
    x = _graph_norm(x, vrow(R_GN0W, IN), vrow(R_GN0B, IN), vrow(R_GN0S, IN))

    # ---- conv1: A_hat first (IN << H), then flat [G*N, IN] @ W1 ------------
    ax = jnp.einsum('gij,gjf->gif', A, x, preferred_element_type=jnp.float32)
    xw = jnp.dot(ax.reshape(g * n, IN), gcnw_ref[0:IN, :],
                 preferred_element_type=jnp.float32)
    x = xw.reshape(g, n, H) + vrow(R_B1, H)
    x = _prelu(x, vrow(R_A1, H))
    x = _graph_norm(x, vrow(R_GN1W, H), vrow(R_GN1B, H), vrow(R_GN1S, H))

    # ---- conv2: flat X@W across graphs, per-graph aggregation --------------
    xw = jnp.dot(x.reshape(g * n, H), gcnw_ref[H:2 * H, :],
                 preferred_element_type=jnp.float32).reshape(g, n, H)
    x = jnp.einsum('gij,gjh->gih', A, xw,
                   preferred_element_type=jnp.float32) + vrow(R_B2, H)
    x = _prelu(x, vrow(R_A2, H))
    x = _graph_norm(x, vrow(R_GN2W, H), vrow(R_GN2B, H), vrow(R_GN2S, H))

    # ---- conv3 --------------------------------------------------------------
    xw = jnp.dot(x.reshape(g * n, H), gcnw_ref[2 * H:3 * H, :],
                 preferred_element_type=jnp.float32).reshape(g, n, H)
    x = jnp.einsum('gij,gjh->gih', A, xw,
                   preferred_element_type=jnp.float32) + vrow(R_B3, H)
    x = _graph_norm(x, vrow(R_GN3W, H), vrow(R_GN3B, H), vrow(R_GN3S, H))

    # ---- Set2Set(H, 3), batched over the G graphs (q == h is exploited:
    #      wih_q was folded into whh in the wrapper) ---------------------------
    wf = lstmw_ref[0:H, :]                 # [H, 4H]  wih_q^T + whh^T
    wr = lstmw_ref[H:2 * H, :]             # [H, 4H]  wih_r^T
    bl = vec_ref[R_BLSTM:R_BLSTM + 1, :]   # [1, 4H]  bias_ih + bias_hh

    h = jnp.zeros((g, H), jnp.float32)
    c = jnp.zeros((g, H), jnp.float32)
    r = jnp.zeros((g, H), jnp.float32)
    for _ in range(STEPS):                 # static unroll (3 steps)
        gates = (jnp.dot(h, wf, preferred_element_type=jnp.float32)
                 + jnp.dot(r, wr, preferred_element_type=jnp.float32)
                 + bl)                     # [G, 4H], torch gate order i,f,g,o
        sg = jax.nn.sigmoid(gates)         # full 4H lanes through the EUP once
        tg = jnp.tanh(gates)
        i_g = sg[:, 0:H]
        f_g = sg[:, H:2 * H]
        g_g = tg[:, 2 * H:3 * H]
        o_g = sg[:, 3 * H:4 * H]
        c = f_g * c + i_g * g_g
        h = o_g * jnp.tanh(c)              # q == h
        # attention: per-graph softmax over the N nodes
        e = jnp.sum(x * h[:, None, :], axis=-1, keepdims=True)   # [G, N, 1]
        e = e - jnp.max(e, axis=1, keepdims=True)
        p = jnp.exp(e)
        a = p / jnp.sum(p, axis=1, keepdims=True)                 # exact softmax
        r = jnp.sum(a * x, axis=1)                                # [G, H]

    # q_star = concat([q, r], dim=-1): one lane-contiguous [G, 2H] store
    o_ref[...] = jnp.concatenate([h, r], axis=-1)


# ---------------------------------------------------------------- wrapper ---
def build_gcn_adj(edge_index, num_nodes):
    # Dense GCN-normalized adjacency with self loops (glue, not hot path).
    # TODO(synk): sparse edge_index scatter has no clean Pallas equivalent at
    # this size; densification is done in plain JAX outside the kernel.
    src, dst = edge_index[0], edge_index[1]
    A = jnp.zeros((num_nodes, num_nodes), jnp.float32)
    A = A.at[dst, src].add(1.0)                 # message src -> dst
    A = A + jnp.eye(num_nodes, dtype=jnp.float32)
    deg = jnp.sum(A, axis=1)                    # degree incl. self loop
    dinv = jnp.where(deg > 0, 1.0 / jnp.sqrt(deg), 0.0)
    return dinv[:, None] * A * dinv[None, :]


def pack_params(key):
    """Random-init module parameters, packed into 3 dense kernel buffers."""
    ks = jax.random.split(key, 6)
    w1 = 0.1 * jax.random.normal(ks[0], (IN, H), jnp.float32)
    w2 = 0.1 * jax.random.normal(ks[1], (H, H), jnp.float32)
    w3 = 0.1 * jax.random.normal(ks[2], (H, H), jnp.float32)
    # torch LSTM(in=2H, hid=H): weight_ih [4H,2H], weight_hh [4H,H]
    wih = 0.1 * jax.random.normal(ks[3], (4 * H, 2 * H), jnp.float32)
    whh = 0.1 * jax.random.normal(ks[4], (4 * H, H), jnp.float32)
    b_ih = 0.01 * jax.random.normal(ks[5], (4 * H,), jnp.float32)
    b_hh = jnp.zeros((4 * H,), jnp.float32)

    # stacked GCN weights, 8-aligned slots
    gcnw = jnp.zeros((GCNW_ROWS, H), jnp.float32)
    gcnw = gcnw.at[0:IN, :].set(w1)
    gcnw = gcnw.at[H:2 * H, :].set(w2)
    gcnw = gcnw.at[2 * H:3 * H, :].set(w3)

    # stacked LSTM weights; fold wih_q into whh since input q == hidden h
    wih_t = wih.T                                   # [2H, 4H]
    whh_t = whh.T                                   # [H, 4H]
    lstmw = jnp.concatenate([wih_t[:H, :] + whh_t, wih_t[H:, :]], axis=0)

    # per-channel vectors: one param per row of a [VEC_ROWS, 128] slab
    vec = jnp.zeros((VEC_ROWS, VEC_LANES), jnp.float32)

    def put(v_, row, arr):
        return v_.at[row, 0:arr.shape[0]].set(arr)

    for row_w, row_b, row_s, ch in ((R_GN0W, R_GN0B, R_GN0S, IN),
                                    (R_GN1W, R_GN1B, R_GN1S, H),
                                    (R_GN2W, R_GN2B, R_GN2S, H),
                                    (R_GN3W, R_GN3B, R_GN3S, H)):
        vec = put(vec, row_w, jnp.ones((ch,), jnp.float32))    # GraphNorm weight
        vec = put(vec, row_b, jnp.zeros((ch,), jnp.float32))   # GraphNorm bias
        vec = put(vec, row_s, jnp.ones((ch,), jnp.float32))    # mean_scale
    vec = put(vec, R_B1, jnp.zeros((H,), jnp.float32))
    vec = put(vec, R_B2, jnp.zeros((H,), jnp.float32))
    vec = put(vec, R_B3, jnp.zeros((H,), jnp.float32))
    vec = put(vec, R_A1, jnp.full((H,), 0.25, jnp.float32))    # PReLU init
    vec = put(vec, R_A2, jnp.full((H,), 0.25, jnp.float32))
    vec = put(vec, R_BLSTM, b_ih + b_hh)
    return gcnw, lstmw, vec


@jax.jit
def encoder_forward(x, a_hat, gcnw, lstmw, vec):
    nb = x.shape[0]
    assert nb % GRID == 0
    g = nb // GRID
    flops = nb * (2 * N * N * IN + 2 * N * IN * H               # conv1 (A-first)
                  + 2 * (2 * N * H * H + 2 * N * N * H)         # conv2, conv3
                  + STEPS * (2 * 2 * H * 4 * H + 4 * N * H))    # Set2Set
    cost = pl.CostEstimate(
        flops=flops,
        transcendentals=nb * (4 * N + STEPS * (2 * 4 * H + H + N)),
        bytes_accessed=4 * (x.size + a_hat.size + gcnw.size + lstmw.size
                            + vec.size + nb * 2 * H))
    return pl.pallas_call(
        encoder_kernel,
        out_shape=jax.ShapeDtypeStruct((nb, 2 * H), jnp.float32),
        grid_spec=pltpu.PrefetchScalarGridSpec(
            num_scalar_prefetch=0,
            grid=(GRID,),
            in_specs=[
                pl.BlockSpec((g, N, IN), lambda b: (b, 0, 0)),      # G graphs of x
                pl.BlockSpec((g, N, N), lambda b: (b, 0, 0)),       # G graphs of A_hat
                pl.BlockSpec((GCNW_ROWS, H), lambda b: (0, 0)),     # shared, resident
                pl.BlockSpec((LSTMW_ROWS, 4 * H), lambda b: (0, 0)),
                pl.BlockSpec((VEC_ROWS, VEC_LANES), lambda b: (0, 0)),
            ],
            out_specs=pl.BlockSpec((g, 2 * H), lambda b: (b, 0)),
        ),
        compiler_params=pltpu.CompilerParams(
            dimension_semantics=("parallel",)),
        cost_estimate=cost,
    )(x, a_hat, gcnw, lstmw, vec)


# ------------------------------------------------------------------ main ----
if __name__ == "__main__":
    key = jax.random.PRNGKey(0)
    kx, ke, kpar = jax.random.split(key, 3)

    x = jax.random.normal(kx, (B, N, IN), jnp.float32)

    # random per-graph edge lists (no self loops), densified + GCN-normalized
    esrc = jax.random.randint(jax.random.fold_in(ke, 0), (B, E), 0, N)
    eoff = jax.random.randint(jax.random.fold_in(ke, 1), (B, E), 1, N)
    edst = (esrc + eoff) % N
    edge_index = jnp.stack([esrc, edst], axis=1).astype(jnp.int32)   # [B, 2, E]
    a_hat = jax.vmap(build_gcn_adj, in_axes=(0, None))(edge_index, N)

    gcnw, lstmw, vec = pack_params(kpar)

    out = encoder_forward(x, a_hat, gcnw, lstmw, vec)
    jax.block_until_ready(out)
    assert out.shape == (B, 2 * H) and out.dtype == jnp.float32
    assert bool(jnp.all(jnp.isfinite(out)))
    print("KERNEL_OK")
</pallas_src>

<mosaic_0001>
module attributes {stable_mosaic.version = 11 : i64} {
  func.func @encoder_kernel(%arg0: i32, %arg1: memref<16x8x4xf32, #tpu.memory_space<vmem>>, %arg2: memref<16x8x8xf32, #tpu.memory_space<vmem>>, %arg3: memref<96x32xf32, #tpu.memory_space<vmem>>, %arg4: memref<64x128xf32, #tpu.memory_space<vmem>>, %arg5: memref<24x128xf32, #tpu.memory_space<vmem>>, %arg6: memref<16x64xf32, #tpu.memory_space<vmem>>) attributes {dimension_semantics = [#tpu.dimension_semantics<parallel>], iteration_bounds = array<i64: 2>, scalar_prefetch = 0 : i64, scratch_operands = 0 : i64, tpu.core_type = #tpu.core_type<tc>, window_params = [{transform_indices = @transform_0, window_bounds = array<i64: 16, 8, 4>}, {transform_indices = @transform_1, window_bounds = array<i64: 16, 8, 8>}, {pipeline_mode = #tpu.pipeline_mode<synchronous>, transform_indices = @transform_2, window_bounds = array<i64: 96, 32>}, {pipeline_mode = #tpu.pipeline_mode<synchronous>, transform_indices = @transform_3, window_bounds = array<i64: 64, 128>}, {pipeline_mode = #tpu.pipeline_mode<synchronous>, transform_indices = @transform_4, window_bounds = array<i64: 24, 128>}, {transform_indices = @transform_5, window_bounds = array<i64: 16, 64>}]} {
    %c0 = arith.constant 0 : index
    %c0_0 = arith.constant 0 : index
    %c0_1 = arith.constant 0 : index
    %0 = vector.load %arg1[%c0, %c0_0, %c0_1] : memref<16x8x4xf32, #tpu.memory_space<vmem>>, vector<16x8x4xf32>
    %c0_2 = arith.constant 0 : index
    %c0_3 = arith.constant 0 : index
    %c0_4 = arith.constant 0 : index
    %1 = vector.load %arg2[%c0_2, %c0_3, %c0_4] : memref<16x8x8xf32, #tpu.memory_space<vmem>>, vector<16x8x8xf32>
    %c0_5 = arith.constant 0 : index
    %c0_6 = arith.constant 0 : index
    %2 = vector.load %arg5[%c0_5, %c0_6] : memref<24x128xf32, #tpu.memory_space<vmem>>, vector<1x4xf32>
    %c1 = arith.constant 1 : index
    %c0_7 = arith.constant 0 : index
    %3 = vector.load %arg5[%c1, %c0_7] : memref<24x128xf32, #tpu.memory_space<vmem>>, vector<1x4xf32>
    %c2 = arith.constant 2 : index
    %c0_8 = arith.constant 0 : index
    %4 = vector.load %arg5[%c2, %c0_8] : memref<24x128xf32, #tpu.memory_space<vmem>>, vector<1x4xf32>
    %cst = arith.constant dense<0.000000e+00> : vector<16x4xf32>
    %5 = vector.multi_reduction <add>, %0, %cst [1] : vector<16x8x4xf32> to vector<16x4xf32>
    %6 = vector.shape_cast %5 : vector<16x4xf32> to vector<16x1x4xf32>
    %cst_9 = arith.constant 8.000000e+00 : f32
    %7 = vector.broadcast %cst_9 : f32 to vector<16x1x4xf32>
    %8 = arith.divf %6, %7 : vector<16x1x4xf32>
    %9 = vector.shape_cast %4 : vector<1x4xf32> to vector<1x1x4xf32>
    %10 = vector.broadcast %9 : vector<1x1x4xf32> to vector<16x1x4xf32>
    %11 = arith.mulf %10, %8 : vector<16x1x4xf32>
    %12 = vector.broadcast %11 : vector<16x1x4xf32> to vector<16x8x4xf32>
    %13 = arith.subf %0, %12 : vector<16x8x4xf32>
    %14 = arith.mulf %13, %13 : vector<16x8x4xf32>
    %cst_10 = arith.constant dense<0.000000e+00> : vector<16x4xf32>
    %15 = vector.multi_reduction <add>, %14, %cst_10 [1] : vector<16x8x4xf32> to vector<16x4xf32>
    %16 = vector.shape_cast %15 : vector<16x4xf32> to vector<16x1x4xf32>
    %cst_11 = arith.constant 8.000000e+00 : f32
    %17 = vector.broadcast %cst_11 : f32 to vector<16x1x4xf32>
    %18 = arith.divf %16, %17 : vector<16x1x4xf32>
    %cst_12 = arith.constant 9.99999974E-6 : f32
    %19 = vector.broadcast %cst_12 : f32 to vector<16x1x4xf32>
    %20 = arith.addf %18, %19 : vector<16x1x4xf32>
    %21 = math.rsqrt %20 : vector<16x1x4xf32>
    %22 = vector.broadcast %21 : vector<16x1x4xf32> to vector<16x8x4xf32>
    %23 = arith.mulf %13, %22 : vector<16x8x4xf32>
    %24 = vector.shape_cast %2 : vector<1x4xf32> to vector<1x1x4xf32>
    %25 = vector.broadcast %24 : vector<1x1x4xf32> to vector<16x8x4xf32>
    %26 = arith.mulf %23, %25 : vector<16x8x4xf32>
    %27 = vector.shape_cast %3 : vector<1x4xf32> to vector<1x1x4xf32>
    %28 = vector.broadcast %27 : vector<1x1x4xf32> to vector<16x8x4xf32>
    %29 = arith.addf %26, %28 : vector<16x8x4xf32>
    "tpu.trace_start"() <{level = 10 : i32, message = "gij,gjf->gif"}> : () -> ()
    %cst_13 = arith.constant dense<0.000000e+00> : vector<16x8x4xf32>
    %30 = tpu.matmul %1, %29, %cst_13 {dimension_numbers = #tpu.dot_dimension_numbers<[2], [1], [1], [2], [0, 0, 0, 1, 1, 2], [0], [0]>} : vector<16x8x8xf32>, vector<16x8x4xf32>, vector<16x8x4xf32> -> vector<16x8x4xf32>
    "tpu.trace_stop"() : () -> ()
    %31 = vector.shape_cast %30 : vector<16x8x4xf32> to vector<128x4xf32>
    %c0_14 = arith.constant 0 : index
    %c0_15 = arith.constant 0 : index
    %32 = vector.load %arg3[%c0_14, %c0_15] : memref<96x32xf32, #tpu.memory_space<vmem>>, vector<4x32xf32>
    %cst_16 = arith.constant dense<0.000000e+00> : vector<128x32xf32>
    %33 = tpu.matmul %31, %32, %cst_16 {dimension_numbers = #tpu.dot_dimension_numbers<[1], [0], [0], [1], [0, 0, 1, 1], [], []>} : vector<128x4xf32>, vector<4x32xf32>, vector<128x32xf32> -> vector<128x32xf32>
    %34 = vector.shape_cast %33 : vector<128x32xf32> to vector<16x8x32xf32>
    %c12 = arith.constant 12 : index
    %c0_17 = arith.constant 0 : index
    %35 = vector.load %arg5[%c12, %c0_17] : memref<24x128xf32, #tpu.memory_space<vmem>>, vector<1x32xf32>
    %36 = vector.shape_cast %35 : vector<1x32xf32> to vector<1x1x32xf32>
    %37 = vector.broadcast %36 : vector<1x1x32xf32> to vector<16x8x32xf32>
    %38 = arith.addf %34, %37 : vector<16x8x32xf32>
    %c15 = arith.constant 15 : index
    %c0_18 = arith.constant 0 : index
    %39 = vector.load %arg5[%c15, %c0_18] : memref<24x128xf32, #tpu.memory_space<vmem>>, vector<1x32xf32>
    %cst_19 = arith.constant 0.000000e+00 : f32
    %40 = vector.broadcast %cst_19 : f32 to vector<16x8x32xf32>
    %41 = arith.cmpf ogt, %38, %40 : vector<16x8x32xf32>
    %42 = vector.shape_cast %39 : vector<1x32xf32> to vector<1x1x32xf32>
    %43 = vector.broadcast %42 : vector<1x1x32xf32> to vector<16x8x32xf32>
    %44 = arith.mulf %43, %38 : vector<16x8x32xf32>
    %45 = arith.select %41, %38, %44 : vector<16x8x32xi1>, vector<16x8x32xf32>
    %c3 = arith.constant 3 : index
    %c0_20 = arith.constant 0 : index
    %46 = vector.load %arg5[%c3, %c0_20] : memref<24x128xf32, #tpu.memory_space<vmem>>, vector<1x32xf32>
    %c4 = arith.constant 4 : index
    %c0_21 = arith.constant 0 : index
    %47 = vector.load %arg5[%c4, %c0_21] : memref<24x128xf32, #tpu.memory_space<vmem>>, vector<1x32xf32>
    %c5 = arith.constant 5 : index
    %c0_22 = arith.constant 0 : index
    %48 = vector.load %arg5[%c5, %c0_22] : memref<24x128xf32, #tpu.memory_space<vmem>>, vector<1x32xf32>
    %cst_23 = arith.constant dense<0.000000e+00> : vector<16x32xf32>
    %49 = vector.multi_reduction <add>, %45, %cst_23 [1] : vector<16x8x32xf32> to vector<16x32xf32>
    %50 = vector.shape_cast %49 : vector<16x32xf32> to vector<16x1x32xf32>
    %cst_24 = arith.constant 8.000000e+00 : f32
    %51 = vector.broadcast %cst_24 : f32 to vector<16x1x32xf32>
    %52 = arith.divf %50, %51 : vector<16x1x32xf32>
    %53 = vector.shape_cast %48 : vector<1x32xf32> to vector<1x1x32xf32>
    %54 = vector.broadcast %53 : vector<1x1x32xf32> to vector<16x1x32xf32>
    %55 = arith.mulf %54, %52 : vector<16x1x32xf32>
    %56 = vector.broadcast %55 : vector<16x1x32xf32> to vector<16x8x32xf32>
    %57 = arith.subf %45, %56 : vector<16x8x32xf32>
    %58 = arith.mulf %57, %57 : vector<16x8x32xf32>
    %cst_25 = arith.constant dense<0.000000e+00> : vector<16x32xf32>
    %59 = vector.multi_reduction <add>, %58, %cst_25 [1] : vector<16x8x32xf32> to vector<16x32xf32>
    %60 = vector.shape_cast %59 : vector<16x32xf32> to vector<16x1x32xf32>
    %cst_26 = arith.constant 8.000000e+00 : f32
    %61 = vector.broadcast %cst_26 : f32 to vector<16x1x32xf32>
    %62 = arith.divf %60, %61 : vector<16x1x32xf32>
    %cst_27 = arith.constant 9.99999974E-6 : f32
    %63 = vector.broadcast %cst_27 : f32 to vector<16x1x32xf32>
    %64 = arith.addf %62, %63 : vector<16x1x32xf32>
    %65 = math.rsqrt %64 : vector<16x1x32xf32>
    %66 = vector.broadcast %65 : vector<16x1x32xf32> to vector<16x8x32xf32>
    %67 = arith.mulf %57, %66 : vector<16x8x32xf32>
    %68 = vector.shape_cast %46 : vector<1x32xf32> to vector<1x1x32xf32>
    %69 = vector.broadcast %68 : vector<1x1x32xf32> to vector<16x8x32xf32>
    %70 = arith.mulf %67, %69 : vector<16x8x32xf32>
    %71 = vector.shape_cast %47 : vector<1x32xf32> to vector<1x1x32xf32>
    %72 = vector.broadcast %71 : vector<1x1x32xf32> to vector<16x8x32xf32>
    %73 = arith.addf %70, %72 : vector<16x8x32xf32>
    %74 = vector.shape_cast %73 : vector<16x8x32xf32> to vector<128x32xf32>
    %c32 = arith.constant 32 : index
    %c0_28 = arith.constant 0 : index
    %75 = vector.load %arg3[%c32, %c0_28] : memref<96x32xf32, #tpu.memory_space<vmem>>, vector<32x32xf32>
    %cst_29 = arith.constant dense<0.000000e+00> : vector<128x32xf32>
    %76 = tpu.matmul %74, %75, %cst_29 {dimension_numbers = #tpu.dot_dimension_numbers<[1], [0], [0], [1], [0, 0, 1, 1], [], []>} : vector<128x32xf32>, vector<32x32xf32>, vector<128x32xf32> -> vector<128x32xf32>
    %77 = vector.shape_cast %76 : vector<128x32xf32> to vector<16x8x32xf32>
    "tpu.trace_start"() <{level = 10 : i32, message = "gij,gjh->gih"}> : () -> ()
    %cst_30 = arith.constant dense<0.000000e+00> : vector<16x8x32xf32>
    %78 = tpu.matmul %1, %77, %cst_30 {dimension_numbers = #tpu.dot_dimension_numbers<[2], [1], [1], [2], [0, 0, 0, 1, 1, 2], [0], [0]>} : vector<16x8x8xf32>, vector<16x8x32xf32>, vector<16x8x32xf32> -> vector<16x8x32xf32>
    "tpu.trace_stop"() : () -> ()
    %c13 = arith.constant 13 : index
    %c0_31 = arith.constant 0 : index
    %79 = vector.load %arg5[%c13, %c0_31] : memref<24x128xf32, #tpu.memory_space<vmem>>, vector<1x32xf32>
    %80 = vector.shape_cast %79 : vector<1x32xf32> to vector<1x1x32xf32>
    %81 = vector.broadcast %80 : vector<1x1x32xf32> to vector<16x8x32xf32>
    %82 = arith.addf %78, %81 : vector<16x8x32xf32>
    %c16 = arith.constant 16 : index
    %c0_32 = arith.constant 0 : index
    %83 = vector.load %arg5[%c16, %c0_32] : memref<24x128xf32, #tpu.memory_space<vmem>>, vector<1x32xf32>
    %cst_33 = arith.constant 0.000000e+00 : f32
    %84 = vector.broadcast %cst_33 : f32 to vector<16x8x32xf32>
    %85 = arith.cmpf ogt, %82, %84 : vector<16x8x32xf32>
    %86 = vector.shape_cast %83 : vector<1x32xf32> to vector<1x1x32xf32>
    %87 = vector.broadcast %86 : vector<1x1x32xf32> to vector<16x8x32xf32>
    %88 = arith.mulf %87, %82 : vector<16x8x32xf32>
    %89 = arith.select %85, %82, %88 : vector<16x8x32xi1>, vector<16x8x32xf32>
    %c6 = arith.constant 6 : index
    %c0_34 = arith.constant 0 : index
    %90 = vector.load %arg5[%c6, %c0_34] : memref<24x128xf32, #tpu.memory_space<vmem>>, vector<1x32xf32>
    %c7 = arith.constant 7 : index
    %c0_35 = arith.constant 0 : index
    %91 = vector.load %arg5[%c7, %c0_35] : memref<24x128xf32, #tpu.memory_space<vmem>>, vector<1x32xf32>
    %c8 = arith.constant 8 : index
    %c0_36 = arith.constant 0 : index
    %92 = vector.load %arg5[%c8, %c0_36] : memref<24x128xf32, #tpu.memory_space<vmem>>, vector<1x32xf32>
    %cst_37 = arith.constant dense<0.000000e+00> : vector<16x32xf32>
    %93 = vector.multi_reduction <add>, %89, %cst_37 [1] : vector<16x8x32xf32> to vector<16x32xf32>
    %94 = vector.shape_cast %93 : vector<16x32xf32> to vector<16x1x32xf32>
    %cst_38 = arith.constant 8.000000e+00 : f32
    %95 = vector.broadcast %cst_38 : f32 to vector<16x1x32xf32>
    %96 = arith.divf %94, %95 : vector<16x1x32xf32>
    %97 = vector.shape_cast %92 : vector<1x32xf32> to vector<1x1x32xf32>
    %98 = vector.broadcast %97 : vector<1x1x32xf32> to vector<16x1x32xf32>
    %99 = arith.mulf %98, %96 : vector<16x1x32xf32>
    %100 = vector.broadcast %99 : vector<16x1x32xf32> to vector<16x8x32xf32>
    %101 = arith.subf %89, %100 : vector<16x8x32xf32>
    %102 = arith.mulf %101, %101 : vector<16x8x32xf32>
    %cst_39 = arith.constant dense<0.000000e+00> : vector<16x32xf32>
    %103 = vector.multi_reduction <add>, %102, %cst_39 [1] : vector<16x8x32xf32> to vector<16x32xf32>
    %104 = vector.shape_cast %103 : vector<16x32xf32> to vector<16x1x32xf32>
    %cst_40 = arith.constant 8.000000e+00 : f32
    %105 = vector.broadcast %cst_40 : f32 to vector<16x1x32xf32>
    %106 = arith.divf %104, %105 : vector<16x1x32xf32>
    %cst_41 = arith.constant 9.99999974E-6 : f32
    %107 = vector.broadcast %cst_41 : f32 to vector<16x1x32xf32>
    %108 = arith.addf %106, %107 : vector<16x1x32xf32>
    %109 = math.rsqrt %108 : vector<16x1x32xf32>
    %110 = vector.broadcast %109 : vector<16x1x32xf32> to vector<16x8x32xf32>
    %111 = arith.mulf %101, %110 : vector<16x8x32xf32>
    %112 = vector.shape_cast %90 : vector<1x32xf32> to vector<1x1x32xf32>
    %113 = vector.broadcast %112 : vector<1x1x32xf32> to vector<16x8x32xf32>
    %114 = arith.mulf %111, %113 : vector<16x8x32xf32>
    %115 = vector.shape_cast %91 : vector<1x32xf32> to vector<1x1x32xf32>
    %116 = vector.broadcast %115 : vector<1x1x32xf32> to vector<16x8x32xf32>
    %117 = arith.addf %114, %116 : vector<16x8x32xf32>
    %118 = vector.shape_cast %117 : vector<16x8x32xf32> to vector<128x32xf32>
    %c64 = arith.constant 64 : index
    %c0_42 = arith.constant 0 : index
    %119 = vector.load %arg3[%c64, %c0_42] : memref<96x32xf32, #tpu.memory_space<vmem>>, vector<32x32xf32>
    %cst_43 = arith.constant dense<0.000000e+00> : vector<128x32xf32>
    %120 = tpu.matmul %118, %119, %cst_43 {dimension_numbers = #tpu.dot_dimension_numbers<[1], [0], [0], [1], [0, 0, 1, 1], [], []>} : vector<128x32xf32>, vector<32x32xf32>, vector<128x32xf32> -> vector<128x32xf32>
    %121 = vector.shape_cast %120 : vector<128x32xf32> to vector<16x8x32xf32>
    "tpu.trace_start"() <{level = 10 : i32, message = "gij,gjh->gih"}> : () -> ()
    %cst_44 = arith.constant dense<0.000000e+00> : vector<16x8x32xf32>
    %122 = tpu.matmul %1, %121, %cst_44 {dimension_numbers = #tpu.dot_dimension_numbers<[2], [1], [1], [2], [0, 0, 0, 1, 1, 2], [0], [0]>} : vector<16x8x8xf32>, vector<16x8x32xf32>, vector<16x8x32xf32> -> vector<16x8x32xf32>
    "tpu.trace_stop"() : () -> ()
    %c14 = arith.constant 14 : index
    %c0_45 = arith.constant 0 : index
    %123 = vector.load %arg5[%c14, %c0_45] : memref<24x128xf32, #tpu.memory_space<vmem>>, vector<1x32xf32>
    %124 = vector.shape_cast %123 : vector<1x32xf32> to vector<1x1x32xf32>
    %125 = vector.broadcast %124 : vector<1x1x32xf32> to vector<16x8x32xf32>
    %126 = arith.addf %122, %125 : vector<16x8x32xf32>
    %c9 = arith.constant 9 : index
    %c0_46 = arith.constant 0 : index
    %127 = vector.load %arg5[%c9, %c0_46] : memref<24x128xf32, #tpu.memory_space<vmem>>, vector<1x32xf32>
    %c10 = arith.constant 10 : index
    %c0_47 = arith.constant 0 : index
    %128 = vector.load %arg5[%c10, %c0_47] : memref<24x128xf32, #tpu.memory_space<vmem>>, vector<1x32xf32>
    %c11 = arith.constant 11 : index
    %c0_48 = arith.constant 0 : index
    %129 = vector.load %arg5[%c11, %c0_48] : memref<24x128xf32, #tpu.memory_space<vmem>>, vector<1x32xf32>
    %cst_49 = arith.constant dense<0.000000e+00> : vector<16x32xf32>
    %130 = vector.multi_reduction <add>, %126, %cst_49 [1] : vector<16x8x32xf32> to vector<16x32xf32>
    %131 = vector.shape_cast %130 : vector<16x32xf32> to vector<16x1x32xf32>
    %cst_50 = arith.constant 8.000000e+00 : f32
    %132 = vector.broadcast %cst_50 : f32 to vector<16x1x32xf32>
    %133 = arith.divf %131, %132 : vector<16x1x32xf32>
    %134 = vector.shape_cast %129 : vector<1x32xf32> to vector<1x1x32xf32>
    %135 = vector.broadcast %134 : vector<1x1x32xf32> to vector<16x1x32xf32>
    %136 = arith.mulf %135, %133 : vector<16x1x32xf32>
    %137 = vector.broadcast %136 : vector<16x1x32xf32> to vector<16x8x32xf32>
    %138 = arith.subf %126, %137 : vector<16x8x32xf32>
    %139 = arith.mulf %138, %138 : vector<16x8x32xf32>
    %cst_51 = arith.constant dense<0.000000e+00> : vector<16x32xf32>
    %140 = vector.multi_reduction <add>, %139, %cst_51 [1] : vector<16x8x32xf32> to vector<16x32xf32>
    %141 = vector.shape_cast %140 : vector<16x32xf32> to vector<16x1x32xf32>
    %cst_52 = arith.constant 8.000000e+00 : f32
    %142 = vector.broadcast %cst_52 : f32 to vector<16x1x32xf32>
    %143 = arith.divf %141, %142 : vector<16x1x32xf32>
    %cst_53 = arith.constant 9.99999974E-6 : f32
    %144 = vector.broadcast %cst_53 : f32 to vector<16x1x32xf32>
    %145 = arith.addf %143, %144 : vector<16x1x32xf32>
    %146 = math.rsqrt %145 : vector<16x1x32xf32>
    %147 = vector.broadcast %146 : vector<16x1x32xf32> to vector<16x8x32xf32>
    %148 = arith.mulf %138, %147 : vector<16x8x32xf32>
    %149 = vector.shape_cast %127 : vector<1x32xf32> to vector<1x1x32xf32>
    %150 = vector.broadcast %149 : vector<1x1x32xf32> to vector<16x8x32xf32>
    %151 = arith.mulf %148, %150 : vector<16x8x32xf32>
    %152 = vector.shape_cast %128 : vector<1x32xf32> to vector<1x1x32xf32>
    %153 = vector.broadcast %152 : vector<1x1x32xf32> to vector<16x8x32xf32>
    %154 = arith.addf %151, %153 : vector<16x8x32xf32>
    %c0_54 = arith.constant 0 : index
    %c0_55 = arith.constant 0 : index
    %155 = vector.load %arg4[%c0_54, %c0_55] : memref<64x128xf32, #tpu.memory_space<vmem>>, vector<32x128xf32>
    %c32_56 = arith.constant 32 : index
    %c0_57 = arith.constant 0 : index
    %156 = vector.load %arg4[%c32_56, %c0_57] : memref<64x128xf32, #tpu.memory_space<vmem>>, vector<32x128xf32>
    %c17 = arith.constant 17 : index
    %c0_58 = arith.constant 0 : index
    %157 = vector.load %arg5[%c17, %c0_58] : memref<24x128xf32, #tpu.memory_space<vmem>>, vector<1x128xf32>
    %cst_59 = arith.constant 0.000000e+00 : f32
    %158 = vector.broadcast %cst_59 : f32 to vector<16x32xf32>
    %cst_60 = arith.constant 0.000000e+00 : f32
    %159 = vector.broadcast %cst_60 : f32 to vector<16x32xf32>
    %cst_61 = arith.constant 0.000000e+00 : f32
    %160 = vector.broadcast %cst_61 : f32 to vector<16x32xf32>
    %cst_62 = arith.constant dense<0.000000e+00> : vector<16x128xf32>
    %161 = tpu.matmul %158, %155, %cst_62 {dimension_numbers = #tpu.dot_dimension_numbers<[1], [0], [0], [1], [0, 0, 1, 1], [], []>} : vector<16x32xf32>, vector<32x128xf32>, vector<16x128xf32> -> vector<16x128xf32>
    %cst_63 = arith.constant dense<0.000000e+00> : vector<16x128xf32>
    %162 = tpu.matmul %160, %156, %cst_63 {dimension_numbers = #tpu.dot_dimension_numbers<[1], [0], [0], [1], [0, 0, 1, 1], [], []>} : vector<16x32xf32>, vector<32x128xf32>, vector<16x128xf32> -> vector<16x128xf32>
    %163 = arith.addf %161, %162 : vector<16x128xf32>
    %164 = vector.broadcast %157 : vector<1x128xf32> to vector<16x128xf32>
    %165 = arith.addf %163, %164 : vector<16x128xf32>
    %166 = arith.negf %165 : vector<16x128xf32>
    %167 = math.exp %166 : vector<16x128xf32>
    %cst_64 = arith.constant 1.000000e+00 : f32
    %168 = vector.broadcast %cst_64 : f32 to vector<16x128xf32>
    %169 = arith.addf %168, %167 : vector<16x128xf32>
    %170 = arith.divf %168, %169 : vector<16x128xf32>
    %171 = math.tanh %165 : vector<16x128xf32>
    %172 = vector.extract_strided_slice %170 {offsets = [0, 0], sizes = [16, 32], strides = [1, 1]} : vector<16x128xf32> to vector<16x32xf32>
    %173 = vector.extract_strided_slice %170 {offsets = [0, 32], sizes = [16, 32], strides = [1, 1]} : vector<16x128xf32> to vector<16x32xf32>
    %174 = vector.extract_strided_slice %171 {offsets = [0, 64], sizes = [16, 32], strides = [1, 1]} : vector<16x128xf32> to vector<16x32xf32>
    %175 = vector.extract_strided_slice %170 {offsets = [0, 96], sizes = [16, 32], strides = [1, 1]} : vector<16x128xf32> to vector<16x32xf32>
    %176 = arith.mulf %173, %159 : vector<16x32xf32>
    %177 = arith.mulf %172, %174 : vector<16x32xf32>
    %178 = arith.addf %176, %177 : vector<16x32xf32>
    %179 = math.tanh %178 : vector<16x32xf32>
    %180 = arith.mulf %175, %179 : vector<16x32xf32>
    %181 = vector.shape_cast %180 : vector<16x32xf32> to vector<16x1x32xf32>
    %182 = vector.broadcast %181 : vector<16x1x32xf32> to vector<16x8x32xf32>
    %183 = arith.mulf %154, %182 : vector<16x8x32xf32>
    %cst_65 = arith.constant dense<0.000000e+00> : vector<16x8xf32>
    %184 = vector.multi_reduction <add>, %183, %cst_65 [2] : vector<16x8x32xf32> to vector<16x8xf32>
    %185 = vector.shape_cast %184 : vector<16x8xf32> to vector<16x8x1xf32>
    %cst_66 = arith.constant dense<0xFF800000> : vector<16x1xf32>
    %186 = vector.multi_reduction <maximumf>, %185, %cst_66 [1] : vector<16x8x1xf32> to vector<16x1xf32>
    %187 = vector.shape_cast %186 : vector<16x1xf32> to vector<16x1x1xf32>
    %188 = vector.broadcast %187 : vector<16x1x1xf32> to vector<16x8x1xf32>
    %189 = arith.subf %185, %188 : vector<16x8x1xf32>
    %190 = math.exp %189 : vector<16x8x1xf32>
    %cst_67 = arith.constant dense<0.000000e+00> : vector<16x1xf32>
    %191 = vector.multi_reduction <add>, %190, %cst_67 [1] : vector<16x8x1xf32> to vector<16x1xf32>
    %192 = vector.shape_cast %191 : vector<16x1xf32> to vector<16x1x1xf32>
    %193 = vector.broadcast %192 : vector<16x1x1xf32> to vector<16x8x1xf32>
    %194 = arith.divf %190, %193 : vector<16x8x1xf32>
    %195 = vector.broadcast %194 : vector<16x8x1xf32> to vector<16x8x32xf32>
    %196 = arith.mulf %195, %154 : vector<16x8x32xf32>
    %cst_68 = arith.constant dense<0.000000e+00> : vector<16x32xf32>
    %197 = vector.multi_reduction <add>, %196, %cst_68 [1] : vector<16x8x32xf32> to vector<16x32xf32>
    %cst_69 = arith.constant dense<0.000000e+00> : vector<16x128xf32>
    %198 = tpu.matmul %180, %155, %cst_69 {dimension_numbers = #tpu.dot_dimension_numbers<[1], [0], [0], [1], [0, 0, 1, 1], [], []>} : vector<16x32xf32>, vector<32x128xf32>, vector<16x128xf32> -> vector<16x128xf32>
    %cst_70 = arith.constant dense<0.000000e+00> : vector<16x128xf32>
    %199 = tpu.matmul %197, %156, %cst_70 {dimension_numbers = #tpu.dot_dimension_numbers<[1], [0], [0], [1], [0, 0, 1, 1], [], []>} : vector<16x32xf32>, vector<32x128xf32>, vector<16x128xf32> -> vector<16x128xf32>
    %200 = arith.addf %198, %199 : vector<16x128xf32>
    %201 = vector.broadcast %157 : vector<1x128xf32> to vector<16x128xf32>
    %202 = arith.addf %200, %201 : vector<16x128xf32>
    %203 = arith.negf %202 : vector<16x128xf32>
    %204 = math.exp %203 : vector<16x128xf32>
    %cst_71 = arith.constant 1.000000e+00 : f32
    %205 = vector.broadcast %cst_71 : f32 to vector<16x128xf32>
    %206 = arith.addf %205, %204 : vector<16x128xf32>
    %207 = arith.divf %205, %206 : vector<16x128xf32>
    %208 = math.tanh %202 : vector<16x128xf32>
    %209 = vector.extract_strided_slice %207 {offsets = [0, 0], sizes = [16, 32], strides = [1, 1]} : vector<16x128xf32> to vector<16x32xf32>
    %210 = vector.extract_strided_slice %207 {offsets = [0, 32], sizes = [16, 32], strides = [1, 1]} : vector<16x128xf32> to vector<16x32xf32>
    %211 = vector.extract_strided_slice %208 {offsets = [0, 64], sizes = [16, 32], strides = [1, 1]} : vector<16x128xf32> to vector<16x32xf32>
    %212 = vector.extract_strided_slice %207 {offsets = [0, 96], sizes = [16, 32], strides = [1, 1]} : vector<16x128xf32> to vector<16x32xf32>
    %213 = arith.mulf %210, %178 : vector<16x32xf32>
    %214 = arith.mulf %209, %211 : vector<16x32xf32>
    %215 = arith.addf %213, %214 : vector<16x32xf32>
    %216 = math.tanh %215 : vector<16x32xf32>
    %217 = arith.mulf %212, %216 : vector<16x32xf32>
    %218 = vector.shape_cast %217 : vector<16x32xf32> to vector<16x1x32xf32>
    %219 = vector.broadcast %218 : vector<16x1x32xf32> to vector<16x8x32xf32>
    %220 = arith.mulf %154, %219 : vector<16x8x32xf32>
    %cst_72 = arith.constant dense<0.000000e+00> : vector<16x8xf32>
    %221 = vector.multi_reduction <add>, %220, %cst_72 [2] : vector<16x8x32xf32> to vector<16x8xf32>
    %222 = vector.shape_cast %221 : vector<16x8xf32> to vector<16x8x1xf32>
    %cst_73 = arith.constant dense<0xFF800000> : vector<16x1xf32>
    %223 = vector.multi_reduction <maximumf>, %222, %cst_73 [1] : vector<16x8x1xf32> to vector<16x1xf32>
    %224 = vector.shape_cast %223 : vector<16x1xf32> to vector<16x1x1xf32>
    %225 = vector.broadcast %224 : vector<16x1x1xf32> to vector<16x8x1xf32>
    %226 = arith.subf %222, %225 : vector<16x8x1xf32>
    %227 = math.exp %226 : vector<16x8x1xf32>
    %cst_74 = arith.constant dense<0.000000e+00> : vector<16x1xf32>
    %228 = vector.multi_reduction <add>, %227, %cst_74 [1] : vector<16x8x1xf32> to vector<16x1xf32>
    %229 = vector.shape_cast %228 : vector<16x1xf32> to vector<16x1x1xf32>
    %230 = vector.broadcast %229 : vector<16x1x1xf32> to vector<16x8x1xf32>
    %231 = arith.divf %227, %230 : vector<16x8x1xf32>
    %232 = vector.broadcast %231 : vector<16x8x1xf32> to vector<16x8x32xf32>
    %233 = arith.mulf %232, %154 : vector<16x8x32xf32>
    %cst_75 = arith.constant dense<0.000000e+00> : vector<16x32xf32>
    %234 = vector.multi_reduction <add>, %233, %cst_75 [1] : vector<16x8x32xf32> to vector<16x32xf32>
    %cst_76 = arith.constant dense<0.000000e+00> : vector<16x128xf32>
    %235 = tpu.matmul %217, %155, %cst_76 {dimension_numbers = #tpu.dot_dimension_numbers<[1], [0], [0], [1], [0, 0, 1, 1], [], []>} : vector<16x32xf32>, vector<32x128xf32>, vector<16x128xf32> -> vector<16x128xf32>
    %cst_77 = arith.constant dense<0.000000e+00> : vector<16x128xf32>
    %236 = tpu.matmul %234, %156, %cst_77 {dimension_numbers = #tpu.dot_dimension_numbers<[1], [0], [0], [1], [0, 0, 1, 1], [], []>} : vector<16x32xf32>, vector<32x128xf32>, vector<16x128xf32> -> vector<16x128xf32>
    %237 = arith.addf %235, %236 : vector<16x128xf32>
    %238 = vector.broadcast %157 : vector<1x128xf32> to vector<16x128xf32>
    %239 = arith.addf %237, %238 : vector<16x128xf32>
    %240 = arith.negf %239 : vector<16x128xf32>
    %241 = math.exp %240 : vector<16x128xf32>
    %cst_78 = arith.constant 1.000000e+00 : f32
    %242 = vector.broadcast %cst_78 : f32 to vector<16x128xf32>
    %243 = arith.addf %242, %241 : vector<16x128xf32>
    %244 = arith.divf %242, %243 : vector<16x128xf32>
    %245 = math.tanh %239 : vector<16x128xf32>
    %246 = vector.extract_strided_slice %244 {offsets = [0, 0], sizes = [16, 32], strides = [1, 1]} : vector<16x128xf32> to vector<16x32xf32>
    %247 = vector.extract_strided_slice %244 {offsets = [0, 32], sizes = [16, 32], strides = [1, 1]} : vector<16x128xf32> to vector<16x32xf32>
    %248 = vector.extract_strided_slice %245 {offsets = [0, 64], sizes = [16, 32], strides = [1, 1]} : vector<16x128xf32> to vector<16x32xf32>
    %249 = vector.extract_strided_slice %244 {offsets = [0, 96], sizes = [16, 32], strides = [1, 1]} : vector<16x128xf32> to vector<16x32xf32>
    %250 = arith.mulf %247, %215 : vector<16x32xf32>
    %251 = arith.mulf %246, %248 : vector<16x32xf32>
    %252 = arith.addf %250, %251 : vector<16x32xf32>
    %253 = math.tanh %252 : vector<16x32xf32>
    %254 = arith.mulf %249, %253 : vector<16x32xf32>
    %255 = vector.shape_cast %254 : vector<16x32xf32> to vector<16x1x32xf32>
    %256 = vector.broadcast %255 : vector<16x1x32xf32> to vector<16x8x32xf32>
    %257 = arith.mulf %154, %256 : vector<16x8x32xf32>
    %cst_79 = arith.constant dense<0.000000e+00> : vector<16x8xf32>
    %258 = vector.multi_reduction <add>, %257, %cst_79 [2] : vector<16x8x32xf32> to vector<16x8xf32>
    %259 = vector.shape_cast %258 : vector<16x8xf32> to vector<16x8x1xf32>
    %cst_80 = arith.constant dense<0xFF800000> : vector<16x1xf32>
    %260 = vector.multi_reduction <maximumf>, %259, %cst_80 [1] : vector<16x8x1xf32> to vector<16x1xf32>
    %261 = vector.shape_cast %260 : vector<16x1xf32> to vector<16x1x1xf32>
    %262 = vector.broadcast %261 : vector<16x1x1xf32> to vector<16x8x1xf32>
    %263 = arith.subf %259, %262 : vector<16x8x1xf32>
    %264 = math.exp %263 : vector<16x8x1xf32>
    %cst_81 = arith.constant dense<0.000000e+00> : vector<16x1xf32>
    %265 = vector.multi_reduction <add>, %264, %cst_81 [1] : vector<16x8x1xf32> to vector<16x1xf32>
    %266 = vector.shape_cast %265 : vector<16x1xf32> to vector<16x1x1xf32>
    %267 = vector.broadcast %266 : vector<16x1x1xf32> to vector<16x8x1xf32>
    %268 = arith.divf %264, %267 : vector<16x8x1xf32>
    %269 = vector.broadcast %268 : vector<16x8x1xf32> to vector<16x8x32xf32>
    %270 = arith.mulf %269, %154 : vector<16x8x32xf32>
    %cst_82 = arith.constant dense<0.000000e+00> : vector<16x32xf32>
    %271 = vector.multi_reduction <add>, %270, %cst_82 [1] : vector<16x8x32xf32> to vector<16x32xf32>
    %272 = tpu.concatenate %254, %271 in 1 : vector<16x32xf32>, vector<16x32xf32> -> vector<16x64xf32>
    %c0_83 = arith.constant 0 : index
    %c0_84 = arith.constant 0 : index
    %273 = vector.load %arg6[%c0_83, %c0_84] : memref<16x64xf32, #tpu.memory_space<vmem>>, vector<16x64xf32>
    tpu.vector_store %arg6[%c0_83, %c0_84], %272 {strides = array<i32>} : memref<16x64xf32, #tpu.memory_space<vmem>>, vector<16x64xf32>,
    return
  }
  func.func @transform_0(%arg0: i32) -> (i32, i32, i32) {
    %c0_i32 = arith.constant 0 : i32
    %c0_i32_0 = arith.constant 0 : i32
    %c0_i32_1 = arith.constant 0 : i32
    return %arg0, %c0_i32, %c0_i32_0 : i32, i32, i32
  }
  func.func @transform_1(%arg0: i32) -> (i32, i32, i32) {
    %c0_i32 = arith.constant 0 : i32
    %c0_i32_0 = arith.constant 0 : i32
    %c0_i32_1 = arith.constant 0 : i32
    return %arg0, %c0_i32, %c0_i32_0 : i32, i32, i32
  }
  func.func @transform_2(%arg0: i32) -> (i32, i32) {
    %c0_i32 = arith.constant 0 : i32
    %c0_i32_0 = arith.constant 0 : i32
    %c0_i32_1 = arith.constant 0 : i32
    return %c0_i32, %c0_i32_0 : i32, i32
  }
  func.func @transform_3(%arg0: i32) -> (i32, i32) {
    %c0_i32 = arith.constant 0 : i32
    %c0_i32_0 = arith.constant 0 : i32
    %c0_i32_1 = arith.constant 0 : i32
    return %c0_i32, %c0_i32_0 : i32, i32
  }
  func.func @transform_4(%arg0: i32) -> (i32, i32) {
    %c0_i32 = arith.constant 0 : i32
    %c0_i32_0 = arith.constant 0 : i32
    %c0_i32_1 = arith.constant 0 : i32
    return %c0_i32, %c0_i32_0 : i32, i32
  }
  func.func @transform_5(%arg0: i32) -> (i32, i32) {
    %c0_i32 = arith.constant 0 : i32
    %c0_i32_0 = arith.constant 0 : i32
    return %arg0, %c0_i32 : i32, i32
  }
}

</mosaic_0001>

<bundles_post_ra>
// kernel: encoder_forward.1
= control target key start
LH: loop header
LB: loop body
LE: loop exit
PB: predicated region body
PF: predicated region fallthrough
CT: control target
= control target key end

     0   :  { %10 = vsyncpa [#allocation3], 0  ;;  %s13069_s0 = inlined_call_operand.vmem [shape: f32[32,8,4], index: 0, kind: input, shape index: {}]   ;;  %s13070_s1 = inlined_call_operand.vmem [shape: f32[32,8,8], index: 1, kind: input, shape index: {}]   ;;  %s13071_s2 = inlined_call_operand.vmem [shape: f32[96,32], index: 2, kind: input, shape index: {}]   ;;  %s13072_s3 = inlined_call_operand.vmem [shape: f32[64,128], index: 3, kind: input, shape index: {}]   ;;  %s13073_s4 = inlined_call_operand.vmem [shape: f32[24,128], index: 4, kind: input, shape index: {}]   ;;  %s13074_s5 = inlined_call_operand.hbm [shape: f32[32,64], index: 5, kind: output, shape index: {}]  }
   0x1   :  { %12 = vsyncpa [#allocation3 + $0x1], 0  ;;  %s10408_s18 = smov 0   ;;  %s10410_s19 = smov 0  }
   0x2   :  { %s10412_s20 = smov 0   ;;  %s10414_s21 = smov 0  }
   0x3 LB: > { %s10429_s22 = sadd.s32 4294967295, %s10368_s21   ;;  %s9127_s23 = sadd.s32 4294967294, %s10368_s21   ;;  %s10368_s21 = sphi %s10414_s21, %s13086_s21   ;;  %s10364_s20 = sphi %s10412_s20, %s13085_s20   ;;  %s10360_s19 = sphi %s10410_s19, %s13084_s19   ;;  %s10356_s18 = sphi %s10408_s18, %s13083_s18  }
   0x4   : > { %s10433_s24 = sadd.s32 1, %s10368_s21   ;;  %s140_s25 = sadd.s32 1, %s10364_s20 }
   0x5   : > { %s137_s26 = ssub.s32 %s10368_s21, %s10433_s24  ;;  %p150_p0 = scmp.ne.s32.totalorder %s10364_s20, %s10360_s19 }
   0x6   : > { %p138_p1 = scmp.eq.s32.totalorder %s137_s26, 0  ;;  %p151_p2 = scmp.eq.s32.totalorder %s10429_s22, 1 }
   0x7   : > { %p156_p3 = scmp.ne.s32.totalorder %s10360_s19, %s10356_s18  ;;  %p157_p4 = scmp.eq.s32.totalorder %s9127_s23, 1 }
   0x8   : > { %s10444_s27 = scalar_select %p138_p1, %s10364_s20, %s140_s25  }
   0x9   : > { %p10446_p5 = por %p151_p2, %p150_p0  ;;  %p10450_p6 = por %p157_p4, %p156_p3 }
   0xa   : > { %p9130_p7 = scmp.ge.s32.totalorder %s10368_s21, 1  ;;  %p202_p8 = scmp.lt.s32.totalorder %s10368_s21, 3 }
   0xc   : > { %p203_p9 = pnand %p9130_p7, %p202_p8 }
   0xe   : > { %206 = sbr.rel (%p203_p9) target bundleno = 4370 (0x1112), region = 40 }
  0x13   : > { %s9132_s30 = sshll.u32 %s10429_s22, 4  ;;  %v10370_v0 = vmov 0.0   ;;  %v429_v1 = vlaneseq  ;;  %vm10371_vm0 = vmmov 0   ;;  %vm283_vm1 = vcmask 31744   ;;  %v10521_v56 = vld [vmem:[%s13073_s4 + $0x2] sm:$0x1] }
  0x14   : > { %9456 = vmatprep.subr.mxu0 %v10370_v0  ;;  %9461 = vmatprep.subr.mxu1 %v10370_v0  ;;  %p236_p10 = scmp.lt.s32.totalorder %s9132_s30, 31  ;;  %vm741_vm2 = vcmask 64512   ;;  %vm1959_vm3 = vcmask 1043456   ;;  %vm2185_vm5 = vcmask 261120   ;;  %s10372_s13 = smov 64  }
  0x15   : > { %9458 = vmatprep.mubr.msk.f32.mxu0 %vm10371_vm0, %v10370_v0  ;;  %9463 = vmatprep.mubr.msk.f32.mxu1 %vm10371_vm0, %v10370_v0  ;;  %v10473_v2 = vshrl.u32 %v429_v1, 7  ;;  %s10373_s14 = smov 32   ;;  %s9266_s25 = sshll.u32 %s10429_s22, 8 }
  0x16   : > { %s13088_s30 = smov (!%p236_p10, %s9132_s30), 31  ;;  %s10375_s22 = smov [#allocation2]  }
  0x17   : > { %s9133_s6 = sshll.u32 %s13088_s30, 3  ;;  %v10497_v13 = vsub.s32 0, %v10473_v2  ;;  %s13026_s30 = scalar_lea.hbm %s13074_s5, %s9266_s25 }
  0x18   : > { %s10471_s9 = scalar_lea.vmem %s13069_s0, %s9133_s6  ;;  %s10648_s23 = scalar_lea.vmem %s13070_s1, %s9133_s6 }
  0x19   : > { %v10476_v3 = vld [vmem:[%s10471_s9] sm:$0xff]  ;;  %v10479_v4 = vld [vmem:[%s10471_s9 + $0x8] sm:$0xff]  ;;  %v10486_v7 = vld [vmem:[%s10471_s9 + $0x10] sm:$0xff]  ;;  %13080 = vst [vmem:[#allocation5_spill] sm:$0xff] %v10497_v13  ;;  %s10312_s8 = sshll.u32 %s10375_s22, 4  ;;  %s10313_s8 = int_to_ptr.vmem [resolvable:$false] %s10312_s8 }
  0x1a   : > { %v284_v5 = vsel %vm283_vm1, %v10476_v3, 0.0  ;;  %v291_v6 = vsel %vm283_vm1, %v10479_v4, 0.0  ;;  %v298_v10 = vsel %vm283_vm1, %v10486_v7, 0.0  ;;  %v10491_v11 = vld [vmem:[%s10471_s9 + $0x18] sm:$0xff]  ;;  %v10494_v12 = vld [vmem:[%s10471_s9 + $0x20] sm:$0xff]  ;;  %v10504_v17 = vld [vmem:[%s10471_s9 + $0x28] sm:$0xff] }
  0x1b   : > { %v285_v8 = vrot.slane %v284_v5, 4  ;;  %v292_v9 = vrot.slane %v291_v6, 4  ;;  %v299_v14 = vrot.slane %v298_v10, 4  ;;  %v305_v15 = vsel %vm283_vm1, %v10491_v11, 0.0  ;;  %v10507_v22 = vld [vmem:[%s10471_s9 + $0x30] sm:$0xff]  ;;  %v10510_v23 = vld [vmem:[%s10471_s9 + $0x38] sm:$0xff] }
  0x1c   : > { %v312_v16 = vsel %vm283_vm1, %v10494_v12, 0.0  ;;  %v306_v20 = vrot.slane %v305_v15, 4  ;;  %v319_v25 = vsel %vm283_vm1, %v10504_v17, 0.0  ;;  %v326_v26 = vsel %vm283_vm1, %v10507_v22, 0.0 }
  0x1d   : > { %v286_v18 = vadd.f32 %v285_v8, %v284_v5  ;;  %v293_v19 = vadd.f32 %v292_v9, %v291_v6  ;;  %v313_v21 = vrot.slane %v312_v16, 4  ;;  %v300_v24 = vadd.f32 %v299_v14, %v298_v10 }
  0x1e   : > { %v333_v27 = vsel %vm283_vm1, %v10510_v23, 0.0  ;;  %v307_v30 = vadd.f32 %v306_v20, %v305_v15  ;;  %v320_v33 = vrot.slane %v319_v25, 4  ;;  %v327_v34 = vrot.slane %v326_v26, 4 }
  0x1f   : > { %v287_v28 = vrot.slane %v286_v18, 2  ;;  %v294_v29 = vrot.slane %v293_v19, 2  ;;  %v314_v31 = vadd.f32 %v313_v21, %v312_v16  ;;  %v301_v32 = vrot.slane %v300_v24, 2 }
  0x20   : > { %v334_v35 = vrot.slane %v333_v27, 4  ;;  %v308_v38 = vrot.slane %v307_v30, 2  ;;  %v321_v41 = vadd.f32 %v320_v33, %v319_v25  ;;  %v328_v42 = vadd.f32 %v327_v34, %v326_v26 }
  0x21   : > { %v288_v36 = vadd.f32 %v287_v28, %v286_v18  ;;  %v295_v37 = vadd.f32 %v294_v29, %v293_v19  ;;  %v315_v39 = vrot.slane %v314_v31, 2  ;;  %v302_v40 = vadd.f32 %v301_v32, %v300_v24 }
  0x22   : > { %v335_v43 = vadd.f32 %v334_v35, %v333_v27  ;;  %v309_v46 = vadd.f32 %v308_v38, %v307_v30  ;;  %v322_v49 = vrot.slane %v321_v41, 2  ;;  %v329_v50 = vrot.slane %v328_v42, 2 }
  0x23   : > { %v289_v44 = vrot.slane %v288_v36, 1  ;;  %v296_v45 = vrot.slane %v295_v37, 1  ;;  %v316_v47 = vadd.f32 %v315_v39, %v314_v31  ;;  %v303_v48 = vrot.slane %v302_v40, 1 }
  0x24   : > { %v336_v51 = vrot.slane %v335_v43, 2  ;;  %v310_v54 = vrot.slane %v309_v46, 1  ;;  %v323_v58 = vadd.f32 %v322_v49, %v321_v41  ;;  %v330_v59 = vadd.f32 %v329_v50, %v328_v42 }
  0x25   : > { %v290_v52 = vadd.f32 %v289_v44, %v288_v36  ;;  %v297_v53 = vadd.f32 %v296_v45, %v295_v37  ;;  %v317_v55 = vrot.slane %v316_v47, 1  ;;  %v304_v57 = vadd.f32 %v303_v48, %v302_v40 }
  0x26   : > { %v337_v60 = vadd.f32 %v336_v51, %v335_v43  ;;  %v311_v63 = vadd.f32 %v310_v54, %v309_v46  ;;  %v324_v6 = vrot.slane %v323_v58, 1  ;;  %v331_v8 = vrot.slane %v330_v59, 1 }
  0x27   : > { %v397_v61 = vmul.f32 0.125, %v290_v52  ;;  %v398_v62 = vmul.f32 0.125, %v297_v53  ;;  %v318_v1 = vadd.f32 %v317_v55, %v316_v47  ;;  %v399_v5 = vmul.f32 0.125, %v304_v57 }
  0x28   : > { %v338_v9 = vrot.slane %v337_v60, 1  ;;  %v400_v15 = vmul.f32 0.125, %v311_v63  ;;  %v325_v19 = vadd.f32 %v324_v6, %v323_v58  ;;  %v332_v20 = vadd.f32 %v331_v8, %v330_v59 }
  0x29   : > { %v413_v10 = vmul.f32 %v397_v61, %v10521_v56  ;;  %v414_v14 = vmul.f32 %v398_v62, %v10521_v56  ;;  %v401_v16 = vmul.f32 0.125, %v318_v1  ;;  %v415_v18 = vmul.f32 %v399_v5, %v10521_v56 }
  0x2a   : > { %v339_v21 = vadd.f32 %v338_v9, %v337_v60  ;;  %v416_v26 = vmul.f32 %v400_v15, %v10521_v56  ;;  %v402_v29 = vmul.f32 0.125, %v325_v19  ;;  %v403_v30 = vmul.f32 0.125, %v332_v20 }
  0x2b   : > { %v432_v24 = vrot.slane %v413_v10, %v10497_v13  ;;  %v436_v25 = vrot.slane %v414_v14, %v10497_v13  ;;  %v417_v27 = vmul.f32 %v401_v16, %v10521_v56  ;;  %v440_v28 = vrot.slane %v415_v18, %v10497_v13 }
  0x2c   : > { %v404_v31 = vmul.f32 0.125, %v339_v21  ;;  %v444_v34 = vrot.slane %v416_v26, %v10497_v13  ;;  %v418_v37 = vmul.f32 %v402_v29, %v10521_v56  ;;  %v419_v38 = vmul.f32 %v403_v30, %v10521_v56 }
  0x2d   : > { %v10532_v32 = vsub.f32 %v10476_v3, %v432_v24  ;;  %v10535_v33 = vsub.f32 %v10479_v4, %v436_v25  ;;  %v448_v35 = vrot.slane %v417_v27, %v10497_v13  ;;  %v10540_v36 = vsub.f32 %v10486_v7, %v440_v28 }
  0x2e   : > { %v420_v39 = vmul.f32 %v404_v31, %v10521_v56  ;;  %v10550_v40 = vsub.f32 %v10491_v11, %v444_v34  ;;  %v452_v42 = vrot.slane %v418_v37, %v10497_v13  ;;  %v456_v43 = vrot.slane %v419_v38, %v10497_v13 }
  0x2f   : > { %v509_v3 = vmul.f32 %v10532_v32, %v10532_v32  ;;  %v510_v4 = vmul.f32 %v10535_v33, %v10535_v33  ;;  %v10553_v41 = vsub.f32 %v10494_v12, %v448_v35  ;;  %v511_v7 = vmul.f32 %v10540_v36, %v10540_v36 }
  0x30   : > { %v460_v44 = vrot.slane %v420_v39, %v10497_v13  ;;  %v512_v11 = vmul.f32 %v10550_v40, %v10550_v40  ;;  %v10568_v50 = vsub.f32 %v10504_v17, %v452_v42  ;;  %v10573_v54 = vsub.f32 %v10507_v22, %v456_v43 }
  0x31   : > { %v525_v45 = vsel %vm283_vm1, %v509_v3, 0.0  ;;  %v532_v46 = vsel %vm283_vm1, %v510_v4, 0.0  ;;  %v513_v12 = vmul.f32 %v10553_v41, %v10553_v41  ;;  %v539_v49 = vsel %vm283_vm1, %v511_v7, 0.0 }
  0x32   : > { %v526_v47 = vrot.slane %v525_v45, 4  ;;  %v533_v48 = vrot.slane %v532_v46, 4  ;;  %v540_v51 = vrot.slane %v539_v49, 4  ;;  %v546_v52 = vsel %vm283_vm1, %v512_v11, 0.0 }
  0x33   : > { %v553_v53 = vsel %vm283_vm1, %v513_v12, 0.0  ;;  %v547_v58 = vrot.slane %v546_v52, 4  ;;  %v514_v61 = vmul.f32 %v10568_v50, %v10568_v50  ;;  %v515_v17 = vmul.f32 %v10573_v54, %v10573_v54 }
  0x34   : > { %v527_v55 = vadd.f32 %v526_v47, %v525_v45  ;;  %v534_v57 = vadd.f32 %v533_v48, %v532_v46  ;;  %v554_v59 = vrot.slane %v553_v53, 4  ;;  %v541_v60 = vadd.f32 %v540_v51, %v539_v49  ;;  %v10588_v48 = vld [vmem:[%s10471_s9 + $0x40] sm:$0xff] }
  0x35   : > { %v10580_v62 = vsub.f32 %v10510_v23, %v460_v44  ;;  %v548_v5 = vadd.f32 %v547_v58, %v546_v52  ;;  %v560_v8 = vsel %vm283_vm1, %v514_v61, 0.0  ;;  %v567_v9 = vsel %vm283_vm1, %v515_v17, 0.0  ;;  %v10594_v61 = vld [vmem:[%s10471_s9 + $0x50] sm:$0xff] }
  0x36   : > { %v528_v63 = vrot.slane %v527_v55, 2  ;;  %v535_v1 = vrot.slane %v534_v57, 2  ;;  %v555_v6 = vadd.f32 %v554_v59, %v553_v53  ;;  %v542_v22 = vrot.slane %v541_v60, 2 }
  0x37   : > { %v516_v10 = vmul.f32 %v10580_v62, %v10580_v62  ;;  %v549_v16 = vrot.slane %v548_v5, 2  ;;  %v561_v20 = vrot.slane %v560_v8, 4  ;;  %v568_v23 = vrot.slane %v567_v9, 4 }
  0x38   : > { %v529_v14 = vadd.f32 %v528_v63, %v527_v55  ;;  %v536_v15 = vadd.f32 %v535_v1, %v534_v57  ;;  %v556_v18 = vrot.slane %v555_v6, 2  ;;  %v543_v19 = vadd.f32 %v542_v22, %v541_v60  ;;  %v10591_v60 = vld [vmem:[%s10471_s9 + $0x48] sm:$0xff] }
  0x39   : > { %v574_v21 = vsel %vm283_vm1, %v516_v10, 0.0  ;;  %v550_v26 = vadd.f32 %v549_v16, %v548_v5  ;;  %v562_v29 = vadd.f32 %v561_v20, %v560_v8  ;;  %v569_v30 = vadd.f32 %v568_v23, %v567_v9 }
  0x3a   : > { %v530_v24 = vrot.slane %v529_v14, 1  ;;  %v537_v25 = vrot.slane %v536_v15, 1  ;;  %v557_v27 = vadd.f32 %v556_v18, %v555_v6  ;;  %v544_v28 = vrot.slane %v543_v19, 1 }
  0x3b   : > { %v575_v31 = vrot.slane %v574_v21, 4  ;;  %v551_v37 = vrot.slane %v550_v26, 1  ;;  %v563_v3 = vrot.slane %v562_v29, 2  ;;  %v570_v4 = vrot.slane %v569_v30, 2 }
  0x3c   : > { %v531_v34 = vadd.f32 %v530_v24, %v529_v14  ;;  %v538_v35 = vadd.f32 %v537_v25, %v536_v15  ;;  %v558_v38 = vrot.slane %v557_v27, 1  ;;  %v545_v39 = vadd.f32 %v544_v28, %v543_v19  ;;  %v10603_v14 = vld [vmem:[%s10471_s9 + $0x58] sm:$0xff]  ;;  %v10609_v24 = vld [vmem:[%s10471_s9 + $0x68] sm:$0xff] }
  0x3d   : > { %v576_v7 = vadd.f32 %v575_v31, %v574_v21  ;;  %v552_v44 = vadd.f32 %v551_v37, %v550_v26  ;;  %v564_v11 = vadd.f32 %v563_v3, %v562_v29  ;;  %v571_v12 = vadd.f32 %v570_v4, %v569_v30  ;;  %v10606_v21 = vld [vmem:[%s10471_s9 + $0x60] sm:$0xff] }
  0x3e   : > { %v637_v42 = vmul.f32 0.125, %v531_v34  ;;  %v638_v43 = vmul.f32 0.125, %v538_v35  ;;  %v559_v45 = vadd.f32 %v558_v38, %v557_v27  ;;  %v639_v46 = vmul.f32 0.125, %v545_v39  ;;  %v10618_v39 = vld [vmem:[%s10471_s9 + $0x70] sm:$0xff] }
  0x3f   : > { %v577_v47 = vrot.slane %v576_v7, 2  ;;  %v640_v52 = vmul.f32 0.125, %v552_v44  ;;  %v565_v57 = vrot.slane %v564_v11, 1  ;;  %v572_v58 = vrot.slane %v571_v12, 1 }
  0x40   : > { %v653_v49 = vadd.f32 1e-05, %v637_v42  ;;  %v654_v51 = vadd.f32 1e-05, %v638_v43  ;;  %v641_v53 = vmul.f32 0.125, %v559_v45  ;;  %v340_v1 = vsel %vm283_vm1, %v10588_v48, 0.0 }
  0x41   : > { %v655_v55 = vadd.f32 1e-05, %v639_v46  ;;  %v578_v59 = vadd.f32 %v577_v47, %v576_v7  ;;  %v656_v17 = vadd.f32 1e-05, %v640_v52  ;;  %v566_v5 = vadd.f32 %v565_v57, %v564_v11  ;;  %v10621_v45 = vld [vmem:[%s10471_s9 + $0x78] sm:$0xff]  ;;  %s10314_s9 = scalar_lea.vmem %s10313_s8, 512 }
  0x42   : > { %9898 = vrsqrt.f32 %v653_v49  ;;  %v657_v63 = vadd.f32 1e-05, %v641_v53  ;;  %v573_v6 = vadd.f32 %v572_v58, %v571_v12  ;;  %v341_v8 = vrot.slane %v340_v1, 4 }
  0x43   : > { %9900 = vrsqrt.f32 %v654_v51  ;;  %v579_v22 = vrot.slane %v578_v59, 1  ;;  %v347_v9 = vsel %vm283_vm1, %v10591_v60, 0.0  ;;  %v354_v10 = vsel %vm283_vm1, %v10594_v61, 0.0 }
  0x44   : > { %9902 = vrsqrt.f32 %v655_v55  ;;  %v642_v15 = vmul.f32 0.125, %v566_v5  ;;  %v643_v16 = vmul.f32 0.125, %v573_v6  ;;  %v342_v19 = vadd.f32 %v341_v8, %v340_v1 }
  0x45   : > { %9904 = vrsqrt.f32 %v656_v17  ;;  %v580_v18 = vadd.f32 %v579_v22, %v578_v59  ;;  %v348_v20 = vrot.slane %v347_v9, 4  ;;  %v355_v23 = vrot.slane %v354_v10, 4 }
  0x46   : > { %9906 = vrsqrt.f32 %v657_v63  ;;  %v658_v25 = vadd.f32 1e-05, %v642_v15  ;;  %v659_v26 = vadd.f32 1e-05, %v643_v16  ;;  %v361_v28 = vsel %vm283_vm1, %v10603_v14, 0.0 }
  0x47   : > { %v644_v27 = vmul.f32 0.125, %v580_v18  ;;  %v343_v29 = vrot.slane %v342_v19, 2  ;;  %v349_v30 = vadd.f32 %v348_v20, %v347_v9  ;;  %v356_v31 = vadd.f32 %v355_v23, %v354_v10  ;;  %v10632_v63 = vld [vmem:[%s13073_s4] ss:$0 sm:$0xff] }
  0x48   : > { %v362_v34 = vrot.slane %v361_v28, 4  ;;  %9908 = vrsqrt.f32 %v658_v25  ;;  %v368_v37 = vsel %vm283_vm1, %v10606_v21, 0.0  ;;  %v375_v38 = vsel %vm283_vm1, %v10609_v24, 0.0 }
  0x49   : > { %v660_v35 = vadd.f32 1e-05, %v644_v27  ;;  %9910 = vrsqrt.f32 %v659_v26  ;;  %v344_v3 = vadd.f32 %v343_v29, %v342_v19  ;;  %v350_v4 = vrot.slane %v349_v30, 2  ;;  %v10640_v19 = vld [vmem:[%s13073_s4 + $0x1] ss:$0 sm:$0xff] }
  0x4a   : > { %v357_v7 = vrot.slane %v356_v31, 2  ;;  %v363_v42 = vadd.f32 %v362_v34, %v361_v28  ;;  %v369_v43 = vrot.slane %v368_v37, 4  ;;  %v376_v44 = vrot.slane %v375_v38, 4 }
  0x4b   : > { %9912 = vrsqrt.f32 %v660_v35  ;;  %v345_v46 = vrot.slane %v344_v3, 1  ;;  %v351_v11 = vadd.f32 %v350_v4, %v349_v30  ;;  %v382_v47 = vsel %vm283_vm1, %v10618_v39, 0.0 }
  0x4c   : > { %v358_v12 = vadd.f32 %v357_v7, %v356_v31  ;;  %v364_v49 = vrot.slane %v363_v42, 2  ;;  %v370_v51 = vadd.f32 %v369_v43, %v368_v37  ;;  %v377_v52 = vadd.f32 %v376_v44, %v375_v38  ;;  %v265_v43 = vld [vmem:[%s10648_s23 + $0x8] sm:$0xff] }
  0x4d   : > { %v383_v53 = vrot.slane %v382_v47, 4  ;;  %v346_v55 = vadd.f32 %v345_v46, %v344_v3  ;;  %v352_v57 = vrot.slane %v351_v11, 1  ;;  %v10627_v59 = vsel %vm283_vm1, %v10621_v45, 0.0  ;;  %v264_v3 = vld [vmem:[%s10648_s23] sm:$0xff] }
  0x4e   : > { %v359_v58 = vrot.slane %v358_v12, 1  ;;  %v365_v1 = vadd.f32 %v364_v49, %v363_v42  ;;  %v371_v5 = vrot.slane %v370_v51, 2  ;;  %v378_v6 = vrot.slane %v377_v52, 2 }
  0x4f   : > { %v9899_v17 = vpop.eup %9898  ;;  %v10634_v22 = vadd.f32 %v383_v53, %v382_v47  ;;  %v405_v10 = vmul.f32 0.125, %v346_v55  ;;  %v353_v15 = vadd.f32 %v352_v57, %v351_v11 }
  0x50   : > { %v9901_v8 = vpop.eup %9900  ;;  %v685_v9 = vmul.f32 %v9899_v17, %v10532_v32  ;;  %v360_v16 = vadd.f32 %v359_v58, %v358_v12  ;;  %v366_v23 = vrot.slane %v365_v1, 1  ;;  %v10650_v32 = vadd.f32 %v371_v5, %v370_v51 }
  0x51   : > { %v9903_v18 = vpop.eup %9902  ;;  %v686_v20 = vmul.f32 %v9901_v8, %v10535_v33  ;;  %v10652_v25 = vadd.f32 %v378_v6, %v377_v52  ;;  %v421_v33 = vmul.f32 %v405_v10, %v10521_v56  ;;  %v406_v29 = vmul.f32 0.125, %v353_v15 }
  0x52   : > { %v9905_v26 = vpop.eup %9904  ;;  %v705_v27 = vmul.f32 %v10632_v63, %v685_v9  ;;  %v687_v28 = vmul.f32 %v9903_v18, %v10540_v36  ;;  %v407_v35 = vmul.f32 0.125, %v360_v16  ;;  %v367_v37 = vadd.f32 %v366_v23, %v365_v1 }
  0x53   : > { %v9907_v30 = vpop.eup %9906  ;;  %v706_v31 = vmul.f32 %v10632_v63, %v686_v20  ;;  %v688_v34 = vmul.f32 %v9905_v26, %v10550_v40  ;;  %v464_v42 = vrot.slane %v421_v33, %v10497_v13  ;;  %v422_v46 = vmul.f32 %v406_v29, %v10521_v56 }
  0x54   : > { %v725_v38 = vadd.f32 %v10640_v19, %v705_v27  ;;  %v707_v4 = vmul.f32 %v10632_v63, %v687_v28  ;;  %v689_v7 = vmul.f32 %v9907_v30, %v10553_v41  ;;  %v423_v40 = vmul.f32 %v407_v35, %v10521_v56  ;;  %v268_v27 = vld [vmem:[%s10648_s23 + $0x20] sm:$0xff] }
  0x55   : > { %v726_v36 = vadd.f32 %v10640_v19, %v706_v31  ;;  %v708_v44 = vmul.f32 %v10632_v63, %v688_v34  ;;  %v9909_v11 = vpop.eup %9908  ;;  %v10672_v41 = vsub.f32 %v10588_v48, %v464_v42  ;;  %v408_v49 = vmul.f32 0.125, %v367_v37  ;;  %v266_v48 = vld [vmem:[%s10648_s23 + $0x10] sm:$0xff]  ;;  %v269_v31 = vld [vmem:[%s10648_s23 + $0x28] sm:$0xff] }
  0x56   : > { %9457 = vmatpush3.msra.mxu0 %v725_v38  ;;  %v727_v12 = vadd.f32 %v10640_v19, %v707_v4  ;;  %v709_v47 = vmul.f32 %v10632_v63, %v689_v7  ;;  %v9911_v51 = vpop.eup %9910  ;;  %v690_v53 = vmul.f32 %v9909_v11, %v10568_v50  ;;  %v468_v55 = vrot.slane %v422_v46, %v10497_v13  ;;  %v267_v50 = vld [vmem:[%s10648_s23 + $0x18] sm:$0xff] }
  0x57   : > { %9462 = vmatpush3.msra.mxu1 %v726_v36  ;;  %9459 = vmatmul.mubr.msk.f32.vlgmr.msra.gmra.mxu0 %vm741_vm2, %v264_v3  ;;  %v728_v52 = vadd.f32 %v10640_v19, %v708_v44  ;;  %v373_v57 = vrot.slane %v10650_v32, 1  ;;  %v691_v1 = vmul.f32 %v9911_v51, %v10573_v54  ;;  %v517_v5 = vmul.f32 %v10672_v41, %v10672_v41  ;;  %v270_v44 = vld [vmem:[%s10648_s23 + $0x30] sm:$0xff]  ;;  %v271_v11 = vld [vmem:[%s10648_s23 + $0x38] sm:$0xff] }
  0x58   : > { %v9913_v58 = vpop.eup %9912  ;;  %9464 = vmatmul.mubr.msk.f32.vlgmr.msra.gmra.mxu1 %vm741_vm2, %v265_v43  ;;  %9466 = vmatprep.subr.mxu0 %v10370_v0  ;;  %v729_v17 = vadd.f32 %v10640_v19, %v709_v47  ;;  %v380_v6 = vrot.slane %v10652_v25, 1  ;;  %v710_v8 = vmul.f32 %v10632_v63, %v690_v53  ;;  %v10693_v10 = vsub.f32 %v10591_v60, %v468_v55 }
  0x59   : > { %9467 = vmatpush3.msra.mxu0 %v727_v12  ;;  %9468 = vmatprep.mubr.msk.f32.mxu0 %vm10371_vm0, %v10370_v0  ;;  %v692_v9 = vmul.f32 %v9913_v58, %v10580_v62  ;;  %v385_v54 = vrot.slane %v10634_v22, 2  ;;  %v711_v15 = vmul.f32 %v10632_v63, %v691_v1  ;;  %v581_v16 = vsel %vm283_vm1, %v517_v5, 0.0 }
  0x5a   : > { %9471 = vmatprep.subr.mxu1 %v10370_v0  ;;  %9473 = vmatprep.mubr.msk.f32.mxu1 %vm10371_vm0, %v10370_v0  ;;  %v472_v18 = vrot.slane %v423_v40, %v10497_v13  ;;  %v424_v20 = vmul.f32 %v408_v49, %v10521_v56  ;;  %v730_v62 = vadd.f32 %v10640_v19, %v710_v8  ;;  %v582_v23 = vrot.slane %v581_v16, 4 }
  0x5b   : > { %9469 = vmatmul.mubr.msk.f32.vlgmr.msra.gmra.mxu0 %vm741_vm2, %v266_v48  ;;  %9472 = vmatpush3.msra.mxu1 %v728_v52  ;;  %v712_v60 = vmul.f32 %v10632_v63, %v692_v9  ;;  %v518_v26 = vmul.f32 %v10693_v10, %v10693_v10  ;;  %v731_v28 = vadd.f32 %v10640_v19, %v711_v15  ;;  %v390_v30 = vrot.slane %v10627_v59, 4 }
  0x5c   : > { %9474 = vmatmul.mubr.msk.f32.vlgmr.msra.gmra.mxu1 %vm741_vm2, %v267_v50  ;;  %9476 = vmatprep.subr.mxu0 %v10370_v0  ;;  %v10713_v33 = vsub.f32 %v10594_v61, %v472_v18  ;;  %v476_v29 = vrot.slane %v424_v20, %v10497_v13  ;;  %v583_v35 = vadd.f32 %v582_v23, %v581_v16 }
  0x5d   : > { %9477 = vmatpush3.msra.mxu0 %v729_v17  ;;  %9478 = vmatprep.mubr.msk.f32.mxu0 %vm10371_vm0, %v10370_v0  ;;  %v732_v34 = vadd.f32 %v10640_v19, %v712_v60  ;;  %v588_v37 = vsel %vm283_vm1, %v518_v26, 0.0  ;;  %v374_v38 = vadd.f32 %v373_v57, %v10650_v32  ;;  %v381_v7 = vadd.f32 %v380_v6, %v10652_v25 }
  0x5e   : > { %9481 = vmatprep.subr.mxu1 %v10370_v0  ;;  %9483 = vmatprep.mubr.msk.f32.mxu1 %vm10371_vm0, %v10370_v0  ;;  %v589_v61 = vrot.slane %v588_v37, 4  ;;  %v519_v3 = vmul.f32 %v10713_v33, %v10713_v33  ;;  %v10729_v4 = vsub.f32 %v10603_v14, %v476_v29  ;;  %v584_v42 = vrot.slane %v583_v35, 2 }
  0x5f   : > { %9479 = vmatmul.mubr.msk.f32.vlgmr.msra.gmra.mxu0 %vm741_vm2, %v268_v27  ;;  %9482 = vmatpush3.msra.mxu1 %v730_v62  ;;  %v409_v32 = vmul.f32 0.125, %v374_v38  ;;  %v386_v36 = vadd.f32 %v385_v54, %v10634_v22  ;;  %v391_v43 = vadd.f32 %v390_v30, %v10627_v59  ;;  %v410_v40 = vmul.f32 0.125, %v381_v7 }
  0x60   : > { %9484 = vmatmul.mubr.msk.f32.vlgmr.msra.gmra.mxu1 %vm741_vm2, %v269_v31  ;;  %9486 = vmatprep.subr.mxu0 %v10370_v0  ;;  %v590_v46 = vadd.f32 %v589_v61, %v588_v37  ;;  %v595_v14 = vsel %vm283_vm1, %v519_v3, 0.0  ;;  %v520_v25 = vmul.f32 %v10729_v4, %v10729_v4  ;;  %v585_v22 = vadd.f32 %v584_v42, %v583_v35 }
  0x61   : > { %9487 = vmatpush3.msra.mxu0 %v731_v28  ;;  %9488 = vmatprep.mubr.msk.f32.mxu0 %vm10371_vm0, %v10370_v0  ;;  %v596_v12 = vrot.slane %v595_v14, 4  ;;  %v425_v59 = vmul.f32 %v409_v32, %v10521_v56  ;;  %v387_v47 = vrot.slane %v386_v36, 1  ;;  %v426_v52 = vmul.f32 %v410_v40, %v10521_v56 }
  0x62   : > { %9491 = vmatprep.subr.mxu1 %v10370_v0  ;;  %9493 = vmatprep.mubr.msk.f32.mxu1 %vm10371_vm0, %v10370_v0  ;;  %v591_v49 = vrot.slane %v590_v46, 2  ;;  %v602_v51 = vsel %vm283_vm1, %v520_v25, 0.0  ;;  %v392_v53 = vrot.slane %v391_v43, 2  ;;  %v586_v55 = vrot.slane %v585_v22, 1 }
  0x63   : > { %9489 = vmatmul.mubr.msk.f32.vlgmr.msra.gmra.mxu0 %vm741_vm2, %v270_v44  ;;  %9492 = vmatpush3.msra.mxu1 %v732_v34  ;;  %v597_v57 = vadd.f32 %v596_v12, %v595_v14  ;;  %v603_v58 = vrot.slane %v602_v51, 4  ;;  %v480_v48 = vrot.slane %v425_v59, %v10497_v13  ;;  %v484_v1 = vrot.slane %v426_v52, %v10497_v13 }
  0x64   : > { %9494 = vmatmul.mubr.msk.f32.vlgmr.msra.gmra.mxu1 %vm741_vm2, %v271_v11  ;;  %9496 = vmatprep.subr.mxu0 %v10370_v0  ;;  %v592_v17 = vadd.f32 %v591_v49, %v590_v46  ;;  %v388_v5 = vadd.f32 %v387_v47, %v386_v36  ;;  %v587_v6 = vadd.f32 %v586_v55, %v585_v22 }
  0x65   : > { %9498 = vmatprep.mubr.msk.f32.mxu0 %vm10371_vm0, %v10370_v0  ;;  %9501 = vmatprep.subr.mxu1 %v10370_v0  ;;  %v598_v50 = vrot.slane %v597_v57, 2  ;;  %v604_v8 = vadd.f32 %v603_v58, %v602_v51  ;;  %v10759_v9 = vsub.f32 %v10606_v21, %v480_v48  ;;  %v10764_v15 = vsub.f32 %v10609_v24, %v484_v1 }
  0x66   : > { %v593_v54 = vrot.slane %v592_v17, 1  ;;  %9503 = vmatprep.mubr.msk.f32.mxu1 %vm10371_vm0, %v10370_v0  ;;  %v411_v16 = vmul.f32 0.125, %v388_v5  ;;  %v393_v18 = vadd.f32 %v392_v53, %v391_v43  ;;  %v645_v20 = vmul.f32 0.125, %v587_v6 }
  0x67   : > { %v599_v62 = vadd.f32 %v598_v50, %v597_v57  ;;  %v605_v60 = vrot.slane %v604_v8, 2  ;;  %v521_v23 = vmul.f32 %v10759_v9, %v10759_v9  ;;  %v522_v21 = vmul.f32 %v10764_v15, %v10764_v15 }
  0x68   : > { %v594_v26 = vadd.f32 %v593_v54, %v592_v17  ;;  %v427_v27 = vmul.f32 %v411_v16, %v10521_v56  ;;  %v394_v28 = vrot.slane %v393_v18, 1  ;;  %v661_v29 = vadd.f32 1e-05, %v645_v20 }
  0x69   : > { %v600_v30 = vrot.slane %v599_v62, 1  ;;  %v606_v31 = vadd.f32 %v605_v60, %v604_v8  ;;  %v609_v24 = vsel %vm283_vm1, %v521_v23, 0.0  ;;  %v616_v37 = vsel %vm283_vm1, %v522_v21, 0.0 }
  0x6a   : > { %v646_v34 = vmul.f32 0.125, %v594_v26  ;;  %v610_v35 = vrot.slane %v609_v24, 4  ;;  %v488_v38 = vrot.slane %v427_v27, %v10497_v13  ;;  %9914 = vrsqrt.f32 %v661_v29 }
  0x6b   : > { %v601_v61 = vadd.f32 %v600_v30, %v599_v62  ;;  %v607_v3 = vrot.slane %v606_v31, 1  ;;  %v617_v7 = vrot.slane %v616_v37, 4  ;;  %v395_v43 = vadd.f32 %v394_v28, %v393_v18 }
  0x6c   : > { %v662_v42 = vadd.f32 1e-05, %v646_v34  ;;  %v611_v32 = vadd.f32 %v610_v35, %v609_v24  ;;  %v10775_v36 = vsub.f32 %v10618_v39, %v488_v38 }
  0x6d   : > { %v647_v44 = vmul.f32 0.125, %v601_v61  ;;  %v608_v46 = vadd.f32 %v607_v3, %v606_v31  ;;  %v618_v14 = vadd.f32 %v617_v7, %v616_v37  ;;  %v412_v11 = vmul.f32 0.125, %v395_v43  ;;  %v272_v31 = vld [vmem:[%s10648_s23 + $0x40] sm:$0xff] }
  0x6e   : > { %9916 = vrsqrt.f32 %v662_v42  ;;  %v612_v25 = vrot.slane %v611_v32, 2  ;;  %v523_v40 = vmul.f32 %v10775_v36, %v10775_v36 }
  0x6f   : > { %v663_v22 = vadd.f32 1e-05, %v647_v44  ;;  %v648_v12 = vmul.f32 0.125, %v608_v46  ;;  %v619_v59 = vrot.slane %v618_v14, 2  ;;  %v428_v51 = vmul.f32 %v412_v11, %v10521_v56  ;;  %v274_v44 = vld [vmem:[%s10648_s23 + $0x50] sm:$0xff] }
  0x70   : > { %v613_v47 = vadd.f32 %v612_v25, %v611_v32  ;;  %v623_v49 = vsel %vm283_vm1, %v523_v40, 0.0 }
  0x71   : > { %9918 = vrsqrt.f32 %v663_v22  ;;  %v664_v39 = vadd.f32 1e-05, %v648_v12  ;;  %v620_v52 = vadd.f32 %v619_v59, %v618_v14  ;;  %v624_v53 = vrot.slane %v623_v49, 4 }
  0x72   : > { %v614_v55 = vrot.slane %v613_v47, 1  ;;  %v492_v57 = vrot.slane %v428_v51, %v10497_v13 }
  0x73   : > { %9920 = vrsqrt.f32 %v664_v39  ;;  %v621_v58 = vrot.slane %v620_v52, 1  ;;  %v625_v48 = vadd.f32 %v624_v53, %v623_v49 }
  0x74   : > { %v615_v17 = vadd.f32 %v614_v55, %v613_v47  ;;  %v10783_v1 = vsub.f32 %v10621_v45, %v492_v57  ;;  %v277_v55 = vld [vmem:[%s10648_s23 + $0x68] sm:$0xff] }
  0x75   : > { %v622_v5 = vadd.f32 %v621_v58, %v620_v52  ;;  %v626_v6 = vrot.slane %v625_v48, 2  ;;  %v276_v52 = vld [vmem:[%s10648_s23 + $0x60] sm:$0xff] }
  0x76   : > { %v649_v50 = vmul.f32 0.125, %v615_v17  ;;  %v524_v56 = vmul.f32 %v10783_v1, %v10783_v1 }
  0x77   : > { %v650_v8 = vmul.f32 0.125, %v622_v5  ;;  %v627_v54 = vadd.f32 %v626_v6, %v625_v48  ;;  %v9915_v16 = vpop.eup %9914  ;;  %v278_v48 = vld [vmem:[%s10648_s23 + $0x70] sm:$0xff]  ;;  %v1910_v5 = vld [vmem:[%s13071_s2] sm:$0xf] }
  0x78   : > { %v665_v18 = vadd.f32 1e-05, %v649_v50  ;;  %v630_v20 = vsel %vm283_vm1, %v524_v56, 0.0  ;;  %v693_v62 = vmul.f32 %v9915_v16, %v10672_v41  ;;  %v279_v56 = vld [vmem:[%s10648_s23 + $0x78] sm:$0xff] }
  0x79   : > { %v666_v60 = vadd.f32 1e-05, %v650_v8  ;;  %v628_v23 = vrot.slane %v627_v54, 1  ;;  %v631_v26 = vrot.slane %v630_v20, 4 }
  0x7a   : > { %9922 = vrsqrt.f32 %v665_v18  ;;  %v713_v21 = vmul.f32 %v10632_v63, %v693_v62 }
  0x7b   : > { %v9917_v45 = vpop.eup %9916  ;;  %9924 = vrsqrt.f32 %v666_v60  ;;  %v629_v27 = vadd.f32 %v628_v23, %v627_v54  ;;  %v632_v28 = vadd.f32 %v631_v26, %v630_v20 }
  0x7c   : > { %v694_v29 = vmul.f32 %v9917_v45, %v10693_v10  ;;  %v733_v30 = vadd.f32 %v10640_v19, %v713_v21  ;;  %v273_v10 = vld [vmem:[%s10648_s23 + $0x48] sm:$0xff] }
  0x7d   : > { %v651_v24 = vmul.f32 0.125, %v629_v27  ;;  %v633_v34 = vrot.slane %v632_v28, 2 }
  0x7e   : > { %v9919_v35 = vpop.eup %9918  ;;  %v714_v41 = vmul.f32 %v10632_v63, %v694_v29  ;;  %9497 = vmatpush3.msra.mxu0 %v733_v30 }
  0x7f   : > { %v695_v37 = vmul.f32 %v9919_v35, %v10713_v33  ;;  %v667_v38 = vadd.f32 1e-05, %v651_v24  ;;  %v634_v61 = vadd.f32 %v633_v34, %v632_v28  ;;  %9499 = vmatmul.mubr.msk.f32.vlgmr.msra.gmra.mxu0 %vm741_vm2, %v272_v31  ;;  %9506 = vmatprep.subr.mxu0 %v10370_v0 }
  0x80   : > { %v9921_v3 = vpop.eup %9920  ;;  %v734_v7 = vadd.f32 %v10640_v19, %v714_v41  ;;  %9508 = vmatprep.mubr.msk.f32.mxu0 %vm10371_vm0, %v10370_v0 }
  0x81   : > { %v715_v42 = vmul.f32 %v10632_v63, %v695_v37  ;;  %v696_v32 = vmul.f32 %v9921_v3, %v10729_v4  ;;  %9926 = vrsqrt.f32 %v667_v38  ;;  %v635_v33 = vrot.slane %v634_v61, 1  ;;  %v275_v4 = vld [vmem:[%s10648_s23 + $0x58] sm:$0xff] }
  0x82   : > { %9502 = vmatpush3.msra.mxu1 %v734_v7 }
  0x83   : > { %9504 = vmatmul.mubr.msk.f32.vlgmr.msra.gmra.mxu1 %vm741_vm2, %v273_v10  ;;  %v735_v43 = vadd.f32 %v10640_v19, %v715_v42  ;;  %9511 = vmatprep.subr.mxu1 %v10370_v0  ;;  %v716_v46 = vmul.f32 %v10632_v63, %v696_v32  ;;  %v636_v14 = vadd.f32 %v635_v33, %v634_v61 }
  0x84   : > { %9513 = vmatprep.mubr.msk.f32.mxu1 %vm10371_vm0, %v10370_v0 }
  0x85   : > { %9507 = vmatpush3.msra.mxu0 %v735_v43  ;;  %v736_v25 = vadd.f32 %v10640_v19, %v716_v46  ;;  %v652_v40 = vmul.f32 0.125, %v636_v14  ;;  %v2645_v43 = vld [vmem:[%s13071_s2 + $0x38] sm:$0xff]  ;;  %v2643_v46 = vld [vmem:[%s13071_s2 + $0x28] sm:$0xff]  ;;  %v2642_v14 = vld [vmem:[%s13071_s2 + $0x20] sm:$0xff] }
  0x86   : > { %9509 = vmatmul.mubr.msk.f32.vlgmr.msra.gmra.mxu0 %vm741_vm2, %v274_v44  ;;  %9516 = vmatprep.subr.mxu0 %v10370_v0  ;;  %v2644_v44 = vld [vmem:[%s13071_s2 + $0x30] sm:$0xff] }
  0x87   : > { %v9923_v11 = vpop.eup %9922  ;;  %9512 = vmatpush3.msra.mxu1 %v736_v25  ;;  %9518 = vmatprep.mubr.msk.f32.mxu0 %vm10371_vm0, %v10370_v0  ;;  %v668_v22 = vadd.f32 1e-05, %v652_v40  ;;  %v10884_v25 = vld [vmem:[%s13073_s4 + $0xc] ss:$0 sm:$0xff]  ;;  %v10889_v40 = vld [vmem:[%s13073_s4 + $0xf] ss:$0 sm:$0xff] }
  0x88   : > { %v9925_v12 = vpop.eup %9924  ;;  %9514 = vmatmul.mubr.msk.f32.vlgmr.msra.gmra.mxu1 %vm741_vm2, %v275_v4  ;;  %v697_v59 = vmul.f32 %v9923_v11, %v10759_v9  ;;  %9521 = vmatprep.subr.mxu1 %v10370_v0 }
  0x89   : > { %v698_v47 = vmul.f32 %v9925_v12, %v10764_v15  ;;  %9523 = vmatprep.mubr.msk.f32.mxu1 %vm10371_vm0, %v10370_v0  ;;  %9928 = vrsqrt.f32 %v668_v22 }
  0x8a   : > { %v717_v49 = vmul.f32 %v10632_v63, %v697_v59 }
  0x8b   : > { %v718_v51 = vmul.f32 %v10632_v63, %v698_v47 }
  0x8c   : > { %v737_v39 = vadd.f32 %v10640_v19, %v717_v49 }
  0x8d   : > { %v738_v53 = vadd.f32 %v10640_v19, %v718_v51 }
  0x8e   : > { %v9927_v9 = vpop.eup %9926  ;;  %9517 = vmatpush3.msra.mxu0 %v737_v39 }
  0x8f   : > { %9519 = vmatmul.mubr.msk.f32.vlgmr.msra.gmra.mxu0 %vm741_vm2, %v276_v52  ;;  %9522 = vmatpush3.msra.mxu1 %v738_v53  ;;  %v699_v15 = vmul.f32 %v9927_v9, %v10775_v36 }
  0x90   : > { %9524 = vmatmul.mubr.msk.f32.vlgmr.msra.gmra.mxu1 %vm741_vm2, %v277_v55  ;;  %9526 = vmatprep.subr.mxu0 %v10370_v0 }
  0x91   : > { %v719_v57 = vmul.f32 %v10632_v63, %v699_v15  ;;  %9528 = vmatprep.mubr.msk.f32.mxu0 %vm10371_vm0, %v10370_v0  ;;  %9531 = vmatprep.subr.mxu1 %v10370_v0 }
  0x92   : > { %9533 = vmatprep.mubr.msk.f32.mxu1 %vm10371_vm0, %v10370_v0 }
  0x93   : > { %v739_v58 = vadd.f32 %v10640_v19, %v719_v57 }
  0x95   : > { %9527 = vmatpush3.msra.mxu0 %v739_v58 }
  0x96   : > { %v9929_v36 = vpop.eup %9928  ;;  %9529 = vmatmul.mubr.msk.f32.vlgmr.msra.gmra.mxu0 %vm741_vm2, %v278_v48  ;;  %9536 = vmatprep.subr.msk.mxu0 %vm1959_vm3, %v1910_v5 }
  0x97   : > { %v700_v17 = vmul.f32 %v9929_v36, %v10783_v1  ;;  %9537 = vmatpush3.msk.msra.mxu0 %vm1959_vm3, %v1910_v5 }
  0x98   : > { %9594 = vmatprep.subr.mxu0 %v10370_v0 }
  0x99   : > { %v720_v6 = vmul.f32 %v10632_v63, %v700_v17 }
  0x9b   : > { %v740_v50 = vadd.f32 %v10640_v19, %v720_v6 }
  0x9d   : > { %9532 = vmatpush3.msra.mxu1 %v740_v50 }
  0x9e   : > { %9534 = vmatmul.mubr.msk.f32.vlgmr.msra.gmra.mxu1 %vm741_vm2, %v279_v56  ;;  %9562 = vmatprep.subr.mxu1 %v2645_v43 }
  0x9f   : > { %9563 = vmatpush3.msra.mxu1 %v2645_v43 }
  0xa0   : > { %9564 = vmatprep.subr.mxu1 %v2644_v44 }
  0xa1   : > { %9565 = vmatpush3.msra.mxu1 %v2644_v44 }
  0xa2   : > { %9566 = vmatprep.subr.mxu1 %v2643_v46 }
  0xa3   : > { %9567 = vmatpush3.msra.mxu1 %v2643_v46 }
  0xa4   : > { %9568 = vmatprep.subr.mxu1 %v2642_v14 }
  0xa5   : > { %9569 = vmatpush3.msra.mxu1 %v2642_v14 }
  0xa6   : > { %9604 = vmatprep.subr.mxu1 %v10370_v0 }
 0x117   : > { %v811_v8 = vpop.f32.mrf.mxu0 }
 0x118   : > { %v884_v54 = vpop.f32.mrf.mxu1  ;;  %9538 = vmatprep.mubr.msk.f32.mxu0 %vm283_vm1, %v811_v8 }
 0x119   : > { %v9460_v1 = vpop.f32.mrf.mxu0  ;;  %9539 = vmatmul.mubr.msk.f32.vlgmr.msra.gmra.mxu0 %vm283_vm1, %v884_v54 }
 0x11a   : > { %v9465_v16 = vpop.f32.mrf.mxu1 }
 0x11b   : > { %v957_v18 = vpop.f32.mrf.mxu0 }
 0x11c   : > { %v1030_v63 = vpop.f32.mrf.mxu1  ;;  %9541 = vmatprep.mubr.msk.f32.mxu0 %vm283_vm1, %v957_v18 }
 0x11d   : > { %v9470_v20 = vpop.f32.mrf.mxu0  ;;  %9542 = vmatmul.mubr.msk.f32.gmra.mxu0 %vm283_vm1, %v1030_v63 }
 0x11e   : > { %v9475_v19 = vpop.f32.mrf.mxu1 }
 0x11f   : > { %v1103_v62 = vpop.f32.mrf.mxu0 }
 0x120   : > { %v1176_v60 = vpop.f32.mrf.mxu1  ;;  %9544 = vmatprep.mubr.msk.f32.mxu0 %vm283_vm1, %v1103_v62 }
 0x121   : > { %v9480_v23 = vpop.f32.mrf.mxu0  ;;  %9545 = vmatmul.mubr.msk.f32.gmra.mxu0 %vm283_vm1, %v1176_v60 }
 0x122   : > { %v9485_v26 = vpop.f32.mrf.mxu1 }
 0x123   : > { %v1249_v45 = vpop.f32.mrf.mxu0 }
 0x124   : > { %v1322_v21 = vpop.f32.mrf.mxu1  ;;  %9547 = vmatprep.mubr.msk.f32.mxu0 %vm283_vm1, %v1249_v45 }
 0x125   : > { %v9490_v27 = vpop.f32.mrf.mxu0  ;;  %9548 = vmatmul.mubr.msk.f32.gmra.mxu0 %vm283_vm1, %v1322_v21 }
 0x126   : > { %v9495_v28 = vpop.f32.mrf.mxu1 }
 0x13f   : > { %v1395_v29 = vpop.f32.mrf.mxu0 }
 0x140   : > { %9550 = vmatprep.mubr.msk.f32.mxu0 %vm283_vm1, %v1395_v29 }
 0x141   : > { %v9500_v30 = vpop.f32.mrf.mxu0 }
 0x143   : > { %v1468_v31 = vpop.f32.mrf.mxu1 }
 0x144   : > { %9551 = vmatmul.mubr.msk.f32.gmra.mxu0 %vm283_vm1, %v1468_v31 }
 0x145   : > { %v9505_v24 = vpop.f32.mrf.mxu1 }
 0x146   : > { %v1541_v34 = vpop.f32.mrf.mxu0 }
 0x147   : > { %9553 = vmatprep.mubr.msk.f32.mxu0 %vm283_vm1, %v1541_v34 }
 0x148   : > { %v1614_v35 = vpop.f32.mrf.mxu1  ;;  %v9510_v41 = vpop.f32.mrf.mxu0 }
 0x149   : > { %9554 = vmatmul.mubr.msk.f32.gmra.mxu0 %vm283_vm1, %v1614_v35 }
 0x14a   : > { %v9515_v37 = vpop.f32.mrf.mxu1 }
 0x14f   : > { %v1687_v38 = vpop.f32.mrf.mxu0 }
 0x150   : > { %v1760_v61 = vpop.f32.mrf.mxu1  ;;  %9556 = vmatprep.mubr.msk.f32.mxu0 %vm283_vm1, %v1687_v38 }
 0x151   : > { %v9520_v3 = vpop.f32.mrf.mxu0  ;;  %9557 = vmatmul.mubr.msk.f32.gmra.mxu0 %vm283_vm1, %v1760_v61 }
 0x152   : > { %v9525_v7 = vpop.f32.mrf.mxu1 }
 0x156   : > { %v1833_v10 = vpop.f32.mrf.mxu0 }
 0x157   : > { %9559 = vmatprep.mubr.msk.f32.mxu0 %vm283_vm1, %v1833_v10  ;;  %v10931_v10 = vld [vmem:[%s13073_s4 + $0x5] sm:$0x1] }
 0x158   : > { %v9530_v42 = vpop.f32.mrf.mxu0 }
 0x15e   : > { %v1906_v32 = vpop.f32.mrf.mxu1 }
 0x15f   : > { %9560 = vmatmul.mubr.msk.f32.gmra.mxu0 %vm283_vm1, %v1906_v32 }
 0x160   : > { %v9535_v33 = vpop.f32.mrf.mxu1  ;;  %9596 = vmatprep.mubr.msk.f32.mxu0 %vm10371_vm0, %v10370_v0 }
 0x1d9   : > { %v9540_v4 = vpop.f32.mrf.mxu0 }
 0x1da   : > { %v2114_v11 = vadd.f32 %v9540_v4, %v10884_v25 }
 0x1db   : > { %v2029_v22 = vpop.f32.mrf.mxu0 }
 0x1dc   : > { %vm2131_vm4 = vcmp.gt.f32.partialorder %v2114_v11, 0.0  ;;  %v2151_v12 = vmul.f32 %v10889_v40, %v2114_v11  ;;  %v2113_v59 = vadd.f32 %v10884_v25, %v2029_v22 }
 0x1dd   : > { %v9543_v47 = vpop.f32.mrf.mxu0 }
 0x1de   : > { %v10894_v49 = vsel %vm2131_vm4, %v2114_v11, %v2151_v12  ;;  %vm2130_vm6 = vcmp.gt.f32.partialorder %v2113_v59, 0.0  ;;  %v2150_v51 = vmul.f32 %v10889_v40, %v2113_v59  ;;  %v2116_v39 = vadd.f32 %v9543_v47, %v10884_v25 }
 0x1df   : > { %v2193_v52 = vsel %vm2185_vm5, %v10894_v49, 0.0  ;;  %v2039_v53 = vpop.f32.mrf.mxu0 }
 0x1e0   : > { %v2194_v55 = vrot.slane %v2193_v52, 4  ;;  %v10900_v9 = vsel %vm2130_vm6, %v2113_v59, %v2150_v51  ;;  %vm2133_vm7 = vcmp.gt.f32.partialorder %v2116_v39, 0.0  ;;  %v2153_v15 = vmul.f32 %v10889_v40, %v2116_v39 }
 0x1e1   : > { %v2186_v57 = vsel %vm2185_vm5, %v10900_v9, 0.0  ;;  %v2115_v58 = vadd.f32 %v10884_v25, %v2039_v53  ;;  %v9546_v48 = vpop.f32.mrf.mxu0 }
 0x1e2   : > { %v2195_v36 = vadd.f32 %v2194_v55, %v2193_v52  ;;  %v2187_v17 = vrot.slane %v2186_v57, 4  ;;  %v10906_v5 = vsel %vm2133_vm7, %v2116_v39, %v2153_v15  ;;  %v2118_v6 = vadd.f32 %v9546_v48, %v10884_v25 }
 0x1e3   : > { %v2207_v50 = vsel %vm2185_vm5, %v10906_v5, 0.0  ;;  %vm2132_vm8 = vcmp.gt.f32.partialorder %v2115_v58, 0.0  ;;  %v2152_v56 = vmul.f32 %v10889_v40, %v2115_v58  ;;  %v2049_v8 = vpop.f32.mrf.mxu0 }
 0x1e4   : > { %v2196_v54 = vrot.slane %v2195_v36, 2  ;;  %v2188_v1 = vadd.f32 %v2187_v17, %v2186_v57  ;;  %v2208_v16 = vrot.slane %v2207_v50, 4  ;;  %vm2135_vm9 = vcmp.gt.f32.partialorder %v2118_v6, 0.0 }
 0x1e5   : > { %v10912_v18 = vsel %vm2132_vm8, %v2115_v58, %v2152_v56  ;;  %v2155_v63 = vmul.f32 %v10889_v40, %v2118_v6  ;;  %v2117_v20 = vadd.f32 %v10884_v25, %v2049_v8  ;;  %v9549_v26 = vpop.f32.mrf.mxu0 }
 0x1e6   : > { %v2197_v19 = vadd.f32 %v2196_v54, %v2195_v36  ;;  %v2189_v62 = vrot.slane %v2188_v1, 2  ;;  %v2209_v60 = vadd.f32 %v2208_v16, %v2207_v50  ;;  %v2200_v23 = vsel %vm2185_vm5, %v10912_v18, 0.0 }
 0x1e7   : > { %v2201_v45 = vrot.slane %v2200_v23, 4  ;;  %v10918_v21 = vsel %vm2135_vm9, %v2118_v6, %v2155_v63  ;;  %vm2134_vm10 = vcmp.gt.f32.partialorder %v2117_v20, 0.0  ;;  %v2154_v27 = vmul.f32 %v10889_v40, %v2117_v20  ;;  %v2059_v7 = vpop.f32.mrf.mxu0 }
 0x1e8   : > { %v2198_v28 = vrot.slane %v2197_v19, 1  ;;  %v2190_v29 = vadd.f32 %v2189_v62, %v2188_v1  ;;  %v2210_v30 = vrot.slane %v2209_v60, 2  ;;  %v2221_v31 = vsel %vm2185_vm5, %v10918_v21, 0.0 }
 0x1e9   : > { %v2202_v24 = vadd.f32 %v2201_v45, %v2200_v23  ;;  %v2222_v34 = vrot.slane %v2221_v31, 4  ;;  %v10923_v35 = vsel %vm2134_vm10, %v2117_v20, %v2154_v27  ;;  %v2120_v41 = vadd.f32 %v9549_v26, %v10884_v25 }
 0x1ea   : > { %v2199_v37 = vadd.f32 %v2198_v28, %v2197_v19  ;;  %v2191_v38 = vrot.slane %v2190_v29, 1  ;;  %v2211_v61 = vadd.f32 %v2210_v30, %v2209_v60  ;;  %v2214_v3 = vsel %vm2185_vm5, %v10923_v35, 0.0 }
 0x1eb   : > { %v2203_v42 = vrot.slane %v2202_v24, 2  ;;  %v2223_v32 = vadd.f32 %v2222_v34, %v2221_v31  ;;  %v2215_v33 = vrot.slane %v2214_v3, 4  ;;  %vm2137_vm11 = vcmp.gt.f32.partialorder %v2120_v41, 0.0 }
 0x1ec   : > { %v2299_v43 = vmul.f32 0.125, %v2199_v37  ;;  %v2192_v44 = vadd.f32 %v2191_v38, %v2190_v29  ;;  %v2212_v46 = vrot.slane %v2211_v61, 1  ;;  %v2157_v14 = vmul.f32 %v10889_v40, %v2120_v41 }
 0x1ed   : > { %v2204_v4 = vadd.f32 %v2203_v42, %v2202_v24  ;;  %v2224_v11 = vrot.slane %v2223_v32, 2  ;;  %v2216_v22 = vadd.f32 %v2215_v33, %v2214_v3  ;;  %v2119_v12 = vadd.f32 %v10884_v25, %v2059_v7 }
 0x1ee   : > { %v2315_v59 = vmul.f32 %v2299_v43, %v10931_v10  ;;  %v2298_v47 = vmul.f32 0.125, %v2192_v44  ;;  %v2213_v51 = vadd.f32 %v2212_v46, %v2211_v61  ;;  %v10936_v39 = vsel %vm2137_vm11, %v2120_v41, %v2157_v14 }
 0x1ef   : > { %v2205_v52 = vrot.slane %v2204_v4, 1  ;;  %v2225_v53 = vadd.f32 %v2224_v11, %v2223_v32  ;;  %v2217_v55 = vrot.slane %v2216_v22, 2  ;;  %v2235_v15 = vsel %vm2185_vm5, %v10936_v39, 0.0 }
 0x1f0   : > { %v2337_v57 = vrot.slane %v2315_v59, %v10497_v13  ;;  %v2314_v58 = vmul.f32 %v2298_v47, %v10931_v10  ;;  %v2301_v48 = vmul.f32 0.125, %v2213_v51  ;;  %v2236_v36 = vrot.slane %v2235_v15, 4 }
 0x1f1   : > { %v2206_v17 = vadd.f32 %v2205_v52, %v2204_v4  ;;  %v2226_v6 = vrot.slane %v2225_v53, 1  ;;  %v2218_v50 = vadd.f32 %v2217_v55, %v2216_v22  ;;  %vm2136_vm12 = vcmp.gt.f32.partialorder %v2119_v12, 0.0 }
 0x1f2   : > { %v10943_v56 = vsub.f32 %v10894_v49, %v2337_v57  ;;  %v2333_v8 = vrot.slane %v2314_v58, %v10497_v13  ;;  %v2317_v54 = vmul.f32 %v2301_v48, %v10931_v10  ;;  %v2237_v1 = vadd.f32 %v2236_v36, %v2235_v15 }
 0x1f3   : > { %v2300_v16 = vmul.f32 0.125, %v2206_v17  ;;  %v2227_v63 = vadd.f32 %v2226_v6, %v2225_v53  ;;  %v2219_v20 = vrot.slane %v2218_v50, 1  ;;  %v2156_v19 = vmul.f32 %v10889_v40, %v2119_v12 }
 0x1f4   : > { %v2411_v62 = vmul.f32 %v10943_v56, %v10943_v56  ;;  %v10951_v60 = vsub.f32 %v10900_v9, %v2333_v8  ;;  %v2345_v23 = vrot.slane %v2317_v54, %v10497_v13  ;;  %v2238_v49 = vrot.slane %v2237_v1, 2 }
 0x1f5   : > { %v2316_v26 = vmul.f32 %v2300_v16, %v10931_v10  ;;  %v2303_v45 = vmul.f32 0.125, %v2227_v63  ;;  %v2220_v27 = vadd.f32 %v2219_v20, %v2218_v50  ;;  %v10956_v28 = vsel %vm2136_vm12, %v2119_v12, %v2156_v19 }
 0x1f6   : > { %v2433_v29 = vsel %vm2185_vm5, %v2411_v62, 0.0  ;;  %v2410_v30 = vmul.f32 %v10951_v60, %v10951_v60  ;;  %v10962_v31 = vsub.f32 %v10906_v5, %v2345_v23  ;;  %v2239_v9 = vadd.f32 %v2238_v49, %v2237_v1 }
 0x1f7   : > { %v2434_v24 = vrot.slane %v2433_v29, 4  ;;  %v2341_v34 = vrot.slane %v2316_v26, %v10497_v13  ;;  %v2319_v41 = vmul.f32 %v2303_v45, %v10931_v10  ;;  %v2302_v37 = vmul.f32 0.125, %v2220_v27 }
 0x1f8   : > { %v2426_v38 = vsel %vm2185_vm5, %v2410_v30, 0.0  ;;  %v2413_v61 = vmul.f32 %v10962_v31, %v10962_v31  ;;  %v2240_v3 = vrot.slane %v2239_v9, 1  ;;  %v2228_v7 = vsel %vm2185_vm5, %v10956_v28, 0.0 }
 0x1f9   : > { %v2435_v42 = vadd.f32 %v2434_v24, %v2433_v29  ;;  %v2427_v32 = vrot.slane %v2426_v38, 4  ;;  %v10972_v5 = vsub.f32 %v10912_v18, %v2341_v34  ;;  %v2353_v33 = vrot.slane %v2319_v41, %v10497_v13 }
 0x1fa   : > { %v2447_v43 = vsel %vm2185_vm5, %v2413_v61, 0.0  ;;  %v2318_v44 = vmul.f32 %v2302_v37, %v10931_v10  ;;  %v2241_v46 = vadd.f32 %v2240_v3, %v2239_v9  ;;  %v2229_v14 = vrot.slane %v2228_v7, 4 }
 0x1fb   : > { %v2436_v4 = vrot.slane %v2435_v42, 2  ;;  %v2428_v11 = vadd.f32 %v2427_v32, %v2426_v38  ;;  %v2448_v22 = vrot.slane %v2447_v43, 4  ;;  %v2412_v12 = vmul.f32 %v10972_v5, %v10972_v5 }
 0x1fc   : > { %v10980_v59 = vsub.f32 %v10918_v21, %v2353_v33  ;;  %v2349_v18 = vrot.slane %v2318_v44, %v10497_v13  ;;  %v2305_v47 = vmul.f32 0.125, %v2241_v46  ;;  %v2230_v51 = vadd.f32 %v2229_v14, %v2228_v7 }
 0x1fd   : > { %v2437_v52 = vadd.f32 %v2436_v4, %v2435_v42  ;;  %v2429_v53 = vrot.slane %v2428_v11, 2  ;;  %v2449_v55 = vadd.f32 %v2448_v22, %v2447_v43  ;;  %v2440_v15 = vsel %vm2185_vm5, %v2412_v12, 0.0 }
 0x1fe   : > { %v2441_v57 = vrot.slane %v2440_v15, 4  ;;  %v2415_v58 = vmul.f32 %v10980_v59, %v10980_v59  ;;  %v10987_v48 = vsub.f32 %v10923_v35, %v2349_v18  ;;  %v2321_v36 = vmul.f32 %v2305_v47, %v10931_v10 }
 0x1ff   : > { %v2438_v21 = vrot.slane %v2437_v52, 1  ;;  %v2430_v17 = vadd.f32 %v2429_v53, %v2428_v11  ;;  %v2450_v6 = vrot.slane %v2449_v55, 2  ;;  %v2231_v50 = vrot.slane %v2230_v51, 2 }
 0x200   : > { %v2442_v8 = vadd.f32 %v2441_v57, %v2440_v15  ;;  %v2461_v54 = vsel %vm2185_vm5, %v2415_v58, 0.0  ;;  %v2414_v1 = vmul.f32 %v10987_v48, %v10987_v48  ;;  %v2361_v16 = vrot.slane %v2321_v36, %v10497_v13 }
 0x201   : > { %v2439_v63 = vadd.f32 %v2438_v21, %v2437_v52  ;;  %v2431_v20 = vrot.slane %v2430_v17, 1  ;;  %v2451_v19 = vadd.f32 %v2450_v6, %v2449_v55  ;;  %v2462_v62 = vrot.slane %v2461_v54, 4 }
 0x202   : > { %v2443_v35 = vrot.slane %v2442_v8, 2  ;;  %v2454_v23 = vsel %vm2185_vm5, %v2414_v1, 0.0  ;;  %v10996_v49 = vsub.f32 %v10936_v39, %v2361_v16  ;;  %v2232_v26 = vadd.f32 %v2231_v50, %v2230_v51 }
 0x203   : > { %v2539_v45 = vmul.f32 0.125, %v2439_v63  ;;  %v2432_v27 = vadd.f32 %v2431_v20, %v2430_v17  ;;  %v2452_v29 = vrot.slane %v2451_v19, 1  ;;  %v2463_v30 = vadd.f32 %v2462_v62, %v2461_v54 }
 0x204   : > { %v2444_v9 = vadd.f32 %v2443_v35, %v2442_v8  ;;  %v2455_v24 = vrot.slane %v2454_v23, 4  ;;  %v2417_v34 = vmul.f32 %v10996_v49, %v10996_v49  ;;  %v2233_v41 = vrot.slane %v2232_v26, 1  ;;  %v9552_v37 = vpop.f32.mrf.mxu0 }
 0x205   : > { %v2555_v38 = vadd.f32 1e-05, %v2539_v45  ;;  %v2538_v61 = vmul.f32 0.125, %v2432_v27  ;;  %v2453_v3 = vadd.f32 %v2452_v29, %v2451_v19  ;;  %v2464_v7 = vrot.slane %v2463_v30, 2 }
 0x206   : > { %v2445_v42 = vrot.slane %v2444_v9, 1  ;;  %v2456_v32 = vadd.f32 %v2455_v24, %v2454_v23  ;;  %v2475_v39 = vsel %vm2185_vm5, %v2417_v34, 0.0  ;;  %v2234_v33 = vadd.f32 %v2233_v41, %v2232_v26  ;;  %v2069_v43 = vpop.f32.mrf.mxu0 }
 0x207   : > { %9930 = vrsqrt.f32 %v2555_v38  ;;  %v2554_v44 = vadd.f32 1e-05, %v2538_v61  ;;  %v2541_v46 = vmul.f32 0.125, %v2453_v3  ;;  %v2465_v14 = vadd.f32 %v2464_v7, %v2463_v30 }
 0x208   : > { %v2446_v4 = vadd.f32 %v2445_v42, %v2444_v9  ;;  %v2457_v11 = vrot.slane %v2456_v32, 2  ;;  %v2476_v22 = vrot.slane %v2475_v39, 4  ;;  %v2304_v12 = vmul.f32 0.125, %v2234_v33 }
 0x209   : > { %9932 = vrsqrt.f32 %v2554_v44  ;;  %v2557_v18 = vadd.f32 1e-05, %v2541_v46  ;;  %v2466_v47 = vrot.slane %v2465_v14, 1  ;;  %v2122_v51 = vadd.f32 %v9552_v37, %v10884_v25  ;;  %v9555_v57 = vpop.f32.mrf.mxu0 }
 0x20a   : > { %v2540_v52 = vmul.f32 0.125, %v2446_v4  ;;  %v2458_v53 = vadd.f32 %v2457_v11, %v2456_v32  ;;  %v2477_v55 = vadd.f32 %v2476_v22, %v2475_v39  ;;  %v2320_v15 = vmul.f32 %v2304_v12, %v10931_v10  ;;  %v11029_v32 = vld [vmem:[%s13073_s4 + $0x3] ss:$0 sm:$0xff] }
 0x20b   : > { %9934 = vrsqrt.f32 %v2557_v18  ;;  %v2467_v58 = vadd.f32 %v2466_v47, %v2465_v14  ;;  %vm2139_vm13 = vcmp.gt.f32.partialorder %v2122_v51, 0.0  ;;  %v2159_v36 = vmul.f32 %v10889_v40, %v2122_v51  ;;  %v2079_v30 = vpop.f32.mrf.mxu0 }
 0x20c   : > { %v2556_v21 = vadd.f32 1e-05, %v2540_v52  ;;  %v2459_v17 = vrot.slane %v2458_v53, 1  ;;  %v2478_v6 = vrot.slane %v2477_v55, 2  ;;  %v2357_v50 = vrot.slane %v2320_v15, %v10497_v13 }
 0x20d   : > { %v2543_v8 = vmul.f32 0.125, %v2467_v58  ;;  %v11005_v54 = vsel %vm2139_vm13, %v2122_v51, %v2159_v36  ;;  %v2121_v1 = vadd.f32 %v10884_v25, %v2069_v43  ;;  %v2124_v16 = vadd.f32 %v9555_v57, %v10884_v25 }
 0x20e   : > { %9936 = vrsqrt.f32 %v2556_v21  ;;  %v2460_v63 = vadd.f32 %v2459_v17, %v2458_v53  ;;  %v2479_v20 = vadd.f32 %v2478_v6, %v2477_v55  ;;  %v11010_v19 = vsub.f32 %v10956_v28, %v2357_v50 }
 0x20f   : > { %v2559_v62 = vadd.f32 1e-05, %v2543_v8  ;;  %v2249_v35 = vsel %vm2185_vm5, %v11005_v54, 0.0  ;;  %vm2138_vm14 = vcmp.gt.f32.partialorder %v2121_v1, 0.0  ;;  %v2158_v23 = vmul.f32 %v10889_v40, %v2121_v1 }
 0x210   : > { %v2542_v26 = vmul.f32 0.125, %v2460_v63  ;;  %v2480_v45 = vrot.slane %v2479_v20, 1  ;;  %v2416_v27 = vmul.f32 %v11010_v19, %v11010_v19  ;;  %v2250_v29 = vrot.slane %v2249_v35, 4 }
 0x211   : > { %9938 = vrsqrt.f32 %v2559_v62  ;;  %v11017_v9 = vsel %vm2138_vm14, %v2121_v1, %v2158_v23  ;;  %vm2141_vm15 = vcmp.gt.f32.partialorder %v2124_v16, 0.0  ;;  %v2161_v28 = vmul.f32 %v10889_v40, %v2124_v16  ;;  %v9558_v47 = vpop.f32.mrf.mxu0 }
 0x212   : > { %v2558_v24 = vadd.f32 1e-05, %v2542_v26  ;;  %v2481_v34 = vadd.f32 %v2480_v45, %v2479_v20  ;;  %v2468_v41 = vsel %vm2185_vm5, %v2416_v27, 0.0  ;;  %v2251_v37 = vadd.f32 %v2250_v29, %v2249_v35 }
 0x213   : > { %v2469_v38 = vrot.slane %v2468_v41, 4  ;;  %v2242_v61 = vsel %vm2185_vm5, %v11017_v9, 0.0  ;;  %v11023_v3 = vsel %vm2141_vm15, %v2124_v16, %v2161_v28  ;;  %v2123_v7 = vadd.f32 %v10884_v25, %v2079_v30  ;;  %v2089_v16 = vpop.f32.mrf.mxu0 }
 0x214   : > { %v9931_v42 = vpop.eup %9930  ;;  %9940 = vrsqrt.f32 %v2558_v24  ;;  %v2545_v39 = vmul.f32 0.125, %v2481_v34  ;;  %v2252_v33 = vrot.slane %v2251_v37, 2  ;;  %v2243_v43 = vrot.slane %v2242_v61, 4 }
 0x215   : > { %v2587_v44 = vmul.f32 %v9931_v42, %v10943_v56  ;;  %v2470_v46 = vadd.f32 %v2469_v38, %v2468_v41  ;;  %v2263_v14 = vsel %vm2185_vm5, %v11023_v3, 0.0  ;;  %vm2140_vm1 = vcmp.gt.f32.partialorder %v2123_v7, 0.0 }
 0x216   : > { %v9933_v4 = vpop.eup %9932  ;;  %v2561_v11 = vadd.f32 1e-05, %v2545_v39  ;;  %v2253_v22 = vadd.f32 %v2252_v33, %v2251_v37  ;;  %v2244_v12 = vadd.f32 %v2243_v43, %v2242_v61  ;;  %v2264_v18 = vrot.slane %v2263_v14, 4 }
 0x217   : > { %v11035_v51 = vmul.f32 %v11029_v32, %v2587_v44  ;;  %v11038_v52 = vmul.f32 %v9933_v4, %v10951_v60  ;;  %v2471_v53 = vrot.slane %v2470_v46, 2  ;;  %v2160_v56 = vmul.f32 %v10889_v40, %v2123_v7 }
 0x218   : > { %v9935_v55 = vpop.eup %9934  ;;  %9942 = vrsqrt.f32 %v2561_v11  ;;  %v2254_v15 = vrot.slane %v2253_v22, 1  ;;  %v2245_v57 = vrot.slane %v2244_v12, 2  ;;  %v2265_v58 = vadd.f32 %v2264_v18, %v2263_v14 }
 0x219   : > { %v11042_v36 = vmul.f32 %v9935_v55, %v10962_v31  ;;  %v2472_v21 = vadd.f32 %v2471_v53, %v2470_v46  ;;  %v11045_v17 = vsel %vm2140_vm1, %v2123_v7, %v2160_v56  ;;  %v2126_v6 = vadd.f32 %v9558_v47, %v10884_v25 }
 0x21a   : > { %v2255_v50 = vadd.f32 %v2254_v15, %v2253_v22  ;;  %v2246_v60 = vadd.f32 %v2245_v57, %v2244_v12  ;;  %v2266_v8 = vrot.slane %v2265_v58, 2  ;;  %v2256_v1 = vsel %vm2185_vm5, %v11045_v17, 0.0 }
 0x21b   : > { %v9937_v63 = vpop.eup %9936  ;;  %v2473_v20 = vrot.slane %v2472_v21, 1  ;;  %v2257_v62 = vrot.slane %v2256_v1, 4  ;;  %vm2143_vm3 = vcmp.gt.f32.partialorder %v2126_v6, 0.0  ;;  %v2163_v31 = vmul.f32 %v10889_v40, %v2126_v6 }
 0x21c   : > { %v11052_v35 = vmul.f32 %v9937_v63, %v10972_v5  ;;  %v2307_v23 = vmul.f32 0.125, %v2255_v50  ;;  %v2247_v26 = vrot.slane %v2246_v60, 1  ;;  %v2267_v45 = vadd.f32 %v2266_v8, %v2265_v58 }
 0x21d   : > { %v2474_v27 = vadd.f32 %v2473_v20, %v2472_v21  ;;  %v2258_v29 = vadd.f32 %v2257_v62, %v2256_v1  ;;  %v11054_v30 = vsel %vm2143_vm3, %v2126_v6, %v2163_v31  ;;  %v2125_v28 = vadd.f32 %v10884_v25, %v2089_v16 }
 0x21e   : > { %v9939_v24 = vpop.eup %9938  ;;  %v2323_v34 = vmul.f32 %v2307_v23, %v10931_v10  ;;  %v2248_v41 = vadd.f32 %v2247_v26, %v2246_v60  ;;  %v2268_v37 = vrot.slane %v2267_v45, 1  ;;  %v2277_v38 = vsel %vm2185_vm5, %v11054_v30, 0.0 }
 0x21f   : > { %v11061_v5 = vmul.f32 %v9939_v24, %v10980_v59  ;;  %v2544_v61 = vmul.f32 0.125, %v2474_v27  ;;  %v2259_v7 = vrot.slane %v2258_v29, 2  ;;  %v2278_v42 = vrot.slane %v2277_v38, 4  ;;  %v9561_v47 = vpop.f32.mrf.mxu0 }
 0x220   : > { %v2369_v39 = vrot.slane %v2323_v34, %v10497_v13  ;;  %v2306_v33 = vmul.f32 0.125, %v2248_v41  ;;  %v2269_v43 = vadd.f32 %v2268_v37, %v2267_v45  ;;  %vm2142_vm4 = vcmp.gt.f32.partialorder %v2125_v28, 0.0 }
 0x221   : > { %v9941_v44 = vpop.eup %9940  ;;  %v2560_v46 = vadd.f32 1e-05, %v2544_v61  ;;  %v2260_v14 = vadd.f32 %v2259_v7, %v2258_v29  ;;  %v2279_v4 = vadd.f32 %v2278_v42, %v2277_v38  ;;  %v2162_v11 = vmul.f32 %v10889_v40, %v2125_v28  ;;  %v2099_v26 = vpop.f32.mrf.mxu0 }
 0x222   : > { %v11066_v22 = vmul.f32 %v9941_v44, %v10987_v48  ;;  %v11069_v59 = vsub.f32 %v11005_v54, %v2369_v39  ;;  %v2322_v12 = vmul.f32 %v2306_v33, %v10931_v10  ;;  %v2309_v18 = vmul.f32 0.125, %v2269_v43 }
 0x223   : > { %9944 = vrsqrt.f32 %v2560_v46  ;;  %v2261_v53 = vrot.slane %v2260_v14, 1  ;;  %v2280_v56 = vrot.slane %v2279_v4, 2  ;;  %v11072_v55 = vsel %vm2142_vm4, %v2125_v28, %v2162_v11 }
 0x224   : > { %v2419_v15 = vmul.f32 %v11069_v59, %v11069_v59  ;;  %v2365_v57 = vrot.slane %v2322_v12, %v10497_v13  ;;  %v2325_v48 = vmul.f32 %v2309_v18, %v10931_v10  ;;  %v2270_v54 = vsel %vm2185_vm5, %v11072_v55, 0.0 }
 0x225   : > { %v9943_v58 = vpop.eup %9942  ;;  %v2262_v21 = vadd.f32 %v2261_v53, %v2260_v14  ;;  %v2281_v6 = vadd.f32 %v2280_v56, %v2279_v4  ;;  %v2271_v50 = vrot.slane %v2270_v54, 4  ;;  %v2128_v60 = vadd.f32 %v9561_v47, %v10884_v25 }
 0x226   : > { %v11082_v8 = vmul.f32 %v9943_v58, %v10996_v49  ;;  %v2489_v1 = vsel %vm2185_vm5, %v2419_v15, 0.0  ;;  %v11086_v16 = vsub.f32 %v11017_v9, %v2365_v57  ;;  %v2377_v63 = vrot.slane %v2325_v48, %v10497_v13 }
 0x227   : > { %v2490_v20 = vrot.slane %v2489_v1, 4  ;;  %v2308_v62 = vmul.f32 0.125, %v2262_v21  ;;  %v2282_v31 = vrot.slane %v2281_v6, 1  ;;  %v2272_v23 = vadd.f32 %v2271_v50, %v2270_v54 }
 0x228   : > { %v2418_v45 = vmul.f32 %v11086_v16, %v11086_v16  ;;  %v11092_v27 = vsub.f32 %v11023_v3, %v2377_v63  ;;  %vm2145_vm6 = vcmp.gt.f32.partialorder %v2128_v60, 0.0  ;;  %v2165_v49 = vmul.f32 %v10889_v40, %v2128_v60 }
 0x229   : > { %v2491_v29 = vadd.f32 %v2490_v20, %v2489_v1  ;;  %v2324_v9 = vmul.f32 %v2308_v62, %v10931_v10  ;;  %v2283_v28 = vadd.f32 %v2282_v31, %v2281_v6  ;;  %v2273_v24 = vrot.slane %v2272_v23, 2 }
 0x22a   : > { %v2482_v34 = vsel %vm2185_vm5, %v2418_v45, 0.0  ;;  %v2421_v41 = vmul.f32 %v11092_v27, %v11092_v27  ;;  %v11099_v37 = vsel %vm2145_vm6, %v2128_v60, %v2165_v49  ;;  %v2127_v38 = vadd.f32 %v10884_v25, %v2099_v26 }
 0x22b   : > { %v2492_v61 = vrot.slane %v2491_v29, 2  ;;  %v2483_v3 = vrot.slane %v2482_v34, 4  ;;  %v2373_v7 = vrot.slane %v2324_v9, %v10497_v13  ;;  %v2311_v42 = vmul.f32 0.125, %v2283_v28 }
 0x22c   : > { %v2503_v39 = vsel %vm2185_vm5, %v2421_v41, 0.0  ;;  %v2274_v33 = vadd.f32 %v2273_v24, %v2272_v23  ;;  %v2291_v43 = vsel %vm2185_vm5, %v11099_v37, 0.0  ;;  %vm2144_vm7 = vcmp.gt.f32.partialorder %v2127_v38, 0.0 }
 0x22d   : > { %v2493_v44 = vadd.f32 %v2492_v61, %v2491_v29  ;;  %v2484_v46 = vadd.f32 %v2483_v3, %v2482_v34  ;;  %v2504_v14 = vrot.slane %v2503_v39, 4  ;;  %v11107_v4 = vsub.f32 %v11045_v17, %v2373_v7 }
 0x22e   : > { %v2327_v25 = vmul.f32 %v2311_v42, %v10931_v10  ;;  %v2275_v11 = vrot.slane %v2274_v33, 1  ;;  %v2292_v12 = vrot.slane %v2291_v43, 4  ;;  %v2164_v18 = vmul.f32 %v10889_v40, %v2127_v38 }
 0x22f   : > { %v2494_v47 = vrot.slane %v2493_v44, 1  ;;  %v2485_v53 = vrot.slane %v2484_v46, 2  ;;  %v2505_v56 = vadd.f32 %v2504_v14, %v2503_v39  ;;  %v2420_v15 = vmul.f32 %v11107_v4, %v11107_v4 }
 0x230   : > { %v9945_v57 = vpop.eup %9944  ;;  %v2385_v48 = vrot.slane %v2327_v25, %v10497_v13  ;;  %v2276_v54 = vadd.f32 %v2275_v11, %v2274_v33  ;;  %v2293_v58 = vadd.f32 %v2292_v12, %v2291_v43  ;;  %v11115_v17 = vsel %vm2144_vm7, %v2127_v38, %v2164_v18 }
 0x231   : > { %v11118_v21 = vmul.f32 %v9945_v57, %v11010_v19  ;;  %v2495_v6 = vadd.f32 %v2494_v47, %v2493_v44  ;;  %v2486_v50 = vadd.f32 %v2485_v53, %v2484_v46  ;;  %v2506_v40 = vrot.slane %v2505_v56, 2 }
 0x232   : > { %v2496_v60 = vsel %vm2185_vm5, %v2420_v15, 0.0  ;;  %v11122_v1 = vsub.f32 %v11054_v30, %v2385_v48  ;;  %v2310_v63 = vmul.f32 0.125, %v2276_v54  ;;  %v2294_v20 = vrot.slane %v2293_v58, 2 }
 0x233   : > { %v2547_v62 = vmul.f32 0.125, %v2495_v6  ;;  %v2487_v31 = vrot.slane %v2486_v50, 1  ;;  %v2507_v23 = vadd.f32 %v2506_v40, %v2505_v56  ;;  %v2497_v26 = vrot.slane %v2496_v60, 4  ;;  %v11141_v56 = vld [vmem:[%s13073_s4 + $0x4] ss:$0 sm:$0xff] }
 0x234   : > { %v2423_v45 = vmul.f32 %v11122_v1, %v11122_v1  ;;  %v2326_v19 = vmul.f32 %v2310_v63, %v10931_v10  ;;  %v2295_v49 = vadd.f32 %v2294_v20, %v2293_v58  ;;  %v2284_v29 = vsel %vm2185_vm5, %v11115_v17, 0.0 }
 0x235   : > { %v2563_v9 = vadd.f32 1e-05, %v2547_v62  ;;  %v2488_v28 = vadd.f32 %v2487_v31, %v2486_v50  ;;  %v2508_v24 = vrot.slane %v2507_v23, 1  ;;  %v2498_v30 = vadd.f32 %v2497_v26, %v2496_v60 }
 0x236   : > { %v2517_v34 = vsel %vm2185_vm5, %v2423_v45, 0.0  ;;  %v2381_v41 = vrot.slane %v2326_v19, %v10497_v13  ;;  %v2296_v38 = vrot.slane %v2295_v49, 1  ;;  %v2285_v61 = vrot.slane %v2284_v29, 4 }
 0x237   : > { %9946 = vrsqrt.f32 %v2563_v9  ;;  %v2546_v3 = vmul.f32 0.125, %v2488_v28  ;;  %v2509_v7 = vadd.f32 %v2508_v24, %v2507_v23  ;;  %v2499_v42 = vrot.slane %v2498_v30, 2 }
 0x238   : > { %v2518_v39 = vrot.slane %v2517_v34, 4  ;;  %v11132_v33 = vsub.f32 %v11072_v55, %v2381_v41  ;;  %v2297_v43 = vadd.f32 %v2296_v38, %v2295_v49  ;;  %v2286_v44 = vadd.f32 %v2285_v61, %v2284_v29 }
 0x239   : > { %v2562_v46 = vadd.f32 1e-05, %v2546_v3  ;;  %v2549_v14 = vmul.f32 0.125, %v2509_v7  ;;  %v2500_v25 = vadd.f32 %v2499_v42, %v2498_v30  ;;  %v2606_v11 = vmul.f32 %v11029_v32, %v11038_v52 }
 0x23a   : > { %v2519_v12 = vadd.f32 %v2518_v39, %v2517_v34  ;;  %v2422_v18 = vmul.f32 %v11132_v33, %v11132_v33  ;;  %v2313_v47 = vmul.f32 0.125, %v2297_v43  ;;  %v2287_v53 = vrot.slane %v2286_v44, 2 }
 0x23b   : > { %9948 = vrsqrt.f32 %v2562_v46  ;;  %v2565_v55 = vadd.f32 1e-05, %v2549_v14  ;;  %v2501_v15 = vrot.slane %v2500_v25, 1  ;;  %v2626_v57 = vadd.f32 %v11141_v56, %v2606_v11 }
 0x23c   : > { %v2520_v48 = vrot.slane %v2519_v12, 2  ;;  %v2510_v54 = vsel %vm2185_vm5, %v2422_v18, 0.0  ;;  %v2329_v52 = vmul.f32 %v2313_v47, %v10931_v10  ;;  %v2288_v58 = vadd.f32 %v2287_v53, %v2286_v44 }
 0x23d   : > { %9950 = vrsqrt.f32 %v2565_v55  ;;  %v2502_v6 = vadd.f32 %v2501_v15, %v2500_v25  ;;  %v2511_v50 = vrot.slane %v2510_v54, 4  ;;  %9570 = vmatprep.mubr.msk.f32.mxu1 %vm2185_vm5, %v2626_v57  ;;  %v2627_v40 = vadd.f32 %v11141_v56, %v11035_v51 }
 0x23e   : > { %v2521_v60 = vadd.f32 %v2520_v48, %v2519_v12  ;;  %v2393_v63 = vrot.slane %v2329_v52, %v10497_v13  ;;  %v2289_v20 = vrot.slane %v2288_v58, 1  ;;  %v2608_v62 = vmul.f32 %v11029_v32, %v11052_v35 }
 0x23f   : > { %v2548_v31 = vmul.f32 0.125, %v2502_v6  ;;  %v2512_v23 = vadd.f32 %v2511_v50, %v2510_v54  ;;  %9571 = vmatmul.mubr.msk.f32.vlgmr.msra.gmra.mxu1 %vm2185_vm5, %v2627_v40  ;;  %v2609_v26 = vmul.f32 %v11029_v32, %v11042_v36  ;;  %v2610_v45 = vmul.f32 %v11029_v32, %v11066_v22 }
 0x240   : > { %v2522_v19 = vrot.slane %v2521_v60, 1  ;;  %v11158_v51 = vsub.f32 %v11099_v37, %v2393_v63  ;;  %v2290_v49 = vadd.f32 %v2289_v20, %v2288_v58  ;;  %v2628_v29 = vadd.f32 %v11141_v56, %v2608_v62 }
 0x241   : > { %v2564_v9 = vadd.f32 1e-05, %v2548_v31  ;;  %v2513_v28 = vrot.slane %v2512_v23, 2  ;;  %v2629_v35 = vadd.f32 %v11141_v56, %v2609_v26  ;;  %v2630_v24 = vadd.f32 %v11141_v56, %v2610_v45 }
 0x242   : > { %v2523_v30 = vadd.f32 %v2522_v19, %v2521_v60  ;;  %v2425_v36 = vmul.f32 %v11158_v51, %v11158_v51  ;;  %v2312_v34 = vmul.f32 0.125, %v2290_v49  ;;  %9573 = vmatprep.mubr.msk.f32.mxu1 %vm2185_vm5, %v2628_v29  ;;  %v2611_v22 = vmul.f32 %v11029_v32, %v11061_v5 }
 0x243   : > { %9952 = vrsqrt.f32 %v2564_v9  ;;  %v2514_v37 = vadd.f32 %v2513_v28, %v2512_v23  ;;  %9574 = vmatmul.mubr.msk.f32.gmra.mxu1 %vm2185_vm5, %v2629_v35  ;;  %v2612_v41 = vmul.f32 %v11029_v32, %v11118_v21  ;;  %v2613_v42 = vmul.f32 %v11029_v32, %v11082_v8 }
 0x244   : > { %v9947_v38 = vpop.eup %9946  ;;  %v2551_v61 = vmul.f32 0.125, %v2523_v30  ;;  %v2531_v3 = vsel %vm2185_vm5, %v2425_v36, 0.0  ;;  %v2328_v7 = vmul.f32 %v2312_v34, %v10931_v10  ;;  %9576 = vmatprep.mubr.msk.f32.mxu1 %vm2185_vm5, %v2630_v24  ;;  %v2631_v43 = vadd.f32 %v11141_v56, %v2611_v22 }
 0x245   : > { %v2515_v39 = vrot.slane %v2514_v37, 1  ;;  %v2532_v5 = vrot.slane %v2531_v3, 4  ;;  %v2632_v44 = vadd.f32 %v11141_v56, %v2612_v41  ;;  %v2595_v46 = vmul.f32 %v9947_v38, %v11069_v59 }
 0x246   : > { %v2567_v21 = vadd.f32 1e-05, %v2551_v61  ;;  %v2389_v14 = vrot.slane %v2328_v7, %v10497_v13  ;;  %v2633_v53 = vadd.f32 %v11141_v56, %v2613_v42 }
 0x247   : > { %v2516_v25 = vadd.f32 %v2515_v39, %v2514_v37  ;;  %v2533_v11 = vadd.f32 %v2532_v5, %v2531_v3  ;;  %9577 = vmatmul.mubr.msk.f32.gmra.mxu1 %vm2185_vm5, %v2631_v43  ;;  %v2615_v15 = vmul.f32 %v11029_v32, %v2595_v46  ;;  %v10267_v46 = vld [vmem:[%s10648_s23 + $0x8] sm:$0xff] }
 0x248   : > { %v9949_v10 = vpop.eup %9948  ;;  %9954 = vrsqrt.f32 %v2567_v21  ;;  %v2408_v12 = vsub.f32 %v11115_v17, %v2389_v14  ;;  %9579 = vmatprep.mubr.msk.f32.mxu1 %vm2185_vm5, %v2632_v44  ;;  %v10266_v44 = vld [vmem:[%s10648_s23] sm:$0xff]  ;;  %v10268_v21 = vld [vmem:[%s10648_s23 + $0x10] sm:$0xff] }
 0x249   : > { %v2594_v8 = vmul.f32 %v9949_v10, %v11086_v16  ;;  %v2550_v18 = vmul.f32 0.125, %v2516_v25  ;;  %v2534_v47 = vrot.slane %v2533_v11, 2  ;;  %v2635_v50 = vadd.f32 %v11141_v56, %v2615_v15  ;;  %v10270_v10 = vld [vmem:[%s10648_s23 + $0x20] sm:$0xff]  ;;  %v10275_v15 = vld [vmem:[%s10648_s23 + $0x48] sm:$0xff] }
 0x24a   : > { %v9951_v59 = vpop.eup %9950  ;;  %v2424_v55 = vmul.f32 %v2408_v12, %v2408_v12 }
 0x24b   : > { %v2566_v57 = vadd.f32 1e-05, %v2550_v18  ;;  %v2535_v48 = vadd.f32 %v2534_v47, %v2533_v11  ;;  %9580 = vmatmul.mubr.msk.f32.gmra.mxu1 %vm2185_vm5, %v2633_v53  ;;  %v2614_v54 = vmul.f32 %v11029_v32, %v2594_v8  ;;  %v2597_v6 = vmul.f32 %v9951_v59, %v11092_v27  ;;  %v10269_v11 = vld [vmem:[%s10648_s23 + $0x18] sm:$0xff]  ;;  %v10271_v8 = vld [vmem:[%s10648_s23 + $0x28] sm:$0xff]  ;;  %v10272_v18 = vld [vmem:[%s10648_s23 + $0x30] sm:$0xff] }
 0x24c   : > { %v2524_v17 = vsel %vm2185_vm5, %v2424_v55, 0.0  ;;  %v10273_v59 = vld [vmem:[%s10648_s23 + $0x38] sm:$0xff]  ;;  %v10274_v55 = vld [vmem:[%s10648_s23 + $0x40] sm:$0xff] }
 0x24d   : > { %9956 = vrsqrt.f32 %v2566_v57  ;;  %v2536_v52 = vrot.slane %v2535_v48, 1  ;;  %v2525_v58 = vrot.slane %v2524_v17, 4  ;;  %v2634_v16 = vadd.f32 %v11141_v56, %v2614_v54  ;;  %v10276_v54 = vld [vmem:[%s10648_s23 + $0x58] sm:$0xff] }
 0x24e   : > { %v2617_v23 = vmul.f32 %v11029_v32, %v2597_v6  ;;  %v10279_v6 = vld [vmem:[%s10648_s23 + $0x60] sm:$0xff] }
 0x24f   : > { %v2537_v40 = vadd.f32 %v2536_v52, %v2535_v48  ;;  %v2526_v60 = vadd.f32 %v2525_v58, %v2524_v17  ;;  %9582 = vmatprep.mubr.msk.f32.mxu1 %vm2185_vm5, %v2634_v16  ;;  %v10277_v17 = vld [vmem:[%s10648_s23 + $0x50] sm:$0xff]  ;;  %v10278_v16 = vld [vmem:[%s10648_s23 + $0x68] sm:$0xff] }
 0x250   : > { %v9953_v63 = vpop.eup %9952  ;;  %9583 = vmatmul.mubr.msk.f32.gmra.mxu1 %vm2185_vm5, %v2635_v50  ;;  %v2637_v9 = vadd.f32 %v11141_v56, %v2617_v23  ;;  %v11307_v23 = vld [vmem:[%s13073_s4 + $0xd] ss:$0 sm:$0xff] }
 0x251   : > { %v2596_v20 = vmul.f32 %v9953_v63, %v11107_v4  ;;  %v2553_v62 = vmul.f32 0.125, %v2537_v40  ;;  %v2527_v31 = vrot.slane %v2526_v60, 2  ;;  %v10281_v63 = vld [vmem:[%s10648_s23 + $0x70] sm:$0xff] }
 0x253   : > { %v2528_v26 = vadd.f32 %v2527_v31, %v2526_v60  ;;  %v2616_v45 = vmul.f32 %v11029_v32, %v2596_v20  ;;  %v2569_v19 = vadd.f32 1e-05, %v2553_v62  ;;  %v10280_v60 = vld [vmem:[%s10648_s23 + $0x78] sm:$0xff]  ;;  %v4478_v62 = vld [vmem:[%s13071_s2 + $0x50] sm:$0xff]  ;;  %v4477_v31 = vld [vmem:[%s13071_s2 + $0x48] sm:$0xff] }
 0x254   : > { %v4479_v20 = vld [vmem:[%s13071_s2 + $0x58] sm:$0xff] }
 0x255   : > { %v9955_v27 = vpop.eup %9954  ;;  %v2529_v49 = vrot.slane %v2528_v26, 1  ;;  %v2636_v29 = vadd.f32 %v11141_v56, %v2616_v45  ;;  %9958 = vrsqrt.f32 %v2569_v19  ;;  %v11315_v19 = vld [vmem:[%s13073_s4 + $0x10] ss:$0 sm:$0xff] }
 0x256   : > { %v2599_v35 = vmul.f32 %v9955_v27, %v11122_v1 }
 0x257   : > { %v2530_v28 = vadd.f32 %v2529_v49, %v2528_v26  ;;  %9585 = vmatprep.mubr.msk.f32.mxu1 %vm2185_vm5, %v2636_v29  ;;  %v4476_v26 = vld [vmem:[%s13071_s2 + $0x40] sm:$0xff] }
 0x258   : > { %9586 = vmatmul.mubr.msk.f32.gmra.mxu1 %vm2185_vm5, %v2637_v9  ;;  %v2619_v34 = vmul.f32 %v11029_v32, %v2599_v35 }
 0x259   : > { %v2552_v4 = vmul.f32 0.125, %v2530_v28 }
 0x25a   : > { %v9957_v24 = vpop.eup %9956  ;;  %v2639_v41 = vadd.f32 %v11141_v56, %v2619_v34 }
 0x25b   : > { %v2598_v30 = vmul.f32 %v9957_v24, %v11132_v33  ;;  %v2568_v36 = vadd.f32 1e-05, %v2552_v4 }
 0x25d   : > { %9960 = vrsqrt.f32 %v2568_v36  ;;  %v2618_v22 = vmul.f32 %v11029_v32, %v2598_v30 }
 0x25f   : > { %v2638_v37 = vadd.f32 %v11141_v56, %v2618_v22 }
 0x261   : > { %9588 = vmatprep.mubr.msk.f32.mxu1 %vm2185_vm5, %v2638_v37 }
 0x262   : > { %9589 = vmatmul.mubr.msk.f32.gmra.mxu1 %vm2185_vm5, %v2639_v41  ;;  %v9959_v1 = vpop.eup %9958 }
 0x263   : > { %v2601_v38 = vmul.f32 %v9959_v1, %v11158_v51 }
 0x265   : > { %v2621_v3 = vmul.f32 %v11029_v32, %v2601_v38 }
 0x267   : > { %v2641_v39 = vadd.f32 %v11141_v56, %v2621_v3 }
 0x26a   : > { %v9961_v61 = vpop.eup %9960 }
 0x26b   : > { %v2600_v33 = vmul.f32 %v9961_v61, %v2408_v12 }
 0x26d   : > { %v2620_v7 = vmul.f32 %v11029_v32, %v2600_v33 }
 0x26f   : > { %v2640_v42 = vadd.f32 %v11141_v56, %v2620_v7 }
 0x271   : > { %9591 = vmatprep.mubr.msk.f32.mxu1 %vm2185_vm5, %v2640_v42 }
 0x272   : > { %9592 = vmatmul.mubr.msk.f32.gmra.mxu1 %vm2185_vm5, %v2641_v39 }
 0x273   : > { %9606 = vmatprep.mubr.msk.f32.mxu1 %vm10371_vm0, %v10370_v0 }
 0x2ff   : > { %v9572_v51 = vpop.f32.mrf.mxu1 }
 0x301   : > { %v2760_v5 = vpop.f32.mrf.mxu1 }
 0x302   : > { %9595 = vmatpush3.msra.mxu0 %v2760_v5 }
 0x303   : > { %v9575_v43 = vpop.f32.mrf.mxu1  ;;  %9597 = vmatmul.mubr.msk.f32.vlgmr.msra.gmra.mxu0 %vm741_vm2, %v10266_v44  ;;  %9599 = vmatprep.subr.mxu0 %v10370_v0 }
 0x304   : > { %9600 = vmatpush3.msra.mxu0 %v9572_v51  ;;  %9601 = vmatprep.mubr.msk.f32.mxu0 %vm10371_vm0, %v10370_v0 }
 0x305   : > { %v2770_v32 = vpop.f32.mrf.mxu1  ;;  %9609 = vmatprep.subr.mxu0 %v10370_v0 }
 0x306   : > { %9605 = vmatpush3.msra.mxu1 %v2770_v32 }
 0x307   : > { %v9578_v56 = vpop.f32.mrf.mxu1  ;;  %9602 = vmatmul.mubr.msk.f32.vlgmr.msra.gmra.mxu0 %vm741_vm2, %v10267_v46  ;;  %9607 = vmatmul.mubr.msk.f32.vlgmr.msra.gmra.mxu1 %vm741_vm2, %v10268_v21 }
 0x308   : > { %9610 = vmatpush3.msra.mxu0 %v9575_v43  ;;  %9614 = vmatprep.subr.mxu1 %v10370_v0 }
 0x309   : > { %v2780_v14 = vpop.f32.mrf.mxu1  ;;  %9611 = vmatprep.mubr.msk.f32.mxu0 %vm10371_vm0, %v10370_v0  ;;  %9616 = vmatprep.mubr.msk.f32.mxu1 %vm10371_vm0, %v10370_v0 }
 0x30a   : > { %9615 = vmatpush3.msra.mxu1 %v2780_v14  ;;  %9619 = vmatprep.subr.mxu0 %v10370_v0 }
 0x30b   : > { %v9581_v25 = vpop.f32.mrf.mxu1  ;;  %9612 = vmatmul.mubr.msk.f32.vlgmr.msra.gmra.mxu0 %vm741_vm2, %v10269_v11  ;;  %9617 = vmatmul.mubr.msk.f32.vlgmr.msra.gmra.mxu1 %vm741_vm2, %v10270_v10 }
 0x30c   : > { %9620 = vmatpush3.msra.mxu0 %v9578_v56  ;;  %9624 = vmatprep.subr.mxu1 %v10370_v0 }
 0x30d   : > { %v2790_v12 = vpop.f32.mrf.mxu1  ;;  %9621 = vmatprep.mubr.msk.f32.mxu0 %vm10371_vm0, %v10370_v0  ;;  %9626 = vmatprep.mubr.msk.f32.mxu1 %vm10371_vm0, %v10370_v0 }
 0x30e   : > { %9625 = vmatpush3.msra.mxu1 %v2790_v12  ;;  %9629 = vmatprep.subr.mxu0 %v10370_v0 }
 0x30f   : > { %9622 = vmatmul.mubr.msk.f32.vlgmr.msra.gmra.mxu0 %vm741_vm2, %v10271_v8  ;;  %9627 = vmatmul.mubr.msk.f32.vlgmr.msra.gmra.mxu1 %vm741_vm2, %v10272_v18 }
 0x310   : > { %v9584_v47 = vpop.f32.mrf.mxu1  ;;  %9630 = vmatpush3.msra.mxu0 %v9581_v25  ;;  %9634 = vmatprep.subr.mxu1 %v10370_v0 }
 0x311   : > { %9631 = vmatprep.mubr.msk.f32.mxu0 %vm10371_vm0, %v10370_v0  ;;  %9636 = vmatprep.mubr.msk.f32.mxu1 %vm10371_vm0, %v10370_v0 }
 0x312   : > { %v2800_v53 = vpop.f32.mrf.mxu1  ;;  %9639 = vmatprep.subr.mxu0 %v10370_v0 }
 0x313   : > { %9635 = vmatpush3.msra.mxu1 %v2800_v53  ;;  %9632 = vmatmul.mubr.msk.f32.vlgmr.msra.gmra.mxu0 %vm741_vm2, %v10273_v59 }
 0x314   : > { %9637 = vmatmul.mubr.msk.f32.vlgmr.msra.gmra.mxu1 %vm741_vm2, %v10274_v55  ;;  %9640 = vmatpush3.msra.mxu0 %v9584_v47 }
 0x315   : > { %9644 = vmatprep.subr.mxu1 %v10370_v0  ;;  %9641 = vmatprep.mubr.msk.f32.mxu0 %vm10371_vm0, %v10370_v0 }
 0x316   : > { %9646 = vmatprep.mubr.msk.f32.mxu1 %vm10371_vm0, %v10370_v0  ;;  %9649 = vmatprep.subr.mxu0 %v10370_v0 }
 0x317   : > { %9642 = vmatmul.mubr.msk.f32.vlgmr.msra.gmra.mxu0 %vm741_vm2, %v10275_v15 }
 0x318   : > { %v9587_v57 = vpop.f32.mrf.mxu1  ;;  %9651 = vmatprep.mubr.msk.f32.mxu0 %vm10371_vm0, %v10370_v0 }
 0x319   : > { %9650 = vmatpush3.msra.mxu0 %v9587_v57 }
 0x31a   : > { %v2810_v48 = vpop.f32.mrf.mxu1  ;;  %9659 = vmatprep.subr.mxu0 %v10370_v0 }
 0x31b   : > { %9645 = vmatpush3.msra.mxu1 %v2810_v48  ;;  %9652 = vmatmul.mubr.msk.f32.vlgmr.msra.gmra.mxu0 %vm741_vm2, %v10276_v54 }
 0x31c   : > { %9647 = vmatmul.mubr.msk.f32.vlgmr.msra.gmra.mxu1 %vm741_vm2, %v10277_v17  ;;  %9654 = vmatprep.subr.mxu1 %v10370_v0 }
 0x31d   : > { %9656 = vmatprep.mubr.msk.f32.mxu1 %vm10371_vm0, %v10370_v0  ;;  %9661 = vmatprep.mubr.msk.f32.mxu0 %vm10371_vm0, %v10370_v0 }
 0x322   : > { %v9590_v52 = vpop.f32.mrf.mxu1 }
 0x323   : > { %9660 = vmatpush3.msra.mxu0 %v9590_v52 }
 0x324   : > { %v2820_v58 = vpop.f32.mrf.mxu1  ;;  %9669 = vmatprep.subr.mxu0 %v10370_v0  ;;  %9662 = vmatmul.mubr.msk.f32.vlgmr.msra.gmra.mxu0 %vm741_vm2, %v10278_v16 }
 0x325   : > { %9655 = vmatpush3.msra.mxu1 %v2820_v58  ;;  %9671 = vmatprep.mubr.msk.f32.mxu0 %vm10371_vm0, %v10370_v0 }
 0x326   : > { %9657 = vmatmul.mubr.msk.f32.vlgmr.msra.gmra.mxu1 %vm741_vm2, %v10279_v6  ;;  %9664 = vmatprep.subr.mxu1 %v10370_v0 }
 0x327   : > { %9666 = vmatprep.mubr.msk.f32.mxu1 %vm10371_vm0, %v10370_v0 }
 0x332   : > { %v9593_v50 = vpop.f32.mrf.mxu1 }
 0x333   : > { %9670 = vmatpush3.msra.mxu0 %v9593_v50 }
 0x334   : > { %v2830_v40 = vpop.f32.mrf.mxu1  ;;  %9672 = vmatmul.mubr.msk.f32.vlgmr.msra.gmra.mxu0 %vm741_vm2, %v10280_v60  ;;  %9706 = vmatprep.subr.mxu0 %v10370_v0 }
 0x335   : > { %9665 = vmatpush3.msra.mxu1 %v2830_v40  ;;  %9708 = vmatprep.mubr.msk.f32.mxu0 %vm10371_vm0, %v10370_v0 }
 0x336   : > { %9667 = vmatmul.mubr.msk.f32.vlgmr.msra.gmra.mxu1 %vm741_vm2, %v10281_v63  ;;  %9674 = vmatprep.subr.mxu1 %v4479_v20  ;;  %v11356_v63 = vld [vmem:[%s13073_s4 + $0x8] sm:$0x1] }
 0x337   : > { %9675 = vmatpush3.msra.mxu1 %v4479_v20 }
 0x338   : > { %9676 = vmatprep.subr.mxu1 %v4478_v62 }
 0x339   : > { %9677 = vmatpush3.msra.mxu1 %v4478_v62 }
 0x33a   : > { %9678 = vmatprep.subr.mxu1 %v4477_v31 }
 0x33b   : > { %9679 = vmatpush3.msra.mxu1 %v4477_v31 }
 0x33c   : > { %9680 = vmatprep.subr.mxu1 %v4476_v26 }
 0x33d   : > { %9681 = vmatpush3.msra.mxu1 %v4476_v26 }
 0x33e   : > { %9751 = vmatprep.subr.mxu1 %v10370_v0 }
 0x3c3   : > { %v2910_v45 = vpop.f32.mrf.mxu0 }
 0x3c4   : > { %v2911_v27 = vadd.f32 %v11307_v23, %v2910_v45 }
 0x3c5   : > { %v9598_v49 = vpop.f32.mrf.mxu0 }
 0x3c6   : > { %vm3965_vm8 = vcmp.gt.f32.partialorder %v2911_v27, 0.0  ;;  %v3985_v29 = vmul.f32 %v11315_v19, %v2911_v27 }
 0x3c7   : > { %v2980_v9 = vpop.f32.mrf.mxu0  ;;  %v3050_v28 = vpop.f32.mrf.mxu1 }
 0x3c8   : > { %v11320_v35 = vsel %vm3965_vm8, %v2911_v27, %v3985_v29  ;;  %v2981_v4 = vadd.f32 %v11307_v23, %v2980_v9  ;;  %v3051_v24 = vadd.f32 %v11307_v23, %v3050_v28 }
 0x3c9   : > { %v4020_v30 = vsel %vm2185_vm5, %v11320_v35, 0.0  ;;  %v9603_v36 = vpop.f32.mrf.mxu0  ;;  %v9608_v34 = vpop.f32.mrf.mxu1 }
 0x3ca   : > { %v4021_v22 = vrot.slane %v4020_v30, 4  ;;  %vm3966_vm9 = vcmp.gt.f32.partialorder %v2981_v4, 0.0  ;;  %v3986_v37 = vmul.f32 %v11315_v19, %v2981_v4  ;;  %vm3967_vm10 = vcmp.gt.f32.partialorder %v3051_v24, 0.0 }
 0x3cb   : > { %v3987_v41 = vmul.f32 %v11315_v19, %v3051_v24  ;;  %v3120_v1 = vpop.f32.mrf.mxu0  ;;  %v3190_v38 = vpop.f32.mrf.mxu1 }
 0x3cc   : > { %v4022_v61 = vadd.f32 %v4021_v22, %v4020_v30  ;;  %v11328_v33 = vsel %vm3966_vm9, %v2981_v4, %v3986_v37  ;;  %v3121_v3 = vadd.f32 %v11307_v23, %v3120_v1  ;;  %v3191_v7 = vadd.f32 %v11307_v23, %v3190_v38 }
 0x3cd   : > { %v4027_v42 = vsel %vm2185_vm5, %v11328_v33, 0.0  ;;  %v11334_v39 = vsel %vm3967_vm10, %v3051_v24, %v3987_v41  ;;  %v9613_v51 = vpop.f32.mrf.mxu0  ;;  %v9618_v5 = vpop.f32.mrf.mxu1 }
 0x3ce   : > { %v4023_v43 = vrot.slane %v4022_v61, 2  ;;  %v4028_v44 = vrot.slane %v4027_v42, 4  ;;  %v4034_v32 = vsel %vm2185_vm5, %v11334_v39, 0.0  ;;  %vm3968_vm11 = vcmp.gt.f32.partialorder %v3121_v3, 0.0 }
 0x3cf   : > { %v4035_v56 = vrot.slane %v4034_v32, 4  ;;  %v3988_v46 = vmul.f32 %v11315_v19, %v3121_v3  ;;  %vm3969_vm12 = vcmp.gt.f32.partialorder %v3191_v7, 0.0  ;;  %v3989_v21 = vmul.f32 %v11315_v19, %v3191_v7  ;;  %v3260_v14 = vpop.f32.mrf.mxu0  ;;  %v3330_v25 = vpop.f32.mrf.mxu1 }
 0x3d0   : > { %v4024_v11 = vadd.f32 %v4023_v43, %v4022_v61  ;;  %v4029_v10 = vadd.f32 %v4028_v44, %v4027_v42  ;;  %v3261_v12 = vadd.f32 %v11307_v23, %v3260_v14  ;;  %v3331_v8 = vadd.f32 %v11307_v23, %v3330_v25 }
 0x3d1   : > { %v4036_v18 = vadd.f32 %v4035_v56, %v4034_v32  ;;  %v11342_v47 = vsel %vm3968_vm11, %v3121_v3, %v3988_v46  ;;  %v11344_v53 = vsel %vm3969_vm12, %v3191_v7, %v3989_v21  ;;  %v9623_v59 = vpop.f32.mrf.mxu0  ;;  %v9628_v55 = vpop.f32.mrf.mxu1  ;;  %vm7169_vm11 = vcmask 1043459  }
 0x3d2   : > { %v4025_v15 = vrot.slane %v4024_v11, 1  ;;  %v4030_v57 = vrot.slane %v4029_v10, 2  ;;  %v4041_v48 = vsel %vm2185_vm5, %v11342_v47, 0.0  ;;  %v4048_v54 = vsel %vm2185_vm5, %v11344_v53, 0.0 }
 0x3d3   : > { %v4037_v17 = vrot.slane %v4036_v18, 2  ;;  %v4042_v52 = vrot.slane %v4041_v48, 4  ;;  %v4049_v58 = vrot.slane %v4048_v54, 4  ;;  %vm3970_vm13 = vcmp.gt.f32.partialorder %v3261_v12, 0.0  ;;  %v3400_v16 = vpop.f32.mrf.mxu0 }
 0x3d4   : > { %v4026_v6 = vadd.f32 %v4025_v15, %v4024_v11  ;;  %v4031_v50 = vadd.f32 %v4030_v57, %v4029_v10  ;;  %v3990_v40 = vmul.f32 %v11315_v19, %v3261_v12  ;;  %vm3971_vm14 = vcmp.gt.f32.partialorder %v3331_v8, 0.0  ;;  %v11351_v60 = vpop.f32.mrf.mxu1 }
 0x3d5   : > { %v4038_v20 = vadd.f32 %v4037_v17, %v4036_v18  ;;  %v4043_v62 = vadd.f32 %v4042_v52, %v4041_v48  ;;  %v4050_v31 = vadd.f32 %v4049_v58, %v4048_v54  ;;  %v3991_v26 = vmul.f32 %v11315_v19, %v3331_v8  ;;  %v9633_v45 = vpop.f32.mrf.mxu0 }
 0x3d6   : > { %v4132_v27 = vmul.f32 0.125, %v4026_v6  ;;  %v4032_v49 = vrot.slane %v4031_v50, 1  ;;  %v11359_v29 = vsel %vm3970_vm13, %v3261_v12, %v3990_v40  ;;  %v3401_v9 = vadd.f32 %v11307_v23, %v3400_v16  ;;  %v9638_v28 = vpop.f32.mrf.mxu1 }
 0x3d7   : > { %v4039_v4 = vrot.slane %v4038_v20, 1  ;;  %v4044_v24 = vrot.slane %v4043_v62, 2  ;;  %v4051_v30 = vrot.slane %v4050_v31, 2  ;;  %v4055_v36 = vsel %vm2185_vm5, %v11359_v29, 0.0  ;;  %v11364_v34 = vpop.f32.mrf.mxu0 }
 0x3d8   : > { %v4148_v22 = vmul.f32 %v4132_v27, %v11356_v63  ;;  %v4033_v37 = vadd.f32 %v4032_v49, %v4031_v50  ;;  %v4056_v41 = vrot.slane %v4055_v36, 4  ;;  %v11368_v1 = vsel %vm3971_vm14, %v3331_v8, %v3991_v26 }
 0x3d9   : > { %v4040_v38 = vadd.f32 %v4039_v4, %v4038_v20  ;;  %v4045_v61 = vadd.f32 %v4044_v24, %v4043_v62  ;;  %v4052_v3 = vadd.f32 %v4051_v30, %v4050_v31  ;;  %v4062_v7 = vsel %vm2185_vm5, %v11368_v1, 0.0  ;;  %v9643_v42 = vpop.f32.mrf.mxu0 }
 0x3da   : > { %v4167_v51 = vrot.slane %v4148_v22, %v10497_v13  ;;  %v4133_v5 = vmul.f32 0.125, %v4033_v37  ;;  %v4057_v43 = vadd.f32 %v4056_v41, %v4055_v36  ;;  %v4063_v44 = vrot.slane %v4062_v7, 4 }
 0x3db   : > { %v4134_v32 = vmul.f32 0.125, %v4040_v38  ;;  %v4046_v56 = vrot.slane %v4045_v61, 1  ;;  %v4053_v46 = vrot.slane %v4052_v3, 1  ;;  %vm3972_vm15 = vcmp.gt.f32.partialorder %v3401_v9, 0.0  ;;  %v11373_v21 = vpop.f32.mrf.mxu0 }
 0x3dc   : > { %v11376_v14 = vsub.f32 %v11320_v35, %v4167_v51  ;;  %v4149_v25 = vmul.f32 %v4133_v5, %v11356_v63  ;;  %v4058_v11 = vrot.slane %v4057_v43, 2  ;;  %v4064_v10 = vadd.f32 %v4063_v44, %v4062_v7  ;;  %v11379_v12 = vpop.f32.mrf.mxu1 }
 0x3dd   : > { %v4150_v8 = vmul.f32 %v4134_v32, %v11356_v63  ;;  %v4047_v18 = vadd.f32 %v4046_v56, %v4045_v61  ;;  %v4054_v59 = vadd.f32 %v4053_v46, %v4052_v3  ;;  %v3992_v55 = vmul.f32 %v11315_v19, %v3401_v9  ;;  %v9653_v15 = vpop.f32.mrf.mxu0 }
 0x3de   : > { %v4244_v57 = vmul.f32 %v11376_v14, %v11376_v14  ;;  %v4171_v48 = vrot.slane %v4149_v25, %v10497_v13  ;;  %v4059_v35 = vadd.f32 %v4058_v11, %v4057_v43  ;;  %v4065_v54 = vrot.slane %v4064_v10, 2  ;;  %v9648_v17 = vpop.f32.mrf.mxu1 }
 0x3df   : > { %v4175_v52 = vrot.slane %v4150_v8, %v10497_v13  ;;  %v4135_v58 = vmul.f32 0.125, %v4047_v18  ;;  %v4136_v16 = vmul.f32 0.125, %v4054_v59  ;;  %v11388_v6 = vsel %vm3972_vm15, %v3401_v9, %v3992_v55 }
 0x3e0   : > { %v4260_v50 = vsel %vm2185_vm5, %v4244_v57, 0.0  ;;  %v11392_v40 = vsub.f32 %v11328_v33, %v4171_v48  ;;  %v4060_v20 = vrot.slane %v4059_v35, 1  ;;  %v4066_v62 = vadd.f32 %v4065_v54, %v4064_v10 }
 0x3e1   : > { %v4261_v31 = vrot.slane %v4260_v50, 4  ;;  %v11395_v26 = vsub.f32 %v11334_v39, %v4175_v52  ;;  %v4151_v45 = vmul.f32 %v4135_v58, %v11356_v63  ;;  %v4152_v27 = vmul.f32 %v4136_v16, %v11356_v63 }
 0x3e2   : > { %v4245_v49 = vmul.f32 %v11392_v40, %v11392_v40  ;;  %v4061_v9 = vadd.f32 %v4060_v20, %v4059_v35  ;;  %v4067_v28 = vrot.slane %v4066_v62, 1  ;;  %v4069_v4 = vsel %vm2185_vm5, %v11388_v6, 0.0 }
 0x3e3   : > { %v4262_v33 = vadd.f32 %v4261_v31, %v4260_v50  ;;  %v4246_v24 = vmul.f32 %v11395_v26, %v11395_v26  ;;  %v4179_v30 = vrot.slane %v4151_v45, %v10497_v13  ;;  %v4183_v39 = vrot.slane %v4152_v27, %v10497_v13 }
 0x3e4   : > { %v4267_v36 = vsel %vm2185_vm5, %v4245_v49, 0.0  ;;  %v4137_v22 = vmul.f32 0.125, %v4061_v9  ;;  %v4068_v37 = vadd.f32 %v4067_v28, %v4066_v62  ;;  %v4070_v41 = vrot.slane %v4069_v4, 4  ;;  %v11408_v38 = vpop.f32.mrf.mxu0 }
 0x3e5   : > { %v4263_v61 = vrot.slane %v4262_v33, 2  ;;  %v4268_v3 = vrot.slane %v4267_v36, 4  ;;  %v4274_v7 = vsel %vm2185_vm5, %v4246_v24, 0.0  ;;  %v11412_v42 = vsub.f32 %v11342_v47, %v4179_v30 }
 0x3e6   : > { %v4275_v51 = vrot.slane %v4274_v7, 4  ;;  %v11415_v5 = vsub.f32 %v11344_v53, %v4183_v39  ;;  %v4153_v43 = vmul.f32 %v4137_v22, %v11356_v63  ;;  %v4138_v44 = vmul.f32 0.125, %v4068_v37  ;;  %v11418_v32 = vpop.f32.mrf.mxu1  ;;  %v9663_v56 = vpop.f32.mrf.mxu0 }
 0x3e7   : > { %v4264_v46 = vadd.f32 %v4263_v61, %v4262_v33  ;;  %v4269_v25 = vadd.f32 %v4268_v3, %v4267_v36  ;;  %v4247_v11 = vmul.f32 %v11412_v42, %v11412_v42  ;;  %v4071_v10 = vadd.f32 %v4070_v41, %v4069_v4 }
 0x3e8   : > { %v4276_v8 = vadd.f32 %v4275_v51, %v4274_v7  ;;  %v4248_v47 = vmul.f32 %v11415_v5, %v11415_v5  ;;  %v4187_v18 = vrot.slane %v4153_v43, %v10497_v13  ;;  %v4154_v53 = vmul.f32 %v4138_v44, %v11356_v63  ;;  %v9658_v59 = vpop.f32.mrf.mxu1 }
 0x3e9   : > { %v4265_v55 = vrot.slane %v4264_v46, 1  ;;  %v4270_v15 = vrot.slane %v4269_v25, 2  ;;  %v4281_v57 = vsel %vm2185_vm5, %v4247_v11, 0.0  ;;  %v4072_v48 = vrot.slane %v4071_v10, 2 }
 0x3ea   : > { %v4277_v35 = vrot.slane %v4276_v8, 2  ;;  %v4282_v54 = vrot.slane %v4281_v57, 4  ;;  %v4288_v17 = vsel %vm2185_vm5, %v4248_v47, 0.0  ;;  %v11429_v52 = vsub.f32 %v11359_v29, %v4187_v18 }
 0x3eb   : > { %v4266_v58 = vadd.f32 %v4265_v55, %v4264_v46  ;;  %v4271_v16 = vadd.f32 %v4270_v15, %v4269_v25  ;;  %v4289_v50 = vrot.slane %v4288_v17, 4  ;;  %v4191_v20 = vrot.slane %v4154_v53, %v10497_v13 }
 0x3ec   : > { %v4278_v62 = vadd.f32 %v4277_v35, %v4276_v8  ;;  %v4283_v31 = vadd.f32 %v4282_v54, %v4281_v57  ;;  %v4249_v45 = vmul.f32 %v11429_v52, %v11429_v52  ;;  %v4073_v27 = vadd.f32 %v4072_v48, %v4071_v10 }
 0x3ed   : > { %v4372_v49 = vmul.f32 0.125, %v4266_v58  ;;  %v4272_v9 = vrot.slane %v4271_v16, 1  ;;  %v4290_v28 = vadd.f32 %v4289_v50, %v4288_v17  ;;  %v11435_v4 = vsub.f32 %v11368_v1, %v4191_v20 }
 0x3ee   : > { %v4279_v33 = vrot.slane %v4278_v62, 1  ;;  %v4284_v29 = vrot.slane %v4283_v31, 2  ;;  %v4295_v24 = vsel %vm2185_vm5, %v4249_v45, 0.0  ;;  %v4074_v30 = vrot.slane %v4073_v27, 1 }
 0x3ef   : > { %v4388_v39 = vadd.f32 1e-05, %v4372_v49  ;;  %v4273_v36 = vadd.f32 %v4272_v9, %v4271_v16  ;;  %v4291_v22 = vrot.slane %v4290_v28, 2  ;;  %v4296_v37 = vrot.slane %v4295_v24, 4 }
 0x3f0   : > { %v4280_v41 = vadd.f32 %v4279_v33, %v4278_v62  ;;  %v4285_v61 = vadd.f32 %v4284_v29, %v4283_v31  ;;  %v4250_v3 = vmul.f32 %v11435_v4, %v11435_v4  ;;  %v4075_v7 = vadd.f32 %v4074_v30, %v4073_v27 }
 0x3f1   : > { %9962 = vrsqrt.f32 %v4388_v39  ;;  %v4373_v51 = vmul.f32 0.125, %v4273_v36  ;;  %v4292_v43 = vadd.f32 %v4291_v22, %v4290_v28  ;;  %v4297_v1 = vadd.f32 %v4296_v37, %v4295_v24 }
 0x3f2   : > { %v4374_v44 = vmul.f32 0.125, %v4280_v41  ;;  %v4286_v56 = vrot.slane %v4285_v61, 1  ;;  %v4302_v46 = vsel %vm2185_vm5, %v4250_v3, 0.0  ;;  %v4139_v25 = vmul.f32 0.125, %v4075_v7 }
 0x3f3   : > { %v4389_v11 = vadd.f32 1e-05, %v4373_v51  ;;  %v4293_v10 = vrot.slane %v4292_v43, 1  ;;  %v4298_v8 = vrot.slane %v4297_v1, 2  ;;  %v4303_v47 = vrot.slane %v4302_v46, 4 }
 0x3f4   : > { %v4390_v18 = vadd.f32 1e-05, %v4374_v44  ;;  %v4287_v53 = vadd.f32 %v4286_v56, %v4285_v61  ;;  %v4155_v59 = vmul.f32 %v4139_v25, %v11356_v63  ;;  %v3471_v55 = vadd.f32 %v11307_v23, %v11351_v60  ;;  %v11444_v15 = vpop.f32.mrf.mxu0 }
 0x3f5   : > { %9964 = vrsqrt.f32 %v4389_v11  ;;  %v4294_v57 = vadd.f32 %v4293_v10, %v4292_v43  ;;  %v4299_v48 = vadd.f32 %v4298_v8, %v4297_v1  ;;  %v4304_v35 = vadd.f32 %v4303_v47, %v4302_v46 }
 0x3f6   : > { %9966 = vrsqrt.f32 %v4390_v18  ;;  %v4375_v54 = vmul.f32 0.125, %v4287_v53  ;;  %v4195_v17 = vrot.slane %v4155_v59, %v10497_v13  ;;  %vm3973_vm1 = vcmp.gt.f32.partialorder %v3471_v55, 0.0  ;;  %v11447_v58 = vpop.f32.mrf.mxu1  ;;  %v9673_v16 = vpop.f32.mrf.mxu0 }
 0x3f7   : > { %v4376_v50 = vmul.f32 0.125, %v4294_v57  ;;  %v4300_v20 = vrot.slane %v4299_v48, 1  ;;  %v4305_v62 = vrot.slane %v4304_v35, 2  ;;  %v3993_v31 = vmul.f32 %v11315_v19, %v3471_v55  ;;  %v11487_v16 = vld [vmem:[%s13073_s4 + $0x6] ss:$0 sm:$0xff] }
 0x3f8   : > { %v4391_v60 = vadd.f32 1e-05, %v4375_v54  ;;  %v11451_v45 = vsub.f32 %v11388_v6, %v4195_v17  ;;  %v3541_v27 = vadd.f32 %v11307_v23, %v11364_v34  ;;  %v3611_v49 = vadd.f32 %v11307_v23, %v11379_v12  ;;  %v9668_v9 = vpop.f32.mrf.mxu1 }
 0x3f9   : > { %v4392_v28 = vadd.f32 1e-05, %v4376_v50  ;;  %v4301_v33 = vadd.f32 %v4300_v20, %v4299_v48  ;;  %v4306_v29 = vadd.f32 %v4305_v62, %v4304_v35  ;;  %v11457_v24 = vsel %vm3973_vm1, %v3471_v55, %v3993_v31 }
 0x3fa   : > { %9968 = vrsqrt.f32 %v4391_v60  ;;  %v4251_v30 = vmul.f32 %v11451_v45, %v11451_v45  ;;  %v4076_v6 = vsel %vm2185_vm5, %v11457_v24, 0.0  ;;  %vm3974_vm3 = vcmp.gt.f32.partialorder %v3541_v27, 0.0 }
 0x3fb   : > { %9970 = vrsqrt.f32 %v4392_v28  ;;  %v4377_v39 = vmul.f32 0.125, %v4301_v33  ;;  %v4307_v34 = vrot.slane %v4306_v29, 1  ;;  %v4077_v36 = vrot.slane %v4076_v6, 4 }
 0x3fc   : > { %v4309_v12 = vsel %vm2185_vm5, %v4251_v30, 0.0  ;;  %v3994_v22 = vmul.f32 %v11315_v19, %v3541_v27  ;;  %vm3975_vm4 = vcmp.gt.f32.partialorder %v3611_v49, 0.0  ;;  %v3995_v37 = vmul.f32 %v11315_v19, %v3611_v49 }
 0x3fd   : > { %v4393_v41 = vadd.f32 1e-05, %v4377_v39  ;;  %v4308_v61 = vadd.f32 %v4307_v34, %v4306_v29  ;;  %v4310_v3 = vrot.slane %v4309_v12, 4  ;;  %v4078_v7 = vadd.f32 %v4077_v36, %v4076_v6 }
 0x3fe   : > { %v9963_v51 = vpop.eup %9962  ;;  %v11466_v43 = vsel %vm3974_vm3, %v3541_v27, %v3994_v22  ;;  %v11468_v1 = vsel %vm3975_vm4, %v3611_v49, %v3995_v37  ;;  %v3681_v44 = vadd.f32 %v11307_v23, %v11373_v21  ;;  %v3751_v56 = vadd.f32 %v11307_v23, %v11418_v32 }
 0x3ff   : > { %v11475_v46 = vmul.f32 %v9963_v51, %v11376_v14  ;;  %9972 = vrsqrt.f32 %v4393_v41  ;;  %v4378_v25 = vmul.f32 0.125, %v4308_v61  ;;  %v4311_v11 = vadd.f32 %v4310_v3, %v4309_v12 }
 0x400   : > { %v4079_v10 = vrot.slane %v4078_v7, 2  ;;  %v4083_v8 = vsel %vm2185_vm5, %v11466_v43, 0.0  ;;  %v4090_v47 = vsel %vm2185_vm5, %v11468_v1, 0.0  ;;  %vm3976_vm6 = vcmp.gt.f32.partialorder %v3681_v44, 0.0 }
 0x401   : > { %v4394_v18 = vadd.f32 1e-05, %v4378_v25  ;;  %v4312_v53 = vrot.slane %v4311_v11, 2  ;;  %v4084_v21 = vrot.slane %v4083_v8, 4  ;;  %v4091_v59 = vrot.slane %v4090_v47, 4 }
 0x402   : > { %v9965_v55 = vpop.eup %9964  ;;  %v4080_v32 = vadd.f32 %v4079_v10, %v4078_v7  ;;  %v3996_v14 = vmul.f32 %v11315_v19, %v3681_v44  ;;  %vm3977_vm7 = vcmp.gt.f32.partialorder %v3751_v56, 0.0  ;;  %v3997_v57 = vmul.f32 %v11315_v19, %v3751_v56 }
 0x403   : > { %v9967_v48 = vpop.eup %9966  ;;  %v4421_v35 = vmul.f32 %v9965_v55, %v11392_v40  ;;  %9974 = vrsqrt.f32 %v4394_v18  ;;  %v4313_v54 = vadd.f32 %v4312_v53, %v4311_v11  ;;  %v4085_v17 = vadd.f32 %v4084_v21, %v4083_v8 }
 0x404   : > { %v11490_v50 = vmul.f32 %v9967_v48, %v11395_v26  ;;  %v4081_v20 = vrot.slane %v4080_v32, 1  ;;  %v4092_v62 = vadd.f32 %v4091_v59, %v4090_v47  ;;  %v11493_v31 = vsel %vm3976_vm6, %v3681_v44, %v3996_v14 }
 0x405   : > { %v11496_v60 = vmul.f32 %v11487_v16, %v4421_v35  ;;  %v4314_v40 = vrot.slane %v4313_v54, 1  ;;  %v4086_v27 = vrot.slane %v4085_v17, 2  ;;  %v4097_v49 = vsel %vm2185_vm5, %v11493_v31, 0.0 }
 0x406   : > { %v4082_v9 = vadd.f32 %v4081_v20, %v4080_v32  ;;  %v4093_v28 = vrot.slane %v4092_v62, 2  ;;  %v4098_v33 = vrot.slane %v4097_v49, 4  ;;  %v11501_v29 = vsel %vm3977_vm7, %v3751_v56, %v3997_v57 }
 0x407   : > { %v9969_v26 = vpop.eup %9968  ;;  %v4315_v30 = vadd.f32 %v4314_v40, %v4313_v54  ;;  %v4087_v6 = vadd.f32 %v4086_v27, %v4085_v17  ;;  %v4104_v39 = vsel %vm2185_vm5, %v11501_v29, 0.0  ;;  %v3821_v34 = vadd.f32 %v11307_v23, %v11408_v38 }
 0x408   : > { %v9971_v36 = vpop.eup %9970  ;;  %v11508_v12 = vmul.f32 %v9969_v26, %v11412_v42  ;;  %v4140_v22 = vmul.f32 0.125, %v4082_v9  ;;  %v4094_v37 = vadd.f32 %v4093_v28, %v4092_v62  ;;  %v4099_v41 = vadd.f32 %v4098_v33, %v4097_v49 }
 0x409   : > { %v11511_v61 = vmul.f32 %v9971_v36, %v11415_v5  ;;  %v4379_v3 = vmul.f32 0.125, %v4315_v30  ;;  %v4088_v7 = vrot.slane %v4087_v6, 1  ;;  %v4105_v51 = vrot.slane %v4104_v39, 4 }
 0x40a   : > { %v4156_v44 = vmul.f32 %v4140_v22, %v11356_v63  ;;  %v4095_v56 = vrot.slane %v4094_v37, 1  ;;  %v4100_v25 = vrot.slane %v4099_v41, 2  ;;  %vm3978_vm8 = vcmp.gt.f32.partialorder %v3821_v34, 0.0 }
 0x40b   : > { %v4395_v11 = vadd.f32 1e-05, %v4379_v3  ;;  %v4089_v38 = vadd.f32 %v4088_v7, %v4087_v6  ;;  %v4106_v10 = vadd.f32 %v4105_v51, %v4104_v39  ;;  %v3998_v42 = vmul.f32 %v11315_v19, %v3821_v34 }
 0x40c   : > { %v9973_v8 = vpop.eup %9972  ;;  %v4199_v47 = vrot.slane %v4156_v44, %v10497_v13  ;;  %v4096_v18 = vadd.f32 %v4095_v56, %v4094_v37  ;;  %v4101_v53 = vadd.f32 %v4100_v25, %v4099_v41  ;;  %v3891_v5 = vadd.f32 %v11307_v23, %v11447_v58 }
 0x40d   : > { %v11519_v21 = vmul.f32 %v9973_v8, %v11429_v52  ;;  %9976 = vrsqrt.f32 %v4395_v11  ;;  %v4141_v59 = vmul.f32 0.125, %v4089_v38  ;;  %v4107_v55 = vrot.slane %v4106_v10, 2 }
 0x40e   : > { %v11522_v32 = vsub.f32 %v11457_v24, %v4199_v47  ;;  %v4142_v14 = vmul.f32 0.125, %v4096_v18  ;;  %v4102_v57 = vrot.slane %v4101_v53, 1  ;;  %v11525_v48 = vsel %vm3978_vm8, %v3821_v34, %v3998_v42 }
 0x40f   : > { %v4157_v35 = vmul.f32 %v4141_v59, %v11356_v63  ;;  %v4108_v54 = vadd.f32 %v4107_v55, %v4106_v10  ;;  %v4111_v58 = vsel %vm2185_vm5, %v11525_v48, 0.0  ;;  %vm3979_vm9 = vcmp.gt.f32.partialorder %v3891_v5, 0.0 }
 0x410   : > { %v9975_v52 = vpop.eup %9974  ;;  %v4252_v17 = vmul.f32 %v11522_v32, %v11522_v32  ;;  %v4158_v20 = vmul.f32 %v4142_v14, %v11356_v63  ;;  %v4103_v24 = vadd.f32 %v4102_v57, %v4101_v53  ;;  %v4112_v62 = vrot.slane %v4111_v58, 4 }
 0x411   : > { %v11534_v40 = vmul.f32 %v9975_v52, %v11435_v4  ;;  %v4203_v27 = vrot.slane %v4157_v35, %v10497_v13  ;;  %v4109_v49 = vrot.slane %v4108_v54, 1  ;;  %v3999_v9 = vmul.f32 %v11315_v19, %v3891_v5 }
 0x412   : > { %v4316_v28 = vsel %vm2185_vm5, %v4252_v17, 0.0  ;;  %v4207_v33 = vrot.slane %v4158_v20, %v10497_v13  ;;  %v4143_v26 = vmul.f32 0.125, %v4103_v24  ;;  %v4113_v30 = vadd.f32 %v4112_v62, %v4111_v58 }
 0x413   : > { %v4317_v6 = vrot.slane %v4316_v28, 4  ;;  %v11541_v39 = vsub.f32 %v11466_v43, %v4203_v27  ;;  %v4110_v34 = vadd.f32 %v4109_v49, %v4108_v54  ;;  %v11544_v36 = vsel %vm3979_vm9, %v3891_v5, %v3999_v9 }
 0x414   : > { %v11547_v4 = vsub.f32 %v11468_v1, %v4207_v33  ;;  %v4159_v22 = vmul.f32 %v4143_v26, %v11356_v63  ;;  %v4114_v37 = vrot.slane %v4113_v30, 2  ;;  %v4118_v41 = vsel %vm2185_vm5, %v11544_v36, 0.0 }
 0x415   : > { %v4318_v3 = vadd.f32 %v4317_v6, %v4316_v28  ;;  %v4253_v7 = vmul.f32 %v11541_v39, %v11541_v39  ;;  %v4144_v51 = vmul.f32 0.125, %v4110_v34  ;;  %v4119_v43 = vrot.slane %v4118_v41, 4 }
 0x416   : > { %v4254_v44 = vmul.f32 %v11547_v4, %v11547_v4  ;;  %v4211_v56 = vrot.slane %v4159_v22, %v10497_v13  ;;  %v4115_v25 = vadd.f32 %v4114_v37, %v4113_v30  ;;  %v3961_v1 = vadd.f32 %v11307_v23, %v11444_v15 }
 0x417   : > { %v4319_v11 = vrot.slane %v4318_v3, 2  ;;  %v4323_v38 = vsel %vm2185_vm5, %v4253_v7, 0.0  ;;  %v4160_v10 = vmul.f32 %v4144_v51, %v11356_v63  ;;  %v4120_v42 = vadd.f32 %v4119_v43, %v4118_v41 }
 0x418   : > { %v4324_v8 = vrot.slane %v4323_v38, 4  ;;  %v4330_v47 = vsel %vm2185_vm5, %v4254_v44, 0.0  ;;  %v11563_v18 = vsub.f32 %v11493_v31, %v4211_v56  ;;  %v4116_v53 = vrot.slane %v4115_v25, 1 }
 0x419   : > { %v4320_v5 = vadd.f32 %v4319_v11, %v4318_v3  ;;  %v4331_v59 = vrot.slane %v4330_v47, 4  ;;  %v4215_v55 = vrot.slane %v4160_v10, %v10497_v13  ;;  %v4121_v14 = vrot.slane %v4120_v42, 2 }
 0x41a   : > { %v9977_v57 = vpop.eup %9976  ;;  %v4325_v23 = vadd.f32 %v4324_v8, %v4323_v38  ;;  %v4255_v15 = vmul.f32 %v11563_v18, %v11563_v18  ;;  %v4117_v35 = vadd.f32 %v4116_v53, %v4115_v25  ;;  %vm3980_vm10 = vcmp.gt.f32.partialorder %v3961_v1, 0.0 }
 0x41b   : > { %v11569_v54 = vmul.f32 %v9977_v57, %v11451_v45  ;;  %v4321_v58 = vrot.slane %v4320_v5, 1  ;;  %v4332_v52 = vadd.f32 %v4331_v59, %v4330_v47  ;;  %v11572_v31 = vsub.f32 %v11501_v29, %v4215_v55 }
 0x41c   : > { %v4326_v17 = vrot.slane %v4325_v23, 2  ;;  %v4337_v20 = vsel %vm2185_vm5, %v4255_v15, 0.0  ;;  %v4145_v24 = vmul.f32 0.125, %v4117_v35  ;;  %v4122_v62 = vadd.f32 %v4121_v14, %v4120_v42 }
 0x41d   : > { %v4322_v27 = vadd.f32 %v4321_v58, %v4320_v5  ;;  %v4333_v49 = vrot.slane %v4332_v52, 2  ;;  %v4338_v9 = vrot.slane %v4337_v20, 4  ;;  %v4256_v28 = vmul.f32 %v11572_v31, %v11572_v31 }
 0x41e   : > { %v4327_v33 = vadd.f32 %v4326_v17, %v4325_v23  ;;  %v4161_v45 = vmul.f32 %v4145_v24, %v11356_v63  ;;  %v4123_v26 = vrot.slane %v4122_v62, 1  ;;  %v4000_v30 = vmul.f32 %v11315_v19, %v3961_v1 }
 0x41f   : > { %v4380_v6 = vmul.f32 0.125, %v4322_v27  ;;  %v4334_v29 = vadd.f32 %v4333_v49, %v4332_v52  ;;  %v4339_v34 = vadd.f32 %v4338_v9, %v4337_v20  ;;  %v4344_v22 = vsel %vm2185_vm5, %v4256_v28, 0.0 }
 0x420   : > { %v4328_v37 = vrot.slane %v4327_v33, 1  ;;  %v4345_v41 = vrot.slane %v4344_v22, 4  ;;  %v4219_v3 = vrot.slane %v4161_v45, %v10497_v13  ;;  %v4124_v7 = vadd.f32 %v4123_v26, %v4122_v62 }
 0x421   : > { %v4396_v51 = vadd.f32 1e-05, %v4380_v6  ;;  %v4335_v43 = vrot.slane %v4334_v29, 1  ;;  %v4340_v44 = vrot.slane %v4339_v34, 2  ;;  %v11582_v56 = vsel %vm3980_vm10, %v3961_v1, %v4000_v30 }
 0x422   : > { %v4329_v25 = vadd.f32 %v4328_v37, %v4327_v33  ;;  %v4346_v11 = vadd.f32 %v4345_v41, %v4344_v22  ;;  %v11585_v19 = vsub.f32 %v11525_v48, %v4219_v3  ;;  %v4146_v38 = vmul.f32 0.125, %v4124_v7  ;;  %v11595_v48 = vld [vmem:[%s13073_s4 + $0x7] ss:$0 sm:$0xff] }
 0x423   : > { %9978 = vrsqrt.f32 %v4396_v51  ;;  %v4336_v10 = vadd.f32 %v4335_v43, %v4334_v29  ;;  %v4341_v42 = vadd.f32 %v4340_v44, %v4339_v34  ;;  %v4125_v8 = vsel %vm2185_vm5, %v11582_v56, 0.0 }
 0x424   : > { %v4381_v47 = vmul.f32 0.125, %v4329_v25  ;;  %v4347_v53 = vrot.slane %v4346_v11, 2  ;;  %v4257_v5 = vmul.f32 %v11585_v19, %v11585_v19  ;;  %v4162_v1 = vmul.f32 %v4146_v38, %v11356_v63 }
 0x425   : > { %v4382_v59 = vmul.f32 0.125, %v4336_v10  ;;  %v4342_v55 = vrot.slane %v4341_v42, 1  ;;  %v4126_v14 = vrot.slane %v4125_v8, 4  ;;  %v4440_v57 = vmul.f32 %v11487_v16, %v11475_v46 }
 0x426   : > { %v4397_v23 = vadd.f32 1e-05, %v4381_v47  ;;  %v4348_v15 = vadd.f32 %v4347_v53, %v4346_v11  ;;  %v4351_v35 = vsel %vm2185_vm5, %v4257_v5, 0.0  ;;  %v4223_v58 = vrot.slane %v4162_v1, %v10497_v13 }
 0x427   : > { %v4398_v52 = vadd.f32 1e-05, %v4382_v59  ;;  %v4343_v17 = vadd.f32 %v4342_v55, %v4341_v42  ;;  %v4352_v20 = vrot.slane %v4351_v35, 4  ;;  %v4127_v24 = vadd.f32 %v4126_v14, %v4125_v8 }
 0x428   : > { %9980 = vrsqrt.f32 %v4397_v23  ;;  %v4349_v62 = vrot.slane %v4348_v15, 1  ;;  %v11602_v27 = vsub.f32 %v11544_v36, %v4223_v58  ;;  %v4460_v49 = vadd.f32 %v11595_v48, %v4440_v57 }
 0x429   : > { %9982 = vrsqrt.f32 %v4398_v52  ;;  %v4383_v9 = vmul.f32 0.125, %v4343_v17  ;;  %v4353_v46 = vadd.f32 %v4352_v20, %v4351_v35  ;;  %v4128_v28 = vrot.slane %v4127_v24, 2 }
 0x42a   : > { %v4350_v33 = vadd.f32 %v4349_v62, %v4348_v15  ;;  %v4258_v45 = vmul.f32 %v11602_v27, %v11602_v27  ;;  %9682 = vmatprep.mubr.msk.f32.mxu1 %vm2185_vm5, %v4460_v49  ;;  %v4461_v26 = vadd.f32 %v11595_v48, %v11496_v60  ;;  %v4442_v30 = vmul.f32 %v11487_v16, %v11490_v50 }
 0x42b   : > { %v4399_v36 = vadd.f32 1e-05, %v4383_v9  ;;  %v4354_v6 = vrot.slane %v4353_v46, 2  ;;  %v4129_v29 = vadd.f32 %v4128_v28, %v4127_v24  ;;  %v4443_v34 = vmul.f32 %v11487_v16, %v11508_v12 }
 0x42c   : > { %v4384_v22 = vmul.f32 0.125, %v4350_v33  ;;  %v4358_v37 = vsel %vm2185_vm5, %v4258_v45, 0.0  ;;  %9683 = vmatmul.mubr.msk.f32.vlgmr.msra.gmra.mxu1 %vm2185_vm5, %v4461_v26  ;;  %v4462_v41 = vadd.f32 %v11595_v48, %v4442_v30  ;;  %v4444_v3 = vmul.f32 %v11487_v16, %v11511_v61 }
 0x42d   : > { %9984 = vrsqrt.f32 %v4399_v36  ;;  %v4355_v60 = vadd.f32 %v4354_v6, %v4353_v46  ;;  %v4359_v7 = vrot.slane %v4358_v37, 4  ;;  %v4130_v50 = vrot.slane %v4129_v29, 1 }
 0x42e   : > { %v4400_v51 = vadd.f32 1e-05, %v4384_v22  ;;  %9685 = vmatprep.mubr.msk.f32.mxu1 %vm2185_vm5, %v4462_v41  ;;  %v4463_v43 = vadd.f32 %v11595_v48, %v4443_v34  ;;  %v4464_v12 = vadd.f32 %v11595_v48, %v4444_v3  ;;  %v4445_v44 = vmul.f32 %v11487_v16, %v11519_v21 }
 0x42f   : > { %v4356_v25 = vrot.slane %v4355_v60, 1  ;;  %v4360_v11 = vadd.f32 %v4359_v7, %v4358_v37  ;;  %v4131_v38 = vadd.f32 %v4130_v50, %v4129_v29  ;;  %v4446_v61 = vmul.f32 %v11487_v16, %v11534_v40 }
 0x430   : > { %v9979_v10 = vpop.eup %9978  ;;  %9986 = vrsqrt.f32 %v4400_v51  ;;  %9686 = vmatmul.mubr.msk.f32.gmra.mxu1 %vm2185_vm5, %v4463_v43  ;;  %v4465_v42 = vadd.f32 %v11595_v48, %v4445_v44  ;;  %v4447_v8 = vmul.f32 %v11487_v16, %v11569_v54  ;;  %vm7171_vm12 = vcmask 1044484  }
 0x431   : > { %v4428_v47 = vmul.f32 %v9979_v10, %v11522_v32  ;;  %v4357_v53 = vadd.f32 %v4356_v25, %v4355_v60  ;;  %v4361_v5 = vrot.slane %v4360_v11, 2  ;;  %v4147_v21 = vmul.f32 0.125, %v4131_v38  ;;  %9688 = vmatprep.mubr.msk.f32.mxu1 %vm2185_vm5, %v4464_v12 }
 0x432   : > { %v4466_v1 = vadd.f32 %v11595_v48, %v4446_v61  ;;  %v4467_v57 = vadd.f32 %v11595_v48, %v4447_v8  ;;  %vm7173_vm13 = vcmask 1045509   ;;  %vm7175_vm14 = vcmask 1046534  }
 0x433   : > { %v4385_v59 = vmul.f32 0.125, %v4357_v53  ;;  %v4362_v40 = vadd.f32 %v4361_v5, %v4360_v11  ;;  %v4163_v55 = vmul.f32 %v4147_v21, %v11356_v63  ;;  %v4448_v14 = vmul.f32 %v11487_v16, %v4428_v47  ;;  %v10282_v47 = vld [vmem:[%s10648_s23] sm:$0xff]  ;;  %v10283_v53 = vld [vmem:[%s10648_s23 + $0x8] sm:$0xff] }
 0x434   : > { %9689 = vmatmul.mubr.msk.f32.gmra.mxu1 %vm2185_vm5, %v4465_v42  ;;  %vm7177_vm15 = vcmask 1047559   ;;  %vm9036_vm1 = vcmask 523264  }
 0x435   : > { %v9981_v54 = vpop.eup %9980  ;;  %v4401_v23 = vadd.f32 1e-05, %v4385_v59  ;;  %v4363_v32 = vrot.slane %v4362_v40, 1  ;;  %v4227_v15 = vrot.slane %v4163_v55, %v10497_v13  ;;  %9691 = vmatprep.mubr.msk.f32.mxu1 %vm2185_vm5, %v4466_v1  ;;  %v4468_v35 = vadd.f32 %v11595_v48, %v4448_v14  ;;  %v10284_v1 = vld [vmem:[%s10648_s23 + $0x10] sm:$0xff]  ;;  %v10285_v55 = vld [vmem:[%s10648_s23 + $0x18] sm:$0xff] }
 0x436   : > { %v9983_v58 = vpop.eup %9982  ;;  %v4429_v52 = vmul.f32 %v9981_v54, %v11541_v39  ;;  %v10287_v54 = vld [vmem:[%s10648_s23 + $0x20] sm:$0xff] }
 0x437   : > { %v4430_v63 = vmul.f32 %v9983_v58, %v11547_v4  ;;  %9988 = vrsqrt.f32 %v4401_v23  ;;  %v4364_v17 = vadd.f32 %v4363_v32, %v4362_v40  ;;  %v4243_v20 = vsub.f32 %v11582_v56, %v4227_v15  ;;  %v10288_v32 = vld [vmem:[%s10648_s23 + $0x58] sm:$0xff]  ;;  %v10289_v15 = vld [vmem:[%s10648_s23 + $0x28] sm:$0xff]  ;;  %v10290_v58 = vld [vmem:[%s10648_s23 + $0x30] sm:$0xff] }
 0x438   : > { %9692 = vmatmul.mubr.msk.f32.gmra.mxu1 %vm2185_vm5, %v4467_v57  ;;  %v4449_v24 = vmul.f32 %v11487_v16, %v4429_v52  ;;  %v10286_v57 = vld [vmem:[%s10648_s23 + $0x48] sm:$0xff] }
 0x439   : > { %v4386_v62 = vmul.f32 0.125, %v4364_v17  ;;  %v4259_v49 = vmul.f32 %v4243_v20, %v4243_v20  ;;  %9694 = vmatprep.mubr.msk.f32.mxu1 %vm2185_vm5, %v4468_v35  ;;  %v4450_v9 = vmul.f32 %v11487_v16, %v4430_v63  ;;  %v10291_v63 = vld [vmem:[%s10648_s23 + $0x38] sm:$0xff]  ;;  %v10292_v17 = vld [vmem:[%s10648_s23 + $0x68] sm:$0xff] }
 0x43a   : > { %v9985_v46 = vpop.eup %9984  ;;  %v4469_v28 = vadd.f32 %v11595_v48, %v4449_v24 }
 0x43b   : > { %v4431_v39 = vmul.f32 %v9985_v46, %v11563_v18  ;;  %v4402_v4 = vadd.f32 1e-05, %v4386_v62  ;;  %v4365_v33 = vsel %vm2185_vm5, %v4259_v49, 0.0  ;;  %v4470_v56 = vadd.f32 %v11595_v48, %v4450_v9  ;;  %v10294_v62 = vld [vmem:[%s10648_s23 + $0x50] sm:$0xff]  ;;  %v10295_v49 = vld [vmem:[%s10648_s23 + $0x60] sm:$0xff]  ;;  %v6260_v9 = vld [vmem:[%s13072_s3 + $0x18] sm:$0xff] }
 0x43c   : > { %v4366_v45 = vrot.slane %v4365_v33, 4  ;;  %9695 = vmatmul.mubr.msk.f32.gmra.mxu1 %vm2185_vm5, %v4469_v28  ;;  %v6264_v28 = vld [vmem:[%s13072_s3 + $0x38] sm:$0xff] }
 0x43d   : > { %v9987_v26 = vpop.eup %9986  ;;  %9990 = vrsqrt.f32 %v4402_v4  ;;  %9697 = vmatprep.mubr.msk.f32.mxu1 %vm2185_vm5, %v4470_v56  ;;  %v4451_v30 = vmul.f32 %v11487_v16, %v4431_v39  ;;  %v10296_v4 = vld [vmem:[%s10648_s23 + $0x78] sm:$0xff]  ;;  %v6263_v56 = vld [vmem:[%s13072_s3 + $0x30] sm:$0xff] }
 0x43e   : > { %v4432_v36 = vmul.f32 %v9987_v26, %v11572_v31  ;;  %v4367_v6 = vadd.f32 %v4366_v45, %v4365_v33  ;;  %v6259_v33 = vld [vmem:[%s13072_s3 + $0x10] sm:$0xff]  ;;  %v6258_v26 = vld [vmem:[%s13072_s3 + $0x8] sm:$0xff] }
 0x43f   : > { %v4471_v29 = vadd.f32 %v11595_v48, %v4451_v30  ;;  %v10297_v45 = vld [vmem:[%s10648_s23 + $0x70] sm:$0xff]  ;;  %v6262_v30 = vld [vmem:[%s13072_s3 + $0x28] sm:$0xff] }
 0x440   : > { %v4368_v18 = vrot.slane %v4367_v6, 2  ;;  %v4452_v34 = vmul.f32 %v11487_v16, %v4432_v36  ;;  %v6257_v36 = vld [vmem:[%s13072_s3] sm:$0xff] }
 0x441   : > { %9698 = vmatmul.mubr.msk.f32.gmra.mxu1 %vm2185_vm5, %v4471_v29 }
 0x442   : > { %v4369_v22 = vadd.f32 %v4368_v18, %v4367_v6  ;;  %v4472_v37 = vadd.f32 %v11595_v48, %v4452_v34  ;;  %v6261_v6 = vld [vmem:[%s13072_s3 + $0x20] sm:$0xff] }
 0x444   : > { %v9989_v41 = vpop.eup %9988  ;;  %v4370_v3 = vrot.slane %v4369_v22, 1  ;;  %9700 = vmatprep.mubr.msk.f32.mxu1 %vm2185_vm5, %v4472_v37 }
 0x445   : > { %v4433_v60 = vmul.f32 %v9989_v41, %v11585_v19 }
 0x446   : > { %v4371_v7 = vadd.f32 %v4370_v3, %v4369_v22 }
 0x447   : > { %v4453_v31 = vmul.f32 %v11487_v16, %v4433_v60 }
 0x448   : > { %v4387_v50 = vmul.f32 0.125, %v4371_v7 }
 0x449   : > { %v4473_v51 = vadd.f32 %v11595_v48, %v4453_v31 }
 0x44a   : > { %v9991_v43 = vpop.eup %9990  ;;  %v4403_v12 = vadd.f32 1e-05, %v4387_v50 }
 0x44b   : > { %v4434_v44 = vmul.f32 %v9991_v43, %v11602_v27  ;;  %9701 = vmatmul.mubr.msk.f32.gmra.mxu1 %vm2185_vm5, %v4473_v51 }
 0x44c   : > { %9992 = vrsqrt.f32 %v4403_v12 }
 0x44d   : > { %v4454_v25 = vmul.f32 %v11487_v16, %v4434_v44 }
 0x44f   : > { %v4474_v11 = vadd.f32 %v11595_v48, %v4454_v25 }
 0x451   : > { %9703 = vmatprep.mubr.msk.f32.mxu1 %vm2185_vm5, %v4474_v11 }
 0x459   : > { %v9993_v19 = vpop.eup %9992 }
 0x45a   : > { %v4435_v38 = vmul.f32 %v9993_v19, %v4243_v20  ;;  %v10293_v20 = vld [vmem:[%s10648_s23 + $0x40] sm:$0xff] }
 0x45c   : > { %v4455_v61 = vmul.f32 %v11487_v16, %v4435_v38 }
 0x45e   : > { %v4475_v10 = vadd.f32 %v11595_v48, %v4455_v61 }
 0x460   : > { %9704 = vmatmul.mubr.msk.f32.gmra.mxu1 %vm2185_vm5, %v4475_v10 }
 0x461   : > { %9753 = vmatprep.mubr.msk.f32.mxu1 %vm10371_vm0, %v10370_v0 }
 0x4ec   : > { %v9684_v27 = vpop.f32.mrf.mxu1 }
 0x4ee   : > { %v4594_v42 = vpop.f32.mrf.mxu1 }
 0x4ef   : > { %9707 = vmatpush3.msra.mxu0 %v4594_v42 }
 0x4f0   : > { %v9687_v8 = vpop.f32.mrf.mxu1  ;;  %9709 = vmatmul.mubr.msk.f32.vlgmr.msra.gmra.mxu0 %vm741_vm2, %v10282_v47  ;;  %9711 = vmatprep.subr.mxu0 %v10370_v0 }
 0x4f1   : > { %9712 = vmatpush3.msra.mxu0 %v9684_v27  ;;  %9713 = vmatprep.mubr.msk.f32.mxu0 %vm10371_vm0, %v10370_v0 }
 0x4f2   : > { %v4604_v16 = vpop.f32.mrf.mxu1  ;;  %9716 = vmatprep.subr.mxu0 %v10370_v0 }
 0x4f4   : > { %v9690_v48 = vpop.f32.mrf.mxu1  ;;  %9714 = vmatmul.mubr.msk.f32.vlgmr.msra.gmra.mxu0 %vm741_vm2, %v10283_v53 }
 0x4f5   : > { %9717 = vmatpush3.msra.mxu0 %v4604_v16  ;;  %9718 = vmatprep.mubr.msk.f32.mxu0 %vm10371_vm0, %v10370_v0 }
 0x4f6   : > { %v4614_v5 = vpop.f32.mrf.mxu1  ;;  %9721 = vmatprep.subr.mxu0 %v10370_v0 }
 0x4f8   : > { %v9693_v21 = vpop.f32.mrf.mxu1  ;;  %9719 = vmatmul.mubr.msk.f32.vlgmr.msra.gmra.mxu0 %vm741_vm2, %v10284_v1 }
 0x4f9   : > { %9722 = vmatpush3.msra.mxu0 %v9687_v8  ;;  %9723 = vmatprep.mubr.msk.f32.mxu0 %vm10371_vm0, %v10370_v0 }
 0x4fa   : > { %v4624_v59 = vpop.f32.mrf.mxu1  ;;  %9726 = vmatprep.subr.mxu0 %v10370_v0 }
 0x4fc   : > { %v9696_v40 = vpop.f32.mrf.mxu1  ;;  %9724 = vmatmul.mubr.msk.f32.vlgmr.msra.gmra.mxu0 %vm741_vm2, %v10285_v55 }
 0x4fd   : > { %9727 = vmatpush3.msra.mxu0 %v4614_v5  ;;  %9752 = vmatpush3.msra.mxu1 %v9696_v40 }
 0x4fe   : > { %v4634_v14 = vpop.f32.mrf.mxu1  ;;  %9754 = vmatmul.mubr.msk.f32.vlgmr.msra.gmra.mxu1 %vm741_vm2, %v10286_v57  ;;  %9728 = vmatprep.mubr.msk.f32.mxu0 %vm10371_vm0, %v10370_v0 }
 0x4ff   : > { %9731 = vmatprep.subr.mxu0 %v10370_v0  ;;  %9761 = vmatprep.subr.mxu1 %v10370_v0 }
 0x500   : > { %9729 = vmatmul.mubr.msk.f32.vlgmr.msra.gmra.mxu0 %vm741_vm2, %v10287_v54  ;;  %9763 = vmatprep.mubr.msk.f32.mxu1 %vm10371_vm0, %v10370_v0 }
 0x501   : > { %v9699_v23 = vpop.f32.mrf.mxu1  ;;  %9732 = vmatpush3.msra.mxu0 %v9690_v48  ;;  %9733 = vmatprep.mubr.msk.f32.mxu0 %vm10371_vm0, %v10370_v0 }
 0x502   : > { %9762 = vmatpush3.msra.mxu1 %v9699_v23  ;;  %9736 = vmatprep.subr.mxu0 %v10370_v0  ;;  %v9246_v23 = vld [vmem:[%s13073_s4 + $0x11] ss:$0 sm:$0xff] }
 0x503   : > { %9764 = vmatmul.mubr.msk.f32.vlgmr.msra.gmra.mxu1 %vm741_vm2, %v10288_v32  ;;  %9771 = vmatprep.subr.mxu1 %v10370_v0  ;;  %v4644_v35 = vpop.f32.mrf.mxu1 }
 0x504   : > { %9734 = vmatmul.mubr.msk.f32.vlgmr.msra.gmra.mxu0 %vm741_vm2, %v10289_v15  ;;  %9773 = vmatprep.mubr.msk.f32.mxu1 %vm10371_vm0, %v10370_v0 }
 0x505   : > { %9737 = vmatpush3.msra.mxu0 %v4624_v59  ;;  %9738 = vmatprep.mubr.msk.f32.mxu0 %vm10371_vm0, %v10370_v0 }
 0x506   : > { %9741 = vmatprep.subr.mxu0 %v10370_v0 }
 0x508   : > { %9739 = vmatmul.mubr.msk.f32.vlgmr.msra.gmra.mxu0 %vm741_vm2, %v10290_v58 }
 0x509   : > { %9742 = vmatpush3.msra.mxu0 %v9693_v21  ;;  %9743 = vmatprep.mubr.msk.f32.mxu0 %vm10371_vm0, %v10370_v0 }
 0x50a   : > { %9746 = vmatprep.subr.mxu0 %v10370_v0 }
 0x50b   : > { %v9702_v52 = vpop.f32.mrf.mxu1 }
 0x50c   : > { %9772 = vmatpush3.msra.mxu1 %v9702_v52  ;;  %9744 = vmatmul.mubr.msk.f32.vlgmr.msra.gmra.mxu0 %vm741_vm2, %v10291_v63 }
 0x50d   : > { %9774 = vmatmul.mubr.msk.f32.vlgmr.msra.gmra.mxu1 %vm741_vm2, %v10292_v17  ;;  %9781 = vmatprep.subr.mxu1 %v10370_v0  ;;  %v4654_v24 = vpop.f32.mrf.mxu1 }
 0x50e   : > { %9783 = vmatprep.mubr.msk.f32.mxu1 %vm10371_vm0, %v10370_v0  ;;  %9747 = vmatpush3.msra.mxu0 %v4634_v14 }
 0x50f   : > { %9748 = vmatprep.mubr.msk.f32.mxu0 %vm10371_vm0, %v10370_v0  ;;  %9756 = vmatprep.subr.mxu0 %v10370_v0 }
 0x510   : > { %9749 = vmatmul.mubr.msk.f32.vlgmr.msra.gmra.mxu0 %vm741_vm2, %v10293_v20 }
 0x511   : > { %9757 = vmatpush3.msra.mxu0 %v4644_v35  ;;  %9758 = vmatprep.mubr.msk.f32.mxu0 %vm10371_vm0, %v10370_v0 }
 0x512   : > { %9766 = vmatprep.subr.mxu0 %v10370_v0 }
 0x514   : > { %9759 = vmatmul.mubr.msk.f32.vlgmr.msra.gmra.mxu0 %vm741_vm2, %v10294_v62 }
 0x515   : > { %9767 = vmatpush3.msra.mxu0 %v4654_v24  ;;  %9768 = vmatprep.mubr.msk.f32.mxu0 %vm10371_vm0, %v10370_v0 }
 0x516   : > { %9776 = vmatprep.subr.mxu0 %v10370_v0 }
 0x518   : > { %9769 = vmatmul.mubr.msk.f32.vlgmr.msra.gmra.mxu0 %vm741_vm2, %v10295_v49 }
 0x519   : > { %9778 = vmatprep.mubr.msk.f32.mxu0 %vm10371_vm0, %v10370_v0  ;;  %vm7165_vm0 = vcmask 1041409  }
 0x520   : > { %v9705_v46 = vpop.f32.mrf.mxu1 }
 0x521   : > { %9782 = vmatpush3.msra.mxu1 %v9705_v46 }
 0x522   : > { %v4664_v39 = vpop.f32.mrf.mxu1  ;;  %9784 = vmatmul.mubr.msk.f32.vlgmr.msra.gmra.mxu1 %vm741_vm2, %v10296_v4  ;;  %9797 = vmatprep.subr.mxu1 %v6260_v9 }
 0x523   : > { %9777 = vmatpush3.msra.mxu0 %v4664_v39  ;;  %9798 = vmatpush3.msra.mxu1 %v6260_v9 }
 0x524   : > { %9786 = vmatprep.subr.mxu0 %v6264_v28  ;;  %9779 = vmatmul.mubr.msk.f32.vlgmr.msra.gmra.mxu0 %vm741_vm2, %v10297_v45  ;;  %vm7167_vm2 = vcmask 1042434  }
 0x525   : > { %9787 = vmatpush3.msra.mxu0 %v6264_v28  ;;  %9799 = vmatprep.subr.mxu1 %v6259_v33 }
 0x526   : > { %9788 = vmatprep.subr.mxu0 %v6263_v56  ;;  %9800 = vmatpush3.msra.mxu1 %v6259_v33 }
 0x527   : > { %9789 = vmatpush3.msra.mxu0 %v6263_v56  ;;  %9801 = vmatprep.subr.mxu1 %v6258_v26 }
 0x528   : > { %9790 = vmatprep.subr.mxu0 %v6262_v30  ;;  %9802 = vmatpush3.msra.mxu1 %v6258_v26 }
 0x529   : > { %9791 = vmatpush3.msra.mxu0 %v6262_v30  ;;  %9803 = vmatprep.subr.mxu1 %v6257_v36 }
 0x52a   : > { %9792 = vmatprep.subr.mxu0 %v6261_v6  ;;  %9794 = vmatprep.mubr.f32.mxu0 %v10370_v0 }
 0x52b   : > { %9793 = vmatpush3.msra.mxu0 %v6261_v6  ;;  %9804 = vmatpush3.msra.mxu1 %v6257_v36 }
 0x52c   : > { %9805 = vmatprep.mubr.f32.mxu1 %v10370_v0  ;;  %9795 = vmatmul.mubr.f32.vlgmr.msra.gmra.mxu0 %v10370_v0 }
 0x52d   : > { %9806 = vmatmul.mubr.f32.vlgmr.msra.gmra.mxu1 %v10370_v0  ;;  %9819 = vmatprep.subr.mxu1 %v6260_v9 }
 0x52e   : > { %9820 = vmatpush3.msra.mxu1 %v6260_v9  ;;  %9808 = vmatprep.subr.mxu0 %v6264_v28 }
 0x52f   : > { %9821 = vmatprep.subr.mxu1 %v6259_v33  ;;  %9809 = vmatpush3.msra.mxu0 %v6264_v28 }
 0x530   : > { %9822 = vmatpush3.msra.mxu1 %v6259_v33  ;;  %9810 = vmatprep.subr.mxu0 %v6263_v56 }
 0x531   : > { %9823 = vmatprep.subr.mxu1 %v6258_v26  ;;  %9811 = vmatpush3.msra.mxu0 %v6263_v56 }
 0x532   : > { %9824 = vmatpush3.msra.mxu1 %v6258_v26  ;;  %9812 = vmatprep.subr.mxu0 %v6262_v30 }
 0x533   : > { %9825 = vmatprep.subr.mxu1 %v6257_v36  ;;  %9813 = vmatpush3.msra.mxu0 %v6262_v30 }
 0x534   : > { %9826 = vmatpush3.msra.mxu1 %v6257_v36  ;;  %9814 = vmatprep.subr.mxu0 %v6261_v6 }
 0x535   : > { %9815 = vmatpush3.msra.mxu0 %v6261_v6  ;;  %9841 = vmatprep.subr.mxu1 %v6260_v9 }
 0x536   : > { %9830 = vmatprep.subr.mxu0 %v6264_v28 }
 0x5b0   : > { %v11775_v29 = vpop.f32.mrf.mxu0 }
 0x5b2   : > { %v9710_v0 = vpop.f32.mrf.mxu0 }
 0x5b4   : > { %v11777_v18 = vpop.f32.mrf.mxu0 }
 0x5b6   : > { %v9715_v34 = vpop.f32.mrf.mxu0 }
 0x5b7   : > { %v10374_v34 = vmov 1966171168  }
 0x5b8   : > { %v11779_v22 = vpop.f32.mrf.mxu0 }
 0x5ba   : > { %v9720_v37 = vpop.f32.mrf.mxu0 }
 0x5bb   : > { %v6477_v37 = vunpack.c.l.s4 %v10374_v34 }
 0x5bc   : > { %v11781_v41 = vpop.f32.mrf.mxu0 }
 0x5be   : > { %v9725_v3 = vpop.f32.mrf.mxu0  ;;  %v11783_v60 = vpop.f32.mrf.mxu1 }
 0x5bf   : > { %v6478_v3 = vunpack.c.0.s8 %v6477_v37 }
 0x5c0   : > { %v11785_v7 = vpop.f32.mrf.mxu0  ;;  %v9755_v31 = vpop.f32.mrf.mxu1 }
 0x5c1   : > { %v11823_v31 = vsub.s32 %v6478_v3, %v10473_v2 }
 0x5c2   : > { %v9730_v50 = vpop.f32.mrf.mxu0 }
 0x5c3   : > { %v11787_v51 = vpop.f32.mrf.mxu1 }
 0x5c4   : > { %v11789_v43 = vpop.f32.mrf.mxu0 }
 0x5c5   : > { %v9765_v12 = vpop.f32.mrf.mxu1 }
 0x5c6   : > { %v9735_v44 = vpop.f32.mrf.mxu0 }
 0x5c8   : > { %v11791_v25 = vpop.f32.mrf.mxu0 }
 0x5ca   : > { %v9740_v11 = vpop.f32.mrf.mxu0 }
 0x5cc   : > { %v11793_v19 = vpop.f32.mrf.mxu0 }
 0x5cd   : > { %v11795_v38 = vpop.f32.mrf.mxu1 }
 0x5ce   : > { %v9745_v61 = vpop.f32.mrf.mxu0 }
 0x5cf   : > { %v9775_v10 = vpop.f32.mrf.mxu1 }
 0x5d0   : > { %v11797_v27 = vpop.f32.mrf.mxu0 }
 0x5d2   : > { %v9750_v42 = vpop.f32.mrf.mxu0 }
 0x5d3   : > { %v11835_v42 = vld [vmem:[%s13073_s4 + $0xe] ss:$0 sm:$0xff] }
 0x5d4   : > { %v11799_v8 = vpop.f32.mrf.mxu0 }
 0x5d6   : > { %v9760_v47 = vpop.f32.mrf.mxu0 }
 0x5d8   : > { %v11801_v16 = vpop.f32.mrf.mxu0 }
 0x5da   : > { %v9770_v48 = vpop.f32.mrf.mxu0 }
 0x5e2   : > { %v11803_v53 = vpop.f32.mrf.mxu1 }
 0x5e4   : > { %v11805_v5 = vpop.f32.mrf.mxu0  ;;  %v9785_v21 = vpop.f32.mrf.mxu1 }
 0x5e6   : > { %v9780_v1 = vpop.f32.mrf.mxu0 }
 0x5ec   : > { %v9796_v59 = vpop.f32.mrf.mxu0 }
 0x5ed   : > { %v9807_v40 = vpop.f32.mrf.mxu1 }
 0x5ee   : > { %v6335_v55 = vpop.f32.mrf.mxu0  ;;  %v6416_v54 = vadd.f32 %v9807_v40, %v9796_v59 }
 0x5ef   : > { %v6410_v14 = vpop.f32.mrf.mxu1 }
 0x5f0   : > { %v6411_v57 = vadd.f32 %v6410_v14, %v6335_v55  ;;  %v6424_v15 = vadd.f32 %v9246_v23, %v6416_v54  ;;  %v11848_v55 = vadd.f32 %v11835_v42, %v11775_v29 }
 0x5f2   : > { %v6423_v32 = vadd.f32 %v9246_v23, %v6411_v57  ;;  %v9248_v63 = vmul.f32 -1.442695, %v6424_v15 }
 0x5f4   : > { %9994 = vtanh.f32 %v6423_v32  ;;  %v9247_v52 = vmul.f32 -1.442695, %v6423_v32 }
 0x5f5   : > { %9996 = vtanh.f32 %v6424_v15 }
 0x5f6   : > { %9998 = vpow2.f32 %v9247_v52 }
 0x5f7   : > { %10000 = vpow2.f32 %v9248_v63  ;;  %v11864_v63 = vadd.f32 %v11835_v42, %v11797_v27 }
 0x601   : > { %v9995_v35 = vpop.eup %9994 }
 0x602   : > { %6443 = vrot.lane.b32.xlu0 %v9995_v35, %s10372_s13  ;;  %v9997_v58 = vpop.eup %9996 }
 0x603   : > { %v9999_v17 = vpop.eup %9998 }
 0x604   : > { %v6431_v20 = vadd.f32 1.0, %v9999_v17  ;;  %v10001_v24 = vpop.eup %10000  ;;  %v11868_v17 = vadd.f32 %v11835_v42, %v11783_v60  ;;  %v5857_v60 = vsel %vm2185_vm5, %v11864_v63, 0.0 }
 0x605   : > { %v6432_v62 = vadd.f32 1.0, %v10001_v24 }
 0x606   : > { %6445 = vrot.lane.b32.xlu0 %v9997_v58, %s10372_s13  ;;  %10002 = vrcp.f32 %v6431_v20  ;;  %v5801_v58 = vsel %vm2185_vm5, %v11848_v55, 0.0 }
 0x607   : > { %10004 = vrcp.f32 %v6432_v62  ;;  %v5802_v62 = vrot.slane %v5801_v58, 4 }
 0x613   : > { %v10003_v49 = vpop.eup %10002 }
 0x614   : > { %v10005_v28 = vpop.eup %10004  ;;  %v6439_v33 = vmul.f32 0.0, %v10003_v49 }
 0x615   : > { %v6440_v26 = vmul.f32 0.0, %v10005_v28 }
 0x674   : > { %v6444_v9 = vpop.permute.xlu0 %6443 }
 0x675   : > { %v6449_v46 = vmul.f32 %v10003_v49, %v6444_v9 }
 0x677   : > { %6453 = vrot.lane.b32.xlu1 %v6449_v46, %s10373_s14 }
 0x678   : > { %v6446_v39 = vpop.permute.xlu0 %6445 }
 0x679   : > { %v6450_v4 = vmul.f32 %v10005_v28, %v6446_v39 }
 0x67b   : > { %6455 = vrot.lane.b32.xlu1 %v6450_v4, %s10373_s14 }
 0x6e9   : > { %v6454_v56 = vpop.permute.xlu1 %6453 }
 0x6ea   : > { %v11814_v45 = vadd.f32 %v6454_v56, %v6439_v33  ;;  %v11890_v33 = vadd.f32 %v11835_v42, %v11799_v8 }
 0x6ec   : > { %10006 = vtanh.f32 %v11814_v45 }
 0x6ed   : > { %v6456_v30 = vpop.permute.xlu1 %6455 }
 0x6ee   : > { %v11817_v36 = vadd.f32 %v6456_v30, %v6440_v26  ;;  %v5858_v26 = vrot.slane %v5857_v60, 4 }
 0x6f0   : > { %10008 = vtanh.f32 %v11817_v36 }
 0x6f9   : > { %v10007_v6 = vpop.eup %10006 }
 0x6fa   : > { %6465 = vrot.lane.b32.xlu0 %v10007_v6, %s10372_s13 }
 0x6fd   : > { %v10009_v0 = vpop.eup %10008 }
 0x6fe   : > { %6467 = vrot.lane.b32.xlu1 %v10009_v0, %s10372_s13 }
 0x76c   : > { %v6466_v50 = vpop.permute.xlu0 %6465 }
 0x76d   : > { %v11825_v12 = vmul.f32 %v10003_v49, %v6466_v50  ;;  %v11877_v49 = vadd.f32 %v11835_v42, %v11777_v18  ;;  %v5803_v18 = vadd.f32 %v5802_v62, %v5801_v58 }
 0x76f   : > { %v6482_v44 = vrot.slane %v11825_v12, %v11823_v31  ;;  %v6475_v2 = vcombine.high %v11825_v12, %v11825_v12  ;;  %v5808_v56 = vsel %vm2185_vm5, %v11877_v49, 0.0  ;;  %v5804_v50 = vrot.slane %v5803_v18, 2 }
 0x770   : > { %v6468_v11 = vpop.permute.xlu1 %6467  ;;  %v5809_v8 = vrot.slane %v5808_v56, 4 }
 0x771   : > { %v11829_v61 = vmul.f32 %v10005_v28, %v6468_v11  ;;  %v6498_v10 = vrot.slane %v6482_v44, %v11823_v31  ;;  %v6490_v21 = vcombine.high %v6482_v44, %v6482_v44  ;;  %v6489_v23 = vrot.slane %v6475_v2, %v11823_v31 }
 0x772   : > { %v5864_v28 = vsel %vm2185_vm5, %v11868_v17, 0.0  ;;  %v5871_v44 = vsel %vm2185_vm5, %v11890_v33, 0.0  ;;  %v11903_v11 = vadd.f32 %v11835_v42, %v11801_v16  ;;  %v5859_v2 = vadd.f32 %v5858_v26, %v5857_v60 }
 0x773   : > { %v6531_v47 = vrot.slane %v11829_v61, %v11823_v31  ;;  %v6576_v48 = vrot.slane %v6498_v10, %v10497_v13  ;;  %v6524_v1 = vcombine.high %v11829_v61, %v11829_v61  ;;  %v6512_v54 = vrot.slane %v6490_v21, %v11823_v31 }
 0x774   : > { %v6505_v52 = vrot.slane %v6489_v23, %v11823_v31  ;;  %v6491_v46 = vcombine.high %v6489_v23, %v6489_v23  ;;  %v6520_v4 = vcombine.high %v6498_v10, %v6498_v10  ;;  %v5865_v0 = vrot.slane %v5864_v28, 4 }
 0x775   : > { %6637 = vrot.lane.b32.xlu0 %v6576_v48, %s10373_s14  ;;  %v6547_v59 = vrot.slane %v6531_v47, %v11823_v31  ;;  %v6539_v40 = vcombine.high %v6531_v47, %v6531_v47  ;;  %v6538_v35 = vrot.slane %v6524_v1, %v11823_v31  ;;  %v6580_v29 = vrot.slane %v6512_v54, %v10497_v13 }
 0x776   : > { %v6592_v27 = vrot.slane %v6505_v52, %v10497_v13  ;;  %v6522_v9 = vcombine.high %v6512_v54, %v6512_v54  ;;  %v6519_v6 = vrot.slane %v6491_v46, %v11823_v31  ;;  %v6584_v34 = vrot.slane %v6520_v4, %v10497_v13 }
 0x777   : > { %v6608_v14 = vrot.slane %v6547_v59, %v10497_v13  ;;  %v6561_v57 = vrot.slane %v6539_v40, %v11823_v31  ;;  %v6569_v15 = vcombine.high %v6547_v59, %v6547_v59  ;;  %v11873_v24 = vrot.slane %v6538_v35, %v11823_v31 }
 0x778   : > { %v6588_v30 = vrot.slane %v6522_v9, %v10497_v13  ;;  %v6540_v3 = vcombine.high %v6538_v35, %v6538_v35  ;;  %v11907_v10 = vadd.f32 %v11835_v42, %v11779_v22  ;;  %v6596_v47 = vrot.slane %v6519_v6, %v10497_v13 }
 0x779   : > { %6653 = vrot.lane.b32.xlu1 %v6608_v14, %s10373_s14  ;;  %v6612_v32 = vrot.slane %v6561_v57, %v10497_v13  ;;  %v6616_v20 = vrot.slane %v6569_v15, %v10497_v13  ;;  %v6624_v39 = vrot.slane %v11873_v24, %v10497_v13  ;;  %v6571_v37 = vcombine.high %v6561_v57, %v6561_v57 }
 0x77a   : > { %v6521_v48 = vcombine.high %v6505_v52, %v6505_v52  ;;  %v5866_v21 = vadd.f32 %v5865_v0, %v5864_v28  ;;  %v11913_v1 = vadd.f32 %v11835_v42, %v11785_v7  ;;  %v5872_v59 = vrot.slane %v5871_v44, 4 }
 0x77b   : > { %6655 = vrot.lane.b32.xlu0 %v6612_v32, %s10373_s14  ;;  %v6620_v16 = vrot.slane %v6571_v37, %v10497_v13  ;;  %v6568_v40 = vrot.slane %v6540_v3, %v11823_v31  ;;  %v5805_v22 = vadd.f32 %v5804_v50, %v5803_v18  ;;  %v5810_v14 = vadd.f32 %v5809_v8, %v5808_v56 }
 0x77c   : > { %v5885_v57 = vsel %vm2185_vm5, %v11903_v11, 0.0  ;;  %v5815_v54 = vsel %vm2185_vm5, %v11907_v10, 0.0  ;;  %v5860_v23 = vrot.slane %v5859_v2, 2  ;;  %v6600_v7 = vrot.slane %v6521_v48, %v10497_v13 }
 0x77d   : > { %6639 = vrot.lane.b32.xlu1 %v6580_v29, %s10373_s14  ;;  %v6523_v32 = vcombine.high %v6519_v6, %v6519_v6  ;;  %v11926_v15 = vadd.f32 %v11835_v42, %v11781_v41  ;;  %v5867_v35 = vrot.slane %v5866_v21, 2  ;;  %v5829_v58 = vsel %vm2185_vm5, %v11913_v1, 0.0 }
 0x77e   : > { %v11932_v29 = vadd.f32 %v11835_v42, %v11787_v51  ;;  %v5873_v52 = vadd.f32 %v5872_v59, %v5871_v44  ;;  %v6628_v62 = vrot.slane %v6568_v40, %v10497_v13  ;;  %v5806_v9 = vrot.slane %v5805_v22, 1 }
 0x77f   : > { %6657 = vrot.lane.b32.xlu0 %v6616_v20, %s10373_s14  ;;  %v5886_v20 = vrot.slane %v5885_v57, 4  ;;  %v5811_v41 = vrot.slane %v5810_v14, 2  ;;  %v5816_v46 = vrot.slane %v5815_v54, 4  ;;  %v5861_v60 = vadd.f32 %v5860_v23, %v5859_v2 }
 0x780   : > { %v6604_v28 = vrot.slane %v6523_v32, %v10497_v13  ;;  %v5822_v51 = vsel %vm2185_vm5, %v11926_v15, 0.0  ;;  %v5868_v4 = vadd.f32 %v5867_v35, %v5866_v21  ;;  %v5830_v18 = vrot.slane %v5829_v58, 4 }
 0x781   : > { %6645 = vrot.lane.b32.xlu1 %v6592_v27, %s10373_s14  ;;  %v6570_v27 = vcombine.high %v11873_v24, %v11873_v24  ;;  %v5878_v56 = vsel %vm2185_vm5, %v11932_v29, 0.0  ;;  %v11946_v24 = vadd.f32 %v11835_v42, %v11795_v38  ;;  %v5874_v26 = vrot.slane %v5873_v52, 2 }
 0x782   : > { %v5807_v0 = vadd.f32 %v5806_v9, %v5805_v22  ;;  %v5817_v37 = vadd.f32 %v5816_v46, %v5815_v54  ;;  %v5823_v3 = vrot.slane %v5822_v51, 4  ;;  %v11952_v50 = vadd.f32 %v11835_v42, %v11789_v43 }
 0x783   : > { %6661 = vrot.lane.b32.xlu0 %v6624_v39, %s10373_s14  ;;  %v6572_v39 = vcombine.high %v6568_v40, %v6568_v40  ;;  %v6632_v6 = vrot.slane %v6570_v27, %v10497_v13  ;;  %v5862_v8 = vrot.slane %v5861_v60, 1  ;;  %v5869_v44 = vrot.slane %v5868_v4, 1 }
 0x784   : > { %v5879_v2 = vrot.slane %v5878_v56, 4  ;;  %v5892_v48 = vsel %vm2185_vm5, %v11946_v24, 0.0  ;;  %v5875_v21 = vadd.f32 %v5874_v26, %v5873_v52  ;;  %v5818_v22 = vrot.slane %v5817_v37, 2 }
 0x785   : > { %6643 = vrot.lane.b32.xlu1 %v6588_v30, %s10373_s14  ;;  %v5887_v30 = vadd.f32 %v5886_v20, %v5885_v57  ;;  %v6636_v38 = vrot.slane %v6572_v39, %v10497_v13  ;;  %v11961_v43 = vadd.f32 %v11835_v42, %v11805_v5  ;;  %v5824_v57 = vadd.f32 %v5823_v3, %v5822_v51 }
 0x786   : > { %v5836_v54 = vsel %vm2185_vm5, %v11952_v50, 0.0  ;;  %v11972_v23 = vadd.f32 %v11835_v42, %v11791_v25  ;;  %v5870_v32 = vadd.f32 %v5869_v44, %v5868_v4  ;;  %v5880_v35 = vadd.f32 %v5879_v2, %v5878_v56 }
 0x787   : > { %6641 = vrot.lane.b32.xlu0 %v6584_v34, %s10373_s14  ;;  %v5812_v34 = vadd.f32 %v5811_v41, %v5810_v14  ;;  %v5888_v59 = vrot.slane %v5887_v30, 2  ;;  %v11966_v14 = vld [vmem:[%s13073_s4 + $0xb] sm:$0x1]  ;;  %v5876_v5 = vrot.slane %v5875_v21, 1  ;;  %v5837_v9 = vrot.slane %v5836_v54, 4 }
 0x788   : > { %v5899_v41 = vsel %vm2185_vm5, %v11961_v43, 0.0  ;;  %v5819_v46 = vadd.f32 %v5818_v22, %v5817_v37  ;;  %v5843_v25 = vsel %vm2185_vm5, %v11972_v23, 0.0  ;;  %v5881_v51 = vrot.slane %v5880_v35, 2 }
 0x789   : > { %6647 = vrot.lane.b32.xlu1 %v6596_v47, %s10373_s14  ;;  %v5831_v47 = vadd.f32 %v5830_v18, %v5829_v58  ;;  %v5813_v40 = vrot.slane %v5812_v34, 1  ;;  %v5893_v58 = vrot.slane %v5892_v48, 4  ;;  %v5889_v20 = vadd.f32 %v5888_v59, %v5887_v30 }
 0x78a   : > { %v11981_v18 = vadd.f32 %v11835_v42, %v11793_v19  ;;  %v5877_v26 = vadd.f32 %v5876_v5, %v5875_v21  ;;  %v5838_v37 = vadd.f32 %v5837_v9, %v5836_v54  ;;  %v5844_v3 = vrot.slane %v5843_v25, 4 }
 0x78b   : > { %6659 = vrot.lane.b32.xlu0 %v6620_v16, %s10373_s14  ;;  %v5913_v16 = vmul.f32 0.125, %v5807_v0  ;;  %v5832_v52 = vrot.slane %v5831_v47, 2  ;;  %v5814_v27 = vadd.f32 %v5813_v40, %v5812_v34  ;;  %v5894_v4 = vadd.f32 %v5893_v58, %v5892_v48 }
 0x78c   : > { %v5890_v30 = vrot.slane %v5889_v20, 1  ;;  %v11986_v44 = vadd.f32 %v11835_v42, %v11803_v53  ;;  %v5882_v48 = vadd.f32 %v5881_v51, %v5880_v35  ;;  %v5850_v21 = vsel %vm2185_vm5, %v11981_v18, 0.0 }
 0x78d   : > { %6649 = vrot.lane.b32.xlu1 %v6600_v7, %s10373_s14  ;;  %v5863_v7 = vadd.f32 %v5862_v8, %v5861_v60  ;;  %v5922_v60 = vmul.f32 0.125, %v5870_v32  ;;  %v5833_v56 = vadd.f32 %v5832_v52, %v5831_v47  ;;  %v5914_v34 = vmul.f32 0.125, %v5814_v27 }
 0x78e   : > { %v5820_v8 = vrot.slane %v5819_v46, 1  ;;  %v5895_v47 = vrot.slane %v5894_v4, 2  ;;  %v5891_v40 = vadd.f32 %v5890_v30, %v5889_v20  ;;  %v5839_v53 = vrot.slane %v5838_v37, 2 }
 0x78f   : > { %6663 = vrot.lane.b32.xlu0 %v6628_v62, %s10373_s14  ;;  %v5929_v62 = vmul.f32 %v5913_v16, %v11966_v14  ;;  %v5921_v39 = vmul.f32 0.125, %v5863_v7  ;;  %v5938_v19 = vmul.f32 %v5922_v60, %v11966_v14  ;;  %v5834_v59 = vrot.slane %v5833_v56, 1 }
 0x790   : > { %v5923_v16 = vmul.f32 0.125, %v5877_v26  ;;  %v5845_v42 = vadd.f32 %v5844_v3, %v5843_v25  ;;  %v5821_v7 = vadd.f32 %v5820_v8, %v5819_v46  ;;  %v5906_v32 = vsel %vm2185_vm5, %v11986_v44, 0.0 }
 0x791   : > { %6651 = vrot.lane.b32.xlu1 %v6604_v28, %s10373_s14  ;;  %v5825_v28 = vrot.slane %v5824_v57, 2  ;;  %v5948_v0 = vrot.slane %v5929_v62, %v10497_v13  ;;  %v5937_v2 = vmul.f32 %v5921_v39, %v11966_v14  ;;  %v5851_v35 = vrot.slane %v5850_v21, 4 }
 0x792   : > { %v5984_v5 = vrot.slane %v5938_v19, %v10497_v13  ;;  %v5883_v62 = vrot.slane %v5882_v48, 1  ;;  %v5896_v20 = vadd.f32 %v5895_v47, %v5894_v4  ;;  %v5835_v27 = vadd.f32 %v5834_v59, %v5833_v56 }
 0x793   : > { %6665 = vrot.lane.b32.xlu0 %v6632_v6, %s10373_s14  ;;  %v5900_v6 = vrot.slane %v5899_v41, 4  ;;  %v11993_v54 = vsub.f32 %v11848_v55, %v5948_v0  ;;  %v5980_v58 = vrot.slane %v5937_v2, %v10497_v13  ;;  %v5939_v55 = vmul.f32 %v5923_v16, %v11966_v14 }
 0x794   : > { %v5925_v9 = vmul.f32 0.125, %v5891_v40  ;;  %v5840_v46 = vadd.f32 %v5839_v53, %v5838_v37  ;;  %v5846_v25 = vrot.slane %v5845_v42, 2  ;;  %v5907_v39 = vrot.slane %v5906_v32, 4 }
 0x795   : > { %6667 = vrot.lane.b32.xlu1 %v6636_v38, %s10373_s14  ;;  %v5826_v38 = vadd.f32 %v5825_v28, %v5824_v57  ;;  %v5901_v22 = vadd.f32 %v5900_v6, %v5899_v41  ;;  %v5930_v57 = vmul.f32 %v5914_v34, %v11966_v14  ;;  %v6025_v28 = vmul.f32 %v11993_v54, %v11993_v54 }
 0x796   : > { %v5915_v51 = vmul.f32 0.125, %v5821_v7  ;;  %v5852_v26 = vadd.f32 %v5851_v35, %v5850_v21  ;;  %v12005_v30 = vsub.f32 %v11864_v63, %v5980_v58  ;;  %v12008_v4 = vsub.f32 %v11868_v17, %v5984_v5 }
 0x797   : > { %v5827_v52 = vrot.slane %v5826_v38, 1  ;;  %v5902_v41 = vrot.slane %v5901_v22, 2  ;;  %v5952_v60 = vrot.slane %v5930_v57, %v10497_v13  ;;  %v5884_v56 = vadd.f32 %v5883_v62, %v5882_v48 }
 0x798   : > { %v5897_v0 = vrot.slane %v5896_v20, 1  ;;  %v5917_v34 = vmul.f32 0.125, %v5835_v27  ;;  %v5988_v3 = vrot.slane %v5939_v55, %v10497_v13  ;;  %v5941_v37 = vmul.f32 %v5925_v9, %v11966_v14 }
 0x799   : > { %v5828_v6 = vadd.f32 %v5827_v52, %v5826_v38  ;;  %v5903_v8 = vadd.f32 %v5902_v41, %v5901_v22  ;;  %v6041_v2 = vsel %vm2185_vm5, %v6025_v28, 0.0  ;;  %v5841_v19 = vrot.slane %v5840_v46, 1 }
 0x79a   : > { %v5847_v47 = vadd.f32 %v5846_v25, %v5845_v42  ;;  %v5908_v21 = vadd.f32 %v5907_v39, %v5906_v32  ;;  %v12014_v63 = vsub.f32 %v11877_v49, %v5952_v60  ;;  %v5931_v38 = vmul.f32 %v5915_v51, %v11966_v14 }
 0x79b   : > { %v5853_v17 = vrot.slane %v5852_v26, 2  ;;  %v6033_v48 = vmul.f32 %v12005_v30, %v12005_v30  ;;  %v5916_v59 = vmul.f32 0.125, %v5828_v6  ;;  %v6034_v16 = vmul.f32 %v12008_v4, %v12008_v4 }
 0x79c   : > { %v5924_v40 = vmul.f32 0.125, %v5884_v56  ;;  %v5898_v22 = vadd.f32 %v5897_v0, %v5896_v20  ;;  %v5933_v57 = vmul.f32 %v5917_v34, %v11966_v14  ;;  %v12023_v53 = vsub.f32 %v11890_v33, %v5988_v3 }
 0x79d   : > { %v5996_v49 = vrot.slane %v5941_v37, %v10497_v13  ;;  %v5904_v42 = vrot.slane %v5903_v8, 1  ;;  %v6042_v7 = vrot.slane %v6041_v2, 4  ;;  %v5842_v32 = vadd.f32 %v5841_v19, %v5840_v46 }
 0x79e   : > { %v5848_v35 = vrot.slane %v5847_v47, 1  ;;  %v5909_v58 = vrot.slane %v5908_v21, 2  ;;  %v6026_v52 = vmul.f32 %v12014_v63, %v12014_v63  ;;  %v5956_v5 = vrot.slane %v5931_v38, %v10497_v13 }
 0x79f   : > { %v5854_v62 = vadd.f32 %v5853_v17, %v5852_v26  ;;  %v6097_v20 = vsel %vm2185_vm5, %v6033_v48, 0.0  ;;  %v5932_v27 = vmul.f32 %v5916_v59, %v11966_v14  ;;  %v6104_v33 = vsel %vm2185_vm5, %v6034_v16, 0.0 }
 0x7a0   : > { %v5940_v55 = vmul.f32 %v5924_v40, %v11966_v14  ;;  %v5926_v9 = vmul.f32 0.125, %v5898_v22  ;;  %v5964_v41 = vrot.slane %v5933_v57, %v10497_v13  ;;  %v6035_v28 = vmul.f32 %v12023_v53, %v12023_v53 }
 0x7a1   : > { %v12037_v46 = vsub.f32 %v11903_v11, %v5996_v49  ;;  %v5905_v25 = vadd.f32 %v5904_v42, %v5903_v8  ;;  %v5918_v39 = vmul.f32 0.125, %v5842_v32  ;;  %v5849_v60 = vadd.f32 %v5848_v35, %v5847_v47 }
 0x7a2   : > { %v5910_v51 = vadd.f32 %v5909_v58, %v5908_v21  ;;  %v6098_v26 = vrot.slane %v6097_v20, 4  ;;  %v6043_v6 = vadd.f32 %v6042_v7, %v6041_v2  ;;  %v12040_v56 = vsub.f32 %v11907_v10, %v5956_v5 }
 0x7a3   : > { %v6105_v0 = vrot.slane %v6104_v33, 4  ;;  %v5855_v34 = vrot.slane %v5854_v62, 1  ;;  %v6048_v3 = vsel %vm2185_vm5, %v6026_v52, 0.0  ;;  %v5960_v37 = vrot.slane %v5932_v27, %v10497_v13 }
 0x7a4   : > { %v5992_v19 = vrot.slane %v5940_v55, %v10497_v13  ;;  %v5942_v11 = vmul.f32 %v5926_v9, %v11966_v14  ;;  %v12047_v8 = vsub.f32 %v11913_v1, %v5964_v41  ;;  %v6111_v47 = vsel %vm2185_vm5, %v6035_v28, 0.0 }
 0x7a5   : > { %v6037_v2 = vmul.f32 %v12037_v46, %v12037_v46  ;;  %v5927_v10 = vmul.f32 0.125, %v5905_v25  ;;  %v5934_v21 = vmul.f32 %v5918_v39, %v11966_v14  ;;  %v5919_v38 = vmul.f32 0.125, %v5849_v60 }
 0x7a6   : > { %v5911_v17 = vrot.slane %v5910_v51, 1  ;;  %v6099_v48 = vadd.f32 %v6098_v26, %v6097_v20  ;;  %v6044_v59 = vrot.slane %v6043_v6, 2  ;;  %v6027_v16 = vmul.f32 %v12040_v56, %v12040_v56 }
 0x7a7   : > { %v6106_v40 = vadd.f32 %v6105_v0, %v6104_v33  ;;  %v5856_v22 = vadd.f32 %v5855_v34, %v5854_v62  ;;  %v6049_v57 = vrot.slane %v6048_v3, 4  ;;  %v12056_v1 = vsub.f32 %v11932_v29, %v5992_v19 }
 0x7a8   : > { %v6000_v49 = vrot.slane %v5942_v11, %v10497_v13  ;;  %v6112_v42 = vrot.slane %v6111_v47, 4  ;;  %v12060_v7 = vsub.f32 %v11926_v15, %v5960_v37  ;;  %v6029_v32 = vmul.f32 %v12047_v8, %v12047_v8 }
 0x7a9   : > { %v6125_v35 = vsel %vm2185_vm5, %v6037_v2, 0.0  ;;  %v5943_v58 = vmul.f32 %v5927_v10, %v11966_v14  ;;  %v5968_v52 = vrot.slane %v5934_v21, %v10497_v13  ;;  %v5935_v5 = vmul.f32 %v5919_v38, %v11966_v14 }
 0x7aa   : > { %v5912_v62 = vadd.f32 %v5911_v17, %v5910_v51  ;;  %v6100_v29 = vrot.slane %v6099_v48, 2  ;;  %v6045_v20 = vadd.f32 %v6044_v59, %v6043_v6  ;;  %v6055_v27 = vsel %vm2185_vm5, %v6027_v16, 0.0 }
 0x7ab   : > { %v6107_v33 = vrot.slane %v6106_v40, 2  ;;  %v5920_v55 = vmul.f32 0.125, %v5856_v22  ;;  %v6036_v15 = vmul.f32 %v12056_v1, %v12056_v1  ;;  %v12072_v9 = vsub.f32 %v11946_v24, %v6000_v49 }
 0x7ac   : > { %v6113_v41 = vadd.f32 %v6112_v42, %v6111_v47  ;;  %v6126_v28 = vrot.slane %v6125_v35, 4  ;;  %v6050_v25 = vadd.f32 %v6049_v57, %v6048_v3  ;;  %v6028_v39 = vmul.f32 %v12060_v7, %v12060_v7 }
 0x7ad   : > { %v6069_v60 = vsel %vm2185_vm5, %v6029_v32, 0.0  ;;  %v6004_v51 = vrot.slane %v5943_v58, %v10497_v13  ;;  %v12079_v26 = vsub.f32 %v11952_v50, %v5968_v52  ;;  %v5972_v6 = vrot.slane %v5935_v5, %v10497_v13 }
 0x7ae   : > { %v5928_v0 = vmul.f32 0.125, %v5912_v62  ;;  %v6101_v34 = vadd.f32 %v6100_v29, %v6099_v48  ;;  %v6046_v37 = vrot.slane %v6045_v20, 1  ;;  %v6056_v24 = vrot.slane %v6055_v27, 4 }
 0x7af   : > { %v6108_v19 = vadd.f32 %v6107_v33, %v6106_v40  ;;  %v5936_v11 = vmul.f32 %v5920_v55, %v11966_v14  ;;  %v6118_v3 = vsel %vm2185_vm5, %v6036_v15, 0.0  ;;  %v6038_v47 = vmul.f32 %v12072_v9, %v12072_v9 }
 0x7b0   : > { %v6114_v2 = vrot.slane %v6113_v41, 2  ;;  %v6127_v10 = vadd.f32 %v6126_v28, %v6125_v35  ;;  %v6051_v21 = vrot.slane %v6050_v25, 2  ;;  %v6062_v50 = vsel %vm2185_vm5, %v6028_v39, 0.0 }
 0x7b1   : > { %v6070_v38 = vrot.slane %v6069_v60, 4  ;;  %v12088_v17 = vsub.f32 %v11961_v43, %v6004_v51  ;;  %v6030_v48 = vmul.f32 %v12079_v26, %v12079_v26  ;;  %v12093_v59 = vsub.f32 %v11972_v23, %v5972_v6 }
 0x7b2   : > { %v5944_v16 = vmul.f32 %v5928_v0, %v11966_v14  ;;  %v6102_v40 = vrot.slane %v6101_v34, 1  ;;  %v6047_v22 = vadd.f32 %v6046_v37, %v6045_v20  ;;  %v6109_v57 = vrot.slane %v6108_v19, 1 }
 0x7b3   : > { %v6119_v49 = vrot.slane %v6118_v3, 4  ;;  %v5976_v42 = vrot.slane %v5936_v11, %v10497_v13  ;;  %v6057_v32 = vadd.f32 %v6056_v24, %v6055_v27  ;;  %v6132_v35 = vsel %vm2185_vm5, %v6038_v47, 0.0 }
 0x7b4   : > { %v6115_v58 = vadd.f32 %v6114_v2, %v6113_v41  ;;  %v6128_v43 = vrot.slane %v6127_v10, 2  ;;  %v6052_v52 = vadd.f32 %v6051_v21, %v6050_v25  ;;  %v6063_v5 = vrot.slane %v6062_v50, 4 }
 0x7b5   : > { %v6071_v62 = vadd.f32 %v6070_v38, %v6069_v60  ;;  %v6039_v23 = vmul.f32 %v12088_v17, %v12088_v17  ;;  %v6076_v29 = vsel %vm2185_vm5, %v6030_v48, 0.0  ;;  %v6031_v14 = vmul.f32 %v12093_v59, %v12093_v59 }
 0x7b6   : > { %v6008_v20 = vrot.slane %v5944_v16, %v10497_v13  ;;  %v6103_v33 = vadd.f32 %v6102_v40, %v6101_v34  ;;  %v6110_v55 = vadd.f32 %v6109_v57, %v6108_v19  ;;  %v6120_v27 = vadd.f32 %v6119_v49, %v6118_v3 }
 0x7b7   : > { %v6133_v15 = vrot.slane %v6132_v35, 4  ;;  %v12105_v41 = vsub.f32 %v11981_v18, %v5976_v42  ;;  %v6153_v28 = vmul.f32 0.125, %v6047_v22  ;;  %v6058_v25 = vrot.slane %v6057_v32, 2 }
 0x7b8   : > { %v6116_v39 = vrot.slane %v6115_v58, 1  ;;  %v6129_v60 = vadd.f32 %v6128_v43, %v6127_v10  ;;  %v6053_v51 = vrot.slane %v6052_v52, 1  ;;  %v6064_v6 = vadd.f32 %v6063_v5, %v6062_v50 }
 0x7b9   : > { %v6072_v0 = vrot.slane %v6071_v62, 2  ;;  %v6139_v37 = vsel %vm2185_vm5, %v6039_v23, 0.0  ;;  %v6077_v24 = vrot.slane %v6076_v29, 4  ;;  %v6083_v11 = vsel %vm2185_vm5, %v6031_v14, 0.0 }
 0x7ba   : > { %v12110_v34 = vsub.f32 %v11986_v44, %v6008_v20  ;;  %v6161_v19 = vmul.f32 0.125, %v6103_v33  ;;  %v6162_v3 = vmul.f32 0.125, %v6110_v55  ;;  %v6121_v47 = vrot.slane %v6120_v27, 2 }
 0x7bb   : > { %v6134_v18 = vadd.f32 %v6133_v15, %v6132_v35  ;;  %v6032_v2 = vmul.f32 %v12105_v41, %v12105_v41  ;;  %v6059_v21 = vadd.f32 %v6058_v25, %v6057_v32  ;;  %v6117_v10 = vadd.f32 %v6116_v39, %v6115_v58 }
 0x7bc   : > { %v6130_v38 = vrot.slane %v6129_v60, 1  ;;  %v6140_v50 = vrot.slane %v6139_v37, 4  ;;  %v6169_v48 = vadd.f32 1e-05, %v6153_v28  ;;  %v6065_v16 = vrot.slane %v6064_v6, 2 }
 0x7bd   : > { %v6073_v40 = vadd.f32 %v6072_v0, %v6071_v62  ;;  %v6084_v22 = vrot.slane %v6083_v11, 4  ;;  %v6054_v57 = vadd.f32 %v6053_v51, %v6052_v52  ;;  %v6078_v49 = vadd.f32 %v6077_v24, %v6076_v29 }
 0x7be   : > { %v6040_v44 = vmul.f32 %v12110_v34, %v12110_v34  ;;  %v6177_v42 = vadd.f32 1e-05, %v6161_v19  ;;  %v6178_v43 = vadd.f32 1e-05, %v6162_v3  ;;  %v6122_v5 = vadd.f32 %v6121_v47, %v6120_v27 }
 0x7bf   : > { %v6135_v35 = vrot.slane %v6134_v18, 2  ;;  %v6090_v23 = vsel %vm2185_vm5, %v6032_v2, 0.0  ;;  %v6060_v14 = vrot.slane %v6059_v21, 1  ;;  %v6163_v32 = vmul.f32 0.125, %v6117_v10 }
 0x7c0   : > { %v6131_v58 = vadd.f32 %v6130_v38, %v6129_v60  ;;  %v6141_v20 = vadd.f32 %v6140_v50, %v6139_v37  ;;  %10010 = vrsqrt.f32 %v6169_v48  ;;  %v6066_v33 = vadd.f32 %v6065_v16, %v6064_v6 }
 0x7c1   : > { %v6074_v55 = vrot.slane %v6073_v40, 1  ;;  %v6085_v62 = vadd.f32 %v6084_v22, %v6083_v11  ;;  %v6079_v15 = vrot.slane %v6078_v49, 2  ;;  %v6146_v52 = vsel %vm2185_vm5, %v6040_v44, 0.0 }
 0x7c2   : > { %v6091_v29 = vrot.slane %v6090_v23, 4  ;;  %10012 = vrsqrt.f32 %v6177_v42  ;;  %v6123_v28 = vrot.slane %v6122_v5, 1  ;;  %v6136_v25 = vadd.f32 %v6135_v35, %v6134_v18 }
 0x7c3   : > { %10014 = vrsqrt.f32 %v6178_v43  ;;  %v6061_v27 = vadd.f32 %v6060_v14, %v6059_v21  ;;  %v6179_v39 = vadd.f32 1e-05, %v6163_v32  ;;  %v6165_v51 = vmul.f32 0.125, %v6131_v58 }
 0x7c4   : > { %v6142_v0 = vrot.slane %v6141_v20, 2  ;;  %v6154_v24 = vmul.f32 0.125, %v6054_v57  ;;  %v6075_v19 = vadd.f32 %v6074_v55, %v6073_v40  ;;  %v6086_v60 = vrot.slane %v6085_v62, 2 }
 0x7c5   : > { %v6147_v37 = vrot.slane %v6146_v52, 4  ;;  %v6067_v3 = vrot.slane %v6066_v33, 1  ;;  %v6080_v6 = vadd.f32 %v6079_v15, %v6078_v49  ;;  %v6092_v47 = vadd.f32 %v6091_v29, %v6090_v23 }
 0x7c6   : > { %v6124_v11 = vadd.f32 %v6123_v28, %v6122_v5  ;;  %v6137_v2 = vrot.slane %v6136_v25, 1  ;;  %v6155_v10 = vmul.f32 0.125, %v6061_v27  ;;  %10016 = vrsqrt.f32 %v6179_v39 }
 0x7c7   : > { %v6181_v38 = vadd.f32 1e-05, %v6165_v51  ;;  %v6143_v50 = vadd.f32 %v6142_v0, %v6141_v20  ;;  %v6170_v48 = vadd.f32 1e-05, %v6154_v24  ;;  %v6157_v16 = vmul.f32 0.125, %v6075_v19 }
 0x7c8   : > { %v6087_v18 = vadd.f32 %v6086_v60, %v6085_v62  ;;  %v6148_v21 = vadd.f32 %v6147_v37, %v6146_v52  ;;  %v6068_v22 = vadd.f32 %v6067_v3, %v6066_v33  ;;  %v6081_v44 = vrot.slane %v6080_v6, 1  ;;  %v12124_v60 = vld [vmem:[%s13073_s4 + $0x9] ss:$0 sm:$0xff] }
 0x7c9   : > { %v6093_v42 = vrot.slane %v6092_v47, 2  ;;  %v6164_v57 = vmul.f32 0.125, %v6124_v11  ;;  %v6138_v40 = vadd.f32 %v6137_v2, %v6136_v25  ;;  %v6171_v43 = vadd.f32 1e-05, %v6155_v10  ;;  %v12132_v10 = vld [vmem:[%s13073_s4 + $0xa] ss:$0 sm:$0xff] }
 0x7ca   : > { %10018 = vrsqrt.f32 %v6181_v38  ;;  %v6144_v35 = vrot.slane %v6143_v50, 1  ;;  %v6173_v49 = vadd.f32 1e-05, %v6157_v16  ;;  %v6088_v5 = vrot.slane %v6087_v18, 1 }
 0x7cb   : > { %10020 = vrsqrt.f32 %v6170_v48  ;;  %v6149_v23 = vrot.slane %v6148_v21, 2  ;;  %v6156_v32 = vmul.f32 0.125, %v6068_v22  ;;  %v6082_v58 = vadd.f32 %v6081_v44, %v6080_v6 }
 0x7cc   : > { %v6094_v20 = vadd.f32 %v6093_v42, %v6092_v47  ;;  %v6180_v15 = vadd.f32 1e-05, %v6164_v57  ;;  %v6166_v62 = vmul.f32 0.125, %v6138_v40  ;;  %10022 = vrsqrt.f32 %v6171_v43 }
 0x7cd   : > { %v10011_v14 = vpop.eup %10010  ;;  %v6145_v33 = vadd.f32 %v6144_v35, %v6143_v50  ;;  %10024 = vrsqrt.f32 %v6173_v49  ;;  %v6089_v29 = vadd.f32 %v6088_v5, %v6087_v18  ;;  %v6150_v28 = vadd.f32 %v6149_v23, %v6148_v21 }
 0x7ce   : > { %v6172_v25 = vadd.f32 1e-05, %v6156_v32  ;;  %v6158_v27 = vmul.f32 0.125, %v6082_v58  ;;  %v6095_v39 = vrot.slane %v6094_v20, 1  ;;  %v6201_v0 = vmul.f32 %v10011_v14, %v11993_v54 }
 0x7cf   : > { %v10013_v55 = vpop.eup %10012  ;;  %10026 = vrsqrt.f32 %v6180_v15  ;;  %v6182_v19 = vadd.f32 1e-05, %v6166_v62  ;;  %v6167_v37 = vmul.f32 0.125, %v6145_v33  ;;  %v6159_v6 = vmul.f32 0.125, %v6089_v29 }
 0x7d0   : > { %v10015_v52 = vpop.eup %10014  ;;  %v6209_v51 = vmul.f32 %v10013_v55, %v12005_v30  ;;  %v6151_v47 = vrot.slane %v6150_v28, 1  ;;  %10028 = vrsqrt.f32 %v6172_v25  ;;  %v6174_v11 = vadd.f32 1e-05, %v6158_v27 }
 0x7d1   : > { %v6210_v24 = vmul.f32 %v10015_v52, %v12008_v4  ;;  %v6096_v2 = vadd.f32 %v6095_v39, %v6094_v20  ;;  %v6221_v54 = vmul.f32 %v12124_v60, %v6201_v0  ;;  %10030 = vrsqrt.f32 %v6182_v19 }
 0x7d2   : > { %v6229_v30 = vmul.f32 %v12124_v60, %v6209_v51  ;;  %v6183_v50 = vadd.f32 1e-05, %v6167_v37  ;;  %v6175_v16 = vadd.f32 1e-05, %v6159_v6  ;;  %v6152_v18 = vadd.f32 %v6151_v47, %v6150_v28 }
 0x7d3   : > { %v10017_v3 = vpop.eup %10016  ;;  %v6230_v4 = vmul.f32 %v12124_v60, %v6210_v24  ;;  %10032 = vrsqrt.f32 %v6174_v11  ;;  %v6160_v44 = vmul.f32 0.125, %v6096_v2  ;;  %v12139_v57 = vadd.f32 %v12132_v10, %v6221_v54 }
 0x7d4   : > { %v6211_v38 = vmul.f32 %v10017_v3, %v12023_v53  ;;  %v12136_v42 = vadd.f32 %v12132_v10, %v6229_v30  ;;  %10034 = vrsqrt.f32 %v6183_v50  ;;  %v6168_v14 = vmul.f32 0.125, %v6152_v18 }
 0x7d5   : > { %v12142_v40 = vadd.f32 %v12132_v10, %v6230_v4  ;;  %10036 = vrsqrt.f32 %v6175_v16  ;;  %v6176_v20 = vadd.f32 1e-05, %v6160_v44 }
 0x7d6   : > { %v6231_v53 = vmul.f32 %v12124_v60, %v6211_v38  ;;  %v6184_v51 = vadd.f32 1e-05, %v6168_v14 }
 0x7d7   : > { %v10019_v48 = vpop.eup %10018  ;;  %10038 = vrsqrt.f32 %v6176_v20 }
 0x7d8   : > { %v10021_v22 = vpop.eup %10020  ;;  %v6213_v35 = vmul.f32 %v10019_v48, %v12037_v46  ;;  %v12153_v29 = vadd.f32 %v12132_v10, %v6231_v53  ;;  %10040 = vrsqrt.f32 %v6184_v51 }
 0x7d9   : > { %v10023_v5 = vpop.eup %10022  ;;  %v6202_v23 = vmul.f32 %v10021_v22, %v12014_v63 }
 0x7da   : > { %v10025_v58 = vpop.eup %10024  ;;  %v6203_v33 = vmul.f32 %v10023_v5, %v12040_v56  ;;  %v6233_v63 = vmul.f32 %v12124_v60, %v6213_v35 }
 0x7db   : > { %v6222_v25 = vmul.f32 %v12124_v60, %v6202_v23  ;;  %v6205_v27 = vmul.f32 %v10025_v58, %v12047_v8 }
 0x7dc   : > { %v10027_v46 = vpop.eup %10026  ;;  %v6223_v6 = vmul.f32 %v12124_v60, %v6203_v33  ;;  %v12164_v47 = vadd.f32 %v12132_v10, %v6233_v63 }
 0x7dd   : > { %v10029_v56 = vpop.eup %10028  ;;  %v6212_v19 = vmul.f32 %v10027_v46, %v12056_v1  ;;  %v12168_v11 = vadd.f32 %v12132_v10, %v6222_v25  ;;  %v6225_v54 = vmul.f32 %v12124_v60, %v6205_v27 }
 0x7de   : > { %v10031_v3 = vpop.eup %10030  ;;  %v6204_v30 = vmul.f32 %v10029_v56, %v12060_v7  ;;  %v12176_v16 = vadd.f32 %v12132_v10, %v6223_v6 }
 0x7df   : > { %v6232_v38 = vmul.f32 %v12124_v60, %v6212_v19  ;;  %v6214_v50 = vmul.f32 %v10031_v3, %v12072_v9  ;;  %v12182_v53 = vadd.f32 %v12132_v10, %v6225_v54 }
 0x7e0   : > { %v10033_v4 = vpop.eup %10032 }
 0x7e1   : > { %v10035_v22 = vpop.eup %10034  ;;  %v6206_v35 = vmul.f32 %v10033_v4, %v12079_v26  ;;  %v6234_v5 = vmul.f32 %v12124_v60, %v6214_v50 }
 0x7e2   : > { %v10037_v44 = vpop.eup %10036  ;;  %v6215_v14 = vmul.f32 %v10035_v22, %v12088_v17 }
 0x7e3   : > { %v12201_v17 = vadd.f32 %v12132_v10, %v6234_v5 }
 0x7e4   : > { %v10039_v46 = vpop.eup %10038  ;;  %v6235_v33 = vmul.f32 %v12124_v60, %v6215_v14 }
 0x7e5   : > { %v10041_v56 = vpop.eup %10040 }
 0x7e6   : > { %v12214_v19 = vadd.f32 %v12132_v10, %v6235_v33 }
 0x7e7   : > { %v6638_v21 = vpop.permute.xlu0 %6637 }
 0x7e8   : > { %v6685_v55 = vmul.f32 %v6638_v21, %v12139_v57 }
 0x7ea   : > { %v6701_v24 = vsel %vm2185_vm5, %v6685_v55, 0.0 }
 0x7eb   : > { %v6654_v43 = vpop.permute.xlu1 %6653 }
 0x7ec   : > { %v6693_v49 = vmul.f32 %v6654_v43, %v12136_v42  ;;  %v6224_v43 = vmul.f32 %v12124_v60, %v6204_v30 }
 0x7ed   : > { %v6656_v32 = vpop.permute.xlu0 %6655 }
 0x7ee   : > { %v6694_v15 = vmul.f32 %v6656_v32, %v12142_v40  ;;  %v6725_v62 = vsel %vm2185_vm5, %v6693_v49, 0.0  ;;  %v12187_v49 = vadd.f32 %v12132_v10, %v6232_v38  ;;  %v12195_v26 = vadd.f32 %v12132_v10, %v6224_v43 }
 0x7ef   : > { %6726 = vadd.xlane.f32.xlu0 %v6725_v62  ;;  %v6640_v52 = vpop.permute.xlu1 %6639  ;;  %v6207_v62 = vmul.f32 %v10037_v44, %v12093_v59 }
 0x7f0   : > { %v6728_v28 = vsel %vm2185_vm5, %v6694_v15, 0.0  ;;  %v6686_v18 = vmul.f32 %v6640_v52, %v12168_v11  ;;  %v6226_v15 = vmul.f32 %v12124_v60, %v6206_v35 }
 0x7f1   : > { %v6658_v39 = vpop.permute.xlu0 %6657  ;;  %6729 = vadd.xlane.f32.xlu1 %v6728_v28  ;;  %v6227_v51 = vmul.f32 %v12124_v60, %v6207_v62 }
 0x7f2   : > { %v6695_v0 = vmul.f32 %v6658_v39, %v12153_v29  ;;  %v6704_v20 = vsel %vm2185_vm5, %v6686_v18, 0.0  ;;  %v12208_v59 = vadd.f32 %v12132_v10, %v6226_v15 }
 0x7f3   : > { %6702 = vadd.xlane.f32.xlu0 %v6701_v24  ;;  %v6646_v37 = vpop.permute.xlu1 %6645 }
 0x7f4   : > { %v6731_v8 = vsel %vm2185_vm5, %v6695_v0, 0.0  ;;  %v6689_v32 = vmul.f32 %v6646_v37, %v12182_v53  ;;  %v6208_v0 = vmul.f32 %v10039_v46, %v12105_v41  ;;  %v6216_v41 = vmul.f32 %v10041_v56, %v12110_v34 }
 0x7f5   : > { %v6662_v2 = vpop.permute.xlu0 %6661  ;;  %6732 = vadd.xlane.f32.xlu1 %v6731_v8 }
 0x7f6   : > { %v6697_v1 = vmul.f32 %v6662_v2, %v12164_v47  ;;  %v6713_v28 = vsel %vm2185_vm5, %v6689_v32, 0.0  ;;  %v12220_v2 = vadd.f32 %v12132_v10, %v6227_v51  ;;  %v6228_v30 = vmul.f32 %v12124_v60, %v6208_v0 }
 0x7f7   : > { %v6644_v48 = vpop.permute.xlu1 %6643 }
 0x7f8   : > { %v6737_v21 = vsel %vm2185_vm5, %v6697_v1, 0.0  ;;  %v6688_v63 = vmul.f32 %v6644_v48, %v12195_v26  ;;  %v6236_v48 = vmul.f32 %v12124_v60, %v6216_v41  ;;  %v12230_v18 = vadd.f32 %v12132_v10, %v6228_v30 }
 0x7f9   : > { %v6642_v7 = vpop.permute.xlu0 %6641  ;;  %6738 = vadd.xlane.f32.xlu1 %v6737_v21 }
 0x7fa   : > { %v6687_v9 = vmul.f32 %v6642_v7, %v12176_v16  ;;  %v6710_v3 = vsel %vm2185_vm5, %v6688_v63, 0.0  ;;  %v12235_v7 = vadd.f32 %v12132_v10, %v6236_v48 }
 0x7fb   : > { %v6648_v23 = vpop.permute.xlu1 %6647 }
 0x7fc   : > { %v6707_v58 = vsel %vm2185_vm5, %v6687_v9, 0.0  ;;  %v6690_v37 = vmul.f32 %v6648_v23, %v12208_v59 }
 0x7fd   : > { %6708 = vadd.xlane.f32.xlu0 %v6707_v58  ;;  %v6660_v55 = vpop.permute.xlu0 %6659  ;;  %6705 = vadd.xlane.f32.xlu1 %v6704_v20 }
 0x7fe   : > { %v6696_v52 = vmul.f32 %v6660_v55, %v12187_v49  ;;  %v6716_v38 = vsel %vm2185_vm5, %v6690_v37, 0.0 }
 0x7ff   : > { %v6650_v27 = vpop.permute.xlu1 %6649 }
 0x800   : > { %v6734_v25 = vsel %vm2185_vm5, %v6696_v52, 0.0  ;;  %v6691_v4 = vmul.f32 %v6650_v27, %v12220_v2 }
 0x801   : > { %v6664_v39 = vpop.permute.xlu0 %6663  ;;  %6714 = vadd.xlane.f32.xlu0 %v6713_v28  ;;  %6735 = vadd.xlane.f32.xlu1 %v6734_v25 }
 0x802   : > { %v6698_v24 = vmul.f32 %v6664_v39, %v12201_v17  ;;  %v6719_v21 = vsel %vm2185_vm5, %v6691_v4, 0.0 }
 0x803   : > { %v6652_v1 = vpop.permute.xlu1 %6651 }
 0x804   : > { %v6740_v6 = vsel %vm2185_vm5, %v6698_v24, 0.0  ;;  %v6692_v34 = vmul.f32 %v6652_v1, %v12230_v18 }
 0x805   : > { %v6666_v8 = vpop.permute.xlu0 %6665  ;;  %6711 = vadd.xlane.f32.xlu0 %v6710_v3  ;;  %6741 = vadd.xlane.f32.xlu1 %v6740_v6 }
 0x806   : > { %v6699_v54 = vmul.f32 %v6666_v8, %v12214_v19  ;;  %v6722_v43 = vsel %vm2185_vm5, %v6692_v34, 0.0 }
 0x807   : > { %v6668_v22 = vpop.permute.xlu1 %6667 }
 0x808   : > { %v6743_v50 = vsel %vm2185_vm5, %v6699_v54, 0.0  ;;  %v6700_v44 = vmul.f32 %v6668_v22, %v12235_v7 }
 0x809   : > { %6717 = vadd.xlane.f32.xlu0 %v6716_v38  ;;  %6744 = vadd.xlane.f32.xlu1 %v6743_v50 }
 0x80a   : > { %v6746_v35 = vsel %vm2185_vm5, %v6700_v44, 0.0 }
 0x80d   : > { %6720 = vadd.xlane.f32.xlu0 %v6719_v21 }
 0x811   : > { %6723 = vadd.xlane.f32.xlu0 %v6722_v43 }
 0x815   : > { %6747 = vadd.xlane.f32.xlu0 %v6746_v35 }
 0x81a   : > { %7265 = vrot.lane.b32.xlu1 %v11825_v12, %s10373_s14 }
 0x82b   : > { %7267 = vrot.lane.b32.xlu0 %v11829_v61, %s10373_s14 }
 0x878   : > { %v6727_v60 = vpop.xlane.xlu0 %6726 }
 0x879   : > { %v6797_v9 = vrot.slane %v6727_v60, 4 }
 0x87a   : > { %v6730_v5 = vpop.xlane.xlu1 %6729 }
 0x87b   : > { %v6798_v23 = vmax.f32 %v6727_v60, %v6797_v9  ;;  %v6803_v10 = vrot.slane %v6730_v5, 4 }
 0x87c   : > { %v6703_v14 = vpop.xlane.xlu0 %6702 }
 0x87d   : > { %v6799_v32 = vrot.slane %v6798_v23, 2  ;;  %v6804_v58 = vmax.f32 %v6730_v5, %v6803_v10  ;;  %v6749_v20 = vrot.slane %v6703_v14, 4 }
 0x87e   : > { %v6733_v55 = vpop.xlane.xlu1 %6732 }
 0x87f   : > { %v6800_v15 = vmax.f32 %v6798_v23, %v6799_v32  ;;  %v6805_v62 = vrot.slane %v6804_v58, 2  ;;  %v6750_v52 = vmax.f32 %v6703_v14, %v6749_v20  ;;  %v6809_v46 = vrot.slane %v6733_v55, 4 }
 0x881   : > { %v6801_v33 = vrot.slane %v6800_v15, 1  ;;  %v6806_v63 = vmax.f32 %v6804_v58, %v6805_v62  ;;  %v6751_v12 = vrot.slane %v6750_v52, 2  ;;  %v6810_v28 = vmax.f32 %v6733_v55, %v6809_v46 }
 0x882   : > { %v6739_v25 = vpop.xlane.xlu1 %6738 }
 0x883   : > { %v6802_v61 = vmax.f32 %v6800_v15, %v6801_v33  ;;  %v6807_v27 = vrot.slane %v6806_v63, 1  ;;  %v6752_v39 = vmax.f32 %v6750_v52, %v6751_v12  ;;  %v6811_v51 = vrot.slane %v6810_v28, 2 }
 0x884   : > { %v6821_v0 = vrot.slane %v6739_v25, 4 }
 0x885   : > { %v6853_v24 = vsub.f32 %v6727_v60, %v6802_v61  ;;  %v6808_v56 = vmax.f32 %v6806_v63, %v6807_v27  ;;  %v6753_v37 = vrot.slane %v6752_v39, 1  ;;  %v6812_v3 = vmax.f32 %v6810_v28, %v6811_v51 }
 0x886   : > { %v6822_v6 = vmax.f32 %v6739_v25, %v6821_v0  ;;  %v12244_v8 = vpop.xlane.xlu0 %6708  ;;  %v12246_v41 = vpop.xlane.xlu1 %6705 }
 0x887   : > { %v6877_v30 = vmul.f32 1.442695, %v6853_v24  ;;  %v6854_v54 = vsub.f32 %v6730_v5, %v6808_v56  ;;  %v6754_v1 = vmax.f32 %v6752_v39, %v6753_v37  ;;  %v6813_v4 = vrot.slane %v6812_v3, 1 }
 0x888   : > { %v6823_v38 = vrot.slane %v6822_v6, 2  ;;  %v6761_v50 = vrot.slane %v12244_v8, 4  ;;  %v6755_v48 = vrot.slane %v12246_v41, 4 }
 0x889   : > { %10042 = vpow2.f32 %v6877_v30  ;;  %v6879_v34 = vmul.f32 1.442695, %v6854_v54  ;;  %v6845_v21 = vsub.f32 %v6703_v14, %v6754_v1  ;;  %v6814_v22 = vmax.f32 %v6812_v3, %v6813_v4 }
 0x88a   : > { %v6824_v44 = vmax.f32 %v6822_v6, %v6823_v38  ;;  %v6762_v43 = vmax.f32 %v12244_v8, %v6761_v50  ;;  %v6756_v35 = vmax.f32 %v12246_v41, %v6755_v48  ;;  %v12252_v60 = vpop.xlane.xlu0 %6714  ;;  %v12254_v9 = vpop.xlane.xlu1 %6735 }
 0x88b   : > { %10044 = vpow2.f32 %v6879_v34  ;;  %v6861_v5 = vmul.f32 1.442695, %v6845_v21  ;;  %v6855_v23 = vsub.f32 %v6733_v55, %v6814_v22  ;;  %v6773_v10 = vrot.slane %v12252_v60, 4 }
 0x88c   : > { %v6825_v32 = vrot.slane %v6824_v44, 1  ;;  %v6763_v58 = vrot.slane %v6762_v43, 2  ;;  %v6757_v20 = vrot.slane %v6756_v35, 2  ;;  %v6815_v14 = vrot.slane %v12254_v9, 4 }
 0x88d   : > { %10046 = vpow2.f32 %v6861_v5  ;;  %v6881_v15 = vmul.f32 1.442695, %v6855_v23  ;;  %v6774_v62 = vmax.f32 %v12252_v60, %v6773_v10 }
 0x88e   : > { %v6826_v52 = vmax.f32 %v6824_v44, %v6825_v32  ;;  %v6764_v46 = vmax.f32 %v6762_v43, %v6763_v58  ;;  %v6758_v33 = vmax.f32 %v6756_v35, %v6757_v20  ;;  %v6816_v63 = vmax.f32 %v12254_v9, %v6815_v14  ;;  %v12260_v12 = vpop.xlane.xlu0 %6711  ;;  %v12262_v28 = vpop.xlane.xlu1 %6741 }
 0x88f   : > { %10048 = vpow2.f32 %v6881_v15  ;;  %v6775_v55 = vrot.slane %v6774_v62, 2  ;;  %v6767_v61 = vrot.slane %v12260_v12, 4  ;;  %v6827_v27 = vrot.slane %v12262_v28, 4 }
 0x890   : > { %v6857_v39 = vsub.f32 %v6739_v25, %v6826_v52  ;;  %v6765_v51 = vrot.slane %v6764_v46, 1  ;;  %v6759_v0 = vrot.slane %v6758_v33, 1  ;;  %v6817_v24 = vrot.slane %v6816_v63, 2 }
 0x891   : > { %v6776_v56 = vmax.f32 %v6774_v62, %v6775_v55  ;;  %v6768_v37 = vmax.f32 %v12260_v12, %v6767_v61  ;;  %v6828_v3 = vmax.f32 %v12262_v28, %v6827_v27 }
 0x892   : > { %v6885_v6 = vmul.f32 1.442695, %v6857_v39  ;;  %v6766_v30 = vmax.f32 %v6764_v46, %v6765_v51  ;;  %v6760_v54 = vmax.f32 %v6758_v33, %v6759_v0  ;;  %v6818_v1 = vmax.f32 %v6816_v63, %v6817_v24  ;;  %v12268_v4 = vpop.xlane.xlu0 %6717  ;;  %v12270_v38 = vpop.xlane.xlu1 %6744 }
 0x893   : > { %v6777_v50 = vrot.slane %v6776_v56, 1  ;;  %v6769_v48 = vrot.slane %v6768_v37, 2  ;;  %v6829_v34 = vrot.slane %v6828_v3, 2  ;;  %v6779_v25 = vrot.slane %v12268_v4, 4 }
 0x894   : > { %10050 = vpow2.f32 %v6885_v6  ;;  %v6847_v21 = vsub.f32 %v12244_v8, %v6766_v30  ;;  %v6846_v22 = vsub.f32 %v12246_v41, %v6760_v54  ;;  %v6819_v44 = vrot.slane %v6818_v1, 1 }
 0x895   : > { %v6778_v43 = vmax.f32 %v6776_v56, %v6777_v50  ;;  %v6770_v35 = vmax.f32 %v6768_v37, %v6769_v48  ;;  %v6830_v5 = vmax.f32 %v6828_v3, %v6829_v34  ;;  %v6780_v23 = vmax.f32 %v12268_v4, %v6779_v25 }
 0x896   : > { %v12276_v10 = vpop.eup %10042  ;;  %v6865_v32 = vmul.f32 1.442695, %v6847_v21  ;;  %v6863_v58 = vmul.f32 1.442695, %v6846_v22  ;;  %v6820_v20 = vmax.f32 %v6818_v1, %v6819_v44  ;;  %v6833_v14 = vrot.slane %v12270_v38, 4  ;;  %v12279_v15 = vpop.xlane.xlu0 %6720 }
 0x897   : > { %v7266_v62 = vpop.permute.xlu1 %7265  ;;  %v6941_v8 = vrot.slane %v12276_v10, 4  ;;  %v6849_v41 = vsub.f32 %v12252_v60, %v6778_v43  ;;  %v6771_v52 = vrot.slane %v6770_v35, 1  ;;  %v6831_v46 = vrot.slane %v6830_v5, 1 }
 0x898   : > { %9827 = vmatprep.mubr.msk.f32.mxu1 %vm2185_vm5, %v7266_v62  ;;  %v12284_v33 = vpop.eup %10044  ;;  %10052 = vpow2.f32 %v6865_v32  ;;  %v6856_v63 = vsub.f32 %v12254_v9, %v6820_v20  ;;  %v6781_v55 = vrot.slane %v6780_v23, 2  ;;  %v6834_v61 = vmax.f32 %v12270_v38, %v6833_v14 }
 0x899   : > { %v6942_v27 = vadd.f32 %v12276_v10, %v6941_v8  ;;  %v6947_v39 = vrot.slane %v12284_v33, 4  ;;  %10054 = vpow2.f32 %v6863_v58  ;;  %v6869_v51 = vmul.f32 1.442695, %v6849_v41 }
 0x89a   : > { %v12290_v0 = vpop.eup %10046  ;;  %v6883_v60 = vmul.f32 1.442695, %v6856_v63  ;;  %v6772_v24 = vmax.f32 %v6770_v35, %v6771_v52  ;;  %v6832_v56 = vmax.f32 %v6830_v5, %v6831_v46  ;;  %v6782_v37 = vmax.f32 %v6780_v23, %v6781_v55  ;;  %v12292_v3 = vpop.xlane.xlu0 %6723 }
 0x89b   : > { %v6943_v6 = vrot.slane %v6942_v27, 2  ;;  %v6948_v9 = vadd.f32 %v12284_v33, %v6947_v39  ;;  %v6893_v30 = vrot.slane %v12290_v0, 4  ;;  %10056 = vpow2.f32 %v6869_v51 }
 0x89c   : > { %v12296_v54 = vpop.eup %10048  ;;  %10058 = vpow2.f32 %v6883_v60  ;;  %v6848_v1 = vsub.f32 %v12260_v12, %v6772_v24  ;;  %v6858_v50 = vsub.f32 %v12262_v28, %v6832_v56  ;;  %v6783_v48 = vrot.slane %v6782_v37, 1  ;;  %v10299_v56 = vld [vmem:[%s13072_s3 + $0x10] sm:$0xff] }
 0x89d   : > { %v6949_v34 = vrot.slane %v6948_v9, 2  ;;  %v6894_v25 = vadd.f32 %v12290_v0, %v6893_v30  ;;  %v6953_v21 = vrot.slane %v12296_v54, 4  ;;  %v6835_v35 = vrot.slane %v6834_v61, 2 }
 0x89e   : > { %v6867_v22 = vmul.f32 1.442695, %v6848_v1  ;;  %v6887_v44 = vmul.f32 1.442695, %v6858_v50  ;;  %v6784_v43 = vmax.f32 %v6782_v37, %v6783_v48  ;;  %v12302_v5 = vpop.xlane.xlu0 %6747  ;;  %v6944_v23 = vadd.f32 %v6943_v6, %v6942_v27 }
 0x89f   : > { %v6950_v32 = vadd.f32 %v6949_v34, %v6948_v9  ;;  %v6895_v58 = vrot.slane %v6894_v25, 2  ;;  %v6836_v20 = vmax.f32 %v6834_v61, %v6835_v35  ;;  %v6785_v28 = vrot.slane %v12279_v15, 4  ;;  %v10298_v61 = vld [vmem:[%s13072_s3 + $0x18] sm:$0xff] }
 0x8a0   : > { %10060 = vpow2.f32 %v6867_v22  ;;  %v6850_v12 = vsub.f32 %v12268_v4, %v6784_v43  ;;  %v6954_v8 = vadd.f32 %v12296_v54, %v6953_v21  ;;  %v6945_v63 = vrot.slane %v6944_v23, 1  ;;  %v10300_v21 = vld [vmem:[%s13072_s3 + $0x8] sm:$0xff] }
 0x8a1   : > { %v12306_v14 = vpop.eup %10050  ;;  %v6896_v62 = vadd.f32 %v6895_v58, %v6894_v25  ;;  %10062 = vpow2.f32 %v6887_v44  ;;  %v6837_v52 = vrot.slane %v6836_v20, 1  ;;  %v6951_v55 = vrot.slane %v6950_v32, 1 }
 0x8a2   : > { %v6871_v41 = vmul.f32 1.442695, %v6850_v12  ;;  %v7268_v46 = vpop.permute.xlu0 %7267  ;;  %v6786_v4 = vmax.f32 %v12279_v15, %v6785_v28  ;;  %v6955_v60 = vrot.slane %v6954_v8, 2  ;;  %v6791_v24 = vrot.slane %v12292_v3, 4  ;;  %v10301_v28 = vld [vmem:[%s13072_s3] sm:$0xff] }
 0x8a3   : > { %9828 = vmatmul.mubr.msk.f32.vlgmr.msra.gmra.mxu1 %vm2185_vm5, %v7268_v46  ;;  %v6897_v27 = vrot.slane %v6896_v62, 1  ;;  %v6838_v39 = vmax.f32 %v6836_v20, %v6837_v52  ;;  %v6965_v6 = vrot.slane %v12306_v14, 4  ;;  %v12325_v50 = vadd.f32 %v6945_v63, %v6944_v23 }
 0x8a4   : > { %10064 = vpow2.f32 %v6871_v41  ;;  %9842 = vmatpush3.msra.mxu1 %v10298_v61  ;;  %v6787_v1 = vrot.slane %v6786_v4, 2  ;;  %v12327_v48 = vadd.f32 %v6951_v55, %v6950_v32  ;;  %v6792_v25 = vmax.f32 %v12292_v3, %v6791_v24 }
 0x8a5   : > { %v12314_v51 = vpop.eup %10052  ;;  %9843 = vmatprep.subr.mxu1 %v10299_v56  ;;  %v6859_v30 = vsub.f32 %v12270_v38, %v6838_v39  ;;  %v6898_v44 = vadd.f32 %v6897_v27, %v6896_v62  ;;  %v12339_v32 = vadd.f32 %v6955_v60, %v6954_v8  ;;  %v6966_v62 = vadd.f32 %v12306_v14, %v6965_v6 }
 0x8a6   : > { %v12320_v37 = vpop.eup %10054  ;;  %v6905_v9 = vrot.slane %v12314_v51, 4  ;;  %9844 = vmatpush3.msra.mxu1 %v10299_v56  ;;  %v6788_v35 = vmax.f32 %v6786_v4, %v6787_v1  ;;  %v6793_v20 = vrot.slane %v6792_v25, 2  ;;  %v6839_v4 = vrot.slane %v12302_v5, 4 }
 0x8a7   : > { %v6899_v34 = vrot.slane %v12320_v37, 4  ;;  %9845 = vmatprep.subr.mxu1 %v10300_v21  ;;  %v6889_v43 = vmul.f32 1.442695, %v6859_v30 }
 0x8a8   : > { %v12334_v22 = vpop.eup %10056  ;;  %v6906_v38 = vadd.f32 %v12314_v51, %v6905_v9  ;;  %9846 = vmatpush3.msra.mxu1 %v10300_v21  ;;  %v6789_v63 = vrot.slane %v6788_v35, 1  ;;  %v6794_v55 = vmax.f32 %v6792_v25, %v6793_v20 }
 0x8a9   : > { %v12337_v23 = vpop.eup %10058  ;;  %v6900_v58 = vadd.f32 %v12320_v37, %v6899_v34  ;;  %v6917_v12 = vrot.slane %v12334_v22, 4  ;;  %9847 = vmatprep.subr.mxu1 %v10301_v28  ;;  %10066 = vpow2.f32 %v6889_v43  ;;  %v6840_v34 = vmax.f32 %v12302_v5, %v6839_v4 }
 0x8aa   : > { %v6907_v41 = vrot.slane %v6906_v38, 2  ;;  %v6959_v52 = vrot.slane %v12337_v23, 4  ;;  %9848 = vmatpush3.msra.mxu1 %v10301_v28  ;;  %10068 = vrcp.f32 %v6898_v44  ;;  %v6790_v56 = vmax.f32 %v6788_v35, %v6789_v63 }
 0x8ab   : > { %v6901_v46 = vrot.slane %v6900_v58, 2  ;;  %v6918_v8 = vadd.f32 %v12334_v22, %v6917_v12  ;;  %v6795_v6 = vrot.slane %v6794_v55, 1  ;;  %v6967_v12 = vrot.slane %v6966_v62, 2 }
 0x8ac   : > { %v6908_v27 = vadd.f32 %v6907_v41, %v6906_v38  ;;  %v6960_v39 = vadd.f32 %v12337_v23, %v6959_v52  ;;  %v6851_v38 = vsub.f32 %v12279_v15, %v6790_v56 }
 0x8ad   : > { %v12351_v61 = vpop.eup %10060  ;;  %v6902_v60 = vadd.f32 %v6901_v46, %v6900_v58  ;;  %v6919_v24 = vrot.slane %v6918_v8, 2  ;;  %v6796_v43 = vmax.f32 %v6794_v55, %v6795_v6 }
 0x8ae   : > { %v6909_v9 = vrot.slane %v6908_v27, 1  ;;  %v6961_v30 = vrot.slane %v6960_v39, 2  ;;  %v6911_v1 = vrot.slane %v12351_v61, 4  ;;  %v12355_v21 = vpop.eup %10062  ;;  %v6873_v46 = vmul.f32 1.442695, %v6851_v38 }
 0x8af   : > { %v6903_v25 = vrot.slane %v6902_v60, 1  ;;  %v6920_v44 = vadd.f32 %v6919_v24, %v6918_v8  ;;  %v6971_v35 = vrot.slane %v12355_v21, 4  ;;  %v6852_v63 = vsub.f32 %v12292_v3, %v6796_v43 }
 0x8b0   : > { %v6910_v20 = vadd.f32 %v6909_v9, %v6908_v27  ;;  %v6912_v58 = vadd.f32 %v12351_v61, %v6911_v1  ;;  %v6962_v4 = vadd.f32 %v6961_v30, %v6960_v39  ;;  %v6841_v27 = vrot.slane %v6840_v34, 2 }
 0x8b1   : > { %v12360_v28 = vpop.eup %10064  ;;  %v6904_v41 = vadd.f32 %v6903_v25, %v6902_v60  ;;  %v6921_v52 = vrot.slane %v6920_v44, 1  ;;  %v6972_v8 = vadd.f32 %v12355_v21, %v6971_v35  ;;  %v6875_v55 = vmul.f32 1.442695, %v6852_v63 }
 0x8b2   : > { %10070 = vrcp.f32 %v6910_v20  ;;  %v6913_v13 = vrot.slane %v6912_v58, 2  ;;  %v6923_v15 = vrot.slane %v12360_v28, 4  ;;  %v6957_v24 = vrot.slane %v12339_v32, 1 }
 0x8b3   : > { %10072 = vrcp.f32 %v6904_v41  ;;  %v6973_v6 = vrot.slane %v6972_v8, 2  ;;  %v6842_v9 = vmax.f32 %v6840_v34, %v6841_v27  ;;  %v6922_v3 = vadd.f32 %v6921_v52, %v6920_v44 }
 0x8b4   : > { %v6914_v56 = vadd.f32 %v6913_v13, %v6912_v58  ;;  %10074 = vpow2.f32 %v6873_v46  ;;  %v6924_v60 = vadd.f32 %v12360_v28, %v6923_v15  ;;  %v6963_v1 = vrot.slane %v6962_v4, 1 }
 0x8b5   : > { %10076 = vpow2.f32 %v6875_v55  ;;  %v6968_v25 = vadd.f32 %v6967_v12, %v6966_v62  ;;  %v6843_v43 = vrot.slane %v6842_v9, 1  ;;  %v6974_v35 = vadd.f32 %v6973_v6, %v6972_v8 }
 0x8b6   : > { %v6915_v39 = vrot.slane %v6914_v56, 1  ;;  %v12367_v30 = vpop.eup %10066  ;;  %v6925_v38 = vrot.slane %v6924_v60, 2  ;;  %10078 = vrcp.f32 %v6922_v3  ;;  %v6958_v34 = vadd.f32 %v6957_v24, %v12339_v32 }
 0x8b7   : > { %10080 = vrcp.f32 %v12325_v50  ;;  %v6977_v13 = vrot.slane %v12367_v30, 4  ;;  %v10069_v58 = vpop.eup %10068  ;;  %v6844_v44 = vmax.f32 %v6842_v9, %v6843_v43  ;;  %v6964_v52 = vadd.f32 %v6963_v1, %v6962_v4 }
 0x8b8   : > { %v6916_v20 = vadd.f32 %v6915_v39, %v6914_v56  ;;  %10082 = vrcp.f32 %v12327_v48  ;;  %v6926_v41 = vadd.f32 %v6925_v38, %v6924_v60  ;;  %v6969_v62 = vrot.slane %v6968_v25, 1 }
 0x8b9   : > { %v6978_v46 = vadd.f32 %v12367_v30, %v6977_v13  ;;  %v6860_v12 = vsub.f32 %v12302_v5, %v6844_v44  ;;  %v6975_v50 = vrot.slane %v6974_v35, 1  ;;  %v6990_v8 = vmul.f32 %v10069_v58, %v12290_v0 }
 0x8ba   : > { %10084 = vrcp.f32 %v6916_v20  ;;  %v6927_v63 = vrot.slane %v6926_v41, 1  ;;  %v6970_v24 = vadd.f32 %v6969_v62, %v6968_v25 }
 0x8bb   : > { %v6979_v15 = vrot.slane %v6978_v46, 2  ;;  %10086 = vrcp.f32 %v6958_v34  ;;  %v6891_v55 = vmul.f32 1.442695, %v6860_v12  ;;  %v7021_v56 = vmul.f32 %v6990_v8, %v12139_v57 }
 0x8bc   : > { %v6928_v27 = vadd.f32 %v6927_v63, %v6926_v41  ;;  %10088 = vrcp.f32 %v6964_v52  ;;  %v6976_v6 = vadd.f32 %v6975_v50, %v6974_v35 }
 0x8bd   : > { %v6980_v48 = vadd.f32 %v6979_v15, %v6978_v46  ;;  %10090 = vpow2.f32 %v6891_v55  ;;  %v7037_v35 = vsel %vm2185_vm5, %v7021_v56, 0.0 }
 0x8be   : > { %10092 = vrcp.f32 %v6928_v27  ;;  %v7038_v62 = vrot.slane %v7037_v35, 4 }
 0x8bf   : > { %v10071_v32 = vpop.eup %10070  ;;  %v6981_v60 = vrot.slane %v6980_v48, 1  ;;  %10094 = vrcp.f32 %v6970_v24 }
 0x8c0   : > { %v10073_v4 = vpop.eup %10072  ;;  %v6994_v0 = vmul.f32 %v10071_v32, %v12314_v51  ;;  %10096 = vrcp.f32 %v6976_v6  ;;  %v7039_v6 = vadd.f32 %v7038_v62, %v7037_v35 }
 0x8c1   : > { %v12377_v5 = vpop.eup %10074  ;;  %v6992_v9 = vmul.f32 %v10073_v4, %v12320_v37  ;;  %v6982_v39 = vadd.f32 %v6981_v60, %v6980_v48 }
 0x8c2   : > { %v12381_v3 = vpop.eup %10076  ;;  %v6929_v1 = vrot.slane %v12377_v5, 4  ;;  %v7023_v51 = vmul.f32 %v6994_v0, %v12176_v16 }
 0x8c3   : > { %v6935_v25 = vrot.slane %v12381_v3, 4  ;;  %v7022_v38 = vmul.f32 %v6992_v9, %v12168_v11  ;;  %v10079_v43 = vpop.eup %10078  ;;  %10098 = vrcp.f32 %v6982_v39 }
 0x8c4   : > { %v6930_v20 = vadd.f32 %v12377_v5, %v6929_v1  ;;  %v10081_v13 = vpop.eup %10080  ;;  %v6998_v46 = vmul.f32 %v10079_v43, %v12334_v22  ;;  %v7051_v55 = vsel %vm2185_vm5, %v7023_v51, 0.0 }
 0x8c5   : > { %v6936_v37 = vadd.f32 %v12381_v3, %v6935_v25  ;;  %v10083_v58 = vpop.eup %10082  ;;  %v7044_v44 = vsel %vm2185_vm5, %v7022_v38, 0.0  ;;  %v7006_v50 = vmul.f32 %v10081_v13, %v12276_v10  ;;  %v7052_v9 = vrot.slane %v7051_v55, 4 }
 0x8c6   : > { %v6931_v34 = vrot.slane %v6930_v20, 2  ;;  %v7045_v8 = vrot.slane %v7044_v44, 4  ;;  %v7008_v24 = vmul.f32 %v10083_v58, %v12284_v33  ;;  %v7025_v22 = vmul.f32 %v6998_v46, %v12182_v53 }
 0x8c7   : > { %v10085_v41 = vpop.eup %10084  ;;  %v6937_v52 = vrot.slane %v6936_v37, 2  ;;  %v7029_v0 = vmul.f32 %v7006_v50, %v12136_v42 }
 0x8c8   : > { %v6932_v12 = vadd.f32 %v6931_v34, %v6930_v20  ;;  %v6996_v63 = vmul.f32 %v10085_v41, %v12351_v61  ;;  %v10087_v27 = vpop.eup %10086  ;;  %v7046_v38 = vadd.f32 %v7045_v8, %v7044_v44  ;;  %v7030_v35 = vmul.f32 %v7008_v24, %v12142_v40 }
 0x8c9   : > { %v6938_v15 = vadd.f32 %v6937_v52, %v6936_v37  ;;  %v10089_v4 = vpop.eup %10088  ;;  %v7010_v33 = vmul.f32 %v10087_v27, %v12296_v54  ;;  %v7040_v37 = vrot.slane %v7039_v6, 2  ;;  %v7065_v51 = vsel %vm2185_vm5, %v7025_v22, 0.0 }
 0x8ca   : > { %v6933_v48 = vrot.slane %v6932_v12, 1  ;;  %v7024_v32 = vmul.f32 %v6996_v63, %v12195_v26  ;;  %v12398_v60 = vpop.eup %10090  ;;  %v7053_v41 = vadd.f32 %v7052_v9, %v7051_v55  ;;  %v7012_v44 = vmul.f32 %v10089_v4, %v12337_v23 }
 0x8cb   : > { %v6939_v56 = vrot.slane %v6938_v15, 1  ;;  %v10093_v1 = vpop.eup %10092  ;;  %v6983_v39 = vrot.slane %v12398_v60, 4  ;;  %v7093_v54 = vsel %vm2185_vm5, %v7029_v0, 0.0  ;;  %v7066_v63 = vrot.slane %v7065_v51, 4 }
 0x8cc   : > { %v6934_v61 = vadd.f32 %v6933_v48, %v6932_v12  ;;  %v7058_v10 = vsel %vm2185_vm5, %v7024_v32, 0.0  ;;  %v7000_v43 = vmul.f32 %v10093_v1, %v12360_v28  ;;  %v10095_v58 = vpop.eup %10094  ;;  %v7047_v28 = vrot.slane %v7046_v38, 2 }
 0x8cd   : > { %v6940_v25 = vadd.f32 %v6939_v56, %v6938_v15  ;;  %v7059_v20 = vrot.slane %v7058_v10, 4  ;;  %v6984_v13 = vadd.f32 %v12398_v60, %v6983_v39  ;;  %v10097_v52 = vpop.eup %10096  ;;  %v7031_v15 = vmul.f32 %v7010_v33, %v12153_v29 }
 0x8ce   : > { %10100 = vrcp.f32 %v6934_v61  ;;  %v7026_v34 = vmul.f32 %v7000_v43, %v12208_v59  ;;  %v7041_v8 = vadd.f32 %v7040_v37, %v7039_v6  ;;  %v7094_v48 = vrot.slane %v7093_v54, 4 }
 0x8cf   : > { %10102 = vrcp.f32 %v6940_v25  ;;  %v6985_v46 = vrot.slane %v6984_v13, 2  ;;  %v7060_v12 = vadd.f32 %v7059_v20, %v7058_v10  ;;  %v7100_v32 = vsel %vm2185_vm5, %v7030_v35, 0.0 }
 0x8d0   : > { %v10099_v62 = vpop.eup %10098  ;;  %v7072_v50 = vsel %vm2185_vm5, %v7026_v34, 0.0  ;;  %v7054_v55 = vrot.slane %v7053_v41, 2  ;;  %v7016_v23 = vmul.f32 %v10097_v52, %v12355_v21  ;;  %v7032_v4 = vmul.f32 %v7012_v44, %v12187_v49 }
 0x8d1   : > { %v7073_v27 = vrot.slane %v7072_v50, 4  ;;  %v6986_v24 = vadd.f32 %v6985_v46, %v6984_v13  ;;  %v7048_v56 = vadd.f32 %v7047_v28, %v7046_v38  ;;  %v7014_v22 = vmul.f32 %v10095_v58, %v12306_v14 }
 0x8d2   : > { %v7018_v61 = vmul.f32 %v10099_v62, %v12367_v30  ;;  %v7061_v9 = vrot.slane %v7060_v12, 2  ;;  %v7067_v10 = vadd.f32 %v7066_v63, %v7065_v51  ;;  %v7101_v1 = vrot.slane %v7100_v32, 4 }
 0x8d3   : > { %v6987_v0 = vrot.slane %v6986_v24, 1  ;;  %v7042_v6 = vrot.slane %v7041_v8, 1  ;;  %v7074_v39 = vadd.f32 %v7073_v27, %v7072_v50  ;;  %v12418_v25 = vadd.f32 %v7094_v48, %v7093_v54 }
 0x8d4   : > { %v7107_v33 = vsel %vm2185_vm5, %v7031_v15, 0.0  ;;  %v7055_v43 = vadd.f32 %v7054_v55, %v7053_v41  ;;  %v7034_v21 = vmul.f32 %v7016_v23, %v12201_v17  ;;  %v7114_v38 = vsel %vm2185_vm5, %v7032_v4, 0.0 }
 0x8d5   : > { %v6988_v20 = vadd.f32 %v6987_v0, %v6986_v24  ;;  %v7049_v35 = vrot.slane %v7048_v56, 1  ;;  %v7033_v14 = vmul.f32 %v7014_v22, %v12164_v47  ;;  %v7035_v30 = vmul.f32 %v7018_v61, %v12214_v19 }
 0x8d6   : > { %v7062_v13 = vadd.f32 %v7061_v9, %v7060_v12  ;;  %v7068_v37 = vrot.slane %v7067_v10, 2  ;;  %v7108_v51 = vrot.slane %v7107_v33, 4  ;;  %v7075_v34 = vrot.slane %v7074_v39, 2 }
 0x8d7   : > { %10104 = vrcp.f32 %v6988_v20  ;;  %v7096_v44 = vrot.slane %v12418_v25, 2  ;;  %v7102_v41 = vadd.f32 %v7101_v1, %v7100_v32  ;;  %v7115_v54 = vrot.slane %v7114_v38, 4 }
 0x8d8   : > { %v7043_v46 = vadd.f32 %v7042_v6, %v7041_v8  ;;  %v7056_v62 = vrot.slane %v7055_v43, 1  ;;  %v7128_v63 = vsel %vm2185_vm5, %v7034_v21, 0.0  ;;  %v7050_v12 = vadd.f32 %v7049_v35, %v7048_v56 }
 0x8d9   : > { %v7121_v15 = vsel %vm2185_vm5, %v7033_v14, 0.0  ;;  %v7135_v27 = vsel %vm2185_vm5, %v7035_v30, 0.0  ;;  %v7063_v32 = vrot.slane %v7062_v13, 1  ;;  %v7069_v55 = vadd.f32 %v7068_v37, %v7067_v10 }
 0x8da   : > { %v7109_v24 = vadd.f32 %v7108_v51, %v7107_v33  ;;  %v7076_v8 = vadd.f32 %v7075_v34, %v7074_v39  ;;  %v7116_v23 = vadd.f32 %v7115_v54, %v7114_v38  ;;  %v7129_v4 = vrot.slane %v7128_v63, 4 }
 0x8db   : > { %v10101_v58 = vpop.eup %10100  ;;  %v7103_v61 = vrot.slane %v7102_v41, 2  ;;  %v7136_v56 = vrot.slane %v7135_v27, 4  ;;  %v7057_v9 = vadd.f32 %v7056_v62, %v7055_v43  ;;  %v7166_v6 = vsel %vm7165_vm0, %v7050_v12, %v7043_v46 }
 0x8dc   : > { %v10103_v52 = vpop.eup %10102  ;;  %v7002_v28 = vmul.f32 %v10101_v58, %v12377_v5  ;;  %v7064_v20 = vadd.f32 %v7063_v32, %v7062_v13  ;;  %v7070_v10 = vrot.slane %v7069_v55, 1  ;;  %v7110_v21 = vrot.slane %v7109_v24, 2 }
 0x8dd   : > { %v7004_v50 = vmul.f32 %v10103_v52, %v12381_v3  ;;  %v7122_v3 = vrot.slane %v7121_v15, 4  ;;  %v7077_v39 = vrot.slane %v7076_v8, 1  ;;  %v7117_v35 = vrot.slane %v7116_v23, 2 }
 0x8de   : > { %v7027_v48 = vmul.f32 %v7002_v28, %v12220_v2  ;;  %v7130_v14 = vadd.f32 %v7129_v4, %v7128_v63  ;;  %v7137_v51 = vadd.f32 %v7136_v56, %v7135_v27  ;;  %v7168_v58 = vsel %vm7167_vm2, %v7057_v9, %v7166_v6 }
 0x8df   : > { %v7028_v5 = vmul.f32 %v7004_v50, %v12230_v18  ;;  %v7123_v37 = vadd.f32 %v7122_v3, %v7121_v15  ;;  %v7097_v34 = vadd.f32 %v7096_v44, %v12418_v25  ;;  %v7104_v54 = vadd.f32 %v7103_v61, %v7102_v41 }
 0x8e0   : > { %v7079_v22 = vsel %vm2185_vm5, %v7027_v48, 0.0  ;;  %v7071_v52 = vadd.f32 %v7070_v10, %v7069_v55  ;;  %v7170_v28 = vsel %vm7169_vm11, %v7064_v20, %v7168_v58  ;;  %v7111_v46 = vadd.f32 %v7110_v21, %v7109_v24 }
 0x8e1   : > { %v7080_v0 = vrot.slane %v7079_v22, 4  ;;  %v7086_v1 = vsel %vm2185_vm5, %v7028_v5, 0.0  ;;  %v7078_v50 = vadd.f32 %v7077_v39, %v7076_v8  ;;  %v7118_v48 = vadd.f32 %v7117_v35, %v7116_v23 }
 0x8e2   : > { %v7087_v33 = vrot.slane %v7086_v1, 4  ;;  %v7131_v63 = vrot.slane %v7130_v14, 2  ;;  %v7124_v27 = vrot.slane %v7123_v37, 2  ;;  %v7138_v5 = vrot.slane %v7137_v51, 2 }
 0x8e3   : > { %v7081_v38 = vadd.f32 %v7080_v0, %v7079_v22  ;;  %v7098_v22 = vrot.slane %v7097_v34, 1  ;;  %v7105_v25 = vrot.slane %v7104_v54, 1  ;;  %v7172_v41 = vsel %vm7171_vm12, %v7071_v52, %v7170_v28 }
 0x8e4   : > { %v7088_v30 = vadd.f32 %v7087_v33, %v7086_v1  ;;  %v10105_v62 = vpop.eup %10104  ;;  %v7112_v24 = vrot.slane %v7111_v46, 1  ;;  %v7174_v8 = vsel %vm7173_vm13, %v7078_v50, %v7172_v41  ;;  %v7119_v23 = vrot.slane %v7118_v48, 1 }
 0x8e5   : > { %v7082_v43 = vrot.slane %v7081_v38, 2  ;;  %v7020_v15 = vmul.f32 %v10105_v62, %v12398_v60  ;;  %v7132_v3 = vadd.f32 %v7131_v63, %v7130_v14  ;;  %v7125_v9 = vadd.f32 %v7124_v27, %v7123_v37  ;;  %v10302_v63 = vld [vmem:[%s13072_s3 + $0x38] sm:$0xff]  ;;  %v10305_v27 = vld [vmem:[%s13072_s3 + $0x20] sm:$0xff] }
 0x8e6   : > { %v7089_v13 = vrot.slane %v7088_v30, 2  ;;  %v7139_v60 = vadd.f32 %v7138_v5, %v7137_v51  ;;  %v7106_v6 = vadd.f32 %v7105_v25, %v7104_v54  ;;  %v7113_v33 = vadd.f32 %v7112_v24, %v7111_v46 }
 0x8e7   : > { %v7083_v12 = vadd.f32 %v7082_v43, %v7081_v38  ;;  %v7036_v55 = vmul.f32 %v7020_v15, %v12235_v7  ;;  %v7099_v21 = vadd.f32 %v7098_v22, %v7097_v34  ;;  %v7120_v39 = vadd.f32 %v7119_v23, %v7118_v48  ;;  %v10304_v15 = vld [vmem:[%s13072_s3 + $0x28] sm:$0xff] }
 0x8e8   : > { %v7090_v32 = vadd.f32 %v7089_v13, %v7088_v30  ;;  %v7133_v38 = vrot.slane %v7132_v3, 1  ;;  %v7126_v30 = vrot.slane %v7125_v9, 1  ;;  %v7140_v14 = vrot.slane %v7139_v60, 1 }
 0x8e9   : > { %v7084_v4 = vrot.slane %v7083_v12, 1  ;;  %v7142_v0 = vsel %vm2185_vm5, %v7036_v55, 0.0  ;;  %v7179_v37 = vsel %vm7165_vm0, %v7106_v6, %v7099_v21  ;;  %v10306_v55 = vld [vmem:[%s13073_s4 + $0x11] ss:$0 sm:$0xff] }
 0x8ea   : > { %v7091_v44 = vrot.slane %v7090_v32, 1  ;;  %v7143_v20 = vrot.slane %v7142_v0, 4  ;;  %v7180_v51 = vsel %vm7167_vm2, %v7113_v33, %v7179_v37  ;;  %v7134_v58 = vadd.f32 %v7133_v38, %v7132_v3 }
 0x8eb   : > { %v7085_v61 = vadd.f32 %v7084_v4, %v7083_v12  ;;  %v7181_v54 = vsel %vm7169_vm11, %v7120_v39, %v7180_v51  ;;  %v7127_v13 = vadd.f32 %v7126_v30, %v7125_v9  ;;  %v7141_v28 = vadd.f32 %v7140_v14, %v7139_v60 }
 0x8ec   : > { %v7092_v56 = vadd.f32 %v7091_v44, %v7090_v32  ;;  %v7144_v35 = vadd.f32 %v7143_v20, %v7142_v0  ;;  %v10303_v32 = vld [vmem:[%s13072_s3 + $0x30] sm:$0xff] }
 0x8ed   : > { %v7176_v1 = vsel %vm7175_vm14, %v7085_v61, %v7174_v8  ;;  %v7182_v62 = vsel %vm7171_vm12, %v7127_v13, %v7181_v54 }
 0x8ee   : > { %v7178_v10 = vsel %vm7177_vm15, %v7092_v56, %v7176_v1  ;;  %v7145_v43 = vrot.slane %v7144_v35, 2  ;;  %v7183_v50 = vsel %vm7173_vm13, %v7134_v58, %v7182_v62 }
 0x8ef   : > { %9816 = vmatprep.mubr.msk.f32.mxu0 %vm2185_vm5, %v7178_v10  ;;  %v7184_v12 = vsel %vm7175_vm14, %v7141_v28, %v7183_v50  ;;  %v13081_v50 = vld [vmem:[#allocation5_spill] sm:$0xff] }
 0x8f0   : > { %v7146_v52 = vadd.f32 %v7145_v43, %v7144_v35 }
 0x8f2   : > { %v7147_v46 = vrot.slane %v7146_v52, 1 }
 0x8f4   : > { %v7148_v34 = vadd.f32 %v7147_v46, %v7146_v52 }
 0x8f6   : > { %v7185_v48 = vsel %vm7177_vm15, %v7148_v34, %v7184_v12 }
 0x8f7   : > { %9817 = vmatmul.mubr.msk.f32.vlgmr.msra.gmra.mxu0 %vm2185_vm5, %v7185_v48 }
 0x8f8   : > { %9831 = vmatpush3.msra.mxu0 %v10302_v63 }
 0x8f9   : > { %9832 = vmatprep.subr.mxu0 %v10303_v32 }
 0x8fa   : > { %9833 = vmatpush3.msra.mxu0 %v10303_v32 }
 0x8fb   : > { %9834 = vmatprep.subr.mxu0 %v10304_v15 }
 0x8fc   : > { %9835 = vmatpush3.msra.mxu0 %v10304_v15 }
 0x8fd   : > { %9836 = vmatprep.subr.mxu0 %v10305_v27 }
 0x8fe   : > { %9837 = vmatpush3.msra.mxu0 %v10305_v27 }
 0x963   : > { %v9829_v5 = vpop.f32.mrf.mxu1 }
 0x965   : > { %v7339_v22 = vpop.f32.mrf.mxu1 }
 0x9b7   : > { %v9818_v4 = vpop.f32.mrf.mxu0 }
 0x9b8   : > { %v7345_v41 = vadd.f32 %v9829_v5, %v9818_v4 }
 0x9b9   : > { %v7256_v25 = vpop.f32.mrf.mxu0 }
 0x9ba   : > { %v7340_v44 = vadd.f32 %v7339_v22, %v7256_v25  ;;  %v7349_v61 = vadd.f32 %v10306_v55, %v7345_v41 }
 0x9bc   : > { %v7348_v24 = vadd.f32 %v10306_v55, %v7340_v44  ;;  %v9254_v56 = vmul.f32 -1.442695, %v7349_v61 }
 0x9be   : > { %10106 = vtanh.f32 %v7348_v24  ;;  %v9253_v3 = vmul.f32 -1.442695, %v7348_v24 }
 0x9bf   : > { %10108 = vtanh.f32 %v7349_v61 }
 0x9c0   : > { %10110 = vpow2.f32 %v9253_v3 }
 0x9c1   : > { %10112 = vpow2.f32 %v9254_v56 }
 0x9cb   : > { %v10107_v8 = vpop.eup %10106 }
 0x9cc   : > { %7368 = vrot.lane.b32.xlu1 %v10107_v8, %s10372_s13  ;;  %v10109_v23 = vpop.eup %10108 }
 0x9cd   : > { %v10111_v9 = vpop.eup %10110 }
 0x9ce   : > { %v7356_v60 = vadd.f32 1.0, %v10111_v9  ;;  %v10113_v0 = vpop.eup %10112 }
 0x9cf   : > { %v7357_v1 = vadd.f32 1.0, %v10113_v0 }
 0x9d0   : > { %7370 = vrot.lane.b32.xlu1 %v10109_v23, %s10372_s13  ;;  %10114 = vrcp.f32 %v7356_v60 }
 0x9d1   : > { %10116 = vrcp.f32 %v7357_v1 }
 0x9dd   : > { %v10115_v6 = vpop.eup %10114 }
 0x9de   : > { %v10117_v33 = vpop.eup %10116  ;;  %v7364_v38 = vmul.f32 %v10115_v6, %v11814_v45 }
 0x9df   : > { %v7365_v14 = vmul.f32 %v10117_v33, %v11817_v36 }
 0xa3e   : > { %v7369_v20 = vpop.permute.xlu1 %7368 }
 0xa3f   : > { %v7374_v10 = vmul.f32 %v10115_v6, %v7369_v20 }
 0xa41   : > { %7378 = vrot.lane.b32.xlu0 %v7374_v10, %s10373_s14 }
 0xa42   : > { %v7371_v21 = vpop.permute.xlu1 %7370 }
 0xa43   : > { %v7375_v39 = vmul.f32 %v10117_v33, %v7371_v21 }
 0xa45   : > { %7380 = vrot.lane.b32.xlu1 %v7375_v39, %s10373_s14 }
 0xab3   : > { %v7379_v35 = vpop.permute.xlu0 %7378 }
 0xab4   : > { %v12475_v30 = vadd.f32 %v7379_v35, %v7364_v38 }
 0xab6   : > { %10118 = vtanh.f32 %v12475_v30 }
 0xab7   : > { %v7381_v43 = vpop.permute.xlu1 %7380 }
 0xab8   : > { %v12479_v37 = vadd.f32 %v7381_v43, %v7365_v14 }
 0xaba   : > { %10120 = vtanh.f32 %v12479_v37 }
 0xac3   : > { %v10119_v51 = vpop.eup %10118 }
 0xac4   : > { %7390 = vrot.lane.b32.xlu0 %v10119_v51, %s10372_s13 }
 0xac7   : > { %v10121_v58 = vpop.eup %10120 }
 0xac8   : > { %7392 = vrot.lane.b32.xlu1 %v10121_v58, %s10372_s13 }
 0xb36   : > { %v7391_v52 = vpop.permute.xlu0 %7390 }
 0xb37   : > { %v12484_v45 = vmul.f32 %v10115_v6, %v7391_v52 }
 0xb39   : > { %v7407_v54 = vrot.slane %v12484_v45, %v11823_v31  ;;  %v7400_v46 = vcombine.high %v12484_v45, %v12484_v45 }
 0xb3a   : > { %v7393_v13 = vpop.permute.xlu1 %7392 }
 0xb3b   : > { %v12488_v28 = vmul.f32 %v10117_v33, %v7393_v13  ;;  %v7423_v36 = vrot.slane %v7407_v54, %v11823_v31  ;;  %v7415_v62 = vcombine.high %v7407_v54, %v7407_v54  ;;  %v7414_v15 = vrot.slane %v7400_v46, %v11823_v31 }
 0xb3d   : > { %v7456_v34 = vrot.slane %v12488_v28, %v11823_v31  ;;  %v7501_v12 = vrot.slane %v7423_v36, %v13081_v50  ;;  %v7449_v48 = vcombine.high %v12488_v28, %v12488_v28  ;;  %v7437_v4 = vrot.slane %v7415_v62, %v11823_v31 }
 0xb3e   : > { %v7430_v55 = vrot.slane %v7414_v15, %v11823_v31  ;;  %v7416_v3 = vcombine.high %v7414_v15, %v7414_v15  ;;  %v7445_v9 = vcombine.high %v7423_v36, %v7423_v36 }
 0xb3f   : > { %v7464_v63 = vcombine.high %v7456_v34, %v7456_v34  ;;  %7562 = vrot.lane.b32.xlu0 %v7501_v12, %s10373_s14  ;;  %v7472_v32 = vrot.slane %v7456_v34, %v11823_v31  ;;  %v7463_v22 = vrot.slane %v7449_v48, %v11823_v31  ;;  %v7505_v41 = vrot.slane %v7437_v4, %v13081_v50 }
 0xb40   : > { %v7517_v8 = vrot.slane %v7430_v55, %v13081_v50  ;;  %v7447_v23 = vcombine.high %v7437_v4, %v7437_v4  ;;  %v7444_v0 = vrot.slane %v7416_v3, %v11823_v31  ;;  %v7509_v1 = vrot.slane %v7445_v9, %v13081_v50 }
 0xb41   : > { %v7533_v27 = vrot.slane %v7472_v32, %v13081_v50  ;;  %v7486_v5 = vrot.slane %v7464_v63, %v11823_v31  ;;  %v7494_v44 = vcombine.high %v7472_v32, %v7472_v32  ;;  %v7479_v61 = vrot.slane %v7463_v22, %v11823_v31 }
 0xb42   : > { %v7513_v60 = vrot.slane %v7447_v23, %v13081_v50  ;;  %v7465_v20 = vcombine.high %v7463_v22, %v7463_v22  ;;  %v7521_v10 = vrot.slane %v7444_v0, %v13081_v50  ;;  %v7446_v33 = vcombine.high %v7430_v55, %v7430_v55 }
 0xb43   : > { %7578 = vrot.lane.b32.xlu1 %v7533_v27, %s10373_s14  ;;  %v7537_v25 = vrot.slane %v7486_v5, %v13081_v50  ;;  %v7541_v24 = vrot.slane %v7494_v44, %v13081_v50  ;;  %v7549_v56 = vrot.slane %v7479_v61, %v13081_v50  ;;  %v7496_v6 = vcombine.high %v7486_v5, %v7486_v5 }
 0xb44   : > { %v7493_v39 = vrot.slane %v7465_v20, %v11823_v31  ;;  %v7525_v38 = vrot.slane %v7446_v33, %v13081_v50  ;;  %v7448_v35 = vcombine.high %v7444_v0, %v7444_v0  ;;  %v7495_v43 = vcombine.high %v7479_v61, %v7479_v61 }
 0xb45   : > { %7580 = vrot.lane.b32.xlu0 %v7537_v25, %s10373_s14  ;;  %v7545_v21 = vrot.slane %v7496_v6, %v13081_v50 }
 0xb46   : > { %v7553_v14 = vrot.slane %v7493_v39, %v13081_v50  ;;  %v7529_v51 = vrot.slane %v7448_v35, %v13081_v50  ;;  %v7497_v58 = vcombine.high %v7493_v39, %v7493_v39  ;;  %v7557_v52 = vrot.slane %v7495_v43, %v13081_v50 }
 0xb47   : > { %7564 = vrot.lane.b32.xlu1 %v7505_v41, %s10373_s14 }
 0xb48   : > { %v7561_v54 = vrot.slane %v7497_v58, %v13081_v50 }
 0xb49   : > { %7582 = vrot.lane.b32.xlu0 %v7541_v24, %s10373_s14 }
 0xb4b   : > { %7570 = vrot.lane.b32.xlu1 %v7517_v8, %s10373_s14 }
 0xb4d   : > { %7586 = vrot.lane.b32.xlu0 %v7549_v56, %s10373_s14 }
 0xb4f   : > { %7568 = vrot.lane.b32.xlu1 %v7513_v60, %s10373_s14 }
 0xb51   : > { %7566 = vrot.lane.b32.xlu0 %v7509_v1, %s10373_s14 }
 0xb53   : > { %7572 = vrot.lane.b32.xlu1 %v7521_v10, %s10373_s14 }
 0xb55   : > { %7584 = vrot.lane.b32.xlu0 %v7545_v21, %s10373_s14 }
 0xb57   : > { %7574 = vrot.lane.b32.xlu1 %v7525_v38, %s10373_s14 }
 0xb59   : > { %7588 = vrot.lane.b32.xlu0 %v7553_v14, %s10373_s14 }
 0xb5b   : > { %7576 = vrot.lane.b32.xlu1 %v7529_v51, %s10373_s14 }
 0xb5d   : > { %7590 = vrot.lane.b32.xlu0 %v7557_v52, %s10373_s14 }
 0xb5f   : > { %7592 = vrot.lane.b32.xlu1 %v7561_v54, %s10373_s14 }
 0xbb1   : > { %v7563_v13 = vpop.permute.xlu0 %7562 }
 0xbb2   : > { %v7610_v34 = vmul.f32 %v7563_v13, %v12139_v57 }
 0xbb4   : > { %v7626_v5 = vsel %vm2185_vm5, %v7610_v34, 0.0 }
 0xbb5   : > { %v7579_v36 = vpop.permute.xlu1 %7578 }
 0xbb6   : > { %v7618_v46 = vmul.f32 %v7579_v36, %v12136_v42 }
 0xbb7   : > { %v7581_v62 = vpop.permute.xlu0 %7580 }
 0xbb8   : > { %v7619_v12 = vmul.f32 %v7581_v62, %v12142_v40  ;;  %v7650_v48 = vsel %vm2185_vm5, %v7618_v46, 0.0 }
 0xbb9   : > { %7651 = vadd.xlane.f32.xlu0 %v7650_v48  ;;  %v7565_v63 = vpop.permute.xlu1 %7564 }
 0xbba   : > { %v7653_v32 = vsel %vm2185_vm5, %v7619_v12, 0.0  ;;  %v7611_v55 = vmul.f32 %v7565_v63, %v12168_v11 }
 0xbbb   : > { %v7583_v15 = vpop.permute.xlu0 %7582  ;;  %7654 = vadd.xlane.f32.xlu1 %v7653_v32 }
 0xbbc   : > { %v7620_v27 = vmul.f32 %v7583_v15, %v12153_v29  ;;  %v7629_v9 = vsel %vm2185_vm5, %v7611_v55, 0.0 }
 0xbbd   : > { %7627 = vadd.xlane.f32.xlu0 %v7626_v5  ;;  %v7571_v4 = vpop.permute.xlu1 %7570 }
 0xbbe   : > { %v7656_v22 = vsel %vm2185_vm5, %v7620_v27, 0.0  ;;  %v7614_v3 = vmul.f32 %v7571_v4, %v12182_v53 }
 0xbbf   : > { %v7587_v25 = vpop.permute.xlu0 %7586  ;;  %7657 = vadd.xlane.f32.xlu1 %v7656_v22 }
 0xbc0   : > { %v7622_v44 = vmul.f32 %v7587_v25, %v12164_v47  ;;  %v7638_v6 = vsel %vm2185_vm5, %v7614_v3, 0.0 }
 0xbc1   : > { %v7569_v41 = vpop.permute.xlu1 %7568 }
 0xbc2   : > { %v7662_v24 = vsel %vm2185_vm5, %v7622_v44, 0.0  ;;  %v7613_v1 = vmul.f32 %v7569_v41, %v12195_v26 }
 0xbc3   : > { %v7567_v61 = vpop.permute.xlu0 %7566  ;;  %7663 = vadd.xlane.f32.xlu1 %v7662_v24 }
 0xbc4   : > { %v7612_v8 = vmul.f32 %v7567_v61, %v12176_v16  ;;  %v7635_v38 = vsel %vm2185_vm5, %v7613_v1, 0.0 }
 0xbc5   : > { %v7573_v23 = vpop.permute.xlu1 %7572 }
 0xbc6   : > { %v7632_v56 = vsel %vm2185_vm5, %v7612_v8, 0.0  ;;  %v7615_v39 = vmul.f32 %v7573_v23, %v12208_v59 }
 0xbc7   : > { %7633 = vadd.xlane.f32.xlu0 %v7632_v56  ;;  %v7585_v60 = vpop.permute.xlu0 %7584  ;;  %7630 = vadd.xlane.f32.xlu1 %v7629_v9 }
 0xbc8   : > { %v7621_v0 = vmul.f32 %v7585_v60, %v12187_v49  ;;  %v7641_v52 = vsel %vm2185_vm5, %v7615_v39, 0.0 }
 0xbc9   : > { %v7575_v10 = vpop.permute.xlu1 %7574 }
 0xbca   : > { %v7659_v20 = vsel %vm2185_vm5, %v7621_v0, 0.0  ;;  %v7616_v58 = vmul.f32 %v7575_v10, %v12220_v2 }
 0xbcb   : > { %v7589_v33 = vpop.permute.xlu0 %7588  ;;  %7639 = vadd.xlane.f32.xlu0 %v7638_v6  ;;  %7660 = vadd.xlane.f32.xlu1 %v7659_v20 }
 0xbcc   : > { %v7623_v21 = vmul.f32 %v7589_v33, %v12201_v17  ;;  %v7644_v36 = vsel %vm2185_vm5, %v7616_v58, 0.0 }
 0xbcd   : > { %v7577_v51 = vpop.permute.xlu1 %7576 }
 0xbce   : > { %v7665_v35 = vsel %vm2185_vm5, %v7623_v21, 0.0  ;;  %v7617_v13 = vmul.f32 %v7577_v51, %v12230_v18 }
 0xbcf   : > { %v7591_v14 = vpop.permute.xlu0 %7590  ;;  %7636 = vadd.xlane.f32.xlu0 %v7635_v38  ;;  %7666 = vadd.xlane.f32.xlu1 %v7665_v35 }
 0xbd0   : > { %v7624_v43 = vmul.f32 %v7591_v14, %v12214_v19  ;;  %v7647_v34 = vsel %vm2185_vm5, %v7617_v13, 0.0 }
 0xbd1   : > { %v7593_v46 = vpop.permute.xlu1 %7592 }
 0xbd2   : > { %v7668_v54 = vsel %vm2185_vm5, %v7624_v43, 0.0  ;;  %v7625_v62 = vmul.f32 %v7593_v46, %v12235_v7 }
 0xbd3   : > { %7642 = vadd.xlane.f32.xlu0 %v7641_v52  ;;  %7669 = vadd.xlane.f32.xlu1 %v7668_v54 }
 0xbd4   : > { %v7671_v12 = vsel %vm2185_vm5, %v7625_v62, 0.0 }
 0xbd7   : > { %7645 = vadd.xlane.f32.xlu0 %v7644_v36 }
 0xbdb   : > { %7648 = vadd.xlane.f32.xlu0 %v7647_v34 }
 0xbdf   : > { %7672 = vadd.xlane.f32.xlu0 %v7671_v12 }
 0xbe4   : > { %8183 = vrot.lane.b32.xlu1 %v12484_v45, %s10373_s14 }
 0xbf5   : > { %8185 = vrot.lane.b32.xlu0 %v12488_v28, %s10373_s14 }
 0xc42   : > { %v7652_v48 = vpop.xlane.xlu0 %7651 }
 0xc43   : > { %v7722_v63 = vrot.slane %v7652_v48, 4 }
 0xc44   : > { %v7655_v32 = vpop.xlane.xlu1 %7654 }
 0xc45   : > { %v7723_v15 = vmax.f32 %v7652_v48, %v7722_v63  ;;  %v7728_v27 = vrot.slane %v7655_v32, 4 }
 0xc46   : > { %v7628_v5 = vpop.xlane.xlu0 %7627 }
 0xc47   : > { %v7724_v4 = vrot.slane %v7723_v15, 2  ;;  %v7729_v22 = vmax.f32 %v7655_v32, %v7728_v27  ;;  %v7674_v25 = vrot.slane %v7628_v5, 4 }
 0xc48   : > { %v7658_v44 = vpop.xlane.xlu1 %7657 }
 0xc49   : > { %v7725_v41 = vmax.f32 %v7723_v15, %v7724_v4  ;;  %v7730_v55 = vrot.slane %v7729_v22, 2  ;;  %v7675_v24 = vmax.f32 %v7628_v5, %v7674_v25  ;;  %v7734_v61 = vrot.slane %v7658_v44, 4 }
 0xc4b   : > { %v7726_v8 = vrot.slane %v7725_v41, 1  ;;  %v7731_v23 = vmax.f32 %v7729_v22, %v7730_v55  ;;  %v7676_v45 = vrot.slane %v7675_v24, 2  ;;  %v7735_v3 = vmax.f32 %v7658_v44, %v7734_v61 }
 0xc4c   : > { %v7664_v56 = vpop.xlane.xlu1 %7663 }
 0xc4d   : > { %v7727_v28 = vmax.f32 %v7725_v41, %v7726_v8  ;;  %v7732_v9 = vrot.slane %v7731_v23, 1  ;;  %v7677_v60 = vmax.f32 %v7675_v24, %v7676_v45  ;;  %v7736_v0 = vrot.slane %v7735_v3, 2 }
 0xc4e   : > { %v7746_v1 = vrot.slane %v7664_v56, 4 }
 0xc4f   : > { %v7778_v6 = vsub.f32 %v7652_v48, %v7727_v28  ;;  %v7733_v20 = vmax.f32 %v7731_v23, %v7732_v9  ;;  %v7678_v10 = vrot.slane %v7677_v60, 1  ;;  %v7737_v33 = vmax.f32 %v7735_v3, %v7736_v0 }
 0xc50   : > { %v7747_v21 = vmax.f32 %v7664_v56, %v7746_v1  ;;  %v12574_v39 = vpop.xlane.xlu0 %7633  ;;  %v12576_v38 = vpop.xlane.xlu1 %7630 }
 0xc51   : > { %v7802_v35 = vmul.f32 1.442695, %v7778_v6  ;;  %v7779_v14 = vsub.f32 %v7655_v32, %v7733_v20  ;;  %v7679_v43 = vmax.f32 %v7677_v60, %v7678_v10  ;;  %v7738_v51 = vrot.slane %v7737_v33, 1 }
 0xc52   : > { %v7748_v58 = vrot.slane %v7747_v21, 2  ;;  %v7686_v52 = vrot.slane %v12574_v39, 4  ;;  %v7680_v54 = vrot.slane %v12576_v38, 4 }
 0xc53   : > { %10122 = vpow2.f32 %v7802_v35  ;;  %v7804_v13 = vmul.f32 1.442695, %v7779_v14  ;;  %v7770_v36 = vsub.f32 %v7628_v5, %v7679_v43  ;;  %v7739_v46 = vmax.f32 %v7737_v33, %v7738_v51 }
 0xc54   : > { %v7749_v62 = vmax.f32 %v7747_v21, %v7748_v58  ;;  %v7687_v34 = vmax.f32 %v12574_v39, %v7686_v52  ;;  %v7681_v12 = vmax.f32 %v12576_v38, %v7680_v54  ;;  %v12582_v48 = vpop.xlane.xlu0 %7639  ;;  %v12584_v63 = vpop.xlane.xlu1 %7660 }
 0xc55   : > { %10124 = vpow2.f32 %v7804_v13  ;;  %v7786_v32 = vmul.f32 1.442695, %v7770_v36  ;;  %v7780_v15 = vsub.f32 %v7658_v44, %v7739_v46  ;;  %v7698_v27 = vrot.slane %v12582_v48, 4 }
 0xc56   : > { %v7750_v4 = vrot.slane %v7749_v62, 1  ;;  %v7688_v22 = vrot.slane %v7687_v34, 2  ;;  %v7682_v25 = vrot.slane %v7681_v12, 2  ;;  %v7740_v5 = vrot.slane %v12584_v63, 4 }
 0xc57   : > { %10126 = vpow2.f32 %v7786_v32  ;;  %v7806_v41 = vmul.f32 1.442695, %v7780_v15  ;;  %v7699_v55 = vmax.f32 %v12582_v48, %v7698_v27 }
 0xc58   : > { %v7751_v24 = vmax.f32 %v7749_v62, %v7750_v4  ;;  %v7689_v61 = vmax.f32 %v7687_v34, %v7688_v22  ;;  %v7683_v8 = vmax.f32 %v7681_v12, %v7682_v25  ;;  %v7741_v23 = vmax.f32 %v12584_v63, %v7740_v5  ;;  %v12590_v45 = vpop.xlane.xlu0 %7636  ;;  %v12592_v3 = vpop.xlane.xlu1 %7666 }
 0xc59   : > { %10128 = vpow2.f32 %v7806_v41  ;;  %v7700_v44 = vrot.slane %v7699_v55, 2  ;;  %v7692_v28 = vrot.slane %v12590_v45, 4  ;;  %v7752_v9 = vrot.slane %v12592_v3, 4 }
 0xc5a   : > { %v7782_v60 = vsub.f32 %v7664_v56, %v7751_v24  ;;  %v7690_v0 = vrot.slane %v7689_v61, 1  ;;  %v7684_v1 = vrot.slane %v7683_v8, 1  ;;  %v7742_v6 = vrot.slane %v7741_v23, 2 }
 0xc5b   : > { %v7701_v20 = vmax.f32 %v7699_v55, %v7700_v44  ;;  %v7693_v10 = vmax.f32 %v12590_v45, %v7692_v28  ;;  %v7753_v33 = vmax.f32 %v12592_v3, %v7752_v9 }
 0xc5c   : > { %v7810_v21 = vmul.f32 1.442695, %v7782_v60  ;;  %v7691_v35 = vmax.f32 %v7689_v61, %v7690_v0  ;;  %v7685_v14 = vmax.f32 %v7683_v8, %v7684_v1  ;;  %v7743_v43 = vmax.f32 %v7741_v23, %v7742_v6  ;;  %v12598_v51 = vpop.xlane.xlu0 %7642  ;;  %v12600_v58 = vpop.xlane.xlu1 %7669 }
 0xc5d   : > { %v7702_v52 = vrot.slane %v7701_v20, 1  ;;  %v7694_v54 = vrot.slane %v7693_v10, 2  ;;  %v7754_v13 = vrot.slane %v7753_v33, 2  ;;  %v7704_v56 = vrot.slane %v12598_v51, 4 }
 0xc5e   : > { %10130 = vpow2.f32 %v7810_v21  ;;  %v7772_v36 = vsub.f32 %v12574_v39, %v7691_v35  ;;  %v7771_v46 = vsub.f32 %v12576_v38, %v7685_v14  ;;  %v7744_v62 = vrot.slane %v7743_v43, 1 }
 0xc5f   : > { %v7703_v34 = vmax.f32 %v7701_v20, %v7702_v52  ;;  %v7695_v12 = vmax.f32 %v7693_v10, %v7694_v54  ;;  %v7755_v32 = vmax.f32 %v7753_v33, %v7754_v13  ;;  %v7705_v15 = vmax.f32 %v12598_v51, %v7704_v56 }
 0xc60   : > { %v12606_v27 = vpop.eup %10122  ;;  %v7790_v4 = vmul.f32 1.442695, %v7772_v36  ;;  %v7788_v22 = vmul.f32 1.442695, %v7771_v46  ;;  %v7745_v25 = vmax.f32 %v7743_v43, %v7744_v62  ;;  %v7758_v5 = vrot.slane %v12600_v58, 4  ;;  %v12609_v41 = vpop.xlane.xlu0 %7645 }
 0xc61   : > { %v8184_v55 = vpop.permute.xlu1 %8183  ;;  %v7866_v39 = vrot.slane %v12606_v27, 4  ;;  %v7774_v38 = vsub.f32 %v12582_v48, %v7703_v34  ;;  %v7696_v24 = vrot.slane %v7695_v12, 1  ;;  %v7756_v61 = vrot.slane %v7755_v32, 1 }
 0xc62   : > { %9849 = vmatprep.mubr.msk.f32.mxu1 %vm2185_vm5, %v8184_v55  ;;  %v12614_v8 = vpop.eup %10124  ;;  %10132 = vpow2.f32 %v7790_v4  ;;  %v7781_v23 = vsub.f32 %v12584_v63, %v7745_v25  ;;  %v7706_v44 = vrot.slane %v7705_v15, 2  ;;  %v7759_v28 = vmax.f32 %v12600_v58, %v7758_v5 }
 0xc63   : > { %v7867_v9 = vadd.f32 %v12606_v27, %v7866_v39  ;;  %v7872_v60 = vrot.slane %v12614_v8, 4  ;;  %10134 = vpow2.f32 %v7788_v22  ;;  %v7794_v0 = vmul.f32 1.442695, %v7774_v38 }
 0xc64   : > { %v12620_v1 = vpop.eup %10126  ;;  %v7808_v48 = vmul.f32 1.442695, %v7781_v23  ;;  %v7697_v6 = vmax.f32 %v7695_v12, %v7696_v24  ;;  %v7757_v20 = vmax.f32 %v7755_v32, %v7756_v61  ;;  %v7707_v10 = vmax.f32 %v7705_v15, %v7706_v44  ;;  %v12622_v33 = vpop.xlane.xlu0 %7648 }
 0xc65   : > { %v7868_v21 = vrot.slane %v7867_v9, 2  ;;  %v7873_v63 = vadd.f32 %v12614_v8, %v7872_v60  ;;  %v7818_v35 = vrot.slane %v12620_v1, 4  ;;  %10136 = vpow2.f32 %v7794_v0 }
 0xc66   : > { %v12626_v14 = vpop.eup %10128  ;;  %10138 = vpow2.f32 %v7808_v48  ;;  %v7773_v43 = vsub.f32 %v12590_v45, %v7697_v6  ;;  %v7783_v52 = vsub.f32 %v12592_v3, %v7757_v20  ;;  %v7708_v54 = vrot.slane %v7707_v10, 1 }
 0xc67   : > { %v7874_v13 = vrot.slane %v7873_v63, 2  ;;  %v7819_v56 = vadd.f32 %v12620_v1, %v7818_v35  ;;  %v7878_v36 = vrot.slane %v12626_v14, 4  ;;  %v7760_v12 = vrot.slane %v7759_v28, 2 }
 0xc68   : > { %v7792_v46 = vmul.f32 1.442695, %v7773_v43  ;;  %v7812_v62 = vmul.f32 1.442695, %v7783_v52  ;;  %v7709_v34 = vmax.f32 %v7707_v10, %v7708_v54  ;;  %v12632_v32 = vpop.xlane.xlu0 %7672  ;;  %v7869_v15 = vadd.f32 %v7868_v21, %v7867_v9 }
 0xc69   : > { %v7875_v4 = vadd.f32 %v7874_v13, %v7873_v63  ;;  %v7820_v22 = vrot.slane %v7819_v56, 2  ;;  %v7761_v25 = vmax.f32 %v7759_v28, %v7760_v12  ;;  %v7710_v3 = vrot.slane %v12609_v41, 4 }
 0xc6a   : > { %10140 = vpow2.f32 %v7792_v46  ;;  %v7775_v45 = vsub.f32 %v12598_v51, %v7709_v34  ;;  %v7879_v39 = vadd.f32 %v12626_v14, %v7878_v36  ;;  %v7870_v23 = vrot.slane %v7869_v15, 1 }
 0xc6b   : > { %v12636_v5 = vpop.eup %10130  ;;  %v7821_v55 = vadd.f32 %v7820_v22, %v7819_v56  ;;  %10142 = vpow2.f32 %v7812_v62  ;;  %v7762_v24 = vrot.slane %v7761_v25, 1  ;;  %v7876_v44 = vrot.slane %v7875_v4, 1 }
 0xc6c   : > { %v7796_v38 = vmul.f32 1.442695, %v7775_v45  ;;  %v8186_v61 = vpop.permute.xlu0 %8185  ;;  %v7711_v51 = vmax.f32 %v12609_v41, %v7710_v3  ;;  %v7880_v0 = vrot.slane %v7879_v39, 2  ;;  %v7716_v48 = vrot.slane %v12622_v33, 4 }
 0xc6d   : > { %9850 = vmatmul.mubr.msk.f32.vlgmr.msra.gmra.mxu1 %vm2185_vm5, %v8186_v61  ;;  %v7822_v9 = vrot.slane %v7821_v55, 1  ;;  %v7763_v60 = vmax.f32 %v7761_v25, %v7762_v24  ;;  %v7890_v20 = vrot.slane %v12636_v5, 4  ;;  %v12649_v35 = vadd.f32 %v7870_v23, %v7869_v15 }
 0xc6e   : > { %10144 = vpow2.f32 %v7796_v38  ;;  %v7712_v63 = vrot.slane %v7711_v51, 2  ;;  %v12651_v43 = vadd.f32 %v7876_v44, %v7875_v4  ;;  %v7717_v54 = vmax.f32 %v12622_v33, %v7716_v48 }
 0xc6f   : > { %v12641_v28 = vpop.eup %10132  ;;  %v7784_v21 = vsub.f32 %v12600_v58, %v7763_v60  ;;  %v7823_v56 = vadd.f32 %v7822_v9, %v7821_v55  ;;  %v12660_v12 = vadd.f32 %v7880_v0, %v7879_v39  ;;  %v7891_v22 = vadd.f32 %v12636_v5, %v7890_v20 }
 0xc70   : > { %v12644_v6 = vpop.eup %10134  ;;  %v7830_v10 = vrot.slane %v12641_v28, 4  ;;  %v7713_v62 = vmax.f32 %v7711_v51, %v7712_v63  ;;  %v7718_v4 = vrot.slane %v7717_v54, 2  ;;  %v7764_v23 = vrot.slane %v12632_v32, 4 }
 0xc71   : > { %v7824_v52 = vrot.slane %v12644_v6, 4  ;;  %v7814_v46 = vmul.f32 1.442695, %v7784_v21 }
 0xc72   : > { %v12655_v13 = vpop.eup %10136  ;;  %v7831_v36 = vadd.f32 %v12641_v28, %v7830_v10  ;;  %v7714_v38 = vrot.slane %v7713_v62, 1  ;;  %v7719_v24 = vmax.f32 %v7717_v54, %v7718_v4  ;;  %v7765_v21 = vmax.f32 %v12632_v32, %v7764_v23 }
 0xc73   : > { %v12658_v34 = vpop.eup %10138  ;;  %v7825_v58 = vadd.f32 %v12644_v6, %v7824_v52  ;;  %v7842_v15 = vrot.slane %v12655_v13, 4  ;;  %10146 = vpow2.f32 %v7814_v46  ;;  %v7892_v46 = vrot.slane %v7891_v22, 2 }
 0xc74   : > { %v7832_v45 = vrot.slane %v7831_v36, 2  ;;  %v7884_v25 = vrot.slane %v12658_v34, 4  ;;  %10148 = vrcp.f32 %v7823_v56  ;;  %v7715_v51 = vmax.f32 %v7713_v62, %v7714_v38 }
 0xc75   : > { %v7826_v3 = vrot.slane %v7825_v58, 2  ;;  %v7843_v55 = vadd.f32 %v12655_v13, %v7842_v15  ;;  %v7720_v0 = vrot.slane %v7719_v24, 1 }
 0xc76   : > { %v7833_v61 = vadd.f32 %v7832_v45, %v7831_v36  ;;  %v7885_v39 = vadd.f32 %v12658_v34, %v7884_v25  ;;  %v7776_v56 = vsub.f32 %v12609_v41, %v7715_v51 }
 0xc77   : > { %v12669_v44 = vpop.eup %10140  ;;  %v7827_v9 = vadd.f32 %v7826_v3, %v7825_v58  ;;  %v7844_v60 = vrot.slane %v7843_v55, 2  ;;  %v7721_v36 = vmax.f32 %v7719_v24, %v7720_v0 }
 0xc78   : > { %v7834_v48 = vrot.slane %v7833_v61, 1  ;;  %v7886_v20 = vrot.slane %v7885_v39, 2  ;;  %v7836_v10 = vrot.slane %v12669_v44, 4  ;;  %v12673_v63 = vpop.eup %10142  ;;  %v7798_v3 = vmul.f32 1.442695, %v7776_v56 }
 0xc79   : > { %v7828_v52 = vrot.slane %v7827_v9, 1  ;;  %v7845_v54 = vadd.f32 %v7844_v60, %v7843_v55  ;;  %v7896_v62 = vrot.slane %v12673_v63, 4  ;;  %v7777_v38 = vsub.f32 %v12622_v33, %v7721_v36 }
 0xc7a   : > { %v7835_v15 = vadd.f32 %v7834_v48, %v7833_v61  ;;  %v7837_v58 = vadd.f32 %v12669_v44, %v7836_v10  ;;  %v7887_v23 = vadd.f32 %v7886_v20, %v7885_v39  ;;  %v7766_v61 = vrot.slane %v7765_v21, 2 }
 0xc7b   : > { %v12678_v4 = vpop.eup %10144  ;;  %v7829_v45 = vadd.f32 %v7828_v52, %v7827_v9  ;;  %v7846_v25 = vrot.slane %v7845_v54, 1  ;;  %v7897_v55 = vadd.f32 %v12673_v63, %v7896_v62  ;;  %v7800_v24 = vmul.f32 1.442695, %v7777_v38 }
 0xc7c   : > { %10150 = vrcp.f32 %v7835_v15  ;;  %v7838_v50 = vrot.slane %v7837_v58, 2  ;;  %v7848_v41 = vrot.slane %v12678_v4, 4  ;;  %v7882_v60 = vrot.slane %v12660_v12, 1 }
 0xc7d   : > { %10152 = vrcp.f32 %v7829_v45  ;;  %v7898_v0 = vrot.slane %v7897_v55, 2  ;;  %v7767_v48 = vmax.f32 %v7765_v21, %v7766_v61  ;;  %v7847_v33 = vadd.f32 %v7846_v25, %v7845_v54 }
 0xc7e   : > { %v7839_v51 = vadd.f32 %v7838_v50, %v7837_v58  ;;  %10154 = vpow2.f32 %v7798_v3  ;;  %v7849_v9 = vadd.f32 %v12678_v4, %v7848_v41  ;;  %v7888_v10 = vrot.slane %v7887_v23, 1 }
 0xc7f   : > { %10156 = vpow2.f32 %v7800_v24  ;;  %v7893_v52 = vadd.f32 %v7892_v46, %v7891_v22  ;;  %v7768_v36 = vrot.slane %v7767_v48, 1  ;;  %v7899_v62 = vadd.f32 %v7898_v0, %v7897_v55 }
 0xc80   : > { %v7840_v39 = vrot.slane %v7839_v51, 1  ;;  %v12685_v20 = vpop.eup %10146  ;;  %v7850_v56 = vrot.slane %v7849_v9, 2  ;;  %10158 = vrcp.f32 %v7847_v33  ;;  %v7883_v21 = vadd.f32 %v7882_v60, %v12660_v12 }
 0xc81   : > { %10160 = vrcp.f32 %v12649_v35  ;;  %v7902_v50 = vrot.slane %v12685_v20, 4  ;;  %v10149_v58 = vpop.eup %10148  ;;  %v7769_v54 = vmax.f32 %v7767_v48, %v7768_v36  ;;  %v7889_v25 = vadd.f32 %v7888_v10, %v7887_v23 }
 0xc82   : > { %v7841_v15 = vadd.f32 %v7840_v39, %v7839_v51  ;;  %10162 = vrcp.f32 %v12651_v43  ;;  %v7851_v45 = vadd.f32 %v7850_v56, %v7849_v9  ;;  %v7894_v22 = vrot.slane %v7893_v52, 1 }
 0xc83   : > { %v7903_v3 = vadd.f32 %v12685_v20, %v7902_v50  ;;  %v7785_v46 = vsub.f32 %v12632_v32, %v7769_v54  ;;  %v7900_v35 = vrot.slane %v7899_v62, 1  ;;  %v7915_v55 = vmul.f32 %v10149_v58, %v12620_v1 }
 0xc84   : > { %10164 = vrcp.f32 %v7841_v15  ;;  %v7852_v38 = vrot.slane %v7851_v45, 1  ;;  %v7895_v60 = vadd.f32 %v7894_v22, %v7893_v52 }
 0xc85   : > { %v7904_v41 = vrot.slane %v7903_v3, 2  ;;  %10166 = vrcp.f32 %v7883_v21  ;;  %v7816_v24 = vmul.f32 1.442695, %v7785_v46  ;;  %v7946_v51 = vmul.f32 %v7915_v55, %v12139_v57 }
 0xc86   : > { %v7853_v61 = vadd.f32 %v7852_v38, %v7851_v45  ;;  %10168 = vrcp.f32 %v7889_v25  ;;  %v7901_v0 = vadd.f32 %v7900_v35, %v7899_v62 }
 0xc87   : > { %v7905_v43 = vadd.f32 %v7904_v41, %v7903_v3  ;;  %10170 = vpow2.f32 %v7816_v24  ;;  %v7962_v62 = vsel %vm2185_vm5, %v7946_v51, 0.0 }
 0xc88   : > { %10172 = vrcp.f32 %v7853_v61  ;;  %v7963_v22 = vrot.slane %v7962_v62, 4 }
 0xc89   : > { %v10151_v12 = vpop.eup %10150  ;;  %v7906_v9 = vrot.slane %v7905_v43, 1  ;;  %10174 = vrcp.f32 %v7895_v60 }
 0xc8a   : > { %v10153_v23 = vpop.eup %10152  ;;  %v7919_v1 = vmul.f32 %v10151_v12, %v12641_v28  ;;  %10176 = vrcp.f32 %v7901_v0  ;;  %v7964_v0 = vadd.f32 %v7963_v22, %v7962_v62 }
 0xc8b   : > { %v12695_v32 = vpop.eup %10154  ;;  %v7917_v48 = vmul.f32 %v10153_v23, %v12644_v6  ;;  %v7907_v39 = vadd.f32 %v7906_v9, %v7905_v43 }
 0xc8c   : > { %v12699_v33 = vpop.eup %10156  ;;  %v7854_v10 = vrot.slane %v12695_v32, 4  ;;  %v7948_v28 = vmul.f32 %v7919_v1, %v12176_v16 }
 0xc8d   : > { %v7860_v52 = vrot.slane %v12699_v33, 4  ;;  %v7947_v56 = vmul.f32 %v7917_v48, %v12168_v11  ;;  %v10159_v36 = vpop.eup %10158  ;;  %10178 = vrcp.f32 %v7907_v39 }
 0xc8e   : > { %v7855_v15 = vadd.f32 %v12695_v32, %v7854_v10  ;;  %v10161_v50 = vpop.eup %10160  ;;  %v7923_v3 = vmul.f32 %v10159_v36, %v12655_v13  ;;  %v7976_v24 = vsel %vm2185_vm5, %v7948_v28, 0.0 }
 0xc8f   : > { %v7861_v6 = vadd.f32 %v12699_v33, %v7860_v52  ;;  %v10163_v58 = vpop.eup %10162  ;;  %v7969_v54 = vsel %vm2185_vm5, %v7947_v56, 0.0  ;;  %v7931_v35 = vmul.f32 %v10161_v50, %v12606_v27  ;;  %v7977_v48 = vrot.slane %v7976_v24, 4 }
 0xc90   : > { %v7856_v21 = vrot.slane %v7855_v15, 2  ;;  %v7970_v55 = vrot.slane %v7969_v54, 4  ;;  %v7933_v60 = vmul.f32 %v10163_v58, %v12614_v8  ;;  %v7950_v13 = vmul.f32 %v7923_v3, %v12182_v53 }
 0xc91   : > { %v10165_v45 = vpop.eup %10164  ;;  %v7862_v25 = vrot.slane %v7861_v6, 2  ;;  %v7954_v1 = vmul.f32 %v7931_v35, %v12136_v42 }
 0xc92   : > { %v7857_v46 = vadd.f32 %v7856_v21, %v7855_v15  ;;  %v7921_v38 = vmul.f32 %v10165_v45, %v12669_v44  ;;  %v10167_v61 = vpop.eup %10166  ;;  %v7971_v56 = vadd.f32 %v7970_v55, %v7969_v54  ;;  %v7955_v62 = vmul.f32 %v7933_v60, %v12142_v40 }
 0xc93   : > { %v7863_v41 = vadd.f32 %v7862_v25, %v7861_v6  ;;  %v10169_v23 = vpop.eup %10168  ;;  %v7935_v8 = vmul.f32 %v10167_v61, %v12626_v14  ;;  %v7965_v6 = vrot.slane %v7964_v0, 2  ;;  %v7990_v28 = vsel %vm2185_vm5, %v7950_v13, 0.0 }
 0xc94   : > { %v7858_v43 = vrot.slane %v7857_v46, 1  ;;  %v7949_v12 = vmul.f32 %v7921_v38, %v12195_v26  ;;  %v12716_v9 = vpop.eup %10170  ;;  %v7978_v45 = vadd.f32 %v7977_v48, %v7976_v24  ;;  %v7937_v54 = vmul.f32 %v10169_v23, %v12658_v34 }
 0xc95   : > { %v7864_v51 = vrot.slane %v7863_v41, 1  ;;  %v10173_v10 = vpop.eup %10172  ;;  %v7908_v39 = vrot.slane %v12716_v9, 4  ;;  %v8018_v14 = vsel %vm2185_vm5, %v7954_v1, 0.0  ;;  %v7991_v38 = vrot.slane %v7990_v28, 4 }
 0xc96   : > { %v7859_v44 = vadd.f32 %v7858_v43, %v7857_v46  ;;  %v7983_v27 = vsel %vm2185_vm5, %v7949_v12, 0.0  ;;  %v7925_v36 = vmul.f32 %v10173_v10, %v12678_v4  ;;  %v10175_v58 = vpop.eup %10174  ;;  %v7972_v4 = vrot.slane %v7971_v56, 2 }
 0xc97   : > { %v7865_v52 = vadd.f32 %v7864_v51, %v7863_v41  ;;  %v7984_v15 = vrot.slane %v7983_v27, 4  ;;  %v7909_v50 = vadd.f32 %v12716_v9, %v7908_v39  ;;  %v10177_v25 = vpop.eup %10176  ;;  %v7956_v41 = vmul.f32 %v7935_v8, %v12153_v29 }
 0xc98   : > { %10180 = vrcp.f32 %v7859_v44  ;;  %v7951_v21 = vmul.f32 %v7925_v36, %v12208_v59  ;;  %v7966_v55 = vadd.f32 %v7965_v6, %v7964_v0  ;;  %v8019_v43 = vrot.slane %v8018_v14, 4 }
 0xc99   : > { %10182 = vrcp.f32 %v7865_v52  ;;  %v7910_v3 = vrot.slane %v7909_v50, 2  ;;  %v7985_v46 = vadd.f32 %v7984_v15, %v7983_v27  ;;  %v8025_v12 = vsel %vm2185_vm5, %v7955_v62, 0.0 }
 0xc9a   : > { %v10179_v22 = vpop.eup %10178  ;;  %v7997_v35 = vsel %vm2185_vm5, %v7951_v21, 0.0  ;;  %v7979_v24 = vrot.slane %v7978_v45, 2  ;;  %v7941_v34 = vmul.f32 %v10177_v25, %v12673_v63  ;;  %v7957_v23 = vmul.f32 %v7937_v54, %v12187_v49 }
 0xc9b   : > { %v7998_v61 = vrot.slane %v7997_v35, 4  ;;  %v7911_v60 = vadd.f32 %v7910_v3, %v7909_v50  ;;  %v7973_v51 = vadd.f32 %v7972_v4, %v7971_v56  ;;  %v7939_v13 = vmul.f32 %v10175_v58, %v12636_v5 }
 0xc9c   : > { %v7943_v44 = vmul.f32 %v10179_v22, %v12685_v20  ;;  %v7986_v48 = vrot.slane %v7985_v46, 2  ;;  %v7992_v27 = vadd.f32 %v7991_v38, %v7990_v28  ;;  %v8026_v10 = vrot.slane %v8025_v12, 4 }
 0xc9d   : > { %v7912_v1 = vrot.slane %v7911_v60, 1  ;;  %v7967_v0 = vrot.slane %v7966_v55, 1  ;;  %v7999_v39 = vadd.f32 %v7998_v61, %v7997_v35  ;;  %v8020_v52 = vadd.f32 %v8019_v43, %v8018_v14 }
 0xc9e   : > { %v8032_v8 = vsel %vm2185_vm5, %v7956_v41, 0.0  ;;  %v7980_v36 = vadd.f32 %v7979_v24, %v7978_v45  ;;  %v7959_v63 = vmul.f32 %v7941_v34, %v12201_v17  ;;  %v8039_v62 = vsel %vm2185_vm5, %v7957_v23, 0.0 }
 0xc9f   : > { %v7913_v15 = vadd.f32 %v7912_v1, %v7911_v60  ;;  %v7974_v56 = vrot.slane %v7973_v51, 1  ;;  %v7958_v5 = vmul.f32 %v7939_v13, %v12164_v47  ;;  %v7960_v20 = vmul.f32 %v7943_v44, %v12214_v19 }
 0xca0   : > { %v7987_v50 = vadd.f32 %v7986_v48, %v7985_v46  ;;  %v7993_v6 = vrot.slane %v7992_v27, 2  ;;  %v8033_v28 = vrot.slane %v8032_v8, 4  ;;  %v8000_v21 = vrot.slane %v7999_v39, 2 }
 0xca1   : > { %10184 = vrcp.f32 %v7913_v15  ;;  %v8021_v54 = vrot.slane %v8020_v52, 2  ;;  %v8027_v14 = vadd.f32 %v8026_v10, %v8025_v12  ;;  %v8040_v25 = vrot.slane %v8039_v62, 4 }
 0xca2   : > { %v7968_v3 = vadd.f32 %v7967_v0, %v7966_v55  ;;  %v7981_v22 = vrot.slane %v7980_v36, 1  ;;  %v8053_v38 = vsel %vm2185_vm5, %v7959_v63, 0.0  ;;  %v7975_v41 = vadd.f32 %v7974_v56, %v7973_v51 }
 0xca3   : > { %v8046_v46 = vsel %vm2185_vm5, %v7958_v5, 0.0  ;;  %v8060_v61 = vsel %vm2185_vm5, %v7960_v20, 0.0  ;;  %v7988_v24 = vrot.slane %v7987_v50, 1  ;;  %v7994_v60 = vadd.f32 %v7993_v6, %v7992_v27 }
 0xca4   : > { %v8034_v12 = vadd.f32 %v8033_v28, %v8032_v8  ;;  %v8001_v23 = vadd.f32 %v8000_v21, %v7999_v39  ;;  %v8054_v55 = vrot.slane %v8053_v38, 4  ;;  %v8028_v44 = vrot.slane %v8027_v14, 2 }
 0xca5   : > { %v10181_v58 = vpop.eup %10180  ;;  %v8047_v48 = vrot.slane %v8046_v46, 4  ;;  %v7982_v51 = vadd.f32 %v7981_v22, %v7980_v36  ;;  %v8090_v0 = vsel %vm7165_vm0, %v7975_v41, %v7968_v3  ;;  %v7989_v15 = vadd.f32 %v7988_v24, %v7987_v50 }
 0xca6   : > { %v10183_v45 = vpop.eup %10182  ;;  %v7927_v4 = vmul.f32 %v10181_v58, %v12695_v32  ;;  %v8041_v32 = vadd.f32 %v8040_v25, %v8039_v62  ;;  %v7995_v63 = vrot.slane %v7994_v60, 1  ;;  %v8035_v8 = vrot.slane %v8034_v12, 2 }
 0xca7   : > { %v7929_v35 = vmul.f32 %v10183_v45, %v12699_v33  ;;  %v8061_v33 = vrot.slane %v8060_v61, 4  ;;  %v8002_v56 = vrot.slane %v8001_v23, 1  ;;  %v8055_v62 = vadd.f32 %v8054_v55, %v8053_v38 }
 0xca8   : > { %v7952_v43 = vmul.f32 %v7927_v4, %v12220_v2  ;;  %v8042_v39 = vrot.slane %v8041_v32, 2  ;;  %v8048_v6 = vadd.f32 %v8047_v48, %v8046_v46  ;;  %v8091_v21 = vsel %vm7167_vm2, %v7982_v51, %v8090_v0 }
 0xca9   : > { %v7953_v34 = vmul.f32 %v7929_v35, %v12230_v18  ;;  %v8062_v28 = vadd.f32 %v8061_v33, %v8060_v61  ;;  %v8022_v36 = vadd.f32 %v8021_v54, %v8020_v52  ;;  %v8029_v25 = vadd.f32 %v8028_v44, %v8027_v14 }
 0xcaa   : > { %v8004_v13 = vsel %vm2185_vm5, %v7952_v43, 0.0  ;;  %v7996_v45 = vadd.f32 %v7995_v63, %v7994_v60  ;;  %v8092_v3 = vsel %vm7169_vm11, %v7989_v15, %v8091_v21  ;;  %v8036_v50 = vadd.f32 %v8035_v8, %v8034_v12 }
 0xcab   : > { %v8005_v1 = vrot.slane %v8004_v13, 4  ;;  %v8011_v10 = vsel %vm2185_vm5, %v7953_v34, 0.0  ;;  %v8003_v35 = vadd.f32 %v8002_v56, %v8001_v23  ;;  %v8043_v43 = vadd.f32 %v8042_v39, %v8041_v32 }
 0xcac   : > { %v8012_v27 = vrot.slane %v8011_v10, 4  ;;  %v8056_v24 = vrot.slane %v8055_v62, 2  ;;  %v8049_v46 = vrot.slane %v8048_v6, 2  ;;  %v8063_v61 = vrot.slane %v8062_v28, 2 }
 0xcad   : > { %v8006_v5 = vadd.f32 %v8005_v1, %v8004_v13  ;;  %v8023_v13 = vrot.slane %v8022_v36, 1  ;;  %v8030_v48 = vrot.slane %v8029_v25, 1  ;;  %v8093_v54 = vsel %vm7171_vm12, %v7996_v45, %v8092_v3 }
 0xcae   : > { %v8013_v20 = vadd.f32 %v8012_v27, %v8011_v10  ;;  %v10185_v22 = vpop.eup %10184  ;;  %v8037_v60 = vrot.slane %v8036_v50, 1  ;;  %v8094_v23 = vsel %vm7173_vm13, %v8003_v35, %v8093_v54  ;;  %v8044_v44 = vrot.slane %v8043_v43, 1 }
 0xcaf   : > { %v8007_v58 = vrot.slane %v8006_v5, 2  ;;  %v7945_v38 = vmul.f32 %v10185_v22, %v12716_v9  ;;  %v8057_v32 = vadd.f32 %v8056_v24, %v8055_v62  ;;  %v8050_v51 = vadd.f32 %v8049_v46, %v8048_v6 }
 0xcb0   : > { %v8014_v4 = vrot.slane %v8013_v20, 2  ;;  %v8064_v1 = vadd.f32 %v8063_v61, %v8062_v28  ;;  %v8031_v0 = vadd.f32 %v8030_v48, %v8029_v25  ;;  %v8038_v27 = vadd.f32 %v8037_v60, %v8036_v50 }
 0xcb1   : > { %v8008_v41 = vadd.f32 %v8007_v58, %v8006_v5  ;;  %v7961_v14 = vmul.f32 %v7945_v38, %v12235_v7  ;;  %v8024_v8 = vadd.f32 %v8023_v13, %v8022_v36  ;;  %v8045_v56 = vadd.f32 %v8044_v44, %v8043_v43  ;;  %v10307_v13 = vld [vmem:[%s13073_s4 + $0x11] ss:$0 sm:$0xff] }
 0xcb2   : > { %v8015_v34 = vadd.f32 %v8014_v4, %v8013_v20  ;;  %v8058_v5 = vrot.slane %v8057_v32, 1  ;;  %v8051_v20 = vrot.slane %v8050_v51, 1  ;;  %v8065_v62 = vrot.slane %v8064_v1, 1 }
 0xcb3   : > { %v8009_v55 = vrot.slane %v8008_v41, 1  ;;  %v8067_v9 = vsel %vm2185_vm5, %v7961_v14, 0.0  ;;  %v8097_v6 = vsel %vm7165_vm0, %v8031_v0, %v8024_v8 }
 0xcb4   : > { %v8016_v52 = vrot.slane %v8015_v34, 1  ;;  %v8068_v15 = vrot.slane %v8067_v9, 4  ;;  %v8098_v28 = vsel %vm7167_vm2, %v8038_v27, %v8097_v6  ;;  %v8059_v21 = vadd.f32 %v8058_v5, %v8057_v32 }
 0xcb5   : > { %v8010_v12 = vadd.f32 %v8009_v55, %v8008_v41  ;;  %v8099_v25 = vsel %vm7169_vm11, %v8045_v56, %v8098_v28  ;;  %v8052_v4 = vadd.f32 %v8051_v20, %v8050_v51  ;;  %v8066_v3 = vadd.f32 %v8065_v62, %v8064_v1 }
 0xcb6   : > { %v8017_v33 = vadd.f32 %v8016_v52, %v8015_v34  ;;  %v8069_v39 = vadd.f32 %v8068_v15, %v8067_v9 }
 0xcb7   : > { %v8095_v10 = vsel %vm7175_vm14, %v8010_v12, %v8094_v23  ;;  %v8100_v22 = vsel %vm7171_vm12, %v8052_v4, %v8099_v25 }
 0xcb8   : > { %v8096_v63 = vsel %vm7177_vm15, %v8017_v33, %v8095_v10  ;;  %v8070_v58 = vrot.slane %v8069_v39, 2  ;;  %v8101_v35 = vsel %vm7173_vm13, %v8059_v21, %v8100_v22 }
 0xcb9   : > { %9838 = vmatprep.mubr.msk.f32.mxu0 %vm2185_vm5, %v8096_v63  ;;  %v8102_v41 = vsel %vm7175_vm14, %v8066_v3, %v8101_v35 }
 0xcba   : > { %v8071_v45 = vadd.f32 %v8070_v58, %v8069_v39 }
 0xcbc   : > { %v8072_v50 = vrot.slane %v8071_v45, 1 }
 0xcbe   : > { %v8073_v36 = vadd.f32 %v8072_v50, %v8071_v45  ;;  %v13082_v50 = vld [vmem:[#allocation5_spill] sm:$0xff] }
 0xcc0   : > { %v8103_v43 = vsel %vm7177_vm15, %v8073_v36, %v8102_v41 }
 0xcc1   : > { %9839 = vmatmul.mubr.msk.f32.vlgmr.msra.gmra.mxu0 %vm2185_vm5, %v8103_v43 }
 0xd2d   : > { %v9851_v24 = vpop.f32.mrf.mxu1 }
 0xd2f   : > { %v8257_v38 = vpop.f32.mrf.mxu1 }
 0xd81   : > { %v9840_v34 = vpop.f32.mrf.mxu0 }
 0xd82   : > { %v8263_v55 = vadd.f32 %v9851_v24, %v9840_v34 }
 0xd83   : > { %v8174_v46 = vpop.f32.mrf.mxu0 }
 0xd84   : > { %v8258_v61 = vadd.f32 %v8257_v38, %v8174_v46  ;;  %v8267_v52 = vadd.f32 %v10307_v13, %v8263_v55 }
 0xd86   : > { %v8266_v48 = vadd.f32 %v10307_v13, %v8258_v61  ;;  %v9260_v12 = vmul.f32 -1.442695, %v8267_v52 }
 0xd88   : > { %10186 = vtanh.f32 %v8266_v48  ;;  %v9259_v60 = vmul.f32 -1.442695, %v8266_v48 }
 0xd89   : > { %10188 = vtanh.f32 %v8267_v52 }
 0xd8a   : > { %10190 = vpow2.f32 %v9259_v60 }
 0xd8b   : > { %10192 = vpow2.f32 %v9260_v12 }
 0xd95   : > { %v10187_v54 = vpop.eup %10186 }
 0xd96   : > { %8286 = vrot.lane.b32.xlu1 %v10187_v54, %s10372_s13  ;;  %v10189_v14 = vpop.eup %10188 }
 0xd97   : > { %v10191_v23 = vpop.eup %10190 }
 0xd98   : > { %v8274_v44 = vadd.f32 1.0, %v10191_v23  ;;  %v10193_v32 = vpop.eup %10192 }
 0xd99   : > { %v8275_v33 = vadd.f32 1.0, %v10193_v32 }
 0xd9a   : > { %8288 = vrot.lane.b32.xlu1 %v10189_v14, %s10372_s13  ;;  %10194 = vrcp.f32 %v8274_v44 }
 0xd9b   : > { %10196 = vrcp.f32 %v8275_v33 }
 0xda7   : > { %v10195_v51 = vpop.eup %10194 }
 0xda8   : > { %v10197_v10 = vpop.eup %10196  ;;  %v8282_v63 = vmul.f32 %v10195_v51, %v12475_v30 }
 0xda9   : > { %v8283_v56 = vmul.f32 %v10197_v10, %v12479_v37 }
 0xe08   : > { %v8287_v1 = vpop.permute.xlu1 %8286 }
 0xe09   : > { %v8292_v9 = vmul.f32 %v10195_v51, %v8287_v1 }
 0xe0b   : > { %8296 = vrot.lane.b32.xlu0 %v8292_v9, %s10373_s14 }
 0xe0c   : > { %v8289_v0 = vpop.permute.xlu1 %8288 }
 0xe0d   : > { %v8293_v15 = vmul.f32 %v10197_v10, %v8289_v0 }
 0xe0f   : > { %8298 = vrot.lane.b32.xlu1 %v8293_v15, %s10373_s14 }
 0xe7d   : > { %v8297_v27 = vpop.permute.xlu0 %8296 }
 0xe7e   : > { %v8302_v8 = vadd.f32 %v8297_v27, %v8282_v63 }
 0xe80   : > { %10198 = vtanh.f32 %v8302_v8 }
 0xe81   : > { %v8299_v5 = vpop.permute.xlu1 %8298 }
 0xe82   : > { %v8303_v39 = vadd.f32 %v8299_v5, %v8283_v56 }
 0xe84   : > { %10200 = vtanh.f32 %v8303_v39 }
 0xe8d   : > { %v10199_v20 = vpop.eup %10198 }
 0xe8e   : > { %8308 = vrot.lane.b32.xlu0 %v10199_v20, %s10372_s13 }
 0xe91   : > { %v10201_v62 = vpop.eup %10200 }
 0xe92   : > { %8310 = vrot.lane.b32.xlu1 %v10201_v62, %s10372_s13  ;;  %s232_s13 = sand.u32 1, %s10360_s19  }
 0xe93   : > { %s9131_s15 = sshll.u32 %s232_s13, 4  ;;  %s13029_s6 = scalar_lea.sflag [#allocation3], %s232_s13 }
 0xe94   : > { %s234_s16 = scalar_lea.vmem [#allocation2], %s9131_s15 }
 0xe95   : > { %s9053_s17 = sshll.u32 %s234_s16, 4  ;;  %s13021_s17 = int_to_ptr.vmem [resolvable:$true] %s9053_s17 }
 0xe96   : > { %s10308_s7 = scalar_lea.vmem %s13021_s17, 256  ;;  %p10315_p0 = scmp.lt.s32.totalorder %s13021_s17, %s10313_s8 }
 0xe97   : > { %p10309_p11 = scmp.ne.s32.totalorder %s13021_s17, %s10308_s7  ;;  %p10316_p1 = scmp.lt.s32.totalorder %s10314_s9, %s10308_s7 }
 0xe99   : > { %p10310_p12 = pnand %p10309_p11, %p10446_p5  ;;  %p10317_p2 = por %p10316_p1, %p10315_p0 }
 0xe9b   : > { %p10311_p13 = pneg %p10310_p12 }
 0xe9d   : > { %p10318_p3 = pnand %p10317_p2, %p10311_p13 }
 0xf00   : > { %v8309_v58 = vpop.permute.xlu0 %8308 }
 0xf01   : > { %v12780_v6 = vmul.f32 %v10195_v51, %v8309_v58 }
 0xf03   : > { %v8325_v30 = vrot.slane %v12780_v6, %v11823_v31  ;;  %v8318_v3 = vcombine.high %v12780_v6, %v12780_v6 }
 0xf04   : > { %v8311_v28 = vpop.permute.xlu1 %8310 }
 0xf05   : > { %v12782_v21 = vmul.f32 %v10197_v10, %v8311_v28  ;;  %v8341_v35 = vrot.slane %v8325_v30, %v11823_v31  ;;  %v8332_v34 = vrot.slane %v8318_v3, %v11823_v31  ;;  %v8333_v38 = vcombine.high %v8325_v30, %v8325_v30 }
 0xf07   : > { %v8374_v37 = vrot.slane %v12782_v21, %v11823_v31  ;;  %v8367_v45 = vcombine.high %v12782_v21, %v12782_v21  ;;  %v8419_v46 = vrot.slane %v8341_v35, %v13082_v50  ;;  %v8363_v61 = vcombine.high %v8341_v35, %v8341_v35 }
 0xf08   : > { %v8348_v52 = vrot.slane %v8332_v34, %v11823_v31  ;;  %v8355_v54 = vrot.slane %v8333_v38, %v11823_v31  ;;  %v8334_v23 = vcombine.high %v8332_v34, %v8332_v34 }
 0xf09   : > { %v8382_v25 = vcombine.high %v8374_v37, %v8374_v37  ;;  %v8390_v4 = vrot.slane %v8374_v37, %v11823_v31  ;;  %v8381_v41 = vrot.slane %v8367_v45, %v11823_v31  ;;  %v8427_v48 = vrot.slane %v8363_v61, %v13082_v50 }
 0xf0a   : > { %v8435_v60 = vrot.slane %v8348_v52, %v13082_v50  ;;  %v8365_v12 = vcombine.high %v8355_v54, %v8355_v54  ;;  %v8423_v44 = vrot.slane %v8355_v54, %v13082_v50  ;;  %v8362_v1 = vrot.slane %v8334_v23, %v11823_v31 }
 0xf0b   : > { %v8451_v22 = vrot.slane %v8390_v4, %v13082_v50  ;;  %v8404_v36 = vrot.slane %v8382_v25, %v11823_v31  ;;  %v8412_v24 = vcombine.high %v8390_v4, %v8390_v4  ;;  %v8397_v13 = vrot.slane %v8381_v41, %v11823_v31 }
 0xf0c   : > { %v8383_v33 = vcombine.high %v8381_v41, %v8381_v41  ;;  %v8431_v51 = vrot.slane %v8365_v12, %v13082_v50  ;;  %v8364_v0 = vcombine.high %v8348_v52, %v8348_v52  ;;  %v8439_v15 = vrot.slane %v8362_v1, %v13082_v50 }
 0xf0d   : > { %8496 = vrot.lane.b32.xlu0 %v8451_v22, %s10373_s14  ;;  %v8455_v43 = vrot.slane %v8404_v36, %v13082_v50  ;;  %v8459_v55 = vrot.slane %v8412_v24, %v13082_v50  ;;  %v8467_v14 = vrot.slane %v8397_v13, %v13082_v50  ;;  %v8414_v32 = vcombine.high %v8404_v36, %v8404_v36 }
 0xf0e   : > { %v8411_v10 = vrot.slane %v8383_v33, %v11823_v31  ;;  %v8413_v63 = vcombine.high %v8397_v13, %v8397_v13  ;;  %v8366_v8 = vcombine.high %v8362_v1, %v8362_v1  ;;  %v8443_v56 = vrot.slane %v8364_v0, %v13082_v50 }
 0xf0f   : > { %8498 = vrot.lane.b32.xlu1 %v8455_v43, %s10373_s14  ;;  %v8463_v9 = vrot.slane %v8414_v32, %v13082_v50 }
 0xf10   : > { %v8471_v27 = vrot.slane %v8411_v10, %v13082_v50  ;;  %v8415_v5 = vcombine.high %v8411_v10, %v8411_v10  ;;  %v8475_v31 = vrot.slane %v8413_v63, %v13082_v50  ;;  %v8447_v39 = vrot.slane %v8366_v8, %v13082_v50 }
 0xf11   : > { %8480 = vrot.lane.b32.xlu0 %v8419_v46, %s10373_s14 }
 0xf12   : > { %v8479_v20 = vrot.slane %v8415_v5, %v13082_v50 }
 0xf13   : > { %8500 = vrot.lane.b32.xlu1 %v8459_v55, %s10373_s14 }
 0xf15   : > { %8484 = vrot.lane.b32.xlu0 %v8427_v48, %s10373_s14 }
 0xf17   : > { %8504 = vrot.lane.b32.xlu1 %v8467_v14, %s10373_s14 }
 0xf19   : > { %8488 = vrot.lane.b32.xlu0 %v8435_v60, %s10373_s14 }
 0xf1b   : > { %8482 = vrot.lane.b32.xlu1 %v8423_v44, %s10373_s14 }
 0xf1d   : > { %8486 = vrot.lane.b32.xlu0 %v8431_v51, %s10373_s14 }
 0xf1f   : > { %8502 = vrot.lane.b32.xlu1 %v8463_v9, %s10373_s14 }
 0xf21   : > { %8490 = vrot.lane.b32.xlu0 %v8439_v15, %s10373_s14 }
 0xf23   : > { %8506 = vrot.lane.b32.xlu1 %v8471_v27, %s10373_s14 }
 0xf25   : > { %8492 = vrot.lane.b32.xlu0 %v8443_v56, %s10373_s14 }
 0xf27   : > { %8508 = vrot.lane.b32.xlu1 %v8475_v31, %s10373_s14 }
 0xf29   : > { %8494 = vrot.lane.b32.xlu0 %v8447_v39, %s10373_s14 }
 0xf2b   : > { %8510 = vrot.lane.b32.xlu1 %v8479_v20, %s10373_s14 }
 0xf7f   : > { %v8497_v62 = vpop.permute.xlu0 %8496 }
 0xf80   : > { %v8536_v58 = vmul.f32 %v8497_v62, %v12136_v42 }
 0xf81   : > { %v8499_v28 = vpop.permute.xlu1 %8498 }
 0xf82   : > { %v8568_v30 = vsel %vm2185_vm5, %v8536_v58, 0.0  ;;  %v8537_v4 = vmul.f32 %v8499_v28, %v12142_v40 }
 0xf83   : > { %8569 = vadd.xlane.f32.xlu0 %v8568_v30  ;;  %v8481_v37 = vpop.permute.xlu0 %8480 }
 0xf84   : > { %v8528_v45 = vmul.f32 %v8481_v37, %v12139_v57  ;;  %v8571_v35 = vsel %vm2185_vm5, %v8537_v4, 0.0 }
 0xf85   : > { %v8501_v25 = vpop.permute.xlu1 %8500 }
 0xf86   : > { %v8544_v3 = vsel %vm2185_vm5, %v8528_v45, 0.0  ;;  %v8538_v36 = vmul.f32 %v8501_v25, %v12153_v29 }
 0xf87   : > { %8545 = vadd.xlane.f32.xlu0 %v8544_v3  ;;  %v8485_v22 = vpop.permute.xlu0 %8484 }
 0xf88   : > { %v8574_v38 = vsel %vm2185_vm5, %v8538_v36, 0.0  ;;  %v8530_v61 = vmul.f32 %v8485_v22, %v12176_v16 }
 0xf89   : > { %v8505_v50 = vpop.permute.xlu1 %8504 }
 0xf8a   : > { %v8540_v24 = vmul.f32 %v8505_v50, %v12164_v47  ;;  %v8550_v14 = vsel %vm2185_vm5, %v8530_v61, 0.0 }
 0xf8b   : > { %8572 = vadd.xlane.f32.xlu0 %v8571_v35  ;;  %v8489_v41 = vpop.permute.xlu0 %8488 }
 0xf8c   : > { %v8580_v52 = vsel %vm2185_vm5, %v8540_v24, 0.0  ;;  %v8532_v54 = vmul.f32 %v8489_v41, %v12182_v53 }
 0xf8d   : > { %v8483_v43 = vpop.permute.xlu1 %8482 }
 0xf8e   : > { %v8529_v34 = vmul.f32 %v8483_v43, %v12168_v11  ;;  %v8556_v33 = vsel %vm2185_vm5, %v8532_v54, 0.0 }
 0xf8f   : > { %8575 = vadd.xlane.f32.xlu0 %v8574_v38  ;;  %v8487_v46 = vpop.permute.xlu0 %8486 }
 0xf90   : > { %v8547_v55 = vsel %vm2185_vm5, %v8529_v34, 0.0  ;;  %v8531_v32 = vmul.f32 %v8487_v46, %v12195_v26 }
 0xf91   : > { %8548 = vadd.xlane.f32.xlu1 %v8547_v55  ;;  %v8503_v13 = vpop.permute.xlu1 %8502 }
 0xf92   : > { %v8539_v48 = vmul.f32 %v8503_v13, %v12187_v49  ;;  %v8553_v15 = vsel %vm2185_vm5, %v8531_v32, 0.0 }
 0xf93   : > { %8581 = vadd.xlane.f32.xlu0 %v8580_v52  ;;  %v8491_v60 = vpop.permute.xlu0 %8490 }
 0xf94   : > { %v8577_v44 = vsel %vm2185_vm5, %v8539_v48, 0.0  ;;  %v8533_v0 = vmul.f32 %v8491_v60, %v12208_v59 }
 0xf95   : > { %v8507_v12 = vpop.permute.xlu1 %8506  ;;  %8551 = vadd.xlane.f32.xlu1 %v8550_v14 }
 0xf96   : > { %v8541_v23 = vmul.f32 %v8507_v12, %v12201_v17  ;;  %v8559_v5 = vsel %vm2185_vm5, %v8533_v0, 0.0 }
 0xf97   : > { %8578 = vadd.xlane.f32.xlu0 %v8577_v44  ;;  %v8493_v10 = vpop.permute.xlu0 %8492 }
 0xf98   : > { %v8583_v9 = vsel %vm2185_vm5, %v8541_v23, 0.0  ;;  %v8534_v56 = vmul.f32 %v8493_v10, %v12220_v2 }
 0xf99   : > { %v8509_v51 = vpop.permute.xlu1 %8508  ;;  %8557 = vadd.xlane.f32.xlu1 %v8556_v33 }
 0xf9a   : > { %v8542_v1 = vmul.f32 %v8509_v51, %v12214_v19  ;;  %v8562_v62 = vsel %vm2185_vm5, %v8534_v56, 0.0 }
 0xf9b   : > { %8584 = vadd.xlane.f32.xlu0 %v8583_v9  ;;  %v8495_v31 = vpop.permute.xlu0 %8494 }
 0xf9c   : > { %v8586_v8 = vsel %vm2185_vm5, %v8542_v1, 0.0  ;;  %v8535_v20 = vmul.f32 %v8495_v31, %v12230_v18 }
 0xf9d   : > { %v8511_v63 = vpop.permute.xlu1 %8510  ;;  %8554 = vadd.xlane.f32.xlu1 %v8553_v15 }
 0xf9e   : > { %v8543_v27 = vmul.f32 %v8511_v63, %v12235_v7  ;;  %v8565_v58 = vsel %vm2185_vm5, %v8535_v20, 0.0 }
 0xf9f   : > { %8587 = vadd.xlane.f32.xlu0 %v8586_v8 }
 0xfa0   : > { %v8589_v39 = vsel %vm2185_vm5, %v8543_v27, 0.0 }
 0xfa1   : > { %8560 = vadd.xlane.f32.xlu1 %v8559_v5 }
 0xfa3   : > { %8590 = vadd.xlane.f32.xlu0 %v8589_v39 }
 0xfa5   : > { %8563 = vadd.xlane.f32.xlu1 %v8562_v62 }
 0xfa9   : > { %8566 = vadd.xlane.f32.xlu1 %v8565_v58 }
 0xfb9   : > { %8994 = vrot.lane.b32.xlu0 %v12782_v21, %s10373_s14 }
 0xfba   : > { %8992 = vrot.lane.b32.xlu1 %v12780_v6, %s10373_s14 }
0x100c   : > { %v8570_v28 = vpop.xlane.xlu0 %8569 }
0x100d   : > { %v8640_v30 = vrot.slane %v8570_v28, 4 }
0x100f   : > { %v8641_v37 = vmax.f32 %v8570_v28, %v8640_v30 }
0x1010   : > { %v8546_v45 = vpop.xlane.xlu0 %8545 }
0x1011   : > { %v8642_v25 = vrot.slane %v8641_v37, 2  ;;  %v8592_v4 = vrot.slane %v8546_v45, 4 }
0x1013   : > { %v8643_v3 = vmax.f32 %v8641_v37, %v8642_v25  ;;  %v8593_v22 = vmax.f32 %v8546_v45, %v8592_v4 }
0x1014   : > { %v8573_v50 = vpop.xlane.xlu0 %8572 }
0x1015   : > { %v8644_v36 = vrot.slane %v8643_v3, 1  ;;  %v8594_v35 = vrot.slane %v8593_v22, 2  ;;  %v8646_v41 = vrot.slane %v8573_v50, 4 }
0x1017   : > { %v8645_v43 = vmax.f32 %v8643_v3, %v8644_v36  ;;  %v8595_v24 = vmax.f32 %v8593_v22, %v8594_v35  ;;  %v8647_v34 = vmax.f32 %v8573_v50, %v8646_v41 }
0x1018   : > { %v8576_v38 = vpop.xlane.xlu0 %8575 }
0x1019   : > { %v8596_v21 = vrot.slane %v8595_v24, 1  ;;  %v8648_v46 = vrot.slane %v8647_v34, 2  ;;  %v8652_v61 = vrot.slane %v8576_v38, 4  ;;  %v8696_v6 = vsub.f32 %v8570_v28, %v8645_v43 }
0x101a   : > { %v8549_v55 = vpop.xlane.xlu1 %8548 }
0x101b   : > { %v8597_v13 = vmax.f32 %v8595_v24, %v8596_v21  ;;  %v8649_v48 = vmax.f32 %v8647_v34, %v8648_v46  ;;  %v8653_v52 = vmax.f32 %v8576_v38, %v8652_v61  ;;  %v8598_v54 = vrot.slane %v8549_v55, 4 }
0x101c   : > { %v12870_v14 = vpop.xlane.xlu0 %8581  ;;  %v8720_v44 = vmul.f32 1.442695, %v8696_v6 }
0x101d   : > { %v8688_v60 = vsub.f32 %v8546_v45, %v8597_v13  ;;  %v8650_v12 = vrot.slane %v8649_v48, 1  ;;  %v8654_v23 = vrot.slane %v8653_v52, 2  ;;  %v8599_v32 = vmax.f32 %v8549_v55, %v8598_v54 }
0x101e   : > { %v8664_v33 = vrot.slane %v12870_v14, 4  ;;  %v8552_v51 = vpop.xlane.xlu1 %8551 }
0x101f   : > { %v8704_v1 = vmul.f32 1.442695, %v8688_v60  ;;  %v8651_v9 = vmax.f32 %v8649_v48, %v8650_v12  ;;  %v8655_v10 = vmax.f32 %v8653_v52, %v8654_v23  ;;  %v8604_v0 = vrot.slane %v8552_v51, 4 }
0x1020   : > { %v8600_v15 = vrot.slane %v8599_v32, 2  ;;  %v8665_v63 = vmax.f32 %v12870_v14, %v8664_v33  ;;  %v8579_v27 = vpop.xlane.xlu0 %8578 }
0x1021   : > { %10202 = vpow2.f32 %v8704_v1  ;;  %v8656_v8 = vrot.slane %v8655_v10, 1  ;;  %v8605_v56 = vmax.f32 %v8552_v51, %v8604_v0  ;;  %v8658_v39 = vrot.slane %v8579_v27, 4 }
0x1022   : > { %10204 = vpow2.f32 %v8720_v44  ;;  %v8601_v5 = vmax.f32 %v8599_v32, %v8600_v15  ;;  %v8666_v31 = vrot.slane %v8665_v63, 2  ;;  %v8558_v20 = vpop.xlane.xlu1 %8557  ;;  %v8697_v62 = vsub.f32 %v8573_v50, %v8651_v9 }
0x1023   : > { %v8657_v58 = vmax.f32 %v8655_v10, %v8656_v8  ;;  %v8606_v28 = vrot.slane %v8605_v56, 2  ;;  %v8616_v30 = vrot.slane %v8558_v20, 4  ;;  %v8659_v25 = vmax.f32 %v8579_v27, %v8658_v39 }
0x1024   : > { %v8602_v37 = vrot.slane %v8601_v5, 1  ;;  %v8667_v45 = vmax.f32 %v8665_v63, %v8666_v31  ;;  %v8585_v4 = vpop.xlane.xlu0 %8584  ;;  %v8722_v21 = vmul.f32 1.442695, %v8697_v62 }
0x1025   : > { %v8698_v3 = vsub.f32 %v8576_v38, %v8657_v58  ;;  %v8607_v22 = vmax.f32 %v8605_v56, %v8606_v28  ;;  %v8617_v36 = vmax.f32 %v8558_v20, %v8616_v30  ;;  %v8660_v43 = vrot.slane %v8659_v25, 2 }
0x1026   : > { %v8603_v35 = vmax.f32 %v8601_v5, %v8602_v37  ;;  %v8668_v41 = vrot.slane %v8667_v45, 1  ;;  %v8670_v24 = vrot.slane %v8585_v4, 4  ;;  %v8555_v34 = vpop.xlane.xlu1 %8554  ;;  %10206 = vpow2.f32 %v8722_v21 }
0x1027   : > { %v8608_v46 = vrot.slane %v8607_v22, 1  ;;  %v8618_v61 = vrot.slane %v8617_v36, 2  ;;  %v8610_v6 = vrot.slane %v8555_v34, 4  ;;  %v8661_v13 = vmax.f32 %v8659_v25, %v8660_v43 }
0x1028   : > { %v8689_v50 = vsub.f32 %v8549_v55, %v8603_v35  ;;  %v8671_v48 = vmax.f32 %v8585_v4, %v8670_v24  ;;  %v8669_v52 = vmax.f32 %v8667_v45, %v8668_v41  ;;  %v8724_v23 = vmul.f32 1.442695, %v8698_v3  ;;  %v8588_v10 = vpop.xlane.xlu0 %8587 }
0x1029   : > { %v8609_v54 = vmax.f32 %v8607_v22, %v8608_v46  ;;  %v8619_v60 = vmax.f32 %v8617_v36, %v8618_v61  ;;  %v8611_v12 = vmax.f32 %v8555_v34, %v8610_v6  ;;  %v8662_v44 = vrot.slane %v8661_v13, 1 }
0x102a   : > { %v8706_v38 = vmul.f32 1.442695, %v8689_v50  ;;  %v8672_v32 = vrot.slane %v8671_v48, 2  ;;  %v8700_v55 = vsub.f32 %v12870_v14, %v8669_v52  ;;  %v8676_v62 = vrot.slane %v8588_v10, 4  ;;  %v8561_v58 = vpop.xlane.xlu1 %8560 }
0x102b   : > { %v8690_v33 = vsub.f32 %v8552_v51, %v8609_v54  ;;  %v8620_v1 = vrot.slane %v8619_v60, 1  ;;  %v8612_v9 = vrot.slane %v8611_v12, 2  ;;  %v8663_v0 = vmax.f32 %v8661_v13, %v8662_v44 }
0x102c   : > { %10208 = vpow2.f32 %v8706_v38  ;;  %v8673_v15 = vmax.f32 %v8671_v48, %v8672_v32  ;;  %v8677_v25 = vmax.f32 %v8588_v10, %v8676_v62  ;;  %v8728_v3 = vmul.f32 1.442695, %v8700_v55  ;;  %v12880_v43 = vpop.xlane.xlu0 %8590 }
0x102d   : > { %v8708_v63 = vmul.f32 1.442695, %v8690_v33  ;;  %v8621_v8 = vmax.f32 %v8619_v60, %v8620_v1  ;;  %v8613_v56 = vmax.f32 %v8611_v12, %v8612_v9  ;;  %10210 = vpow2.f32 %v8724_v23 }
0x102e   : > { %v12875_v5 = vpop.eup %10202  ;;  %v8699_v31 = vsub.f32 %v8579_v27, %v8663_v0  ;;  %v8674_v39 = vrot.slane %v8673_v15, 1  ;;  %v8622_v36 = vrot.slane %v8561_v58, 4  ;;  %v8678_v27 = vrot.slane %v8677_v25, 2  ;;  %v12892_v9 = vpop.xlane.xlu1 %8563 }
0x102f   : > { %v12877_v28 = vpop.eup %10204  ;;  %10212 = vpow2.f32 %v8708_v63  ;;  %v8692_v51 = vsub.f32 %v8558_v20, %v8621_v8  ;;  %v8614_v45 = vrot.slane %v8613_v56, 1  ;;  %v8736_v14 = vrot.slane %v12875_v5, 4 }
0x1030   : > { %v8726_v30 = vmul.f32 1.442695, %v8699_v31  ;;  %v8675_v37 = vmax.f32 %v8673_v15, %v8674_v39  ;;  %v8784_v24 = vrot.slane %v12877_v28, 4  ;;  %v8679_v46 = vmax.f32 %v8677_v25, %v8678_v27 }
0x1031   : > { %v8712_v22 = vmul.f32 1.442695, %v8692_v51  ;;  %v8615_v41 = vmax.f32 %v8613_v56, %v8614_v45  ;;  %v8623_v61 = vmax.f32 %v8561_v58, %v8622_v36  ;;  %v8737_v6 = vadd.f32 %v12875_v5, %v8736_v14 }
0x1032   : > { %10214 = vpow2.f32 %v8726_v30  ;;  %v8701_v35 = vsub.f32 %v8585_v4, %v8675_v37  ;;  %v8682_v50 = vrot.slane %v12880_v43, 4  ;;  %v8680_v48 = vrot.slane %v8679_v46, 1 }
0x1033   : > { %10216 = vpow2.f32 %v8712_v22  ;;  %v8691_v20 = vsub.f32 %v8555_v34, %v8615_v41  ;;  %v8624_v52 = vrot.slane %v8623_v61, 2  ;;  %v8785_v4 = vadd.f32 %v12877_v28, %v8784_v24  ;;  %v12886_v54 = vpop.eup %10206 }
0x1034   : > { %v8730_v21 = vmul.f32 1.442695, %v8701_v35  ;;  %10218 = vpow2.f32 %v8728_v3  ;;  %v8681_v60 = vmax.f32 %v8679_v46, %v8680_v48  ;;  %v8683_v34 = vmax.f32 %v12880_v43, %v8682_v50 }
0x1035   : > { %v8710_v13 = vmul.f32 1.442695, %v8691_v20  ;;  %v8625_v12 = vmax.f32 %v8623_v61, %v8624_v52  ;;  %v8738_v38 = vrot.slane %v8737_v6, 2  ;;  %v8786_v15 = vrot.slane %v8785_v4, 2 }
0x1036   : > { %10220 = vpow2.f32 %v8730_v21  ;;  %v8702_v32 = vsub.f32 %v8588_v10, %v8681_v60  ;;  %v8684_v1 = vrot.slane %v8683_v34, 2  ;;  %v8790_v63 = vrot.slane %v12886_v54, 4 }
0x1037   : > { %10222 = vpow2.f32 %v8710_v13  ;;  %v8626_v33 = vrot.slane %v8625_v12, 1  ;;  %v8739_v39 = vadd.f32 %v8738_v38, %v8737_v6  ;;  %v8628_v51 = vrot.slane %v12892_v9, 4  ;;  %v12920_v38 = vpop.xlane.xlu1 %8566 }
0x1038   : > { %v8732_v56 = vmul.f32 1.442695, %v8702_v32  ;;  %v8685_v62 = vmax.f32 %v8683_v34, %v8684_v1  ;;  %v8787_v3 = vadd.f32 %v8786_v15, %v8785_v4  ;;  %v8791_v22 = vadd.f32 %v12886_v54, %v8790_v63 }
0x1039   : > { %v12889_v23 = vpop.eup %10208  ;;  %v8627_v31 = vmax.f32 %v8625_v12, %v8626_v33  ;;  %v8740_v35 = vrot.slane %v8739_v39, 1  ;;  %v8629_v24 = vmax.f32 %v12892_v9, %v8628_v51 }
0x103a   : > { %v8742_v44 = vrot.slane %v12889_v23, 4  ;;  %v12894_v0 = vpop.eup %10210  ;;  %10224 = vpow2.f32 %v8732_v56  ;;  %v8686_v25 = vrot.slane %v8685_v62, 1  ;;  %v8788_v13 = vrot.slane %v8787_v3, 1 }
0x103b   : > { %v8693_v30 = vsub.f32 %v8561_v58, %v8627_v31  ;;  %v8796_v41 = vrot.slane %v12894_v0, 4  ;;  %v8792_v48 = vrot.slane %v8791_v22, 2  ;;  %v8741_v4 = vadd.f32 %v8740_v35, %v8739_v39 }
0x103c   : > { %v12896_v55 = vpop.eup %10212  ;;  %v8743_v8 = vadd.f32 %v12889_v23, %v8742_v44  ;;  %v8687_v27 = vmax.f32 %v8685_v62, %v8686_v25  ;;  %v8630_v34 = vrot.slane %v8629_v24, 2  ;;  %v8634_v39 = vrot.slane %v12920_v38, 4 }
0x103d   : > { %v8748_v10 = vrot.slane %v12896_v55, 4  ;;  %v8714_v36 = vmul.f32 1.442695, %v8693_v30  ;;  %v8797_v60 = vadd.f32 %v12894_v0, %v8796_v41  ;;  %v8793_v62 = vadd.f32 %v8792_v48, %v8791_v22 }
0x103e   : > { %v8744_v45 = vrot.slane %v8743_v8, 2  ;;  %v8703_v6 = vsub.f32 %v12880_v43, %v8687_v27  ;;  %v8631_v63 = vmax.f32 %v8629_v24, %v8630_v34 }
0x103f   : > { %v12902_v37 = vpop.eup %10214  ;;  %v8749_v21 = vadd.f32 %v12896_v55, %v8748_v10  ;;  %10226 = vpow2.f32 %v8714_v36  ;;  %v8798_v51 = vrot.slane %v8797_v60, 2  ;;  %v8635_v36 = vmax.f32 %v12920_v38, %v8634_v39 }
0x1040   : > { %v12904_v14 = vpop.eup %10216  ;;  %v8745_v46 = vadd.f32 %v8744_v45, %v8743_v8  ;;  %v8802_v61 = vrot.slane %v12902_v37, 4  ;;  %v8734_v12 = vmul.f32 1.442695, %v8703_v6  ;;  %v8789_v8 = vadd.f32 %v8788_v13, %v8787_v3 }
0x1041   : > { %v8760_v58 = vrot.slane %v12904_v14, 4  ;;  %v12911_v20 = vpop.eup %10218  ;;  %v8750_v32 = vrot.slane %v8749_v21, 2  ;;  %v8632_v10 = vrot.slane %v8631_v63, 1  ;;  %v8636_v22 = vrot.slane %v8635_v36, 2 }
0x1042   : > { %v8808_v44 = vrot.slane %v12911_v20, 4  ;;  %v8746_v1 = vrot.slane %v8745_v46, 1  ;;  %v8803_v15 = vadd.f32 %v12902_v37, %v8802_v61  ;;  %10228 = vpow2.f32 %v8734_v12 }
0x1043   : > { %v12915_v50 = vpop.eup %10220  ;;  %v8761_v33 = vadd.f32 %v12904_v14, %v8760_v58  ;;  %10230 = vrcp.f32 %v8741_v4  ;;  %v8751_v30 = vadd.f32 %v8750_v32, %v8749_v21  ;;  %v8633_v24 = vmax.f32 %v8631_v63, %v8632_v10 }
0x1044   : > { %v12917_v52 = vpop.eup %10222  ;;  %v8814_v56 = vrot.slane %v12915_v50, 4  ;;  %v8747_v41 = vadd.f32 %v8746_v1, %v8745_v46  ;;  %v8809_v3 = vadd.f32 %v12911_v20, %v8808_v44  ;;  %v8804_v27 = vrot.slane %v8803_v15, 2 }
0x1045   : > { %v8754_v43 = vrot.slane %v12917_v52, 4  ;;  %v8762_v45 = vrot.slane %v8761_v33, 2  ;;  %10232 = vrcp.f32 %v8789_v8  ;;  %v8794_v13 = vrot.slane %v8793_v62, 1 }
0x1046   : > { %v8815_v58 = vadd.f32 %v12915_v50, %v8814_v56  ;;  %v8799_v21 = vadd.f32 %v8798_v51, %v8797_v60  ;;  %v8694_v48 = vsub.f32 %v12892_v9, %v8633_v24  ;;  %v8752_v4 = vrot.slane %v8751_v30, 1 }
0x1047   : > { %v8755_v31 = vadd.f32 %v12917_v52, %v8754_v43  ;;  %v12930_v35 = vpop.eup %10224  ;;  %v8763_v12 = vadd.f32 %v8762_v45, %v8761_v33  ;;  %v8637_v46 = vmax.f32 %v8635_v36, %v8636_v22  ;;  %v8810_v44 = vrot.slane %v8809_v3, 2 }
0x1048   : > { %v8820_v6 = vrot.slane %v12930_v35, 4  ;;  %v8805_v43 = vadd.f32 %v8804_v27, %v8803_v15  ;;  %v8716_v63 = vmul.f32 1.442695, %v8694_v48  ;;  %10234 = vrcp.f32 %v8747_v41 }
0x1049   : > { %v8756_v25 = vrot.slane %v8755_v31, 2  ;;  %v8816_v56 = vrot.slane %v8815_v58, 2  ;;  %v8638_v8 = vrot.slane %v8637_v46, 1  ;;  %v8795_v39 = vadd.f32 %v8794_v13, %v8793_v62 }
0x104a   : > { %v8821_v34 = vadd.f32 %v12930_v35, %v8820_v6  ;;  %v8800_v60 = vrot.slane %v8799_v21, 1  ;;  %10236 = vpow2.f32 %v8716_v63  ;;  %v8753_v51 = vadd.f32 %v8752_v4, %v8751_v30 }
0x104b   : > { %v8757_v61 = vadd.f32 %v8756_v25, %v8755_v31  ;;  %v8764_v33 = vrot.slane %v8763_v12, 1  ;;  %v8639_v45 = vmax.f32 %v8637_v46, %v8638_v8  ;;  %v8811_v25 = vadd.f32 %v8810_v44, %v8809_v3 }
0x104c   : > { %v12937_v32 = vpop.eup %10226  ;;  %v8822_v9 = vrot.slane %v8821_v34, 2  ;;  %v8806_v36 = vrot.slane %v8805_v43, 1  ;;  %v8817_v6 = vadd.f32 %v8816_v56, %v8815_v58  ;;  %10238 = vrcp.f32 %v8795_v39 }
0x104d   : > { %v8758_v1 = vrot.slane %v8757_v61, 1  ;;  %v8766_v31 = vrot.slane %v12937_v32, 4  ;;  %v8695_v41 = vsub.f32 %v12920_v38, %v8639_v45  ;;  %v8801_v22 = vadd.f32 %v8800_v60, %v8799_v21 }
0x104e   : > { %v8823_v13 = vadd.f32 %v8822_v9, %v8821_v34  ;;  %10240 = vrcp.f32 %v8753_v51  ;;  %v8765_v4 = vadd.f32 %v8764_v33, %v8763_v12  ;;  %v8812_v46 = vrot.slane %v8811_v25, 1 }
0x104f   : > { %v8767_v10 = vadd.f32 %v12937_v32, %v8766_v31  ;;  %v8759_v24 = vadd.f32 %v8758_v1, %v8757_v61  ;;  %v12941_v15 = vpop.eup %10228  ;;  %v8718_v30 = vmul.f32 1.442695, %v8695_v41  ;;  %v8807_v3 = vadd.f32 %v8806_v36, %v8805_v43 }
0x1050   : > { %v8826_v62 = vrot.slane %v12941_v15, 4  ;;  %v10231_v48 = vpop.eup %10230  ;;  %v8818_v1 = vrot.slane %v8817_v6, 1  ;;  %v8824_v38 = vrot.slane %v8823_v13, 1  ;;  %v8813_v31 = vadd.f32 %v8812_v46, %v8811_v25 }
0x1051   : > { %v8768_v27 = vrot.slane %v8767_v10, 2  ;;  %10242 = vrcp.f32 %v8759_v24  ;;  %v8833_v34 = vmul.f32 %v10231_v48, %v12875_v5 }
0x1052   : > { %v8827_v61 = vadd.f32 %v12941_v15, %v8826_v62  ;;  %10244 = vpow2.f32 %v8718_v30  ;;  %v10233_v21 = vpop.eup %10232  ;;  %v8819_v12 = vadd.f32 %v8818_v1, %v8817_v6  ;;  %v8825_v39 = vadd.f32 %v8824_v38, %v8823_v13 }
0x1053   : > { %v8769_v63 = vadd.f32 %v8768_v27, %v8767_v10  ;;  %10246 = vrcp.f32 %v8801_v22  ;;  %v8864_v51 = vmul.f32 %v8833_v34, %v12139_v57  ;;  %v8849_v24 = vmul.f32 %v10233_v21, %v12877_v28 }
0x1054   : > { %v8828_v58 = vrot.slane %v8827_v61, 2  ;;  %10248 = vrcp.f32 %v8765_v4 }
0x1055   : > { %v8770_v44 = vrot.slane %v8769_v63, 1  ;;  %10250 = vrcp.f32 %v8807_v3  ;;  %v10235_v43 = vpop.eup %10234  ;;  %v8880_v36 = vsel %vm2185_vm5, %v8864_v51, 0.0 }
0x1056   : > { %v8829_v8 = vadd.f32 %v8828_v58, %v8827_v61  ;;  %v8835_v45 = vmul.f32 %v10235_v43, %v12889_v23  ;;  %v8881_v13 = vrot.slane %v8880_v36, 4 }
0x1057   : > { %v8771_v56 = vadd.f32 %v8770_v44, %v8769_v63  ;;  %v12947_v9 = vpop.eup %10236  ;;  %v8872_v63 = vmul.f32 %v8849_v24, %v12136_v42 }
0x1058   : > { %v8830_v60 = vrot.slane %v8829_v8, 1  ;;  %v8772_v33 = vrot.slane %v12947_v9, 4  ;;  %v8865_v57 = vmul.f32 %v8835_v45, %v12168_v11  ;;  %v8882_v58 = vadd.f32 %v8881_v13, %v8880_v36 }
0x1059   : > { %10252 = vrcp.f32 %v8771_v56  ;;  %v10239_v25 = vpop.eup %10238  ;;  %v8936_v42 = vsel %vm2185_vm5, %v8872_v63, 0.0 }
0x105a   : > { %v8831_v10 = vadd.f32 %v8830_v60, %v8829_v8  ;;  %10254 = vrcp.f32 %v8813_v31  ;;  %v8773_v5 = vadd.f32 %v12947_v9, %v8772_v33  ;;  %v8851_v4 = vmul.f32 %v10239_v25, %v12886_v54 }
0x105b   : > { %10256 = vrcp.f32 %v8819_v12  ;;  %v10241_v27 = vpop.eup %10240  ;;  %v8887_v44 = vsel %vm2185_vm5, %v8865_v57, 0.0  ;;  %v8883_v60 = vrot.slane %v8882_v58, 2 }
0x105c   : > { %10258 = vrcp.f32 %v8825_v39  ;;  %v8774_v41 = vrot.slane %v8773_v5, 2  ;;  %v8837_v30 = vmul.f32 %v10241_v27, %v12896_v55  ;;  %v8873_v54 = vmul.f32 %v8851_v4, %v12142_v40 }
0x105d   : > { %10260 = vrcp.f32 %v8831_v10  ;;  %v8888_v31 = vrot.slane %v8887_v44, 4  ;;  %v8937_v10 = vrot.slane %v8936_v42, 4 }
0x105e   : > { %v10243_v6 = vpop.eup %10242  ;;  %v8775_v62 = vadd.f32 %v8774_v41, %v8773_v5  ;;  %v8866_v55 = vmul.f32 %v8837_v30, %v12176_v16  ;;  %v8943_v25 = vsel %vm2185_vm5, %v8873_v54, 0.0 }
0x105f   : > { %v12956_v22 = vpop.eup %10244  ;;  %v8839_v3 = vmul.f32 %v10243_v6, %v12917_v52  ;;  %v8884_v6 = vadd.f32 %v8883_v60, %v8882_v58  ;;  %v8938_v13 = vadd.f32 %v8937_v10, %v8936_v42 }
0x1060   : > { %v10247_v23 = vpop.eup %10246  ;;  %v8778_v48 = vrot.slane %v12956_v22, 4  ;;  %v8776_v46 = vrot.slane %v8775_v62, 1  ;;  %v8894_v40 = vsel %vm2185_vm5, %v8866_v55, 0.0 }
0x1061   : > { %v10249_v28 = vpop.eup %10248  ;;  %v8853_v21 = vmul.f32 %v10247_v23, %v12894_v0  ;;  %v8867_v52 = vmul.f32 %v8839_v3, %v12195_v26  ;;  %v8889_v26 = vadd.f32 %v8888_v31, %v8887_v44  ;;  %v8895_v27 = vrot.slane %v8894_v40, 4 }
0x1062   : > { %v10251_v61 = vpop.eup %10250  ;;  %v8779_v11 = vadd.f32 %v12956_v22, %v8778_v48  ;;  %v8777_v38 = vadd.f32 %v8776_v46, %v8775_v62  ;;  %v8841_v34 = vmul.f32 %v10249_v28, %v12904_v14  ;;  %v8944_v23 = vrot.slane %v8943_v25, 4 }
0x1063   : > { %v8855_v39 = vmul.f32 %v10251_v61, %v12902_v37  ;;  %v8874_v33 = vmul.f32 %v8853_v21, %v12153_v29  ;;  %v8901_v5 = vsel %vm2185_vm5, %v8867_v52, 0.0  ;;  %v8890_v48 = vrot.slane %v8889_v26, 2 }
0x1064   : > { %v8780_v56 = vrot.slane %v8779_v11, 2  ;;  %10262 = vrcp.f32 %v8777_v38  ;;  %v8868_v45 = vmul.f32 %v8841_v34, %v12182_v53  ;;  %v8902_v53 = vrot.slane %v8901_v5, 4 }
0x1065   : > { %v8875_v24 = vmul.f32 %v8855_v39, %v12187_v49  ;;  %v8896_v30 = vadd.f32 %v8895_v27, %v8894_v40  ;;  %v8885_v3 = vrot.slane %v8884_v6, 1  ;;  %v8939_v38 = vrot.slane %v8938_v13, 2 }
0x1066   : > { %v10253_v1 = vpop.eup %10252  ;;  %v8781_v12 = vadd.f32 %v8780_v56, %v8779_v11  ;;  %v8908_v62 = vsel %vm2185_vm5, %v8868_v45, 0.0  ;;  %v8903_v63 = vadd.f32 %v8902_v53, %v8901_v5  ;;  %v8945_v58 = vadd.f32 %v8944_v23, %v8943_v25 }
0x1067   : > { %v10255_v8 = vpop.eup %10254  ;;  %v8843_v43 = vmul.f32 %v10253_v1, %v12937_v32  ;;  %v8891_v1 = vadd.f32 %v8890_v48, %v8889_v26  ;;  %v8897_v56 = vrot.slane %v8896_v30, 2  ;;  %v8940_v10 = vadd.f32 %v8939_v38, %v8938_v13 }
0x1068   : > { %v10257_v0 = vpop.eup %10256  ;;  %v8782_v16 = vrot.slane %v8781_v12, 1  ;;  %v8857_v41 = vmul.f32 %v10255_v8, %v12911_v20  ;;  %v8957_v20 = vsel %vm2185_vm5, %v8875_v24, 0.0  ;;  %v8904_v55 = vrot.slane %v8903_v63, 2 }
0x1069   : > { %v10259_v51 = vpop.eup %10258  ;;  %v8869_v37 = vmul.f32 %v8843_v43, %v12208_v59  ;;  %v8859_v36 = vmul.f32 %v10257_v0, %v12915_v50  ;;  %v8950_v59 = vsel %vm2185_vm5, %v8874_v33, 0.0  ;;  %v8958_v11 = vrot.slane %v8957_v20, 4 }
0x106a   : > { %v10261_v14 = vpop.eup %10260  ;;  %v8783_v32 = vadd.f32 %v8782_v16, %v8781_v12  ;;  %v8861_v29 = vmul.f32 %v10259_v51, %v12930_v35  ;;  %v8876_v35 = vmul.f32 %v8857_v41, %v12164_v47  ;;  %v8951_v46 = vrot.slane %v8950_v59, 4 }
0x106b   : > { %v8863_v57 = vmul.f32 %v10261_v14, %v12941_v15  ;;  %v8915_v50 = vsel %vm2185_vm5, %v8869_v37, 0.0  ;;  %v8877_v49 = vmul.f32 %v8859_v36, %v12201_v17  ;;  %v8909_v15 = vrot.slane %v8908_v62, 4 }
0x106c   : > { %10264 = vrcp.f32 %v8783_v32  ;;  %v8878_v4 = vmul.f32 %v8861_v29, %v12214_v19  ;;  %v8916_v61 = vrot.slane %v8915_v50, 4  ;;  %v8964_v47 = vsel %vm2185_vm5, %v8876_v35, 0.0 }
0x106d   : > { %v8879_v28 = vmul.f32 %v8863_v57, %v12235_v7  ;;  %v8971_v17 = vsel %vm2185_vm5, %v8877_v49, 0.0  ;;  %v8910_v54 = vadd.f32 %v8909_v15, %v8908_v62  ;;  %v8952_v7 = vadd.f32 %v8951_v46, %v8950_v59 }
0x106e   : > { %v8978_v19 = vsel %vm2185_vm5, %v8878_v4, 0.0  ;;  %v8917_v52 = vadd.f32 %v8916_v61, %v8915_v50  ;;  %v8959_v31 = vadd.f32 %v8958_v11, %v8957_v20  ;;  %v8972_v8 = vrot.slane %v8971_v17, 4 }
0x106f   : > { %v8985_v42 = vsel %vm2185_vm5, %v8879_v28, 0.0  ;;  %v8886_v12 = vadd.f32 %v8885_v3, %v8884_v6  ;;  %v8892_v43 = vrot.slane %v8891_v1, 1  ;;  %v8965_v39 = vrot.slane %v8964_v47, 4 }
0x1070   : > { %v8979_v0 = vrot.slane %v8978_v19, 4  ;;  %v8946_v51 = vrot.slane %v8945_v58, 2  ;;  %v8986_v16 = vrot.slane %v8985_v42, 4  ;;  %v8905_v40 = vadd.f32 %v8904_v55, %v8903_v63 }
0x1071   : > { %v10263_v44 = vpop.eup %10262  ;;  %v8953_v14 = vrot.slane %v8952_v7, 2  ;;  %v8911_v26 = vrot.slane %v8910_v54, 2  ;;  %v8918_v5 = vrot.slane %v8917_v52, 2  ;;  %v8973_v25 = vadd.f32 %v8972_v8, %v8971_v17 }
0x1072   : > { %v8845_v21 = vmul.f32 %v10263_v44, %v12947_v9  ;;  %v8898_v9 = vadd.f32 %v8897_v56, %v8896_v30  ;;  %v8966_v36 = vadd.f32 %v8965_v39, %v8964_v47  ;;  %v8980_v24 = vadd.f32 %v8979_v0, %v8978_v19 }
0x1073   : > { %v8893_v27 = vadd.f32 %v8892_v43, %v8891_v1  ;;  %v8947_v29 = vadd.f32 %v8946_v51, %v8945_v58  ;;  %v8987_v6 = vadd.f32 %v8986_v16, %v8985_v42  ;;  %v8906_v57 = vrot.slane %v8905_v40, 1 }
0x1074   : > { %v8870_v34 = vmul.f32 %v8845_v21, %v12220_v2  ;;  %v8960_v2 = vrot.slane %v8959_v31, 2  ;;  %v8899_v41 = vrot.slane %v8898_v9, 1  ;;  %v8954_v13 = vadd.f32 %v8953_v14, %v8952_v7 }
0x1075   : > { %v8912_v23 = vadd.f32 %v8911_v26, %v8910_v54  ;;  %v8919_v59 = vadd.f32 %v8918_v5, %v8917_v52  ;;  %v8974_v50 = vrot.slane %v8973_v25, 2  ;;  %v8981_v30 = vrot.slane %v8980_v24, 2 }
0x1076   : > { %v8922_v60 = vsel %vm2185_vm5, %v8870_v34, 0.0  ;;  %v8961_v48 = vadd.f32 %v8960_v2, %v8959_v31  ;;  %v8900_v35 = vadd.f32 %v8899_v41, %v8898_v9  ;;  %v8948_v63 = vrot.slane %v8947_v29, 1  ;;  %v8993_v41 = vpop.permute.xlu1 %8992 }
0x1077   : > { %v8923_v33 = vrot.slane %v8922_v60, 4  ;;  %v8988_v15 = vrot.slane %v8987_v6, 2  ;;  %v8907_v28 = vadd.f32 %v8906_v57, %v8905_v40  ;;  %v9014_v46 = vsel %vm7165_vm0, %v8893_v27, %v8886_v12 }
0x1078   : > { %v8955_v3 = vrot.slane %v8954_v13, 1  ;;  %v8920_v61 = vrot.slane %v8919_v59, 1  ;;  %v8962_v44 = vrot.slane %v8961_v48, 1  ;;  %v8975_v1 = vadd.f32 %v8974_v50, %v8973_v25 }
0x1079   : > { %v10265_v45 = vpop.eup %10264  ;;  %v8924_v37 = vadd.f32 %v8923_v33, %v8922_v60  ;;  %v8913_v38 = vrot.slane %v8912_v23, 1  ;;  %v8982_v21 = vadd.f32 %v8981_v30, %v8980_v24  ;;  %v9015_v47 = vsel %vm7167_vm2, %v8900_v35, %v9014_v46 }
0x107a   : > { %v8847_v32 = vmul.f32 %v10265_v45, %v12956_v22  ;;  %v8967_v22 = vrot.slane %v8966_v36, 2  ;;  %v8949_v19 = vadd.f32 %v8948_v63, %v8947_v29  ;;  %v8989_v55 = vadd.f32 %v8988_v15, %v8987_v6 }
0x107b   : > { %v8925_v62 = vrot.slane %v8924_v37, 2  ;;  %v9016_v54 = vsel %vm7169_vm11, %v8907_v28, %v9015_v47  ;;  %v8956_v42 = vadd.f32 %v8955_v3, %v8954_v13  ;;  %v8921_v34 = vadd.f32 %v8920_v61, %v8919_v59 }
0x107c   : > { %v8871_v53 = vmul.f32 %v8847_v32, %v12230_v18  ;;  %v8941_v18 = vrot.slane %v8940_v10, 1  ;;  %v8968_v17 = vadd.f32 %v8967_v22, %v8966_v36  ;;  %v8963_v31 = vadd.f32 %v8962_v44, %v8961_v48 }
0x107d   : > { %v8926_v49 = vadd.f32 %v8925_v62, %v8924_v37  ;;  %v8976_v8 = vrot.slane %v8975_v1, 1  ;;  %v8914_v12 = vadd.f32 %v8913_v38, %v8912_v23  ;;  %v8983_v0 = vrot.slane %v8982_v21, 1 }
0x107e   : > { %v8929_v20 = vsel %vm2185_vm5, %v8871_v53, 0.0  ;;  %v8942_v7 = vadd.f32 %v8941_v18, %v8940_v10  ;;  %v8969_v39 = vrot.slane %v8968_v17, 1  ;;  %v8990_v60 = vrot.slane %v8989_v55, 1  ;;  %v8995_v53 = vpop.permute.xlu0 %8994 }
0x107f   : > { %v8930_v4 = vrot.slane %v8929_v20, 4  ;;  %v8927_v58 = vrot.slane %v8926_v49, 1  ;;  %v9017_v16 = vsel %vm7171_vm12, %v8914_v12, %v9016_v54  ;;  %v8977_v14 = vadd.f32 %v8976_v8, %v8975_v1 }
0x1080   : > { %v9021_v51 = vsel %vm7165_vm0, %v8949_v19, %v8942_v7  ;;  %v9018_v10 = vsel %vm7173_vm13, %v8921_v34, %v9017_v16  ;;  %v8970_v5 = vadd.f32 %v8969_v39, %v8968_v17  ;;  %v8984_v2 = vadd.f32 %v8983_v0, %v8982_v21 }
0x1081   : > { %v8931_v11 = vadd.f32 %v8930_v4, %v8929_v20  ;;  %v8928_v43 = vadd.f32 %v8927_v58, %v8926_v49  ;;  %v9022_v40 = vsel %vm7167_vm2, %v8956_v42, %v9021_v51  ;;  %v8991_v32 = vadd.f32 %v8990_v60, %v8989_v55 }
0x1082   : > { %v9023_v45 = vsel %vm7169_vm11, %v8963_v31, %v9022_v40 }
0x1083   : > { %v8932_v56 = vrot.slane %v8931_v11, 2  ;;  %v9019_v26 = vsel %vm7175_vm14, %v8928_v43, %v9018_v10  ;;  %v9024_v37 = vsel %vm7171_vm12, %v8970_v5, %v9023_v45 }
0x1084   : > { %v9025_v36 = vsel %vm7173_vm13, %v8977_v14, %v9024_v37 }
0x1085   : > { %v8933_v52 = vadd.f32 %v8932_v56, %v8931_v11  ;;  %v9026_v24 = vsel %vm7175_vm14, %v8984_v2, %v9025_v36 }
0x1086   : > { %v9027_v27 = vsel %vm7177_vm15, %v8991_v32, %v9026_v24 }
0x1087   : > { %v8934_v9 = vrot.slane %v8933_v52, 1 }
0x1089   : > { %v8935_v33 = vadd.f32 %v8934_v9, %v8933_v52 }
0x108b   : > { %v9020_v25 = vsel %vm7177_vm15, %v8935_v33, %v9019_v26 }
0x108c   : > { %9028 = vrot.lane.b32.xlu1 %v9020_v25, %s10373_s14 }
0x1090   : > { %9030 = vrot.lane.b32.xlu1 %v9027_v27, %s10373_s14 }
0x10fe   : > { %v9029_v29 = vpop.permute.xlu1 %9028 }
0x10ff   : > { %v9034_v6 = vsel %vm2185_vm5, %v8993_v41, %v9029_v29 }
0x1100   : > { %9037 = vst.msk [vmem:[%s234_s16] sm:$0xff] %vm9036_vm1, %v9034_v6 }
0x1102   : > { %v9031_v57 = vpop.permute.xlu1 %9030 }
0x1103   : > { %v9035_v62 = vsel %vm2185_vm5, %v8995_v53, %v9031_v57 }
0x1104   : > { %9038 = vst.msk [vmem:[%s234_s16 + $0x8] sm:$0xff] %vm9036_vm1, %v9035_v62 }
0x1105   : > { %10321 = shalt.err (!%p10318_p3)
}
0x1106   : > { %s10322_s23 = scalar_lea.hbm %s13026_s30, 256  ;;  %s10326_s12 = scalar_lea.hbm %s13074_s5, 512 }
0x1107   : > { %p10323_p4 = scmp.ne.s32.totalorder %s13026_s30, %s10322_s23  ;;  %p10327_p9 = scmp.lt.s32.totalorder %s13026_s30, %s13074_s5 }
0x1108   : > { %p10328_p10 = scmp.lt.s32.totalorder %s10326_s12, %s10322_s23 }
0x1109   : > { %p10324_p7 = pnand %p10323_p4, %p10446_p5 }
0x110a   : > { %p10329_p11 = por %p10328_p10, %p10327_p9 }
0x110b   : > { %p10325_p8 = pneg %p10324_p7 }
0x110d   : > { %p10330_p12 = pnand %p10329_p11, %p10325_p8 }
0x110f   : > { %10333 = shalt.err (!%p10330_p12)
}
0x1110   : > { %s10376_s16 = smov 128   ;;  %s10377_s25 = smov 8  }
0x1111   : > { %9852 = dma.vmem_to_hbm [thread:$0]  (%p10446_p5), %s13021_s17, 256, %s13026_s30, %s13029_s6, %s10376_s16, %s10376_s16, %s10377_s25  }
0x1112 PF: > { %p9858_p13 = scmp.ge.s32.totalorder %s10368_s21, 2  ;;  %s9068_s14 = sand.u32 1, %s10356_s18  }
0x1113   : > { %s9069_s26 = scalar_lea.sflag [#allocation3], %s9068_s14 }
0x1114   : > { %p9855_p0 = pnand %p9858_p13, %p10450_p6 }
0x1116   : > { %p9856_p1 = pneg %p9855_p0 }
0x1118   : > { %10351 = dma.done.wait (%p9856_p1), %s9069_s26, 256  }
0x1119   : > { %10353 = vsyncadd (%p9856_p1), %s9069_s26, 4294967040  ;;  %p15_p2 = scmp.ge.s32.totalorder %s10433_s24, 4   ;;  %s13083_s18 = smov %s10360_s19 }
0x111a   : > { %s13084_s19 = smov %s10364_s20  ;;  %s13085_s20 = smov %s10444_s27 }
0x111b   : > { %s13086_s21 = smov %s10433_s24  ;;  %17 = sbr.rel (!%p15_p2) target bundleno = 3 (0x3), region = 78 }
0x1120   :  { %9074 = vsyncpa [#allocation3], 1 }
0x1121   :  { %9076 = vsyncpa [#allocation3 + $0x1], 1 }

</bundles_post_ra>
